<compile_context>
chip_gen: v5e
topology: v5e:2x2
jax: 0.10.0
libtpu: 0.0.40
codegen_flags: <defaults>
</compile_context>

<pallas_src>
import functools

import numpy as np
import jax
import jax.numpy as jnp
from jax import lax
from jax.experimental import pallas as pl
from jax.experimental.pallas import tpu as pltpu

HALO = 4      # rows of x halo consumed by the chained conv1 -> blur -> gauss.conv -> conv2
PAD_TOP = 8   # sublane-aligned zero band above row 0 in the VMEM x scratch (4 rows used)
PAD_BOT = 4   # zero band below row H-1


# ---------------------------------------------------------------------------
# Fused kernel: one (batch, H-tile) step computes deep rows [h0, h0+TH).
# Activations are (rows, W*C) slabs; convs are matmuls against banded weights.
# ---------------------------------------------------------------------------
def _fused_gauss_block_kernel(H, W, C, Cin, TH,
                              x_ref, m1_ref, mg_ref, mgc_ref, m2_ref, par_ref,
                              out_ref, xbuf):
    t = pl.program_id(1)
    h0 = t * TH
    f32 = jnp.float32
    L = W * C
    R0, R1, R2 = TH + 6, TH + 4, TH + 2

    def dot(a, b):
        return jnp.dot(a, b, preferred_element_type=f32,
                       precision=jax.lax.Precision.HIGHEST)

    # ---- stage x[n] once per batch element into a row-zero-padded VMEM scratch ----
    # (the x block is fetched by the BlockSpec pipeline only when n changes; the
    #  inner H-tile axis is "arbitrary" so the scratch persists across tiles)
    @pl.when(t == 0)
    def _():
        xbuf[:, :PAD_TOP, :] = jnp.zeros((Cin, PAD_TOP, W), f32)
        xbuf[:, PAD_TOP + H:, :] = jnp.zeros((Cin, PAD_BOT, W), f32)
        xbuf[:, PAD_TOP:PAD_TOP + H, :] = x_ref[0]

    def row_mask(rows, g_start):
        # 1.0 where the global row lies inside the true image (per-stage zero pad).
        # Cheap (rows,1) broadcast; kept unconditional (value-level, ~3 per tile).
        g = g_start + lax.broadcasted_iota(jnp.int32, (rows, 1), 0)
        return ((g >= 0) & (g < H)).astype(f32)

    s1, b1 = par_ref[0:1, :], par_ref[1:2, :]
    sg, bg = par_ref[2:3, :], par_ref[3:4, :]
    s2, b2 = par_ref[4:5, :], par_ref[5:6, :]

    # ---- stage 1: f = relu(bn1(conv1(x))) on rows [h0-3, h0+TH+3) -----------------
    f_pre = jnp.zeros((R0, L), f32)
    for ci in range(Cin):
        xw = xbuf[ci, pl.ds(h0 + (PAD_TOP - HALO), R0 + 2), :]     # (R0+2, W)
        for ky in range(3):
            f_pre = f_pre + dot(xw[ky:ky + R0, :], m1_ref[ci * 3 + ky])
    f = jnp.maximum(f_pre * s1 + b1, 0.0) * row_mask(R0, h0 - 3)

    # ---- stage 2: score = per-channel Gaussian blur on rows [h0-2, h0+TH+2) -------
    score = jnp.zeros((R1, L), f32)
    for ky in range(3):
        score = score + dot(f[ky:ky + R1, :], mg_ref[ky])
    score = score * row_mask(R1, h0 - 2)

    # ---- stage 3: atten = relu(bng(gauss.conv(cat(score, f)))) on [h0-1, h0+TH+1) -
    # (the channel concat is folded into the split banded weights mgc[0:3]/mgc[3:6])
    att = jnp.zeros((R2, L), f32)
    for ky in range(3):
        att = att + dot(score[ky:ky + R2, :], mgc_ref[ky])
        att = att + dot(f[ky + 1:ky + 1 + R2, :], mgc_ref[3 + ky])
    atten = jnp.maximum(att * sg + bg, 0.0)

    # ---- stage 4: fa = f + atten on rows [h0-1, h0+TH+1), masked -------------------
    fa = (f[2:2 + R2, :] + atten) * row_mask(R2, h0 - 1)

    # ---- stage 5: deep = relu(bn2(conv2(fa))) on rows [h0, h0+TH) ------------------
    deep = jnp.zeros((TH, L), f32)
    for ky in range(3):
        deep = deep + dot(fa[ky:ky + TH, :], m2_ref[ky])
    deep = jnp.maximum(deep * s2 + b2, 0.0)
    out_ref[0] = deep.astype(out_ref.dtype)          # lane-dense (TH, W*C) store


# ---------------------------------------------------------------------------
# Wrapper (NCHW in / NCHW out, for PyTorch parity)
# ---------------------------------------------------------------------------
@functools.partial(jax.jit, static_argnames=("tile_h",))
def conv2d_with_gauss3_forward(x_nchw, ops, *, tile_h=16):
    x = x_nchw.astype(jnp.float32)                     # stays NCHW; no transpose / pad
    N, Cin, H, W = x.shape
    L = ops["packed"].shape[1]
    C = L // W
    TH = min(tile_h, H)
    if H % TH != 0:
        raise ValueError("H must be divisible by tile_h")
    nH = H // TH

    kernel = functools.partial(_fused_gauss_block_kernel, H, W, C, Cin, TH)

    out_flat = pl.pallas_call(
        kernel,
        out_shape=jax.ShapeDtypeStruct((N, H, L), jnp.float32),
        grid=(N, nH),
        in_specs=[
            pl.BlockSpec((1, Cin, H, W), lambda n, t: (n, 0, 0, 0)),   # x[n] (fetched on n change)
            pl.BlockSpec((Cin * 3, W, L), lambda n, t: (0, 0, 0)),     # conv1 banded weights
            pl.BlockSpec((3, L, L), lambda n, t: (0, 0, 0)),           # gaussian blur banded weights
            pl.BlockSpec((6, L, L), lambda n, t: (0, 0, 0)),           # gauss.conv banded weights (score|f)
            pl.BlockSpec((3, L, L), lambda n, t: (0, 0, 0)),           # conv2 banded weights
            pl.BlockSpec((8, L), lambda n, t: (0, 0)),                 # packed BN scales / shifts
        ],
        out_specs=pl.BlockSpec((1, TH, L), lambda n, t: (n, t, 0)),
        scratch_shapes=[
            pltpu.VMEM((Cin, H + PAD_TOP + PAD_BOT, W), jnp.float32),  # row-padded x[n]
        ],
        compiler_params=pltpu.CompilerParams(
            dimension_semantics=("parallel", "arbitrary"),
            vmem_limit_bytes=32 * 1024 * 1024),
    )(x, ops["m1"], ops["mg"], ops["mgc"], ops["m2"], ops["packed"])

    # (N, H, W*C) is NHWC with (W, C) flattened on the lane axis -> NCHW for parity.
    return jnp.transpose(out_flat.reshape(N, H, W, C), (0, 3, 1, 2))


# ---------------------------------------------------------------------------
# Parameter construction (deterministic, inference-mode BN folded)
# ---------------------------------------------------------------------------
def _gauss_effective_kernel(sigma_mat, bias_mat, k=3):
    """GaussianConv2d2.__set_kernel__ followed by the sum over its 9 outputs."""
    idx = np.arange(k, dtype=np.float32)
    w = np.zeros((k, k), np.float32)
    for i in range(k):
        for j in range(k):
            kx = np.exp(-(idx - i) ** 2 / (2.0 * sigma_mat[i, j] ** 2))
            ky = np.exp(-(idx - j) ** 2 / (2.0 * sigma_mat[i, j] ** 2))
            g = np.outer(kx, ky)
            g = g / g.sum()
            w = w + (g - bias_mat[i, j])
    return w.astype(np.float32)


def _band_matrix(wk, W):
    """wk: (Co, Ci, 3) taps of one kernel row -> banded (W*Ci, W*Co) matrix that
    performs the pad-1 convolution along W (boundary zero-pad encoded as missing
    bands)."""
    Co, Ci, _ = wk.shape
    M = np.zeros((W * Ci, W * Co), np.float32)
    for xo in range(W):
        for kx in range(3):
            xi = xo + kx - 1
            if 0 <= xi < W:
                M[xi * Ci:(xi + 1) * Ci, xo * Co:(xo + 1) * Co] = wk[:, :, kx].T
    return M


def make_params(key, in_channel, out_channel, W, gauss_kernelsize=3, gauss_sigma=0.6):
    C, Cin = out_channel, in_channel
    ks = jax.random.split(key, 20)

    def rnd(kk, shape, scale=0.1):
        return np.asarray(scale * jax.random.normal(kk, shape, jnp.float32))

    def rnd_var(kk, shape):
        return 1.0 + 0.1 * np.abs(np.asarray(jax.random.normal(kk, shape, jnp.float32)))

    def fold_bn(b, gamma, beta, mean, var, eps=1e-5):
        s = (gamma / np.sqrt(var + eps)).astype(np.float32)
        return s, (beta + s * (b - mean)).astype(np.float32)

    # conv1: Conv2d(Cin, C, 3, 1, 1) + BatchNorm2d(C)
    w1, b1 = rnd(ks[0], (C, Cin, 3, 3)), rnd(ks[1], (C,))
    s1, sh1 = fold_bn(b1, 1.0 + rnd(ks[2], (C,)), rnd(ks[3], (C,)),
                      rnd(ks[4], (C,)), rnd_var(ks[5], (C,)))

    # GaussianConv2d2 effective blur kernel
    sigma = np.full((gauss_kernelsize, gauss_kernelsize), gauss_sigma, np.float32)
    gk_bias = np.asarray(jax.random.normal(ks[6], (gauss_kernelsize,) * 2, jnp.float32)) - 0.1
    wg_eff = _gauss_effective_kernel(sigma, gk_bias, gauss_kernelsize)

    # gauss.conv: Conv2d_Bn_Relu(2C, C, 3, 1, 1)
    wgc, bgc = rnd(ks[7], (C, 2 * C, 3, 3)), rnd(ks[8], (C,))
    sg, shg = fold_bn(bgc, 1.0 + rnd(ks[9], (C,)), rnd(ks[10], (C,)),
                      rnd(ks[11], (C,)), rnd_var(ks[12], (C,)))

    # conv2: Conv2d(C, C, 3, 1, 1) + BatchNorm2d(C)
    w2, b2 = rnd(ks[13], (C, C, 3, 3)), rnd(ks[14], (C,))
    s2, sh2 = fold_bn(b2, 1.0 + rnd(ks[15], (C,)), rnd(ks[16], (C,)),
                      rnd(ks[17], (C,)), rnd_var(ks[18], (C,)))

    # banded matmul operands for the fused kernel
    L = W * C
    m1 = np.stack([_band_matrix(w1[:, ci:ci + 1, ky, :], W)
                   for ci in range(Cin) for ky in range(3)])           # (Cin*3, W, L)
    eye = np.eye(C, dtype=np.float32)
    mg = np.stack([_band_matrix(np.stack([wg_eff[ky, kx] * eye for kx in range(3)], -1), W)
                   for ky in range(3)])                                # (3, L, L)
    mgc = np.stack([_band_matrix(wgc[:, :C, ky, :], W) for ky in range(3)]
                   + [_band_matrix(wgc[:, C:, ky, :], W) for ky in range(3)])  # (6, L, L)
    m2 = np.stack([_band_matrix(w2[:, :, ky, :], W) for ky in range(3)])       # (3, L, L)

    packed = np.zeros((8, L), np.float32)
    for r, v in enumerate((s1, sh1, sg, shg, s2, sh2)):
        packed[r] = np.tile(v, W)

    return dict(
        m1=jnp.asarray(m1), mg=jnp.asarray(mg), mgc=jnp.asarray(mgc),
        m2=jnp.asarray(m2), packed=jnp.asarray(packed),
        # pure-JAX reference operands
        w1_hwio=jnp.asarray(np.transpose(w1, (2, 3, 1, 0))),
        wgc_hwio=jnp.asarray(np.transpose(wgc, (2, 3, 1, 0))),
        w2_hwio=jnp.asarray(np.transpose(w2, (2, 3, 1, 0))),
        scale1=jnp.asarray(s1), shift1=jnp.asarray(sh1),
        scale_g=jnp.asarray(sg), shift_g=jnp.asarray(shg),
        scale2=jnp.asarray(s2), shift2=jnp.asarray(sh2),
        wg_eff=jnp.asarray(wg_eff))


# ---------------------------------------------------------------------------
# Pure-JAX reference (XLA convs) for correctness checking
# ---------------------------------------------------------------------------
def reference_forward(x_nchw, p):
    x = jnp.transpose(x_nchw, (0, 2, 3, 1)).astype(jnp.float32)
    C = p["w1_hwio"].shape[-1]
    prec = lax.Precision.HIGHEST

    def conv(v, w, groups=1):
        return lax.conv_general_dilated(
            v, w, (1, 1), ((1, 1), (1, 1)),
            dimension_numbers=("NHWC", "HWIO", "NHWC"),
            feature_group_count=groups, precision=prec)

    f = jnp.maximum(conv(x, p["w1_hwio"]) * p["scale1"] + p["shift1"], 0.0)
    wg_dw = jnp.tile(p["wg_eff"][:, :, None, None], (1, 1, 1, C))
    score = conv(f, wg_dw, groups=C)
    atten = jnp.maximum(conv(jnp.concatenate([score, f], -1), p["wgc_hwio"])
                        * p["scale_g"] + p["shift_g"], 0.0)
    deep = jnp.maximum(conv(f + atten, p["w2_hwio"]) * p["scale2"] + p["shift2"], 0.0)
    return jnp.transpose(deep, (0, 3, 1, 2))


if __name__ == "__main__":
    key = jax.random.PRNGKey(0)
    k_x, k_p = jax.random.split(key)

    N, Cin, H, W = 2, 4, 16, 16
    Cout = 8

    x = jax.random.normal(k_x, (N, Cin, H, W), jnp.float32)    # NCHW, PyTorch layout
    params = make_params(k_p, Cin, Cout, W, gauss_kernelsize=3, gauss_sigma=0.6)

    ref = reference_forward(x, params)

    # tile_h=16: whole image per tile (grid (2,1)); tile_h=8: exercises the H-halo /
    # persistent-x-scratch path (grid (2,2)).
    for th in (16, 8):
        out = jax.block_until_ready(conv2d_with_gauss3_forward(x, params, tile_h=th))
        assert out.shape == (N, Cout, H, W), out.shape
        assert bool(jnp.all(jnp.isfinite(out)))
        max_err = float(jnp.max(jnp.abs(out - ref)))
        assert max_err < 5e-2, f"tile_h={th}: mismatch vs reference max|err|={max_err}"
    print("KERNEL_OK")
</pallas_src>

<mosaic_0001>
module attributes {stable_mosaic.version = 11 : i64} {
  func.func @_fused_gauss_block_kernel(%arg0: i32, %arg1: i32, %arg2: memref<1x4x16x16xf32, #tpu.memory_space<vmem>>, %arg3: memref<12x16x128xf32, #tpu.memory_space<vmem>>, %arg4: memref<3x128x128xf32, #tpu.memory_space<vmem>>, %arg5: memref<6x128x128xf32, #tpu.memory_space<vmem>>, %arg6: memref<3x128x128xf32, #tpu.memory_space<vmem>>, %arg7: memref<8x128xf32, #tpu.memory_space<vmem>>, %arg8: memref<1x16x128xf32, #tpu.memory_space<vmem>>, %arg9: memref<4x28x16xf32, #tpu.memory_space<vmem>>) attributes {dimension_semantics = [#tpu.dimension_semantics<parallel>, #tpu.dimension_semantics<arbitrary>], iteration_bounds = array<i64: 2, 1>, scalar_prefetch = 0 : i64, scratch_operands = 1 : i64, tpu.core_type = #tpu.core_type<tc>, window_params = [{transform_indices = @transform_0, window_bounds = array<i64: 1, 4, 16, 16>}, {pipeline_mode = #tpu.pipeline_mode<synchronous>, transform_indices = @transform_1, window_bounds = array<i64: 12, 16, 128>}, {pipeline_mode = #tpu.pipeline_mode<synchronous>, transform_indices = @transform_2, window_bounds = array<i64: 3, 128, 128>}, {pipeline_mode = #tpu.pipeline_mode<synchronous>, transform_indices = @transform_3, window_bounds = array<i64: 6, 128, 128>}, {pipeline_mode = #tpu.pipeline_mode<synchronous>, transform_indices = @transform_4, window_bounds = array<i64: 3, 128, 128>}, {pipeline_mode = #tpu.pipeline_mode<synchronous>, transform_indices = @transform_5, window_bounds = array<i64: 8, 128>}, {transform_indices = @transform_6, window_bounds = array<i64: 1, 16, 128>}]} {
    %c16_i32 = arith.constant 16 : i32
    %0 = arith.muli %arg1, %c16_i32 : i32
    %c0_i32 = arith.constant 0 : i32
    %1 = arith.cmpi eq, %arg1, %c0_i32 : i32
    %2 = arith.extui %1 : i1 to i32
    %c0_i32_0 = arith.constant 0 : i32
    %3 = arith.cmpi ne, %2, %c0_i32_0 : i32
    scf.if %3 {
      %cst_123 = arith.constant 0.000000e+00 : f32
      %212 = vector.broadcast %cst_123 : f32 to vector<4x8x16xf32>
      %c0_124 = arith.constant 0 : index
      %c0_125 = arith.constant 0 : index
      %c0_126 = arith.constant 0 : index
      %213 = vector.load %arg9[%c0_124, %c0_125, %c0_126] : memref<4x28x16xf32, #tpu.memory_space<vmem>>, vector<4x8x16xf32>
      tpu.vector_store %arg9[%c0_124, %c0_125, %c0_126], %212 {strides = array<i32>} : memref<4x28x16xf32, #tpu.memory_space<vmem>>, vector<4x8x16xf32>,
      %cst_127 = arith.constant 0.000000e+00 : f32
      %214 = vector.broadcast %cst_127 : f32 to vector<4x4x16xf32>
      %c0_128 = arith.constant 0 : index
      %c24 = arith.constant 24 : index
      %c0_129 = arith.constant 0 : index
      %215 = vector.load %arg9[%c0_128, %c24, %c0_129] : memref<4x28x16xf32, #tpu.memory_space<vmem>>, vector<4x4x16xf32>
      tpu.vector_store %arg9[%c0_128, %c24, %c0_129], %214 {strides = array<i32>} : memref<4x28x16xf32, #tpu.memory_space<vmem>>, vector<4x4x16xf32>,
      %c0_130 = arith.constant 0 : index
      %c0_131 = arith.constant 0 : index
      %c0_132 = arith.constant 0 : index
      %c0_133 = arith.constant 0 : index
      %216 = vector.load %arg2[%c0_130, %c0_131, %c0_132, %c0_133] : memref<1x4x16x16xf32, #tpu.memory_space<vmem>>, vector<1x4x16x16xf32>
      %217 = vector.shape_cast %216 : vector<1x4x16x16xf32> to vector<4x16x16xf32>
      %c0_134 = arith.constant 0 : index
      %c8_135 = arith.constant 8 : index
      %c0_136 = arith.constant 0 : index
      %218 = vector.load %arg9[%c0_134, %c8_135, %c0_136] : memref<4x28x16xf32, #tpu.memory_space<vmem>>, vector<4x16x16xf32>
      tpu.vector_store %arg9[%c0_134, %c8_135, %c0_136], %217 {strides = array<i32>} : memref<4x28x16xf32, #tpu.memory_space<vmem>>, vector<4x16x16xf32>,
    } else {
    }
    %c0 = arith.constant 0 : index
    %c0_1 = arith.constant 0 : index
    %4 = vector.load %arg7[%c0, %c0_1] : memref<8x128xf32, #tpu.memory_space<vmem>>, vector<1x128xf32>
    %c1 = arith.constant 1 : index
    %c0_2 = arith.constant 0 : index
    %5 = vector.load %arg7[%c1, %c0_2] : memref<8x128xf32, #tpu.memory_space<vmem>>, vector<1x128xf32>
    %c2 = arith.constant 2 : index
    %c0_3 = arith.constant 0 : index
    %6 = vector.load %arg7[%c2, %c0_3] : memref<8x128xf32, #tpu.memory_space<vmem>>, vector<1x128xf32>
    %c3 = arith.constant 3 : index
    %c0_4 = arith.constant 0 : index
    %7 = vector.load %arg7[%c3, %c0_4] : memref<8x128xf32, #tpu.memory_space<vmem>>, vector<1x128xf32>
    %c4 = arith.constant 4 : index
    %c0_5 = arith.constant 0 : index
    %8 = vector.load %arg7[%c4, %c0_5] : memref<8x128xf32, #tpu.memory_space<vmem>>, vector<1x128xf32>
    %c5 = arith.constant 5 : index
    %c0_6 = arith.constant 0 : index
    %9 = vector.load %arg7[%c5, %c0_6] : memref<8x128xf32, #tpu.memory_space<vmem>>, vector<1x128xf32>
    %cst = arith.constant 0.000000e+00 : f32
    %10 = vector.broadcast %cst : f32 to vector<22x128xf32>
    %c4_i32 = arith.constant 4 : i32
    %11 = arith.addi %0, %c4_i32 : i32
    %c0_7 = arith.constant 0 : index
    %12 = arith.index_cast %11 : i32 to index
    %c0_8 = arith.constant 0 : index
    %13 = vector.load %arg9[%c0_7, %12, %c0_8] : memref<4x28x16xf32, #tpu.memory_space<vmem>>, vector<1x24x16xf32>
    %14 = vector.shape_cast %13 : vector<1x24x16xf32> to vector<24x16xf32>
    %15 = vector.extract_strided_slice %14 {offsets = [0, 0], sizes = [22, 16], strides = [1, 1]} : vector<24x16xf32> to vector<22x16xf32>
    %c0_9 = arith.constant 0 : index
    %c0_10 = arith.constant 0 : index
    %c0_11 = arith.constant 0 : index
    %16 = vector.load %arg3[%c0_9, %c0_10, %c0_11] : memref<12x16x128xf32, #tpu.memory_space<vmem>>, vector<1x16x128xf32>
    %17 = vector.shape_cast %16 : vector<1x16x128xf32> to vector<16x128xf32>
    %cst_12 = arith.constant dense<0.000000e+00> : vector<22x128xf32>
    %18 = tpu.matmul %15, %17, %cst_12 {dimension_numbers = #tpu.dot_dimension_numbers<[1], [0], [0], [1], [0, 0, 1, 1], [], []>, precision = #tpu.contract_precision<fp32>} : vector<22x16xf32>, vector<16x128xf32>, vector<22x128xf32> -> vector<22x128xf32>
    %19 = arith.addf %10, %18 : vector<22x128xf32>
    %20 = vector.extract_strided_slice %14 {offsets = [1, 0], sizes = [22, 16], strides = [1, 1]} : vector<24x16xf32> to vector<22x16xf32>
    %c1_13 = arith.constant 1 : index
    %c0_14 = arith.constant 0 : index
    %c0_15 = arith.constant 0 : index
    %21 = vector.load %arg3[%c1_13, %c0_14, %c0_15] : memref<12x16x128xf32, #tpu.memory_space<vmem>>, vector<1x16x128xf32>
    %22 = vector.shape_cast %21 : vector<1x16x128xf32> to vector<16x128xf32>
    %cst_16 = arith.constant dense<0.000000e+00> : vector<22x128xf32>
    %23 = tpu.matmul %20, %22, %cst_16 {dimension_numbers = #tpu.dot_dimension_numbers<[1], [0], [0], [1], [0, 0, 1, 1], [], []>, precision = #tpu.contract_precision<fp32>} : vector<22x16xf32>, vector<16x128xf32>, vector<22x128xf32> -> vector<22x128xf32>
    %24 = arith.addf %19, %23 : vector<22x128xf32>
    %25 = vector.extract_strided_slice %14 {offsets = [2, 0], sizes = [22, 16], strides = [1, 1]} : vector<24x16xf32> to vector<22x16xf32>
    %c2_17 = arith.constant 2 : index
    %c0_18 = arith.constant 0 : index
    %c0_19 = arith.constant 0 : index
    %26 = vector.load %arg3[%c2_17, %c0_18, %c0_19] : memref<12x16x128xf32, #tpu.memory_space<vmem>>, vector<1x16x128xf32>
    %27 = vector.shape_cast %26 : vector<1x16x128xf32> to vector<16x128xf32>
    %cst_20 = arith.constant dense<0.000000e+00> : vector<22x128xf32>
    %28 = tpu.matmul %25, %27, %cst_20 {dimension_numbers = #tpu.dot_dimension_numbers<[1], [0], [0], [1], [0, 0, 1, 1], [], []>, precision = #tpu.contract_precision<fp32>} : vector<22x16xf32>, vector<16x128xf32>, vector<22x128xf32> -> vector<22x128xf32>
    %29 = arith.addf %24, %28 : vector<22x128xf32>
    %c4_i32_21 = arith.constant 4 : i32
    %30 = arith.addi %0, %c4_i32_21 : i32
    %c1_22 = arith.constant 1 : index
    %31 = arith.index_cast %30 : i32 to index
    %c0_23 = arith.constant 0 : index
    %32 = vector.load %arg9[%c1_22, %31, %c0_23] : memref<4x28x16xf32, #tpu.memory_space<vmem>>, vector<1x24x16xf32>
    %33 = vector.shape_cast %32 : vector<1x24x16xf32> to vector<24x16xf32>
    %34 = vector.extract_strided_slice %33 {offsets = [0, 0], sizes = [22, 16], strides = [1, 1]} : vector<24x16xf32> to vector<22x16xf32>
    %c3_24 = arith.constant 3 : index
    %c0_25 = arith.constant 0 : index
    %c0_26 = arith.constant 0 : index
    %35 = vector.load %arg3[%c3_24, %c0_25, %c0_26] : memref<12x16x128xf32, #tpu.memory_space<vmem>>, vector<1x16x128xf32>
    %36 = vector.shape_cast %35 : vector<1x16x128xf32> to vector<16x128xf32>
    %cst_27 = arith.constant dense<0.000000e+00> : vector<22x128xf32>
    %37 = tpu.matmul %34, %36, %cst_27 {dimension_numbers = #tpu.dot_dimension_numbers<[1], [0], [0], [1], [0, 0, 1, 1], [], []>, precision = #tpu.contract_precision<fp32>} : vector<22x16xf32>, vector<16x128xf32>, vector<22x128xf32> -> vector<22x128xf32>
    %38 = arith.addf %29, %37 : vector<22x128xf32>
    %39 = vector.extract_strided_slice %33 {offsets = [1, 0], sizes = [22, 16], strides = [1, 1]} : vector<24x16xf32> to vector<22x16xf32>
    %c4_28 = arith.constant 4 : index
    %c0_29 = arith.constant 0 : index
    %c0_30 = arith.constant 0 : index
    %40 = vector.load %arg3[%c4_28, %c0_29, %c0_30] : memref<12x16x128xf32, #tpu.memory_space<vmem>>, vector<1x16x128xf32>
    %41 = vector.shape_cast %40 : vector<1x16x128xf32> to vector<16x128xf32>
    %cst_31 = arith.constant dense<0.000000e+00> : vector<22x128xf32>
    %42 = tpu.matmul %39, %41, %cst_31 {dimension_numbers = #tpu.dot_dimension_numbers<[1], [0], [0], [1], [0, 0, 1, 1], [], []>, precision = #tpu.contract_precision<fp32>} : vector<22x16xf32>, vector<16x128xf32>, vector<22x128xf32> -> vector<22x128xf32>
    %43 = arith.addf %38, %42 : vector<22x128xf32>
    %44 = vector.extract_strided_slice %33 {offsets = [2, 0], sizes = [22, 16], strides = [1, 1]} : vector<24x16xf32> to vector<22x16xf32>
    %c5_32 = arith.constant 5 : index
    %c0_33 = arith.constant 0 : index
    %c0_34 = arith.constant 0 : index
    %45 = vector.load %arg3[%c5_32, %c0_33, %c0_34] : memref<12x16x128xf32, #tpu.memory_space<vmem>>, vector<1x16x128xf32>
    %46 = vector.shape_cast %45 : vector<1x16x128xf32> to vector<16x128xf32>
    %cst_35 = arith.constant dense<0.000000e+00> : vector<22x128xf32>
    %47 = tpu.matmul %44, %46, %cst_35 {dimension_numbers = #tpu.dot_dimension_numbers<[1], [0], [0], [1], [0, 0, 1, 1], [], []>, precision = #tpu.contract_precision<fp32>} : vector<22x16xf32>, vector<16x128xf32>, vector<22x128xf32> -> vector<22x128xf32>
    %48 = arith.addf %43, %47 : vector<22x128xf32>
    %c4_i32_36 = arith.constant 4 : i32
    %49 = arith.addi %0, %c4_i32_36 : i32
    %c2_37 = arith.constant 2 : index
    %50 = arith.index_cast %49 : i32 to index
    %c0_38 = arith.constant 0 : index
    %51 = vector.load %arg9[%c2_37, %50, %c0_38] : memref<4x28x16xf32, #tpu.memory_space<vmem>>, vector<1x24x16xf32>
    %52 = vector.shape_cast %51 : vector<1x24x16xf32> to vector<24x16xf32>
    %53 = vector.extract_strided_slice %52 {offsets = [0, 0], sizes = [22, 16], strides = [1, 1]} : vector<24x16xf32> to vector<22x16xf32>
    %c6 = arith.constant 6 : index
    %c0_39 = arith.constant 0 : index
    %c0_40 = arith.constant 0 : index
    %54 = vector.load %arg3[%c6, %c0_39, %c0_40] : memref<12x16x128xf32, #tpu.memory_space<vmem>>, vector<1x16x128xf32>
    %55 = vector.shape_cast %54 : vector<1x16x128xf32> to vector<16x128xf32>
    %cst_41 = arith.constant dense<0.000000e+00> : vector<22x128xf32>
    %56 = tpu.matmul %53, %55, %cst_41 {dimension_numbers = #tpu.dot_dimension_numbers<[1], [0], [0], [1], [0, 0, 1, 1], [], []>, precision = #tpu.contract_precision<fp32>} : vector<22x16xf32>, vector<16x128xf32>, vector<22x128xf32> -> vector<22x128xf32>
    %57 = arith.addf %48, %56 : vector<22x128xf32>
    %58 = vector.extract_strided_slice %52 {offsets = [1, 0], sizes = [22, 16], strides = [1, 1]} : vector<24x16xf32> to vector<22x16xf32>
    %c7 = arith.constant 7 : index
    %c0_42 = arith.constant 0 : index
    %c0_43 = arith.constant 0 : index
    %59 = vector.load %arg3[%c7, %c0_42, %c0_43] : memref<12x16x128xf32, #tpu.memory_space<vmem>>, vector<1x16x128xf32>
    %60 = vector.shape_cast %59 : vector<1x16x128xf32> to vector<16x128xf32>
    %cst_44 = arith.constant dense<0.000000e+00> : vector<22x128xf32>
    %61 = tpu.matmul %58, %60, %cst_44 {dimension_numbers = #tpu.dot_dimension_numbers<[1], [0], [0], [1], [0, 0, 1, 1], [], []>, precision = #tpu.contract_precision<fp32>} : vector<22x16xf32>, vector<16x128xf32>, vector<22x128xf32> -> vector<22x128xf32>
    %62 = arith.addf %57, %61 : vector<22x128xf32>
    %63 = vector.extract_strided_slice %52 {offsets = [2, 0], sizes = [22, 16], strides = [1, 1]} : vector<24x16xf32> to vector<22x16xf32>
    %c8 = arith.constant 8 : index
    %c0_45 = arith.constant 0 : index
    %c0_46 = arith.constant 0 : index
    %64 = vector.load %arg3[%c8, %c0_45, %c0_46] : memref<12x16x128xf32, #tpu.memory_space<vmem>>, vector<1x16x128xf32>
    %65 = vector.shape_cast %64 : vector<1x16x128xf32> to vector<16x128xf32>
    %cst_47 = arith.constant dense<0.000000e+00> : vector<22x128xf32>
    %66 = tpu.matmul %63, %65, %cst_47 {dimension_numbers = #tpu.dot_dimension_numbers<[1], [0], [0], [1], [0, 0, 1, 1], [], []>, precision = #tpu.contract_precision<fp32>} : vector<22x16xf32>, vector<16x128xf32>, vector<22x128xf32> -> vector<22x128xf32>
    %67 = arith.addf %62, %66 : vector<22x128xf32>
    %c4_i32_48 = arith.constant 4 : i32
    %68 = arith.addi %0, %c4_i32_48 : i32
    %c3_49 = arith.constant 3 : index
    %69 = arith.index_cast %68 : i32 to index
    %c0_50 = arith.constant 0 : index
    %70 = vector.load %arg9[%c3_49, %69, %c0_50] : memref<4x28x16xf32, #tpu.memory_space<vmem>>, vector<1x24x16xf32>
    %71 = vector.shape_cast %70 : vector<1x24x16xf32> to vector<24x16xf32>
    %72 = vector.extract_strided_slice %71 {offsets = [0, 0], sizes = [22, 16], strides = [1, 1]} : vector<24x16xf32> to vector<22x16xf32>
    %c9 = arith.constant 9 : index
    %c0_51 = arith.constant 0 : index
    %c0_52 = arith.constant 0 : index
    %73 = vector.load %arg3[%c9, %c0_51, %c0_52] : memref<12x16x128xf32, #tpu.memory_space<vmem>>, vector<1x16x128xf32>
    %74 = vector.shape_cast %73 : vector<1x16x128xf32> to vector<16x128xf32>
    %cst_53 = arith.constant dense<0.000000e+00> : vector<22x128xf32>
    %75 = tpu.matmul %72, %74, %cst_53 {dimension_numbers = #tpu.dot_dimension_numbers<[1], [0], [0], [1], [0, 0, 1, 1], [], []>, precision = #tpu.contract_precision<fp32>} : vector<22x16xf32>, vector<16x128xf32>, vector<22x128xf32> -> vector<22x128xf32>
    %76 = arith.addf %67, %75 : vector<22x128xf32>
    %77 = vector.extract_strided_slice %71 {offsets = [1, 0], sizes = [22, 16], strides = [1, 1]} : vector<24x16xf32> to vector<22x16xf32>
    %c10 = arith.constant 10 : index
    %c0_54 = arith.constant 0 : index
    %c0_55 = arith.constant 0 : index
    %78 = vector.load %arg3[%c10, %c0_54, %c0_55] : memref<12x16x128xf32, #tpu.memory_space<vmem>>, vector<1x16x128xf32>
    %79 = vector.shape_cast %78 : vector<1x16x128xf32> to vector<16x128xf32>
    %cst_56 = arith.constant dense<0.000000e+00> : vector<22x128xf32>
    %80 = tpu.matmul %77, %79, %cst_56 {dimension_numbers = #tpu.dot_dimension_numbers<[1], [0], [0], [1], [0, 0, 1, 1], [], []>, precision = #tpu.contract_precision<fp32>} : vector<22x16xf32>, vector<16x128xf32>, vector<22x128xf32> -> vector<22x128xf32>
    %81 = arith.addf %76, %80 : vector<22x128xf32>
    %82 = vector.extract_strided_slice %71 {offsets = [2, 0], sizes = [22, 16], strides = [1, 1]} : vector<24x16xf32> to vector<22x16xf32>
    %c11 = arith.constant 11 : index
    %c0_57 = arith.constant 0 : index
    %c0_58 = arith.constant 0 : index
    %83 = vector.load %arg3[%c11, %c0_57, %c0_58] : memref<12x16x128xf32, #tpu.memory_space<vmem>>, vector<1x16x128xf32>
    %84 = vector.shape_cast %83 : vector<1x16x128xf32> to vector<16x128xf32>
    %cst_59 = arith.constant dense<0.000000e+00> : vector<22x128xf32>
    %85 = tpu.matmul %82, %84, %cst_59 {dimension_numbers = #tpu.dot_dimension_numbers<[1], [0], [0], [1], [0, 0, 1, 1], [], []>, precision = #tpu.contract_precision<fp32>} : vector<22x16xf32>, vector<16x128xf32>, vector<22x128xf32> -> vector<22x128xf32>
    %86 = arith.addf %81, %85 : vector<22x128xf32>
    %87 = vector.broadcast %4 : vector<1x128xf32> to vector<22x128xf32>
    %88 = arith.mulf %86, %87 : vector<22x128xf32>
    %89 = vector.broadcast %5 : vector<1x128xf32> to vector<22x128xf32>
    %90 = arith.addf %88, %89 : vector<22x128xf32>
    %cst_60 = arith.constant 0.000000e+00 : f32
    %91 = vector.broadcast %cst_60 : f32 to vector<22x128xf32>
    %92 = arith.maximumf %90, %91 : vector<22x128xf32>
    %c3_i32 = arith.constant 3 : i32
    %93 = arith.subi %0, %c3_i32 : i32
    %94 = tpu.iota {dimensions = array<i32: 0>} : vector<22x1xi32>
    %95 = vector.broadcast %93 : i32 to vector<22x1xi32>
    %96 = arith.addi %95, %94 : vector<22x1xi32>
    %c0_i32_61 = arith.constant 0 : i32
    %97 = vector.broadcast %c0_i32_61 : i32 to vector<22x1xi32>
    %98 = arith.cmpi sge, %96, %97 : vector<22x1xi32>
    %c16_i32_62 = arith.constant 16 : i32
    %99 = vector.broadcast %c16_i32_62 : i32 to vector<22x1xi32>
    %100 = arith.cmpi slt, %96, %99 : vector<22x1xi32>
    %101 = arith.andi %98, %100 : vector<22x1xi1>
    %102 = arith.extui %101 : vector<22x1xi1> to vector<22x1xi32>
    %103 = arith.sitofp %102 : vector<22x1xi32> to vector<22x1xf32>
    %104 = vector.broadcast %103 : vector<22x1xf32> to vector<22x128xf32>
    %105 = arith.mulf %92, %104 : vector<22x128xf32>
    %cst_63 = arith.constant 0.000000e+00 : f32
    %106 = vector.broadcast %cst_63 : f32 to vector<20x128xf32>
    %107 = vector.extract_strided_slice %105 {offsets = [0, 0], sizes = [20, 128], strides = [1, 1]} : vector<22x128xf32> to vector<20x128xf32>
    %c0_64 = arith.constant 0 : index
    %c0_65 = arith.constant 0 : index
    %c0_66 = arith.constant 0 : index
    %108 = vector.load %arg4[%c0_64, %c0_65, %c0_66] : memref<3x128x128xf32, #tpu.memory_space<vmem>>, vector<1x128x128xf32>
    %109 = vector.shape_cast %108 : vector<1x128x128xf32> to vector<128x128xf32>
    %cst_67 = arith.constant dense<0.000000e+00> : vector<20x128xf32>
    %110 = tpu.matmul %107, %109, %cst_67 {dimension_numbers = #tpu.dot_dimension_numbers<[1], [0], [0], [1], [0, 0, 1, 1], [], []>, precision = #tpu.contract_precision<fp32>} : vector<20x128xf32>, vector<128x128xf32>, vector<20x128xf32> -> vector<20x128xf32>
    %111 = arith.addf %106, %110 : vector<20x128xf32>
    %112 = vector.extract_strided_slice %105 {offsets = [1, 0], sizes = [20, 128], strides = [1, 1]} : vector<22x128xf32> to vector<20x128xf32>
    %c1_68 = arith.constant 1 : index
    %c0_69 = arith.constant 0 : index
    %c0_70 = arith.constant 0 : index
    %113 = vector.load %arg4[%c1_68, %c0_69, %c0_70] : memref<3x128x128xf32, #tpu.memory_space<vmem>>, vector<1x128x128xf32>
    %114 = vector.shape_cast %113 : vector<1x128x128xf32> to vector<128x128xf32>
    %cst_71 = arith.constant dense<0.000000e+00> : vector<20x128xf32>
    %115 = tpu.matmul %112, %114, %cst_71 {dimension_numbers = #tpu.dot_dimension_numbers<[1], [0], [0], [1], [0, 0, 1, 1], [], []>, precision = #tpu.contract_precision<fp32>} : vector<20x128xf32>, vector<128x128xf32>, vector<20x128xf32> -> vector<20x128xf32>
    %116 = arith.addf %111, %115 : vector<20x128xf32>
    %117 = vector.extract_strided_slice %105 {offsets = [2, 0], sizes = [20, 128], strides = [1, 1]} : vector<22x128xf32> to vector<20x128xf32>
    %c2_72 = arith.constant 2 : index
    %c0_73 = arith.constant 0 : index
    %c0_74 = arith.constant 0 : index
    %118 = vector.load %arg4[%c2_72, %c0_73, %c0_74] : memref<3x128x128xf32, #tpu.memory_space<vmem>>, vector<1x128x128xf32>
    %119 = vector.shape_cast %118 : vector<1x128x128xf32> to vector<128x128xf32>
    %cst_75 = arith.constant dense<0.000000e+00> : vector<20x128xf32>
    %120 = tpu.matmul %117, %119, %cst_75 {dimension_numbers = #tpu.dot_dimension_numbers<[1], [0], [0], [1], [0, 0, 1, 1], [], []>, precision = #tpu.contract_precision<fp32>} : vector<20x128xf32>, vector<128x128xf32>, vector<20x128xf32> -> vector<20x128xf32>
    %121 = arith.addf %116, %120 : vector<20x128xf32>
    %c2_i32 = arith.constant 2 : i32
    %122 = arith.subi %0, %c2_i32 : i32
    %123 = tpu.iota {dimensions = array<i32: 0>} : vector<20x1xi32>
    %124 = vector.broadcast %122 : i32 to vector<20x1xi32>
    %125 = arith.addi %124, %123 : vector<20x1xi32>
    %c0_i32_76 = arith.constant 0 : i32
    %126 = vector.broadcast %c0_i32_76 : i32 to vector<20x1xi32>
    %127 = arith.cmpi sge, %125, %126 : vector<20x1xi32>
    %c16_i32_77 = arith.constant 16 : i32
    %128 = vector.broadcast %c16_i32_77 : i32 to vector<20x1xi32>
    %129 = arith.cmpi slt, %125, %128 : vector<20x1xi32>
    %130 = arith.andi %127, %129 : vector<20x1xi1>
    %131 = arith.extui %130 : vector<20x1xi1> to vector<20x1xi32>
    %132 = arith.sitofp %131 : vector<20x1xi32> to vector<20x1xf32>
    %133 = vector.broadcast %132 : vector<20x1xf32> to vector<20x128xf32>
    %134 = arith.mulf %121, %133 : vector<20x128xf32>
    %cst_78 = arith.constant 0.000000e+00 : f32
    %135 = vector.broadcast %cst_78 : f32 to vector<18x128xf32>
    %136 = vector.extract_strided_slice %134 {offsets = [0, 0], sizes = [18, 128], strides = [1, 1]} : vector<20x128xf32> to vector<18x128xf32>
    %c0_79 = arith.constant 0 : index
    %c0_80 = arith.constant 0 : index
    %c0_81 = arith.constant 0 : index
    %137 = vector.load %arg5[%c0_79, %c0_80, %c0_81] : memref<6x128x128xf32, #tpu.memory_space<vmem>>, vector<1x128x128xf32>
    %138 = vector.shape_cast %137 : vector<1x128x128xf32> to vector<128x128xf32>
    %cst_82 = arith.constant dense<0.000000e+00> : vector<18x128xf32>
    %139 = tpu.matmul %136, %138, %cst_82 {dimension_numbers = #tpu.dot_dimension_numbers<[1], [0], [0], [1], [0, 0, 1, 1], [], []>, precision = #tpu.contract_precision<fp32>} : vector<18x128xf32>, vector<128x128xf32>, vector<18x128xf32> -> vector<18x128xf32>
    %140 = arith.addf %135, %139 : vector<18x128xf32>
    %141 = vector.extract_strided_slice %105 {offsets = [1, 0], sizes = [18, 128], strides = [1, 1]} : vector<22x128xf32> to vector<18x128xf32>
    %c3_83 = arith.constant 3 : index
    %c0_84 = arith.constant 0 : index
    %c0_85 = arith.constant 0 : index
    %142 = vector.load %arg5[%c3_83, %c0_84, %c0_85] : memref<6x128x128xf32, #tpu.memory_space<vmem>>, vector<1x128x128xf32>
    %143 = vector.shape_cast %142 : vector<1x128x128xf32> to vector<128x128xf32>
    %cst_86 = arith.constant dense<0.000000e+00> : vector<18x128xf32>
    %144 = tpu.matmul %141, %143, %cst_86 {dimension_numbers = #tpu.dot_dimension_numbers<[1], [0], [0], [1], [0, 0, 1, 1], [], []>, precision = #tpu.contract_precision<fp32>} : vector<18x128xf32>, vector<128x128xf32>, vector<18x128xf32> -> vector<18x128xf32>
    %145 = arith.addf %140, %144 : vector<18x128xf32>
    %146 = vector.extract_strided_slice %134 {offsets = [1, 0], sizes = [18, 128], strides = [1, 1]} : vector<20x128xf32> to vector<18x128xf32>
    %c1_87 = arith.constant 1 : index
    %c0_88 = arith.constant 0 : index
    %c0_89 = arith.constant 0 : index
    %147 = vector.load %arg5[%c1_87, %c0_88, %c0_89] : memref<6x128x128xf32, #tpu.memory_space<vmem>>, vector<1x128x128xf32>
    %148 = vector.shape_cast %147 : vector<1x128x128xf32> to vector<128x128xf32>
    %cst_90 = arith.constant dense<0.000000e+00> : vector<18x128xf32>
    %149 = tpu.matmul %146, %148, %cst_90 {dimension_numbers = #tpu.dot_dimension_numbers<[1], [0], [0], [1], [0, 0, 1, 1], [], []>, precision = #tpu.contract_precision<fp32>} : vector<18x128xf32>, vector<128x128xf32>, vector<18x128xf32> -> vector<18x128xf32>
    %150 = arith.addf %145, %149 : vector<18x128xf32>
    %151 = vector.extract_strided_slice %105 {offsets = [2, 0], sizes = [18, 128], strides = [1, 1]} : vector<22x128xf32> to vector<18x128xf32>
    %c4_91 = arith.constant 4 : index
    %c0_92 = arith.constant 0 : index
    %c0_93 = arith.constant 0 : index
    %152 = vector.load %arg5[%c4_91, %c0_92, %c0_93] : memref<6x128x128xf32, #tpu.memory_space<vmem>>, vector<1x128x128xf32>
    %153 = vector.shape_cast %152 : vector<1x128x128xf32> to vector<128x128xf32>
    %cst_94 = arith.constant dense<0.000000e+00> : vector<18x128xf32>
    %154 = tpu.matmul %151, %153, %cst_94 {dimension_numbers = #tpu.dot_dimension_numbers<[1], [0], [0], [1], [0, 0, 1, 1], [], []>, precision = #tpu.contract_precision<fp32>} : vector<18x128xf32>, vector<128x128xf32>, vector<18x128xf32> -> vector<18x128xf32>
    %155 = arith.addf %150, %154 : vector<18x128xf32>
    %156 = vector.extract_strided_slice %134 {offsets = [2, 0], sizes = [18, 128], strides = [1, 1]} : vector<20x128xf32> to vector<18x128xf32>
    %c2_95 = arith.constant 2 : index
    %c0_96 = arith.constant 0 : index
    %c0_97 = arith.constant 0 : index
    %157 = vector.load %arg5[%c2_95, %c0_96, %c0_97] : memref<6x128x128xf32, #tpu.memory_space<vmem>>, vector<1x128x128xf32>
    %158 = vector.shape_cast %157 : vector<1x128x128xf32> to vector<128x128xf32>
    %cst_98 = arith.constant dense<0.000000e+00> : vector<18x128xf32>
    %159 = tpu.matmul %156, %158, %cst_98 {dimension_numbers = #tpu.dot_dimension_numbers<[1], [0], [0], [1], [0, 0, 1, 1], [], []>, precision = #tpu.contract_precision<fp32>} : vector<18x128xf32>, vector<128x128xf32>, vector<18x128xf32> -> vector<18x128xf32>
    %160 = arith.addf %155, %159 : vector<18x128xf32>
    %161 = vector.extract_strided_slice %105 {offsets = [3, 0], sizes = [18, 128], strides = [1, 1]} : vector<22x128xf32> to vector<18x128xf32>
    %c5_99 = arith.constant 5 : index
    %c0_100 = arith.constant 0 : index
    %c0_101 = arith.constant 0 : index
    %162 = vector.load %arg5[%c5_99, %c0_100, %c0_101] : memref<6x128x128xf32, #tpu.memory_space<vmem>>, vector<1x128x128xf32>
    %163 = vector.shape_cast %162 : vector<1x128x128xf32> to vector<128x128xf32>
    %cst_102 = arith.constant dense<0.000000e+00> : vector<18x128xf32>
    %164 = tpu.matmul %161, %163, %cst_102 {dimension_numbers = #tpu.dot_dimension_numbers<[1], [0], [0], [1], [0, 0, 1, 1], [], []>, precision = #tpu.contract_precision<fp32>} : vector<18x128xf32>, vector<128x128xf32>, vector<18x128xf32> -> vector<18x128xf32>
    %165 = arith.addf %160, %164 : vector<18x128xf32>
    %166 = vector.broadcast %6 : vector<1x128xf32> to vector<18x128xf32>
    %167 = arith.mulf %165, %166 : vector<18x128xf32>
    %168 = vector.broadcast %7 : vector<1x128xf32> to vector<18x128xf32>
    %169 = arith.addf %167, %168 : vector<18x128xf32>
    %cst_103 = arith.constant 0.000000e+00 : f32
    %170 = vector.broadcast %cst_103 : f32 to vector<18x128xf32>
    %171 = arith.maximumf %169, %170 : vector<18x128xf32>
    %172 = vector.extract_strided_slice %105 {offsets = [2, 0], sizes = [18, 128], strides = [1, 1]} : vector<22x128xf32> to vector<18x128xf32>
    %173 = arith.addf %172, %171 : vector<18x128xf32>
    %c1_i32 = arith.constant 1 : i32
    %174 = arith.subi %0, %c1_i32 : i32
    %175 = tpu.iota {dimensions = array<i32: 0>} : vector<18x1xi32>
    %176 = vector.broadcast %174 : i32 to vector<18x1xi32>
    %177 = arith.addi %176, %175 : vector<18x1xi32>
    %c0_i32_104 = arith.constant 0 : i32
    %178 = vector.broadcast %c0_i32_104 : i32 to vector<18x1xi32>
    %179 = arith.cmpi sge, %177, %178 : vector<18x1xi32>
    %c16_i32_105 = arith.constant 16 : i32
    %180 = vector.broadcast %c16_i32_105 : i32 to vector<18x1xi32>
    %181 = arith.cmpi slt, %177, %180 : vector<18x1xi32>
    %182 = arith.andi %179, %181 : vector<18x1xi1>
    %183 = arith.extui %182 : vector<18x1xi1> to vector<18x1xi32>
    %184 = arith.sitofp %183 : vector<18x1xi32> to vector<18x1xf32>
    %185 = vector.broadcast %184 : vector<18x1xf32> to vector<18x128xf32>
    %186 = arith.mulf %173, %185 : vector<18x128xf32>
    %cst_106 = arith.constant 0.000000e+00 : f32
    %187 = vector.broadcast %cst_106 : f32 to vector<16x128xf32>
    %188 = vector.extract_strided_slice %186 {offsets = [0, 0], sizes = [16, 128], strides = [1, 1]} : vector<18x128xf32> to vector<16x128xf32>
    %c0_107 = arith.constant 0 : index
    %c0_108 = arith.constant 0 : index
    %c0_109 = arith.constant 0 : index
    %189 = vector.load %arg6[%c0_107, %c0_108, %c0_109] : memref<3x128x128xf32, #tpu.memory_space<vmem>>, vector<1x128x128xf32>
    %190 = vector.shape_cast %189 : vector<1x128x128xf32> to vector<128x128xf32>
    %cst_110 = arith.constant dense<0.000000e+00> : vector<16x128xf32>
    %191 = tpu.matmul %188, %190, %cst_110 {dimension_numbers = #tpu.dot_dimension_numbers<[1], [0], [0], [1], [0, 0, 1, 1], [], []>, precision = #tpu.contract_precision<fp32>} : vector<16x128xf32>, vector<128x128xf32>, vector<16x128xf32> -> vector<16x128xf32>
    %192 = arith.addf %187, %191 : vector<16x128xf32>
    %193 = vector.extract_strided_slice %186 {offsets = [1, 0], sizes = [16, 128], strides = [1, 1]} : vector<18x128xf32> to vector<16x128xf32>
    %c1_111 = arith.constant 1 : index
    %c0_112 = arith.constant 0 : index
    %c0_113 = arith.constant 0 : index
    %194 = vector.load %arg6[%c1_111, %c0_112, %c0_113] : memref<3x128x128xf32, #tpu.memory_space<vmem>>, vector<1x128x128xf32>
    %195 = vector.shape_cast %194 : vector<1x128x128xf32> to vector<128x128xf32>
    %cst_114 = arith.constant dense<0.000000e+00> : vector<16x128xf32>
    %196 = tpu.matmul %193, %195, %cst_114 {dimension_numbers = #tpu.dot_dimension_numbers<[1], [0], [0], [1], [0, 0, 1, 1], [], []>, precision = #tpu.contract_precision<fp32>} : vector<16x128xf32>, vector<128x128xf32>, vector<16x128xf32> -> vector<16x128xf32>
    %197 = arith.addf %192, %196 : vector<16x128xf32>
    %198 = vector.extract_strided_slice %186 {offsets = [2, 0], sizes = [16, 128], strides = [1, 1]} : vector<18x128xf32> to vector<16x128xf32>
    %c2_115 = arith.constant 2 : index
    %c0_116 = arith.constant 0 : index
    %c0_117 = arith.constant 0 : index
    %199 = vector.load %arg6[%c2_115, %c0_116, %c0_117] : memref<3x128x128xf32, #tpu.memory_space<vmem>>, vector<1x128x128xf32>
    %200 = vector.shape_cast %199 : vector<1x128x128xf32> to vector<128x128xf32>
    %cst_118 = arith.constant dense<0.000000e+00> : vector<16x128xf32>
    %201 = tpu.matmul %198, %200, %cst_118 {dimension_numbers = #tpu.dot_dimension_numbers<[1], [0], [0], [1], [0, 0, 1, 1], [], []>, precision = #tpu.contract_precision<fp32>} : vector<16x128xf32>, vector<128x128xf32>, vector<16x128xf32> -> vector<16x128xf32>
    %202 = arith.addf %197, %201 : vector<16x128xf32>
    %203 = vector.broadcast %8 : vector<1x128xf32> to vector<16x128xf32>
    %204 = arith.mulf %202, %203 : vector<16x128xf32>
    %205 = vector.broadcast %9 : vector<1x128xf32> to vector<16x128xf32>
    %206 = arith.addf %204, %205 : vector<16x128xf32>
    %cst_119 = arith.constant 0.000000e+00 : f32
    %207 = vector.broadcast %cst_119 : f32 to vector<16x128xf32>
    %208 = arith.maximumf %206, %207 : vector<16x128xf32>
    %c0_120 = arith.constant 0 : index
    %c0_121 = arith.constant 0 : index
    %c0_122 = arith.constant 0 : index
    %209 = vector.load %arg8[%c0_120, %c0_121, %c0_122] : memref<1x16x128xf32, #tpu.memory_space<vmem>>, vector<1x16x128xf32>
    %210 = vector.shape_cast %209 : vector<1x16x128xf32> to vector<16x128xf32>
    %211 = vector.shape_cast %208 : vector<16x128xf32> to vector<1x16x128xf32>
    tpu.vector_store %arg8[%c0_120, %c0_121, %c0_122], %211 {strides = array<i32>} : memref<1x16x128xf32, #tpu.memory_space<vmem>>, vector<1x16x128xf32>,
    return
  }
  func.func @transform_0(%arg0: i32, %arg1: i32) -> (i32, i32, i32, i32) {
    %c0_i32 = arith.constant 0 : i32
    %c0_i32_0 = arith.constant 0 : i32
    %c0_i32_1 = arith.constant 0 : i32
    %c0_i32_2 = arith.constant 0 : i32
    return %arg0, %c0_i32, %c0_i32_0, %c0_i32_1 : i32, i32, i32, i32
  }
  func.func @transform_1(%arg0: i32, %arg1: i32) -> (i32, i32, i32) {
    %c0_i32 = arith.constant 0 : i32
    %c0_i32_0 = arith.constant 0 : i32
    %c0_i32_1 = arith.constant 0 : i32
    %c0_i32_2 = arith.constant 0 : i32
    return %c0_i32, %c0_i32_0, %c0_i32_1 : i32, i32, i32
  }
  func.func @transform_2(%arg0: i32, %arg1: i32) -> (i32, i32, i32) {
    %c0_i32 = arith.constant 0 : i32
    %c0_i32_0 = arith.constant 0 : i32
    %c0_i32_1 = arith.constant 0 : i32
    %c0_i32_2 = arith.constant 0 : i32
    return %c0_i32, %c0_i32_0, %c0_i32_1 : i32, i32, i32
  }
  func.func @transform_3(%arg0: i32, %arg1: i32) -> (i32, i32, i32) {
    %c0_i32 = arith.constant 0 : i32
    %c0_i32_0 = arith.constant 0 : i32
    %c0_i32_1 = arith.constant 0 : i32
    %c0_i32_2 = arith.constant 0 : i32
    return %c0_i32, %c0_i32_0, %c0_i32_1 : i32, i32, i32
  }
  func.func @transform_4(%arg0: i32, %arg1: i32) -> (i32, i32, i32) {
    %c0_i32 = arith.constant 0 : i32
    %c0_i32_0 = arith.constant 0 : i32
    %c0_i32_1 = arith.constant 0 : i32
    %c0_i32_2 = arith.constant 0 : i32
    return %c0_i32, %c0_i32_0, %c0_i32_1 : i32, i32, i32
  }
  func.func @transform_5(%arg0: i32, %arg1: i32) -> (i32, i32) {
    %c0_i32 = arith.constant 0 : i32
    %c0_i32_0 = arith.constant 0 : i32
    %c0_i32_1 = arith.constant 0 : i32
    return %c0_i32, %c0_i32_0 : i32, i32
  }
  func.func @transform_6(%arg0: i32, %arg1: i32) -> (i32, i32, i32) {
    %c0_i32 = arith.constant 0 : i32
    %c0_i32_0 = arith.constant 0 : i32
    return %arg0, %arg1, %c0_i32 : i32, i32, i32
  }
}

</mosaic_0001>

<bundles_post_ra>
// kernel: conv2d_with_gauss3_forward.1
= control target key start
LH: loop header
LB: loop body
LE: loop exit
PB: predicated region body
PF: predicated region fallthrough
CT: control target
= control target key end

     0   :  { %11 = vsyncpa [#allocation4], 0  ;;  %s13757_s0 = inlined_call_operand.hbm [shape: f32[2,4,16,16], index: 0, kind: input, shape index: {}]   ;;  %s13758_s1 = inlined_call_operand.hbm [shape: f32[12,16,128], index: 1, kind: input, shape index: {}]   ;;  %s13759_s2 = inlined_call_operand.hbm [shape: f32[3,128,128], index: 2, kind: input, shape index: {}]   ;;  %s13760_s3 = inlined_call_operand.hbm [shape: f32[6,128,128], index: 3, kind: input, shape index: {}]   ;;  %s13761_s4 = inlined_call_operand.hbm [shape: f32[3,128,128], index: 4, kind: input, shape index: {}]   ;;  %s13762_s5 = inlined_call_operand.hbm [shape: f32[8,128], index: 5, kind: input, shape index: {}]   ;;  %s13763_s6 = inlined_call_operand.vmem [shape: f32[2,16,128], index: 6, kind: output, shape index: {}]  }
   0x1   :  { %13 = vsyncpa [#allocation4 + $0x1], 0 }
   0x2   :  { %14 = vsyncpa [#allocation6], 0 }
   0x3   :  { %15 = vsyncpa [#allocation9], 0 }
   0x4   :  { %16 = vsyncpa [#allocation12], 0  ;;  %s9042_s21 = smov 0   ;;  %s9044_s22 = smov 0  }
   0x5   :  { %s9046_s23 = smov 0   ;;  %s9048_s24 = smov 0  }
   0x6   :  { %s9050_s25 = smov 0   ;;  %s9052_s26 = smov 0  }
   0x7 LB: > { %s8595_s27 = sadd.s32 4294967295, %s8996_s26   ;;  %p8597_p0 = scmp.ge.s32.totalorder %s8996_s26, 1  ;;  %s8996_s26 = sphi %s9052_s26, %s22_s26   ;;  %s8992_s25 = sphi %s9050_s25, %s14540_s25   ;;  %s8988_s24 = sphi %s9048_s24, %s14539_s24   ;;  %s8984_s23 = sphi %s9046_s23, %s14538_s23   ;;  %s8980_s22 = sphi %s9044_s22, %s14537_s22   ;;  %s8976_s21 = sphi %s9042_s21, %s14536_s21  }
   0x8   : > { %p9074_p1 = scmp.eq.s32.totalorder %s8595_s27, 0  ;;  %p198_p2 = scmp.lt.s32.totalorder %s8996_s26, 3 }
   0x9   : > { %s209_s7 = sshll.u32 %s13758_s1, 4  ;;  %s8998_s9 = smov [#allocation5]   ;;  %s210_s7 = int_to_ptr.hbm [resolvable:$true] %s209_s7 }
   0xa   : > { %p9082_p3 = pnand %p8597_p0, %p198_p2  ;;  %s211_s10 = sshll.u32 %s8998_s9, 4  ;;  %s212_s10 = int_to_ptr.vmem [resolvable:$true] %s211_s10 }
   0xb   : > { %s237_s14 = sshll.u32 %s13760_s3, 4  ;;  %s8999_s15 = smov 128   ;;  %s238_s14 = int_to_ptr.hbm [resolvable:$true] %s237_s14 }
   0xc   : > { %p8660_p4 = pneg %p9082_p3  ;;  %s9000_s16 = smov 8  }
   0xd   : > { %s9001_s17 = smov [#allocation8]   ;;  %s223_s27 = sshll.u32 %s13759_s2, 4  ;;  %s224_s27 = int_to_ptr.hbm [resolvable:$true] %s223_s27 }
   0xe   : > { %p9090_p5 = pnand %p8660_p4, %p9074_p1  ;;  %s239_s18 = sshll.u32 %s9001_s17, 4  ;;  %s240_s18 = int_to_ptr.vmem [resolvable:$true] %s239_s18 }
   0xf   : > { %s251_s9 = sshll.u32 %s13761_s4, 4  ;;  %s9003_s12 = smov [#allocation10]   ;;  %s252_s9 = int_to_ptr.hbm [resolvable:$true] %s251_s9 }
  0x10   : > { %8663 = dma.hbm_to_vmem [thread:$0]  (!%p9090_p5), %s210_s7, 3072, %s212_s10, [#allocation6], %s8999_s15, %s8999_s15, %s9000_s16  }
  0x11   : > { %8669 = dma.hbm_to_vmem [thread:$0]  (!%p9090_p5), %s238_s14, 12288, %s240_s18, [#allocation9], %s8999_s15, %s8999_s15, %s9000_s16  }
  0x12   : > { %s9002_s7 = smov [#allocation7]   ;;  %s253_s13 = sshll.u32 %s9003_s12, 4  ;;  %s254_s13 = int_to_ptr.vmem [resolvable:$true] %s253_s13 }
  0x13   : > { %s225_s10 = sshll.u32 %s9002_s7, 4  ;;  %s266_s18 = sshll.u32 %s13762_s5, 4  ;;  %s226_s10 = int_to_ptr.vmem [resolvable:$true] %s225_s10  ;;  %s267_s18 = int_to_ptr.hbm [resolvable:$true] %s266_s18 }
  0x14   : > { %8666 = dma.hbm_to_vmem [thread:$0]  (!%p9090_p5), %s224_s27, 6144, %s226_s10, [#allocation6], %s8999_s15, %s8999_s15, %s9000_s16  }
  0x15   : > { %8672 = dma.hbm_to_vmem [thread:$0]  (!%p9090_p5), %s252_s9, 6144, %s254_s13, [#allocation9], %s8999_s15, %s8999_s15, %s9000_s16  }
  0x16   : > { %s9004_s19 = smov [#allocation11]   ;;  %s34_s27 = sadd.s32 1, %s8992_s25 }
  0x17   : > { %s268_s20 = sshll.u32 %s9004_s19, 4  ;;  %p36_p6 = scmp.ge.s32.totalorder %s34_s27, 2  ;;  %s269_s20 = int_to_ptr.vmem [resolvable:$true] %s268_s20 }
  0x18   : > { %8675 = dma.hbm_to_vmem [thread:$0]  (!%p9090_p5), %s267_s18, 128, %s269_s20, [#allocation12]  }
  0x19   : > { %p48_p7 = scmp.ne.s32.totalorder %s8984_s23, %s8980_s22  ;;  %p49_p8 = scmp.eq.s32.totalorder %s8996_s26, 0 }
  0x1a   : > { %s14542_s27 = smov (%p36_p6, %s34_s27), 0  ;;  %s41_s29 = sadd.s32 1, %s8984_s23 }
  0x1b   : > { %p54_p9 = scmp.ne.s32.totalorder %s8980_s22, %s8976_s21  ;;  %s38_s30 = ssub.s32 %s8992_s25, %s14542_s27 }
  0x1c   : > { %p9139_p10 = por %p49_p8, %p48_p7  ;;  %p39_p11 = scmp.eq.s32.totalorder %s38_s30, 0 }
  0x1d   : > { %p9145_p12 = por %p9074_p1, %p54_p9  ;;  %s279_s7 = sand.u32 1, %s8984_s23  }
  0x1e   : > { %s8636_s10 = sshll.u32 %s8992_s25, 6  ;;  %p8685_p13 = scmp.lt.s32.totalorder %s8996_s26, 2 }
  0x1f   : > { %s9152_s12 = scalar_select %p39_p11, %s8984_s23, %s41_s29  }
  0x20   : > { %s8604_s13 = sshll.u32 %s279_s7, 6  ;;  %s288_s17 = scalar_lea.hbm %s13757_s0, %s8636_s10 }
  0x21   : > { %s289_s18 = sshll.u32 %s288_s17, 4  ;;  %s283_s19 = scalar_lea.vmem [#allocation3], %s8604_s13  ;;  %s290_s18 = int_to_ptr.hbm [resolvable:$true] %s289_s18 }
  0x22   : > { %s291_s20 = sshll.u32 %s283_s19, 4  ;;  %p8677_p0 = pnand %p8685_p13, %p9139_p10  ;;  %s292_s20 = int_to_ptr.vmem [resolvable:$true] %s291_s20 }
  0x23   : > { %s280_s30 = scalar_lea.sflag [#allocation4], %s279_s7  ;;  %303 = sbr.rel (%p9082_p3) target bundleno = 1577 (0x629), region = 44 }
  0x24   : > { %8679 = dma.hbm_to_vmem [thread:$0]  (!%p8677_p0), %s290_s18, 1024, %s292_s20, %s280_s30, %s8999_s15, %s8999_s15, %s9000_s16  }
  0x28   : > { %s305_s29 = sand.u32 1, %s8980_s22  }
  0x29   : > { %s8608_s14 = sshll.u32 %s305_s29, 6  ;;  %s306_s10 = scalar_lea.sflag [#allocation4], %s305_s29 }
  0x2a   : > { %s9166_s21 = scalar_lea.vmem [#allocation3], %s8608_s14 }
  0x2b   : > { %8959 = dma.done.wait (%p9145_p12), %s306_s10, 1024  }
  0x2c   : > { %8961 = vsyncadd (%p9145_p12), %s306_s10, 4294966272 }
  0x2d   : > { %8963 = dma.done.wait (%p9074_p1), [#allocation6], 9216  }
  0x2e   : > { %8965 = vsyncadd (%p9074_p1), [#allocation6], 4294958080 }
  0x2f   : > { %8967 = dma.done.wait (%p9074_p1), [#allocation9], 18432  }
  0x30   : > { %8969 = vsyncadd (%p9074_p1), [#allocation9], 4294948864 }
  0x31   : > { %8971 = dma.done.wait (%p9074_p1), [#allocation12], 128  }
  0x32   : > { %8973 = vsyncadd (%p9074_p1), [#allocation12], 4294967168  ;;  %vm383_vm0 = vcmask 130048   ;;  %v13764_v0 = vmov 0.0   ;;  %vm388_vm1 = vcmask 125952   ;;  %v424_v1 = vld [vmem:[#allocation5 + $0x18] sm:$0xff] }
  0x33   : > { %384 = vst.msk [vmem:[#allocation2] sm:$0xff] %vm383_vm0, %v13764_v0  ;;  %v423_v2 = vld [vmem:[#allocation5 + $0x10] sm:$0xff]  ;;  %v393_v3 = vld [vmem:[%s9166_s21] sm:$0xff]  ;;  %v455_v4 = vand.u32 4294901760, %v424_v1  ;;  %v394_v6 = vld [vmem:[%s9166_s21 + $0x8] sm:$0xff]  ;;  %vm428_vm2 = vcmask 1046528  }
  0x34   : > { %385 = vst.msk [vmem:[#allocation2 + $0x20] sm:$0xff] %vm383_vm0, %v13764_v0  ;;  %v457_v5 = vand.u32 4294901760, %v423_v2  ;;  %v421_v7 = vld [vmem:[#allocation5 + $0x8] sm:$0xff]  ;;  %v420_v9 = vld [vmem:[#allocation5] sm:$0xff]  ;;  %vm892_vm3 = vcmask 1045504   ;;  %vm6765_vm8 = vcmask 1044480  }
  0x35   : > { %386 = vst.msk [vmem:[#allocation2 + $0x40] sm:$0xff] %vm383_vm0, %v13764_v0  ;;  %v9202_v8 = vand.u32 4294901760, %v421_v7  ;;  %v499_v10 = vsub.f32 %v424_v1, %v455_v4  ;;  %574 = vmatpush.msra.mxu3 %v455_v4  ;;  %456 = vmatpush.msra.mxu0 %v455_v4  ;;  %v684_v12 = vand.u32 4294901760, %v420_v9  ;;  %vm7194_vm11 = vcmask 1041408   ;;  %p369_p1 = scmp.lt.s32.totalorder %s8988_s24, 1 }
  0x36   : > { %387 = vst.msk [vmem:[#allocation2 + $0x60] sm:$0xff] %vm383_vm0, %v13764_v0  ;;  %v505_v11 = vsub.f32 %v423_v2, %v457_v5  ;;  %vm8051_vm12 = vcmask 1043456  }
  0x37   : > { %389 = vst.msk [vmem:[#allocation2 + $0x18] sm:$0xf] %vm388_vm1, %v13764_v0  ;;  %v9207_v13 = vsub.f32 %v421_v7, %v9202_v8  ;;  %539 = vmatpush.msra.mxu2 %v499_v10  ;;  %v500_v14 = vand.u32 4294901760, %v499_v10  ;;  %576 = vmatpush.msra.mxu3 %v457_v5  ;;  %v9209_v16 = vsub.f32 %v420_v9, %v684_v12  ;;  %v891_v7 = vld [vmem:[#allocation5 + $0x28] sm:$0xff]  ;;  %s14544_s24 = smov (!%p369_p1, %s8988_s24), 1 }
  0x38   : > { %390 = vst.msk [vmem:[#allocation2 + $0x38] sm:$0xf] %vm388_vm1, %v13764_v0  ;;  %v506_v15 = vand.u32 4294901760, %v505_v11  ;;  %458 = vmatpush.msra.mxu0 %v457_v5  ;;  %s8637_s28 = sshll.u32 %s14544_s24, 4 }
  0x39   : > { %391 = vst.msk [vmem:[#allocation2 + $0x58] sm:$0xf] %vm388_vm1, %v13764_v0  ;;  %v727_v17 = vand.u32 4294901760, %v9207_v13  ;;  %542 = vmatpush.msra.mxu2 %v505_v11  ;;  %v501_v18 = vsub.f32 %v499_v10, %v500_v14  ;;  %v733_v20 = vand.u32 4294901760, %v9209_v16  ;;  %v918_v10 = vand.u32 4294901760, %v891_v7  ;;  %s376_s16 = scalar_lea.vmem %s13763_s6, %s8637_s28 }
  0x3a   : > { %401 = vst.msk [vmem:[#allocation2 + $0x8] sm:$0xff] %vm383_vm0, %v393_v3  ;;  %v507_v19 = vsub.f32 %v505_v11, %v506_v15  ;;  %613 = vmatpush.msrb.mxu0 %v500_v14  ;;  %v890_v11 = vld [vmem:[#allocation5 + $0x20] sm:$0xff] }
  0x3b   : > { %402 = vst.msk [vmem:[#allocation2 + $0x10] sm:$0xff] %vm383_vm0, %v394_v6  ;;  %683 = vmatpush.msrb.mxu2 %v9202_v8  ;;  %v728_v22 = vsub.f32 %v9207_v13, %v727_v17  ;;  %v502_v25 = vand.u32 4294901760, %v501_v18  ;;  %v734_v31 = vsub.f32 %v9209_v16, %v733_v20  ;;  %v920_v14 = vand.u32 4294901760, %v890_v11 }
  0x3c   : > { %392 = vst.msk [vmem:[#allocation2 + $0x78] sm:$0xf] %vm388_vm1, %v13764_v0  ;;  %v508_v26 = vand.u32 4294901760, %v507_v19  ;;  %617 = vmatpush.msrb.mxu0 %v506_v15 }
  0x3d   : > { %685 = vmatpush.msrb.mxu2 %v684_v12  ;;  %v729_v30 = vand.u32 4294901760, %v728_v22  ;;  %503 = vmatpush.msra.mxu1 %v502_v25  ;;  %v735_v36 = vand.u32 4294901760, %v734_v31  ;;  %v395_v25 = vld [vmem:[%s9166_s21 + $0x10] sm:$0xff] }
  0x3e   : > { %403 = vst.msk [vmem:[#allocation2 + $0x28] sm:$0xff] %vm383_vm0, %v395_v25 }
  0x3f   : > { %730 = vmatpush.msrb.mxu3 %v729_v30  ;;  %509 = vmatpush.msra.mxu1 %v508_v26  ;;  %v1135_v26 = vld [vmem:[#allocation5 + $0x38] sm:$0xff]  ;;  %v1134_v30 = vld [vmem:[#allocation5 + $0x30] sm:$0xff] }
  0x41   : > { %v9213_v21 = vld [vmem:[#allocation2 + $0x4] sm:$0xff]  ;;  %646 = vmatpush.msrb.mxu1 %v455_v4  ;;  %736 = vmatpush.msrb.mxu3 %v735_v36 }
  0x42   : > { %v9217_v23 = vld [vmem:[#allocation2 + $0xc] sm:$0xff]  ;;  %v429_v24 = vrot.slane %v9213_v21, 1  ;;  %v9220_v27 = vld [vmem:[#allocation2 + $0x14] sm:$0xff]  ;;  %v662_v43 = vsel %vm383_vm0, %v9213_v21, 0 }
  0x43   : > { %v430_v28 = vrot.slane %v9217_v23, 1  ;;  %v432_v29 = vrot.slane %v9220_v27, 1  ;;  %648 = vmatpush.msrb.mxu1 %v457_v5  ;;  %v9239_v48 = vand.u32 4294901760, %v662_v43  ;;  %v664_v52 = vsel %vm383_vm0, %v9217_v23, 0 }
  0x44   : > { %v9251_v56 = vand.u32 4294901760, %v664_v52  ;;  %v666_v60 = vsel %vm383_vm0, %v9220_v27, 0  ;;  %v894_v9 = vrot.slane %v9217_v23, 2 }
  0x45   : > { %v431_v32 = vsel %vm428_vm2, %v429_v24, %v430_v28  ;;  %v433_v33 = vsel %vm428_vm2, %v430_v28, %v432_v29  ;;  %v439_v41 = vsel %vm383_vm0, %v432_v29, 0  ;;  %v9245_v51 = vsub.f32 %v662_v43, %v9239_v48 }
  0x46   : > { %v435_v34 = vsel %vm383_vm0, %v431_v32, 0  ;;  %v437_v35 = vsel %vm383_vm0, %v433_v33, 0  ;;  %v9236_v46 = vand.u32 4294901760, %v439_v41  ;;  %v9256_v59 = vsub.f32 %v664_v52, %v9251_v56 }
  0x47   : > { %v459_v37 = vand.u32 4294901760, %v435_v34  ;;  %v9229_v38 = vand.u32 4294901760, %v437_v35  ;;  %v688_v55 = vand.u32 4294901760, %v9245_v51  ;;  %v9261_v1 = vand.u32 4294901760, %v666_v60 }
  0x48   : > { %v476_v50 = vsub.f32 %v439_v41, %v9236_v46  ;;  %v696_v63 = vand.u32 4294901760, %v9256_v59  ;;  %v1159_v29 = vand.u32 4294901760, %v1135_v26  ;;  %v1161_v32 = vand.u32 4294901760, %v1134_v30 }
  0x49   : > { %v460_v39 = vsub.f32 %v435_v34, %v459_v37  ;;  %511 = vmatmul.f32.vlgmr.msra.gmra.mxu1 %v459_v37  ;;  %v468_v40 = vsub.f32 %v437_v35, %v9229_v38  ;;  %v689_v58 = vsub.f32 %v9245_v51, %v688_v55  ;;  %v9265_v3 = vsub.f32 %v666_v60, %v9261_v1 }
  0x4a   : > { %801 = vmatpush.msra.mxu1 %v9202_v8  ;;  %v477_v54 = vand.u32 4294901760, %v476_v50  ;;  %v697_v2 = vsub.f32 %v9256_v59, %v696_v63  ;;  %v1203_v31 = vsub.f32 %v1135_v26, %v1159_v29  ;;  %v1209_v35 = vsub.f32 %v1134_v30, %v1161_v32 }
  0x4b   : > { %545 = vmatmul.f32.vlgmr.msra.gmra.mxu2 %v460_v39  ;;  %v461_v42 = vand.u32 4294901760, %v460_v39  ;;  %v469_v45 = vand.u32 4294901760, %v468_v40  ;;  %v690_v62 = vand.u32 4294901760, %v689_v58  ;;  %v704_v5 = vand.u32 4294901760, %v9265_v3 }
  0x4c   : > { %840 = vmatpush.msra.mxu2 %v727_v17  ;;  %803 = vmatpush.msra.mxu1 %v684_v12  ;;  %v478_v57 = vsub.f32 %v476_v50, %v477_v54  ;;  %v698_v4 = vand.u32 4294901760, %v697_v2  ;;  %v1204_v34 = vand.u32 4294901760, %v1203_v31 }
  0x4d   : > { %580 = vmatmul.f32.vlgmr.msra.gmra.mxu3 %v461_v42  ;;  %v462_v44 = vsub.f32 %v460_v39, %v461_v42  ;;  %v470_v49 = vsub.f32 %v468_v40, %v469_v45  ;;  %v705_v6 = vsub.f32 %v9265_v3, %v704_v5 }
  0x4e   : > { %844 = vmatpush.msra.mxu2 %v733_v20  ;;  %873 = vmatpush.msra.mxu3 %v9202_v8  ;;  %v479_v61 = vand.u32 4294901760, %v478_v57  ;;  %v893_v8 = vrot.slane %v9213_v21, 2  ;;  %v896_v20 = vrot.slane %v9220_v27, 2  ;;  %v396_v27 = vld [vmem:[%s9166_s21 + $0x18] sm:$0xff]  ;;  %v1205_v36 = vsub.f32 %v1203_v31, %v1204_v34 }
  0x4f   : > { %v463_v47 = vand.u32 4294901760, %v462_v44  ;;  %v471_v53 = vand.u32 4294901760, %v470_v49  ;;  %v706_v15 = vand.u32 4294901760, %v705_v6  ;;  %404 = vst.msk [vmem:[#allocation2 + $0x30] sm:$0xff] %vm383_vm0, %v396_v27 }
  0x50   : > { %875 = vmatpush.msra.mxu3 %v684_v12  ;;  %v895_v12 = vsel %vm892_vm3, %v893_v8, %v894_v9  ;;  %v897_v23 = vsel %vm892_vm3, %v894_v9, %v896_v20 }
  0x51   : > { %464 = vmatmul.f32.vlgmr.msra.gmra.mxu0 %v463_v47  ;;  %515 = vmatmul.f32.gmra.mxu1 %v9229_v38  ;;  %v898_v28 = vsel %vm383_vm0, %v895_v12, 0  ;;  %v900_v39 = vsel %vm383_vm0, %v897_v23, 0  ;;  %v9307_v47 = vld [vmem:[#allocation2 + $0x24] sm:$0xff] }
  0x52   : > { %766 = vmatpush.msra.mxu0 %v9207_v13  ;;  %v962_v13 = vsub.f32 %v891_v7, %v918_v10  ;;  %v9293_v33 = vand.u32 4294901760, %v898_v28  ;;  %v9302_v44 = vand.u32 4294901760, %v900_v39  ;;  %v1137_v49 = vsel %vm383_vm0, %v9307_v47, 0 }
  0x53   : > { %550 = vmatmul.f32.gmra.mxu2 %v468_v40  ;;  %v1206_v40 = vand.u32 4294901760, %v1205_v36 }
  0x54   : > { %769 = vmatpush.msra.mxu0 %v9209_v16  ;;  %v968_v16 = vsub.f32 %v890_v11, %v920_v14  ;;  %v963_v17 = vand.u32 4294901760, %v962_v13 }
  0x55   : > { %586 = vmatmul.f32.gmra.mxu3 %v469_v45 }
  0x56   : > { %v964_v18 = vsub.f32 %v962_v13, %v963_v17  ;;  %v969_v19 = vand.u32 4294901760, %v968_v16 }
  0x58   : > { %v965_v21 = vand.u32 4294901760, %v964_v18  ;;  %v970_v22 = vsub.f32 %v968_v16, %v969_v19 }
  0x59   : > { %472 = vmatmul.f32.gmra.mxu0 %v471_v53  ;;  %519 = vmatmul.f32.gmra.mxu1 %v9236_v46  ;;  %v9314_v53 = vand.u32 4294901760, %v1137_v49 }
  0x5a   : > { %v971_v24 = vand.u32 4294901760, %v970_v22 }
  0x5b   : > { %555 = vmatmul.f32.gmra.mxu2 %v476_v50  ;;  %v9321_v57 = vsub.f32 %v1137_v49, %v9314_v53 }
  0x5d   : > { %592 = vmatmul.f32.gmra.mxu3 %v477_v54 }
  0x61   : > { %480 = vmatmul.f32.gmra.mxu0 %v479_v61  ;;  %650 = vmatmul.f32.vlgmr.msrb.gmra.mxu1 %v459_v37  ;;  %v1165_v61 = vand.u32 4294901760, %v9321_v57 }
  0x62   : > { %966 = vmatpush.msrb.mxu1 %v965_v21 }
  0x63   : > { %691 = vmatmul.f32.vlgmr.msrb.gmra.mxu2 %v690_v62  ;;  %v1166_v2 = vsub.f32 %v9321_v57, %v1165_v61 }
  0x64   : > { %1002 = vmatpush.msrb.mxu2 %v962_v13  ;;  %972 = vmatpush.msrb.mxu1 %v971_v24 }
  0x65   : > { %738 = vmatmul.f32.vlgmr.msrb.gmra.mxu3 %v9239_v48  ;;  %v1167_v6 = vand.u32 4294901760, %v1166_v2 }
  0x66   : > { %1037 = vmatpush.msrb.mxu3 %v918_v10  ;;  %1005 = vmatpush.msrb.mxu2 %v968_v16  ;;  %v1370_v16 = vld [vmem:[#allocation5 + $0x40] sm:$0xff] }
  0x67   : > { %v1399_v18 = vand.u32 4294901760, %v1370_v16 }
  0x68   : > { %1039 = vmatpush.msrb.mxu3 %v920_v14 }
  0x69   : > { %619 = vmatmul.f32.vlgmr.msrb.gmra.mxu0 %v459_v37  ;;  %654 = vmatmul.f32.gmra.mxu1 %v9229_v38  ;;  %v1210_v37 = vand.u32 4294901760, %v1209_v35 }
  0x6a   : > { %919 = vmatpush.msrb.mxu0 %v918_v10 }
  0x6b   : > { %699 = vmatmul.f32.gmra.mxu2 %v698_v4  ;;  %v1211_v41 = vsub.f32 %v1209_v35, %v1210_v37 }
  0x6c   : > { %921 = vmatpush.msrb.mxu0 %v920_v14 }
  0x6d   : > { %742 = vmatmul.f32.gmra.mxu3 %v9251_v56  ;;  %v1212_v42 = vand.u32 4294901760, %v1211_v41 }
  0x71   : > { %623 = vmatmul.f32.gmra.mxu0 %v9229_v38  ;;  %658 = vmatmul.f32.gmra.mxu1 %v9236_v46  ;;  %v923_v38 = vsub.f32 %v898_v28, %v9293_v33  ;;  %v1372_v28 = vrot.slane %v9307_v47, 1 }
  0x73   : > { %707 = vmatmul.f32.gmra.mxu2 %v706_v15  ;;  %v924_v43 = vand.u32 4294901760, %v923_v38 }
  0x75   : > { %746 = vmatmul.f32.gmra.mxu3 %v9261_v1  ;;  %v925_v45 = vsub.f32 %v923_v38, %v924_v43 }
  0x77   : > { %v926_v50 = vand.u32 4294901760, %v925_v45 }
  0x79   : > { %627 = vmatmul.f32.gmra.mxu0 %v9236_v46  ;;  %807 = vmatmul.f32.vlgmr.msra.gmra.mxu1 %v688_v55  ;;  %v931_v46 = vsub.f32 %v900_v39, %v9302_v44 }
  0x7a   : > { %1109 = vmatpush.msra.mxu1 %v918_v10 }
  0x7b   : > { %846 = vmatmul.f32.vlgmr.msra.gmra.mxu2 %v9239_v48 }
  0x7c   : > { %1111 = vmatpush.msra.mxu1 %v920_v14  ;;  %1160 = vmatpush.msra.mxu2 %v1159_v29  ;;  %v1371_v14 = vld [vmem:[#allocation5 + $0x48] sm:$0xff] }
  0x7d   : > { %877 = vmatmul.f32.vlgmr.msra.gmra.mxu3 %v9239_v48  ;;  %v902_v48 = vsel %vm383_vm0, %v896_v20, 0  ;;  %v1397_v15 = vand.u32 4294901760, %v1371_v14  ;;  %v1447_v20 = vsub.f32 %v1370_v16, %v1399_v18 }
  0x7e   : > { %1162 = vmatpush.msra.mxu2 %v1161_v32  ;;  %1207 = vmatpush.msra.mxu3 %v1206_v40  ;;  %v9312_v52 = vand.u32 4294901760, %v902_v48 }
  0x7f   : > { %v1448_v23 = vand.u32 4294901760, %v1447_v20 }
  0x80   : > { %1213 = vmatpush.msra.mxu3 %v1212_v42  ;;  %v939_v55 = vsub.f32 %v902_v48, %v9312_v52 }
  0x81   : > { %772 = vmatmul.f32.vlgmr.msra.gmra.mxu0 %v9245_v51  ;;  %813 = vmatmul.f32.gmra.mxu1 %v696_v63  ;;  %v932_v51 = vand.u32 4294901760, %v931_v46  ;;  %v1449_v25 = vsub.f32 %v1447_v20, %v1448_v23 }
  0x82   : > { %1076 = vmatpush.msra.mxu0 %v963_v17  ;;  %v940_v60 = vand.u32 4294901760, %v939_v55  ;;  %v1441_v17 = vsub.f32 %v1371_v14, %v1397_v15 }
  0x83   : > { %850 = vmatmul.f32.gmra.mxu2 %v9251_v56  ;;  %v933_v54 = vsub.f32 %v931_v46, %v932_v51  ;;  %v1450_v26 = vand.u32 4294901760, %v1449_v25 }
  0x84   : > { %1080 = vmatpush.msra.mxu0 %v969_v19  ;;  %v941_v63 = vsub.f32 %v939_v55, %v940_v60  ;;  %v1442_v21 = vand.u32 4294901760, %v1441_v17 }
  0x85   : > { %881 = vmatmul.f32.gmra.mxu3 %v9251_v56  ;;  %v9318_v56 = vld [vmem:[#allocation2 + $0x2c] sm:$0xff] }
  0x86   : > { %v1140_v58 = vsel %vm383_vm0, %v9318_v56, 0  ;;  %v1443_v22 = vsub.f32 %v1441_v17, %v1442_v21  ;;  %v1373_v27 = vrot.slane %v9318_v56, 1 }
  0x87   : > { %v9326_v62 = vand.u32 4294901760, %v1140_v58 }
  0x88   : > { %v1444_v24 = vand.u32 4294901760, %v1443_v22  ;;  %v1374_v30 = vsel %vm428_vm2, %v1372_v28, %v1373_v27 }
  0x89   : > { %777 = vmatmul.f32.gmra.mxu0 %v9256_v59  ;;  %819 = vmatmul.f32.gmra.mxu1 %v704_v5  ;;  %v934_v59 = vand.u32 4294901760, %v933_v54  ;;  %v942_v5 = vand.u32 4294901760, %v941_v63 }
  0x8b   : > { %854 = vmatmul.f32.gmra.mxu2 %v9261_v1 }
  0x8d   : > { %885 = vmatmul.f32.gmra.mxu3 %v9261_v1  ;;  %v9329_v1 = vld [vmem:[#allocation2 + $0x34] sm:$0xff] }
  0x8e   : > { %v1143_v4 = vsel %vm383_vm0, %v9329_v1, 0 }
  0x8f   : > { %v9338_v8 = vand.u32 4294901760, %v1143_v4 }
  0x91   : > { %782 = vmatmul.f32.gmra.mxu0 %v9265_v3  ;;  %974 = vmatmul.f32.vlgmr.msrb.gmra.mxu1 %v9293_v33  ;;  %v9333_v3 = vsub.f32 %v1140_v58, %v9326_v62  ;;  %v9343_v10 = vsub.f32 %v1143_v4, %v9338_v8 }
  0x92   : > { %1278 = vmatpush.msrb.mxu1 %v1159_v29 }
  0x93   : > { %1008 = vmatmul.f32.vlgmr.msrb.gmra.mxu2 %v923_v38  ;;  %v1173_v7 = vand.u32 4294901760, %v9333_v3  ;;  %v1181_v12 = vand.u32 4294901760, %v9343_v10 }
  0x94   : > { %1317 = vmatpush.msrb.mxu2 %v1204_v34  ;;  %1280 = vmatpush.msrb.mxu1 %v1161_v32 }
  0x95   : > { %1043 = vmatmul.f32.vlgmr.msrb.gmra.mxu3 %v924_v43  ;;  %v1174_v9 = vsub.f32 %v9333_v3, %v1173_v7  ;;  %v1182_v13 = vsub.f32 %v9343_v10, %v1181_v12 }
  0x96   : > { %1321 = vmatpush.msrb.mxu2 %v1210_v37  ;;  %1350 = vmatpush.msrb.mxu3 %v1159_v29 }
  0x97   : > { %v1175_v11 = vand.u32 4294901760, %v1174_v9  ;;  %v1183_v19 = vand.u32 4294901760, %v1182_v13 }
  0x98   : > { %1352 = vmatpush.msrb.mxu3 %v1161_v32  ;;  %v1377_v32 = vsel %vm383_vm0, %v1374_v30, 0 }
  0x99   : > { %927 = vmatmul.f32.vlgmr.msrb.gmra.mxu0 %v926_v50  ;;  %978 = vmatmul.f32.gmra.mxu1 %v9302_v44  ;;  %v9375_v38 = vand.u32 4294901760, %v1377_v32 }
  0x9a   : > { %1243 = vmatpush.msrb.mxu0 %v1203_v31  ;;  %v1609_v31 = vld [vmem:[#allocation5 + $0x58] sm:$0xff] }
  0x9b   : > { %1013 = vmatmul.f32.gmra.mxu2 %v931_v46  ;;  %v9365_v34 = vand.u32 4294901760, %v1609_v31 }
  0x9c   : > { %1246 = vmatpush.msrb.mxu0 %v1209_v35  ;;  %v1608_v35 = vld [vmem:[#allocation5 + $0x50] sm:$0xff] }
  0x9d   : > { %1049 = vmatmul.f32.gmra.mxu3 %v932_v51  ;;  %v9370_v36 = vsub.f32 %v1609_v31, %v9365_v34  ;;  %v9372_v37 = vand.u32 4294901760, %v1608_v35  ;;  %v1402_v51 = vsub.f32 %v1377_v32, %v9375_v38 }
  0x9f   : > { %v1680_v42 = vand.u32 4294901760, %v9370_v36  ;;  %v9381_v43 = vsub.f32 %v1608_v35, %v9372_v37 }
  0xa1   : > { %935 = vmatmul.f32.gmra.mxu0 %v934_v59  ;;  %982 = vmatmul.f32.gmra.mxu1 %v9312_v52  ;;  %v1681_v48 = vsub.f32 %v9370_v36, %v1680_v42  ;;  %v1686_v49 = vand.u32 4294901760, %v9381_v43  ;;  %v1610_v59 = vrot.slane %v9307_v47, 2 }
  0xa3   : > { %1018 = vmatmul.f32.gmra.mxu2 %v939_v55  ;;  %v1687_v54 = vsub.f32 %v9381_v43, %v1686_v49 }
  0xa5   : > { %1055 = vmatmul.f32.gmra.mxu3 %v940_v60  ;;  %v1688_v58 = vand.u32 4294901760, %v1687_v54  ;;  %v1611_v60 = vrot.slane %v9318_v56, 2 }
  0xa7   : > { %v1612_v47 = vsel %vm892_vm3, %v1610_v59, %v1611_v60 }
  0xa9   : > { %943 = vmatmul.f32.gmra.mxu0 %v942_v5  ;;  %1113 = vmatmul.f32.vlgmr.msra.gmra.mxu1 %v9293_v33 }
  0xaa   : > { %1445 = vmatpush.msra.mxu1 %v1444_v24 }
  0xab   : > { %1168 = vmatmul.f32.vlgmr.msra.gmra.mxu2 %v1167_v6 }
  0xac   : > { %1481 = vmatpush.msra.mxu2 %v1441_v17  ;;  %1451 = vmatpush.msra.mxu1 %v1450_v26 }
  0xad   : > { %1215 = vmatmul.f32.vlgmr.msra.gmra.mxu3 %v9314_v53 }
  0xae   : > { %1516 = vmatpush.msra.mxu3 %v1397_v15  ;;  %1484 = vmatpush.msra.mxu2 %v1447_v20 }
  0xb0   : > { %1518 = vmatpush.msra.mxu3 %v1399_v18 }
  0xb1   : > { %1082 = vmatmul.f32.vlgmr.msra.gmra.mxu0 %v9293_v33  ;;  %1117 = vmatmul.f32.gmra.mxu1 %v9302_v44  ;;  %v1375_v33 = vrot.slane %v9329_v1, 1 }
  0xb2   : > { %1398 = vmatpush.msra.mxu0 %v1397_v15 }
  0xb3   : > { %1176 = vmatmul.f32.gmra.mxu2 %v1175_v11  ;;  %v1376_v41 = vsel %vm428_vm2, %v1373_v27, %v1375_v33  ;;  %v1381_v56 = vsel %vm383_vm0, %v1375_v33, 0  ;;  %v1615_v11 = vsel %vm383_vm0, %v1612_v47, 0 }
  0xb4   : > { %1400 = vmatpush.msra.mxu0 %v1399_v18  ;;  %v9406_v13 = vand.u32 4294901760, %v1381_v56 }
  0xb5   : > { %1219 = vmatmul.f32.gmra.mxu3 %v9326_v62 }
  0xb9   : > { %1086 = vmatmul.f32.gmra.mxu0 %v9302_v44  ;;  %1121 = vmatmul.f32.gmra.mxu1 %v9312_v52 }
  0xbb   : > { %1184 = vmatmul.f32.gmra.mxu2 %v1183_v19 }
  0xbd   : > { %1223 = vmatmul.f32.gmra.mxu3 %v9338_v8 }
  0xc1   : > { %1090 = vmatmul.f32.gmra.mxu0 %v9312_v52  ;;  %1284 = vmatmul.f32.vlgmr.msrb.gmra.mxu1 %v1165_v61  ;;  %v1379_v52 = vsel %vm383_vm0, %v1376_v41, 0  ;;  %v1403_v61 = vand.u32 4294901760, %v1402_v51 }
  0xc2   : > { %1588 = vmatpush.msrb.mxu1 %v1397_v15 }
  0xc3   : > { %1323 = vmatmul.f32.vlgmr.msrb.gmra.mxu2 %v9314_v53 }
  0xc4   : > { %1590 = vmatpush.msrb.mxu1 %v1399_v18  ;;  %1636 = vmatpush.msrb.mxu2 %v9365_v34  ;;  %v9409_v18 = vand.u32 4294901760, %v1615_v11 }
  0xc5   : > { %1354 = vmatmul.f32.vlgmr.msrb.gmra.mxu3 %v9314_v53  ;;  %v1682_v53 = vand.u32 4294901760, %v1681_v48 }
  0xc6   : > { %v512_v29 = vpop.f32.mrf.mxu1  ;;  %1638 = vmatpush.msrb.mxu2 %v9372_v37  ;;  %v9417_v24 = vsub.f32 %v1615_v11, %v9409_v18  ;;  %v1851_v11 = vld [vmem:[#allocation5 + $0x60] sm:$0xff] }
  0xc7   : > { %1683 = vmatpush.msrb.mxu3 %v1682_v53 }
  0xc8   : > { %v1641_v32 = vand.u32 4294901760, %v9417_v24 }
  0xc9   : > { %1249 = vmatmul.f32.vlgmr.msrb.gmra.mxu0 %v9321_v57  ;;  %1290 = vmatmul.f32.gmra.mxu1 %v1173_v7  ;;  %v9392_v57 = vand.u32 4294901760, %v1379_v52  ;;  %v1404_v7 = vsub.f32 %v1402_v51, %v1403_v61 }
  0xca   : > { %1555 = vmatpush.msrb.mxu0 %v1442_v21  ;;  %1689 = vmatpush.msrb.mxu3 %v1688_v58 }
  0xcb   : > { %1327 = vmatmul.f32.gmra.mxu2 %v9326_v62  ;;  %v1410_v5 = vsub.f32 %v1379_v52, %v9392_v57 }
  0xcc   : > { %1559 = vmatpush.msrb.mxu0 %v1448_v23 }
  0xcd   : > { %1358 = vmatmul.f32.gmra.mxu3 %v9326_v62  ;;  %v1411_v9 = vand.u32 4294901760, %v1410_v5 }
  0xce   : > { %v465_v39 = vpop.f32.mrf.mxu0  ;;  %v546_v40 = vpop.f32.mrf.mxu2 }
  0xcf   : > { %v513_v44 = vadd.f32 %v512_v29, %v465_v39  ;;  %v516_v45 = vpop.f32.mrf.mxu1  ;;  %v1412_v20 = vsub.f32 %v1410_v5, %v1411_v9  ;;  %v1642_v39 = vsub.f32 %v9417_v24, %v1641_v32 }
  0xd0   : > { %v581_v46 = vpop.f32.mrf.mxu3 }
  0xd1   : > { %v547_v50 = vadd.f32 %v546_v40, %v513_v44  ;;  %1254 = vmatmul.f32.gmra.mxu0 %v9333_v3  ;;  %1296 = vmatmul.f32.gmra.mxu1 %v1181_v12  ;;  %v1613_v12 = vrot.slane %v9329_v1, 2  ;;  %v1418_v1 = vsub.f32 %v1381_v56, %v9406_v13  ;;  %v1413_v26 = vand.u32 4294901760, %v1412_v20  ;;  %v1852_v56 = vld [vmem:[#allocation5 + $0x68] sm:$0xff] }
  0xd2   : > { %v1643_v48 = vand.u32 4294901760, %v1642_v39 }
  0xd3   : > { %v582_v55 = vadd.f32 %v581_v46, %v547_v50  ;;  %1331 = vmatmul.f32.gmra.mxu2 %v9338_v8  ;;  %v1614_v22 = vsel %vm892_vm3, %v1611_v60, %v1613_v12  ;;  %v1419_v27 = vand.u32 4294901760, %v1418_v1  ;;  %v1619_v41 = vsel %vm383_vm0, %v1613_v12, 0  ;;  %v397_v60 = vld [vmem:[%s9166_s21 + $0x20] sm:$0xff]  ;;  %v398_v12 = vld [vmem:[%s9166_s21 + $0x28] sm:$0xff] }
  0xd4   : > { %v1617_v25 = vsel %vm383_vm0, %v1614_v22, 0  ;;  %405 = vst.msk [vmem:[#allocation2 + $0x48] sm:$0xff] %vm383_vm0, %v397_v60 }
  0xd5   : > { %1362 = vmatmul.f32.gmra.mxu3 %v9338_v8  ;;  %v9422_v33 = vand.u32 4294901760, %v1617_v25  ;;  %406 = vst.msk [vmem:[#allocation2 + $0x50] sm:$0xff] %vm383_vm0, %v398_v12 }
  0xd6   : > { %v473_v62 = vpop.f32.mrf.mxu0  ;;  %v551_v63 = vpop.f32.mrf.mxu2 }
  0xd7   : > { %v517_v2 = vadd.f32 %v516_v45, %v473_v62  ;;  %v520_v3 = vpop.f32.mrf.mxu1  ;;  %v9429_v40 = vsub.f32 %v1617_v25, %v9422_v33 }
  0xd8   : > { %v587_v4 = vpop.f32.mrf.mxu3 }
  0xd9   : > { %v552_v6 = vadd.f32 %v551_v63, %v517_v2  ;;  %1259 = vmatmul.f32.gmra.mxu0 %v9343_v10  ;;  %1453 = vmatmul.f32.vlgmr.msra.gmra.mxu1 %v9375_v38  ;;  %v1405_v10 = vand.u32 4294901760, %v1404_v7  ;;  %v1649_v50 = vand.u32 4294901760, %v9429_v40 }
  0xda   : > { %1754 = vmatpush.msra.mxu1 %v9365_v34 }
  0xdb   : > { %v588_v8 = vadd.f32 %v587_v4, %v552_v6  ;;  %1487 = vmatmul.f32.vlgmr.msra.gmra.mxu2 %v1402_v51  ;;  %v9433_v51 = vand.u32 4294901760, %v1619_v41 }
  0xdc   : > { %1793 = vmatpush.msra.mxu2 %v1680_v42  ;;  %1756 = vmatpush.msra.mxu1 %v9372_v37 }
  0xdd   : > { %1522 = vmatmul.f32.vlgmr.msra.gmra.mxu3 %v1403_v61  ;;  %v9440_v58 = vsub.f32 %v1619_v41, %v9433_v51 }
  0xde   : > { %v481_v14 = vpop.f32.mrf.mxu0  ;;  %v556_v15 = vpop.f32.mrf.mxu2  ;;  %1797 = vmatpush.msra.mxu2 %v1686_v49  ;;  %1826 = vmatpush.msra.mxu3 %v9365_v34 }
  0xdf   : > { %v521_v16 = vadd.f32 %v520_v3, %v481_v14  ;;  %v651_v17 = vpop.f32.mrf.mxu1  ;;  %v1657_v4 = vand.u32 4294901760, %v9440_v58 }
  0xe0   : > { %v593_v19 = vpop.f32.mrf.mxu3  ;;  %1828 = vmatpush.msra.mxu3 %v9372_v37 }
  0xe1   : > { %v557_v21 = vadd.f32 %v556_v15, %v521_v16  ;;  %1406 = vmatmul.f32.vlgmr.msra.gmra.mxu0 %v1405_v10  ;;  %1457 = vmatmul.f32.gmra.mxu1 %v9392_v57  ;;  %v1658_v47 = vsub.f32 %v9440_v58, %v1657_v4  ;;  %v1878_v16 = vand.u32 4294901760, %v1851_v11 }
  0xe2   : > { %1719 = vmatpush.msra.mxu0 %v9370_v36  ;;  %v1420_v36 = vsub.f32 %v1418_v1, %v1419_v27 }
  0xe3   : > { %v594_v23 = vadd.f32 %v593_v19, %v557_v21  ;;  %1492 = vmatmul.f32.gmra.mxu2 %v1410_v5  ;;  %v1926_v21 = vsub.f32 %v1851_v11, %v1878_v16 }
  0xe4   : > { %1722 = vmatpush.msra.mxu0 %v9381_v43  ;;  %v1421_v43 = vand.u32 4294901760, %v1420_v36 }
  0xe5   : > { %1528 = vmatmul.f32.gmra.mxu3 %v1411_v9  ;;  %v1927_v25 = vand.u32 4294901760, %v1926_v21 }
  0xe6   : > { %v620_v28 = vpop.f32.mrf.mxu0  ;;  %v692_v29 = vpop.f32.mrf.mxu2 }
  0xe7   : > { %v621_v30 = vadd.f32 %v620_v28, %v582_v55  ;;  %v655_v31 = vpop.f32.mrf.mxu1  ;;  %v1650_v55 = vsub.f32 %v9429_v40, %v1649_v50  ;;  %v1928_v28 = vsub.f32 %v1926_v21, %v1927_v25 }
  0xe8   : > { %v739_v34 = vpop.f32.mrf.mxu3 }
  0xe9   : > { %v652_v35 = vadd.f32 %v651_v17, %v621_v30  ;;  %1414 = vmatmul.f32.gmra.mxu0 %v1413_v26  ;;  %1461 = vmatmul.f32.gmra.mxu1 %v9406_v13  ;;  %v1651_v2 = vand.u32 4294901760, %v1650_v55  ;;  %v1659_v17 = vand.u32 4294901760, %v1658_v47 }
  0xeb   : > { %v693_v37 = vadd.f32 %v692_v29, %v652_v35  ;;  %1497 = vmatmul.f32.gmra.mxu2 %v1418_v1 }
  0xed   : > { %v740_v42 = vadd.f32 %v739_v34, %v693_v37  ;;  %1534 = vmatmul.f32.gmra.mxu3 %v1419_v27  ;;  %v1929_v34 = vand.u32 4294901760, %v1928_v28 }
  0xee   : > { %v624_v44 = vpop.f32.mrf.mxu0  ;;  %v700_v45 = vpop.f32.mrf.mxu2 }
  0xef   : > { %v625_v46 = vadd.f32 %v624_v44, %v588_v8  ;;  %v659_v49 = vpop.f32.mrf.mxu1  ;;  %v1876_v8 = vand.u32 4294901760, %v1852_v56 }
  0xf0   : > { %v743_v52 = vpop.f32.mrf.mxu3 }
  0xf1   : > { %v656_v53 = vadd.f32 %v655_v31, %v625_v46  ;;  %1422 = vmatmul.f32.gmra.mxu0 %v1421_v43  ;;  %1592 = vmatmul.f32.vlgmr.msrb.gmra.mxu1 %v9375_v38  ;;  %v1920_v15 = vsub.f32 %v1852_v56, %v1876_v8  ;;  %v9466_v46 = vld [vmem:[#allocation2 + $0x44] sm:$0xff] }
  0xf3   : > { %v701_v54 = vadd.f32 %v700_v45, %v656_v53  ;;  %1644 = vmatmul.f32.vlgmr.msrb.gmra.mxu2 %v1643_v48  ;;  %v1921_v1 = vand.u32 4294901760, %v1920_v15  ;;  %v2087_v53 = vld [vmem:[#allocation5 + $0x70] sm:$0xff] }
  0xf4   : > { %1960 = vmatpush.msrb.mxu2 %v1920_v15 }
  0xf5   : > { %v744_v59 = vadd.f32 %v743_v52, %v701_v54  ;;  %1691 = vmatmul.f32.vlgmr.msrb.gmra.mxu3 %v9409_v18 }
  0xf6   : > { %v628_v61 = vpop.f32.mrf.mxu0  ;;  %v708_v62 = vpop.f32.mrf.mxu2  ;;  %1995 = vmatpush.msrb.mxu3 %v1876_v8  ;;  %1963 = vmatpush.msrb.mxu2 %v1926_v21 }
  0xf7   : > { %v629_v63 = vadd.f32 %v628_v61, %v594_v23  ;;  %v808_v3 = vpop.f32.mrf.mxu1  ;;  %v1922_v23 = vsub.f32 %v1920_v15, %v1921_v1  ;;  %v9487_v61 = vld [vmem:[#allocation2 + $0x4c] sm:$0xff] }
  0xf8   : > { %v747_v5 = vpop.f32.mrf.mxu3  ;;  %1997 = vmatpush.msrb.mxu3 %v1878_v16  ;;  %v1857_v56 = vsel %vm383_vm0, %v9487_v61, 0 }
  0xf9   : > { %v660_v6 = vadd.f32 %v659_v49, %v629_v63  ;;  %1561 = vmatmul.f32.vlgmr.msrb.gmra.mxu0 %v9375_v38  ;;  %1596 = vmatmul.f32.gmra.mxu1 %v9392_v57  ;;  %v1923_v27 = vand.u32 4294901760, %v1922_v23  ;;  %v1854_v49 = vsel %vm383_vm0, %v9466_v46, 0  ;;  %v9504_v12 = vand.u32 4294901760, %v1857_v56 }
  0xfa   : > { %1877 = vmatpush.msrb.mxu0 %v1876_v8  ;;  %v9485_v55 = vand.u32 4294901760, %v1854_v49 }
  0xfb   : > { %v709_v7 = vadd.f32 %v708_v62, %v660_v6  ;;  %1652 = vmatmul.f32.gmra.mxu2 %v1651_v2  ;;  %1924 = vmatpush.msrb.mxu1 %v1923_v27  ;;  %v1889_v21 = vsub.f32 %v1857_v56, %v9504_v12 }
  0xfc   : > { %1879 = vmatpush.msrb.mxu0 %v1878_v16  ;;  %v1881_v47 = vsub.f32 %v1854_v49, %v9485_v55 }
  0xfd   : > { %v748_v9 = vadd.f32 %v747_v5, %v709_v7  ;;  %1695 = vmatmul.f32.gmra.mxu3 %v9422_v33  ;;  %1930 = vmatpush.msrb.mxu1 %v1929_v34  ;;  %v1890_v27 = vand.u32 4294901760, %v1889_v21 }
  0xfe   : > { %v773_v10 = vpop.f32.mrf.mxu0  ;;  %v847_v14 = vpop.f32.mrf.mxu2 }
  0xff   : > { %v774_v38 = vadd.f32 %v773_v10, %v740_v42  ;;  %v814_v19 = vpop.f32.mrf.mxu1 }
 0x100   : > { %v878_v20 = vpop.f32.mrf.mxu3 }
 0x101   : > { %v809_v22 = vadd.f32 %v808_v3, %v774_v38  ;;  %1565 = vmatmul.f32.gmra.mxu0 %v9392_v57  ;;  %1600 = vmatmul.f32.gmra.mxu1 %v9406_v13 }
 0x103   : > { %v848_v26 = vadd.f32 %v847_v14, %v809_v22  ;;  %1660 = vmatmul.f32.gmra.mxu2 %v1659_v17  ;;  %v2090_v14 = vrot.slane %v9487_v61, 1 }
 0x105   : > { %v9456_v29 = vadd.f32 %v878_v20, %v848_v26  ;;  %1699 = vmatmul.f32.gmra.mxu3 %v9433_v51 }
 0x106   : > { %v778_v30 = vpop.f32.mrf.mxu0  ;;  %v851_v31 = vpop.f32.mrf.mxu2 }
 0x107   : > { %v779_v35 = vadd.f32 %v778_v30, %v744_v59  ;;  %v820_v57 = vpop.f32.mrf.mxu1 }
 0x108   : > { %v882_v36 = vpop.f32.mrf.mxu3 }
 0x109   : > { %v815_v37 = vadd.f32 %v814_v19, %v779_v35  ;;  %1569 = vmatmul.f32.gmra.mxu0 %v9406_v13  ;;  %1760 = vmatmul.f32.vlgmr.msra.gmra.mxu1 %v1641_v32  ;;  %v2088_v32 = vld [vmem:[#allocation5 + $0x78] sm:$0xff] }
 0x10a   : > { %2067 = vmatpush.msra.mxu1 %v1876_v8  ;;  %v9473_v52 = vand.u32 4294901760, %v2088_v32  ;;  %v9509_v19 = vld [vmem:[#allocation2 + $0x54] sm:$0xff] }
 0x10b   : > { %v852_v39 = vadd.f32 %v851_v31, %v815_v37  ;;  %1799 = vmatmul.f32.vlgmr.msra.gmra.mxu2 %v9409_v18  ;;  %v1860_v23 = vsel %vm383_vm0, %v9509_v19, 0  ;;  %v2092_v30 = vrot.slane %v9509_v19, 1 }
 0x10c   : > { %2069 = vmatpush.msra.mxu1 %v1878_v16  ;;  %2115 = vmatpush.msra.mxu2 %v9473_v52  ;;  %v9478_v54 = vsub.f32 %v2088_v32, %v9473_v52  ;;  %v9520_v28 = vand.u32 4294901760, %v1860_v23 }
 0x10d   : > { %v9463_v41 = vadd.f32 %v882_v36, %v852_v39  ;;  %1830 = vmatmul.f32.vlgmr.msra.gmra.mxu3 %v9409_v18  ;;  %v1891_v39 = vsub.f32 %v1889_v21, %v1890_v27 }
 0x10e   : > { %v783_v42 = vpop.f32.mrf.mxu0  ;;  %v855_v43 = vpop.f32.mrf.mxu2  ;;  %v2159_v62 = vand.u32 4294901760, %v9478_v54 }
 0x10f   : > { %v784_v44 = vadd.f32 %v783_v42, %v748_v9  ;;  %v975_v45 = vpop.f32.mrf.mxu1  ;;  %v1892_v32 = vand.u32 4294901760, %v1891_v39 }
 0x110   : > { %v886_v48 = vpop.f32.mrf.mxu3  ;;  %v2160_v6 = vsub.f32 %v9478_v54, %v2159_v62 }
 0x111   : > { %v821_v13 = vadd.f32 %v820_v57, %v784_v44  ;;  %1725 = vmatmul.f32.vlgmr.msra.gmra.mxu0 %v9417_v24  ;;  %1766 = vmatmul.f32.gmra.mxu1 %v1649_v50  ;;  %v9480_v24 = vand.u32 4294901760, %v2087_v53  ;;  %v2093_v44 = vsel %vm428_vm2, %v2090_v14, %v2092_v30 }
 0x112   : > { %2034 = vmatpush.msra.mxu0 %v1921_v1  ;;  %v2161_v8 = vand.u32 4294901760, %v2160_v6 }
 0x113   : > { %v856_v18 = vadd.f32 %v855_v43, %v821_v13  ;;  %1803 = vmatmul.f32.gmra.mxu2 %v9422_v33  ;;  %v9492_v63 = vsub.f32 %v2087_v53, %v9480_v24  ;;  %v1897_v43 = vsub.f32 %v1860_v23, %v9520_v28  ;;  %v2096_v13 = vsel %vm383_vm0, %v2093_v44, 0 }
 0x114   : > { %2038 = vmatpush.msra.mxu0 %v1927_v25  ;;  %2117 = vmatpush.msra.mxu2 %v9480_v24 }
 0x115   : > { %v9482_v50 = vadd.f32 %v886_v48, %v856_v18  ;;  %1834 = vmatmul.f32.gmra.mxu3 %v9422_v33  ;;  %v2165_v33 = vand.u32 4294901760, %v9492_v63  ;;  %v1898_v49 = vand.u32 4294901760, %v1897_v43 }
 0x116   : > { %v928_v59 = vpop.f32.mrf.mxu0  ;;  %v1009_v60 = vpop.f32.mrf.mxu2  ;;  %2162 = vmatpush.msra.mxu3 %v2161_v8 }
 0x117   : > { %v976_v2 = vadd.f32 %v975_v45, %v928_v59  ;;  %v979_v3 = vpop.f32.mrf.mxu1  ;;  %v2166_v9 = vsub.f32 %v9492_v63, %v2165_v33 }
 0x118   : > { %v1044_v5 = vpop.f32.mrf.mxu3 }
 0x119   : > { %v1010_v7 = vadd.f32 %v1009_v60, %v976_v2  ;;  %1730 = vmatmul.f32.gmra.mxu0 %v9429_v40  ;;  %1772 = vmatmul.f32.gmra.mxu1 %v1657_v4  ;;  %v2167_v10 = vand.u32 4294901760, %v2166_v9  ;;  %v2089_v40 = vrot.slane %v9466_v46, 1  ;;  %v1882_v4 = vand.u32 4294901760, %v1881_v47 }
 0x11a   : > { %v9537_v60 = vand.u32 4294901760, %v2096_v13 }
 0x11b   : > { %v1045_v11 = vadd.f32 %v1044_v5, %v1010_v7  ;;  %1807 = vmatmul.f32.gmra.mxu2 %v9433_v51  ;;  %2168 = vmatpush.msra.mxu3 %v2167_v10  ;;  %v1883_v22 = vsub.f32 %v1881_v47, %v1882_v4 }
 0x11c   : > { %v9547_v6 = vsub.f32 %v2096_v13, %v9537_v60 }
 0x11d   : > { %1838 = vmatmul.f32.gmra.mxu3 %v9433_v51  ;;  %v2091_v51 = vsel %vm428_vm2, %v2089_v40, %v2090_v14 }
 0x11e   : > { %v936_v15 = vpop.f32.mrf.mxu0  ;;  %v1014_v16 = vpop.f32.mrf.mxu2  ;;  %v2094_v26 = vsel %vm383_vm0, %v2091_v51, 0 }
 0x11f   : > { %v980_v38 = vadd.f32 %v979_v3, %v936_v15  ;;  %v983_v17 = vpop.f32.mrf.mxu1  ;;  %v9524_v57 = vand.u32 4294901760, %v2094_v26  ;;  %v1899_v3 = vsub.f32 %v1897_v43, %v1898_v49 }
 0x120   : > { %v1050_v20 = vpop.f32.mrf.mxu3 }
 0x121   : > { %v1015_v1 = vadd.f32 %v1014_v16, %v980_v38  ;;  %1735 = vmatmul.f32.gmra.mxu0 %v9440_v58  ;;  %1932 = vmatmul.f32.vlgmr.msrb.gmra.mxu1 %v9485_v55  ;;  %v1884_v58 = vand.u32 4294901760, %v1883_v22  ;;  %v9532_v48 = vsub.f32 %v2094_v26, %v9524_v57  ;;  %v1900_v7 = vand.u32 4294901760, %v1899_v3 }
 0x122   : > { %2233 = vmatpush.msrb.mxu1 %v9473_v52 }
 0x123   : > { %v1051_v25 = vadd.f32 %v1050_v20, %v1015_v1  ;;  %1966 = vmatmul.f32.vlgmr.msrb.gmra.mxu2 %v1881_v47  ;;  %v2120_v59 = vand.u32 4294901760, %v9532_v48 }
 0x124   : > { %2272 = vmatpush.msrb.mxu2 %v2159_v62  ;;  %2235 = vmatpush.msrb.mxu1 %v9480_v24 }
 0x125   : > { %2001 = vmatmul.f32.vlgmr.msrb.gmra.mxu3 %v1882_v4  ;;  %v2121_v5 = vsub.f32 %v9532_v48, %v2120_v59 }
 0x126   : > { %v944_v31 = vpop.f32.mrf.mxu0  ;;  %v1019_v34 = vpop.f32.mrf.mxu2  ;;  %2276 = vmatpush.msrb.mxu2 %v2165_v33  ;;  %2305 = vmatpush.msrb.mxu3 %v9473_v52  ;;  %v2098_v33 = vsel %vm383_vm0, %v2092_v30, 0 }
 0x127   : > { %v984_v35 = vadd.f32 %v983_v17, %v944_v31  ;;  %v1114_v36 = vpop.f32.mrf.mxu1  ;;  %v2122_v9 = vand.u32 4294901760, %v2121_v5  ;;  %v9551_v10 = vand.u32 4294901760, %v2098_v33  ;;  %v2325_v31 = vld [vmem:[#allocation5 + $0x80] sm:$0xff] }
 0x128   : > { %v1056_v37 = vpop.f32.mrf.mxu3  ;;  %2307 = vmatpush.msrb.mxu3 %v9480_v24 }
 0x129   : > { %v1020_v42 = vadd.f32 %v1019_v34, %v984_v35  ;;  %1885 = vmatmul.f32.vlgmr.msrb.gmra.mxu0 %v1884_v58  ;;  %1936 = vmatmul.f32.gmra.mxu1 %v9504_v12  ;;  %v9561_v38 = vsub.f32 %v2098_v33, %v9551_v10  ;;  %v2326_v58 = vld [vmem:[#allocation5 + $0x88] sm:$0xff] }
 0x12a   : > { %2198 = vmatpush.msrb.mxu0 %v9478_v54  ;;  %v2352_v30 = vand.u32 4294901760, %v2326_v58 }
 0x12b   : > { %v1057_v45 = vadd.f32 %v1056_v37, %v1020_v42  ;;  %1971 = vmatmul.f32.gmra.mxu2 %v1889_v21  ;;  %v2136_v51 = vand.u32 4294901760, %v9561_v38 }
 0x12c   : > { %2201 = vmatpush.msrb.mxu0 %v9492_v63 }
 0x12d   : > { %2007 = vmatmul.f32.gmra.mxu3 %v1890_v27  ;;  %v2137_v27 = vsub.f32 %v9561_v38, %v2136_v51 }
 0x12e   : > { %v1083_v52 = vpop.f32.mrf.mxu0  ;;  %v1169_v18 = vpop.f32.mrf.mxu2 }
 0x12f   : > { %v1084_v53 = vadd.f32 %v1083_v52, %v1045_v11  ;;  %v1118_v24 = vpop.f32.mrf.mxu1  ;;  %v2138_v39 = vand.u32 4294901760, %v2137_v27 }
 0x130   : > { %v1216_v54 = vpop.f32.mrf.mxu3 }
 0x131   : > { %v1115_v62 = vadd.f32 %v1114_v36, %v1084_v53  ;;  %1893 = vmatmul.f32.gmra.mxu0 %v1892_v32  ;;  %v1217_v2 = vadd.f32 %v1216_v54, %v1169_v18  ;;  %1940 = vmatmul.f32.gmra.mxu1 %v9520_v28  ;;  %v2396_v36 = vsub.f32 %v2326_v58, %v2352_v30 }
 0x133   : > { %v9541_v63 = vadd.f32 %v1115_v62, %v9456_v29  ;;  %1976 = vmatmul.f32.gmra.mxu2 %v1897_v43  ;;  %v2128_v29 = vand.u32 4294901760, %v9547_v6  ;;  %v2397_v44 = vand.u32 4294901760, %v2396_v36 }
 0x135   : > { %2013 = vmatmul.f32.gmra.mxu3 %v1898_v49  ;;  %v2129_v16 = vsub.f32 %v9547_v6, %v2128_v29  ;;  %v2398_v13 = vsub.f32 %v2396_v36, %v2397_v44 }
 0x136   : > { %v1087_v47 = vpop.f32.mrf.mxu0  ;;  %v1177_v56 = vpop.f32.mrf.mxu2 }
 0x137   : > { %v1088_v8 = vadd.f32 %v1087_v47, %v1051_v25  ;;  %v1122_v11 = vpop.f32.mrf.mxu1  ;;  %v2130_v1 = vand.u32 4294901760, %v2129_v16  ;;  %v2399_v52 = vand.u32 4294901760, %v2398_v13  ;;  %v2327_v47 = vrot.slane %v9466_v46, 2  ;;  %v400_v16 = vld [vmem:[%s9166_s21 + $0x38] sm:$0xff] }
 0x138   : > { %v1220_v40 = vpop.f32.mrf.mxu3  ;;  %408 = vst.msk [vmem:[#allocation2 + $0x70] sm:$0xff] %vm383_vm0, %v400_v16 }
 0x139   : > { %v1119_v4 = vadd.f32 %v1118_v24, %v1088_v8  ;;  %1901 = vmatmul.f32.gmra.mxu0 %v1900_v7  ;;  %v1221_v14 = vadd.f32 %v1220_v40, %v1177_v56  ;;  %2071 = vmatmul.f32.vlgmr.msra.gmra.mxu1 %v9485_v55  ;;  %v399_v7 = vld [vmem:[%s9166_s21 + $0x30] sm:$0xff]  ;;  %v2328_v56 = vrot.slane %v9487_v61, 2  ;;  %v2569_v61 = vld [vmem:[#allocation5 + $0x98] sm:$0xff] }
 0x13a   : > { %2400 = vmatpush.msra.mxu1 %v2399_v52  ;;  %407 = vst.msk [vmem:[#allocation2 + $0x68] sm:$0xff] %vm383_vm0, %v399_v7 }
 0x13b   : > { %v9555_v15 = vadd.f32 %v1119_v4, %v9463_v41  ;;  %2123 = vmatmul.f32.vlgmr.msra.gmra.mxu2 %v2122_v9  ;;  %v2329_v4 = vsel %vm892_vm3, %v2327_v47, %v2328_v56 }
 0x13c   : > { %2436 = vmatpush.msra.mxu2 %v2396_v36 }
 0x13d   : > { %2170 = vmatmul.f32.vlgmr.msra.gmra.mxu3 %v9524_v57 }
 0x13e   : > { %v1091_v17 = vpop.f32.mrf.mxu0  ;;  %v1185_v20 = vpop.f32.mrf.mxu2  ;;  %2471 = vmatpush.msra.mxu3 %v2352_v30 }
 0x13f   : > { %v1092_v21 = vadd.f32 %v1091_v17, %v1057_v45  ;;  %v1285_v22 = vpop.f32.mrf.mxu1  ;;  %v9598_v17 = vand.u32 4294901760, %v2569_v61 }
 0x140   : > { %v1224_v23 = vpop.f32.mrf.mxu3 }
 0x141   : > { %v1123_v41 = vadd.f32 %v1122_v11, %v1092_v21  ;;  %2040 = vmatmul.f32.vlgmr.msra.gmra.mxu0 %v9485_v55  ;;  %v1225_v25 = vadd.f32 %v1224_v23, %v1185_v20  ;;  %2075 = vmatmul.f32.gmra.mxu1 %v9504_v12  ;;  %v2354_v55 = vand.u32 4294901760, %v2325_v31  ;;  %v2568_v21 = vld [vmem:[#allocation5 + $0x90] sm:$0xff] }
 0x142   : > { %2353 = vmatpush.msra.mxu0 %v2352_v30 }
 0x143   : > { %v9568_v26 = vadd.f32 %v1123_v41, %v9482_v50  ;;  %2131 = vmatmul.f32.gmra.mxu2 %v2130_v1  ;;  %v2402_v43 = vsub.f32 %v2325_v31, %v2354_v55  ;;  %2473 = vmatpush.msra.mxu3 %v2354_v55 }
 0x144   : > { %2355 = vmatpush.msra.mxu0 %v2354_v55 }
 0x145   : > { %2174 = vmatmul.f32.gmra.mxu3 %v9537_v60  ;;  %2439 = vmatpush.msra.mxu2 %v2402_v43  ;;  %v2403_v32 = vand.u32 4294901760, %v2402_v43 }
 0x146   : > { %v1250_v34 = vpop.f32.mrf.mxu0  ;;  %v1324_v35 = vpop.f32.mrf.mxu2 }
 0x147   : > { %v1251_v37 = vadd.f32 %v1250_v34, %v1217_v2  ;;  %v1291_v50 = vpop.f32.mrf.mxu1  ;;  %v2404_v18 = vsub.f32 %v2402_v43, %v2403_v32 }
 0x148   : > { %v1355_v42 = vpop.f32.mrf.mxu3 }
 0x149   : > { %v1286_v45 = vadd.f32 %v1285_v22, %v1251_v37  ;;  %2044 = vmatmul.f32.gmra.mxu0 %v9504_v12  ;;  %2079 = vmatmul.f32.gmra.mxu1 %v9520_v28  ;;  %v2405_v62 = vand.u32 4294901760, %v2404_v18 }
 0x14b   : > { %v1325_v49 = vadd.f32 %v1324_v35, %v1286_v45  ;;  %2139 = vmatmul.f32.gmra.mxu2 %v2138_v39  ;;  %2406 = vmatpush.msra.mxu1 %v2405_v62 }
 0x14d   : > { %v1356_v53 = vadd.f32 %v1355_v42, %v1325_v49  ;;  %2178 = vmatmul.f32.gmra.mxu3 %v9551_v10 }
 0x14e   : > { %v1255_v24 = vpop.f32.mrf.mxu0  ;;  %v1328_v54 = vpop.f32.mrf.mxu2 }
 0x14f   : > { %v9578_v12 = vadd.f32 %v1356_v53, %v9541_v63  ;;  %v1256_v2 = vadd.f32 %v1255_v24, %v1221_v14  ;;  %v1297_v3 = vpop.f32.mrf.mxu1  ;;  %v9632_v53 = vld [vmem:[#allocation2 + $0x64] sm:$0xff] }
 0x150   : > { %v1359_v5 = vpop.f32.mrf.mxu3 }
 0x151   : > { %v1292_v33 = vadd.f32 %v1291_v50, %v1256_v2  ;;  %2048 = vmatmul.f32.gmra.mxu0 %v9520_v28  ;;  %2239 = vmatmul.f32.vlgmr.msrb.gmra.mxu1 %v2120_v59 }
 0x152   : > { %2543 = vmatpush.msrb.mxu1 %v2352_v30 }
 0x153   : > { %v1329_v63 = vadd.f32 %v1328_v54, %v1292_v33  ;;  %2278 = vmatmul.f32.vlgmr.msrb.gmra.mxu2 %v9524_v57  ;;  %v2571_v54 = vsel %vm383_vm0, %v9632_v53, 0 }
 0x154   : > { %2545 = vmatpush.msrb.mxu1 %v2354_v55  ;;  %2594 = vmatpush.msrb.mxu2 %v9598_v17  ;;  %v9641_v47 = vand.u32 4294901760, %v2571_v54 }
 0x155   : > { %v1360_v8 = vadd.f32 %v1359_v5, %v1329_v63  ;;  %2309 = vmatmul.f32.vlgmr.msrb.gmra.mxu3 %v9524_v57  ;;  %v2332_v57 = vsel %vm383_vm0, %v2329_v4, 0 }
 0x156   : > { %v1260_v28 = vpop.f32.mrf.mxu0  ;;  %v1332_v9 = vpop.f32.mrf.mxu2  ;;  %v9608_v22 = vand.u32 4294901760, %v2332_v57 }
 0x157   : > { %v9590_v59 = vadd.f32 %v1360_v8, %v9555_v15  ;;  %v1261_v11 = vadd.f32 %v1260_v28, %v1225_v25  ;;  %v1454_v40 = vpop.f32.mrf.mxu1  ;;  %v2330_v15 = vrot.slane %v9509_v19, 2 }
 0x158   : > { %v1363_v46 = vpop.f32.mrf.mxu3  ;;  %v2357_v55 = vsub.f32 %v2332_v57, %v9608_v22 }
 0x159   : > { %v1298_v14 = vadd.f32 %v1297_v3, %v1261_v11  ;;  %2204 = vmatmul.f32.vlgmr.msrb.gmra.mxu0 %v9532_v48  ;;  %2245 = vmatmul.f32.gmra.mxu1 %v2128_v29  ;;  %v9605_v48 = vsub.f32 %v2569_v61, %v9598_v17  ;;  %v2595_v29 = vand.u32 4294901760, %v2568_v21  ;;  %v2331_v31 = vsel %vm892_vm3, %v2328_v56, %v2330_v15 }
 0x15a   : > { %2510 = vmatpush.msrb.mxu0 %v2397_v44  ;;  %v2358_v43 = vand.u32 4294901760, %v2357_v55 }
 0x15b   : > { %v1333_v20 = vadd.f32 %v1332_v9, %v1298_v14  ;;  %2282 = vmatmul.f32.gmra.mxu2 %v9537_v60  ;;  %v2638_v19 = vand.u32 4294901760, %v9605_v48  ;;  %v9611_v25 = vsub.f32 %v2568_v21, %v2595_v29  ;;  %v9645_v9 = vld [vmem:[#allocation2 + $0x6c] sm:$0xff] }
 0x15c   : > { %2514 = vmatpush.msrb.mxu0 %v2403_v32  ;;  %2596 = vmatpush.msrb.mxu2 %v2595_v29  ;;  %v2359_v52 = vsub.f32 %v2357_v55, %v2358_v43  ;;  %v2574_v4 = vsel %vm383_vm0, %v9645_v9, 0 }
 0x15d   : > { %v1364_v1 = vadd.f32 %v1363_v46, %v1333_v20  ;;  %2313 = vmatmul.f32.gmra.mxu3 %v9537_v60  ;;  %v2639_v35 = vsub.f32 %v9605_v48, %v2638_v19  ;;  %v2644_v60 = vand.u32 4294901760, %v9611_v25  ;;  %v9655_v20 = vand.u32 4294901760, %v2574_v4 }
 0x15e   : > { %v1407_v23 = vpop.f32.mrf.mxu0  ;;  %v1488_v41 = vpop.f32.mrf.mxu2 }
 0x15f   : > { %v9614_v27 = vadd.f32 %v1364_v1, %v9568_v26  ;;  %v1455_v58 = vadd.f32 %v1454_v40, %v1407_v23  ;;  %v1458_v30 = vpop.f32.mrf.mxu1  ;;  %v2334_v26 = vsel %vm383_vm0, %v2331_v31, 0  ;;  %v2640_v37 = vand.u32 4294901760, %v2639_v35  ;;  %v9658_v23 = vld [vmem:[#allocation2 + $0x74] sm:$0xff] }
 0x160   : > { %v1523_v34 = vpop.f32.mrf.mxu3  ;;  %v2645_v39 = vsub.f32 %v9611_v25, %v2644_v60  ;;  %v9627_v44 = vand.u32 4294901760, %v2334_v26  ;;  %v9649_v40 = vsub.f32 %v2571_v54, %v9641_v47  ;;  %v2805_v54 = vld [vmem:[#allocation5 + $0xa8] sm:$0xff] }
 0x161   : > { %v1489_v36 = vadd.f32 %v1488_v41, %v1455_v58  ;;  %2209 = vmatmul.f32.gmra.mxu0 %v9547_v6  ;;  %2251 = vmatmul.f32.gmra.mxu1 %v2136_v51  ;;  %v2577_v58 = vsel %vm383_vm0, %v9658_v23, 0 }
 0x162   : > { %2641 = vmatpush.msrb.mxu3 %v2640_v37  ;;  %v2646_v42 = vand.u32 4294901760, %v2645_v39  ;;  %v2365_v18 = vsub.f32 %v2334_v26, %v9627_v44 }
 0x163   : > { %v1524_v50 = vadd.f32 %v1523_v34, %v1489_v36  ;;  %2286 = vmatmul.f32.gmra.mxu2 %v9551_v10 }
 0x164   : > { %2647 = vmatpush.msrb.mxu3 %v2646_v42  ;;  %v2366_v62 = vand.u32 4294901760, %v2365_v18 }
 0x165   : > { %2317 = vmatmul.f32.gmra.mxu3 %v9551_v10  ;;  %v2336_v10 = vsel %vm383_vm0, %v2330_v15, 0  ;;  %v2599_v15 = vand.u32 4294901760, %v9649_v40 }
 0x166   : > { %v1415_v6 = vpop.f32.mrf.mxu0  ;;  %v1493_v45 = vpop.f32.mrf.mxu2  ;;  %v9638_v2 = vand.u32 4294901760, %v2336_v10  ;;  %v2367_v8 = vsub.f32 %v2365_v18, %v2366_v62 }
 0x167   : > { %v1459_v51 = vadd.f32 %v1458_v30, %v1415_v6  ;;  %v1462_v13 = vpop.f32.mrf.mxu1 }
 0x168   : > { %v1529_v32 = vpop.f32.mrf.mxu3  ;;  %v2373_v28 = vsub.f32 %v2336_v10, %v9638_v2  ;;  %v2368_v46 = vand.u32 4294901760, %v2367_v8 }
 0x169   : > { %v1494_v49 = vadd.f32 %v1493_v45, %v1459_v51  ;;  %2214 = vmatmul.f32.gmra.mxu0 %v9561_v38  ;;  %2408 = vmatmul.f32.vlgmr.msra.gmra.mxu1 %v9608_v22  ;;  %v2360_v38 = vand.u32 4294901760, %v2359_v52 }
 0x16a   : > { %2712 = vmatpush.msra.mxu1 %v9598_v17  ;;  %v2374_v14 = vand.u32 4294901760, %v2373_v28 }
 0x16b   : > { %v1530_v24 = vadd.f32 %v1529_v32, %v1494_v49  ;;  %2442 = vmatmul.f32.vlgmr.msra.gmra.mxu2 %v2357_v55  ;;  %v9672_v55 = vand.u32 4294901760, %v2577_v58 }
 0x16c   : > { %2751 = vmatpush.msra.mxu2 %v2638_v19  ;;  %2714 = vmatpush.msra.mxu1 %v2595_v29  ;;  %v2375_v1 = vsub.f32 %v2373_v28, %v2374_v14  ;;  %v2600_v19 = vsub.f32 %v9649_v40, %v2599_v15 }
 0x16d   : > { %2477 = vmatmul.f32.vlgmr.msra.gmra.mxu3 %v2358_v43  ;;  %v9682_v43 = vsub.f32 %v2577_v58, %v9672_v55 }
 0x16e   : > { %v1423_v3 = vpop.f32.mrf.mxu0  ;;  %v1498_v5 = vpop.f32.mrf.mxu2  ;;  %2755 = vmatpush.msra.mxu2 %v2644_v60  ;;  %2784 = vmatpush.msra.mxu3 %v9598_v17  ;;  %v2376_v30 = vand.u32 4294901760, %v2375_v1  ;;  %v2601_v60 = vand.u32 4294901760, %v2600_v19 }
 0x16f   : > { %v1463_v33 = vadd.f32 %v1462_v13, %v1423_v3  ;;  %v1593_v7 = vpop.f32.mrf.mxu1  ;;  %v2615_v49 = vand.u32 4294901760, %v9682_v43 }
 0x170   : > { %v1535_v56 = vpop.f32.mrf.mxu3  ;;  %2786 = vmatpush.msra.mxu3 %v2595_v29 }
 0x171   : > { %v1499_v63 = vadd.f32 %v1498_v5, %v1463_v33  ;;  %2361 = vmatmul.f32.vlgmr.msra.gmra.mxu0 %v2360_v38  ;;  %2412 = vmatmul.f32.gmra.mxu1 %v9627_v44  ;;  %v2831_v38 = vand.u32 4294901760, %v2805_v54 }
 0x172   : > { %2677 = vmatpush.msra.mxu0 %v9605_v48 }
 0x173   : > { %v1536_v11 = vadd.f32 %v1535_v56, %v1499_v63  ;;  %2447 = vmatmul.f32.gmra.mxu2 %v2365_v18  ;;  %v2875_v33 = vsub.f32 %v2805_v54, %v2831_v38 }
 0x174   : > { %2680 = vmatpush.msra.mxu0 %v9611_v25  ;;  %v9667_v25 = vsub.f32 %v2574_v4, %v9655_v20 }
 0x175   : > { %2483 = vmatmul.f32.gmra.mxu3 %v2366_v62  ;;  %v2804_v62 = vld [vmem:[#allocation5 + $0xa0] sm:$0xff] }
 0x176   : > { %v1562_v61 = vpop.f32.mrf.mxu0  ;;  %v1645_v16 = vpop.f32.mrf.mxu2 }
 0x177   : > { %v1563_v57 = vadd.f32 %v1562_v61, %v1524_v50  ;;  %v1597_v17 = vpop.f32.mrf.mxu1 }
 0x178   : > { %v1692_v21 = vpop.f32.mrf.mxu3 }
 0x179   : > { %v1594_v48 = vadd.f32 %v1593_v7, %v1563_v57  ;;  %2369 = vmatmul.f32.gmra.mxu0 %v2368_v46  ;;  %v1693_v29 = vadd.f32 %v1692_v21, %v1645_v16  ;;  %2416 = vmatmul.f32.gmra.mxu1 %v9638_v2 }
 0x17b   : > { %v9661_v41 = vadd.f32 %v1594_v48, %v9578_v12  ;;  %2452 = vmatmul.f32.gmra.mxu2 %v2373_v28  ;;  %v2607_v12 = vand.u32 4294901760, %v9667_v25  ;;  %v2876_v28 = vand.u32 4294901760, %v2875_v33 }
 0x17d   : > { %2489 = vmatmul.f32.gmra.mxu3 %v2374_v14  ;;  %v2608_v42 = vsub.f32 %v9667_v25, %v2607_v12  ;;  %v2877_v4 = vsub.f32 %v2875_v33, %v2876_v28 }
 0x17e   : > { %v1566_v31 = vpop.f32.mrf.mxu0  ;;  %v1653_v34 = vpop.f32.mrf.mxu2 }
 0x17f   : > { %v1567_v35 = vadd.f32 %v1566_v31, %v1530_v24  ;;  %v1601_v36 = vpop.f32.mrf.mxu1  ;;  %v2609_v13 = vand.u32 4294901760, %v2608_v42  ;;  %v2616_v24 = vsub.f32 %v9682_v43, %v2615_v49  ;;  %v2878_v61 = vand.u32 4294901760, %v2877_v4  ;;  %v3043_v42 = vld [vmem:[#allocation5 + $0xb8] sm:$0xff] }
 0x180   : > { %v1696_v26 = vpop.f32.mrf.mxu3 }
 0x181   : > { %v1598_v37 = vadd.f32 %v1597_v17, %v1567_v35  ;;  %2377 = vmatmul.f32.gmra.mxu0 %v2376_v30  ;;  %v1697_v39 = vadd.f32 %v1696_v26, %v1653_v34  ;;  %2547 = vmatmul.f32.vlgmr.msrb.gmra.mxu1 %v9608_v22  ;;  %v2617_v56 = vand.u32 4294901760, %v2616_v24  ;;  %v2807_v30 = vrot.slane %v9645_v9, 1 }
 0x182   : > { %2879 = vmatpush.msrb.mxu1 %v2878_v61  ;;  %v2806_v34 = vrot.slane %v9632_v53, 1 }
 0x183   : > { %v9676_v50 = vadd.f32 %v1598_v37, %v9590_v59  ;;  %2602 = vmatmul.f32.vlgmr.msrb.gmra.mxu2 %v2601_v60 }
 0x184   : > { %2915 = vmatpush.msrb.mxu2 %v2875_v33 }
 0x185   : > { %2649 = vmatmul.f32.vlgmr.msrb.gmra.mxu3 %v9641_v47 }
 0x186   : > { %v1570_v6 = vpop.f32.mrf.mxu0  ;;  %v1661_v45 = vpop.f32.mrf.mxu2  ;;  %2950 = vmatpush.msrb.mxu3 %v2831_v38 }
 0x187   : > { %v1571_v51 = vadd.f32 %v1570_v6, %v1536_v11  ;;  %v1761_v32 = vpop.f32.mrf.mxu1 }
 0x188   : > { %v1700_v52 = vpop.f32.mrf.mxu3 }
 0x189   : > { %v1602_v59 = vadd.f32 %v1601_v36, %v1571_v51  ;;  %2516 = vmatmul.f32.vlgmr.msrb.gmra.mxu0 %v9608_v22  ;;  %v1701_v18 = vadd.f32 %v1700_v52, %v1661_v45  ;;  %2551 = vmatmul.f32.gmra.mxu1 %v9627_v44  ;;  %v2833_v22 = vand.u32 4294901760, %v2804_v62  ;;  %v9717_v45 = vand.u32 4294901760, %v3043_v42  ;;  %v3042_v51 = vld [vmem:[#allocation5 + $0xb0] sm:$0xff] }
 0x18a   : > { %2832 = vmatpush.msrb.mxu0 %v2831_v38 }
 0x18b   : > { %v9689_v10 = vadd.f32 %v1602_v59, %v9614_v27  ;;  %2610 = vmatmul.f32.gmra.mxu2 %v2609_v13  ;;  %v2881_v8 = vsub.f32 %v2804_v62, %v2833_v22  ;;  %2952 = vmatpush.msrb.mxu3 %v2833_v22  ;;  %v9722_v13 = vsub.f32 %v3043_v42, %v9717_v45 }
 0x18c   : > { %2834 = vmatpush.msrb.mxu0 %v2833_v22 }
 0x18d   : > { %2653 = vmatmul.f32.gmra.mxu3 %v9655_v20  ;;  %2918 = vmatpush.msrb.mxu2 %v2881_v8  ;;  %v2882_v46 = vand.u32 4294901760, %v2881_v8  ;;  %v3114_v24 = vand.u32 4294901760, %v9722_v13 }
 0x18e   : > { %v1726_v3 = vpop.f32.mrf.mxu0  ;;  %v1800_v5 = vpop.f32.mrf.mxu2 }
 0x18f   : > { %v1727_v7 = vadd.f32 %v1726_v3, %v1693_v29  ;;  %v1767_v27 = vpop.f32.mrf.mxu1  ;;  %v2883_v16 = vsub.f32 %v2881_v8, %v2882_v46 }
 0x190   : > { %v1831_v63 = vpop.f32.mrf.mxu3 }
 0x191   : > { %v1762_v11 = vadd.f32 %v1761_v32, %v1727_v7  ;;  %2520 = vmatmul.f32.gmra.mxu0 %v9627_v44  ;;  %2555 = vmatmul.f32.gmra.mxu1 %v9638_v2  ;;  %v2884_v48 = vand.u32 4294901760, %v2883_v16 }
 0x193   : > { %v1801_v14 = vadd.f32 %v1800_v5, %v1762_v11  ;;  %2618 = vmatmul.f32.gmra.mxu2 %v2617_v56  ;;  %2885 = vmatpush.msrb.mxu1 %v2884_v48  ;;  %v3044_v11 = vrot.slane %v9632_v53, 2 }
 0x195   : > { %v1832_v57 = vadd.f32 %v1831_v63, %v1801_v14  ;;  %2657 = vmatmul.f32.gmra.mxu3 %v9672_v55 }
 0x196   : > { %v1731_v17 = vpop.f32.mrf.mxu0  ;;  %v1804_v21 = vpop.f32.mrf.mxu2 }
 0x197   : > { %v9699_v29 = vadd.f32 %v1832_v57, %v9661_v41  ;;  %v1732_v44 = vadd.f32 %v1731_v17, %v1697_v39  ;;  %v1773_v1 = vpop.f32.mrf.mxu1 }
 0x198   : > { %v1835_v19 = vpop.f32.mrf.mxu3 }
 0x199   : > { %v1768_v58 = vadd.f32 %v1767_v27, %v1732_v44  ;;  %2524 = vmatmul.f32.gmra.mxu0 %v9638_v2  ;;  %2718 = vmatmul.f32.vlgmr.msra.gmra.mxu1 %v2599_v15  ;;  %v2808_v15 = vsel %vm428_vm2, %v2806_v34, %v2807_v30 }
 0x19a   : > { %3022 = vmatpush.msra.mxu1 %v2831_v38  ;;  %v2811_v6 = vsel %vm383_vm0, %v2808_v15, 0 }
 0x19b   : > { %v1805_v31 = vadd.f32 %v1804_v21, %v1768_v58  ;;  %2757 = vmatmul.f32.vlgmr.msra.gmra.mxu2 %v9641_v47  ;;  %v9727_v32 = vand.u32 4294901760, %v2811_v6 }
 0x19c   : > { %3024 = vmatpush.msra.mxu1 %v2833_v22  ;;  %3070 = vmatpush.msra.mxu2 %v9717_v45 }
 0x19d   : > { %v1836_v41 = vadd.f32 %v1835_v19, %v1805_v31  ;;  %2788 = vmatmul.f32.vlgmr.msra.gmra.mxu3 %v9641_v47  ;;  %v2809_v47 = vrot.slane %v9658_v23, 1  ;;  %v2836_v7 = vsub.f32 %v2811_v6, %v9727_v32 }
 0x19e   : > { %v1736_v35 = vpop.f32.mrf.mxu0  ;;  %v1808_v60 = vpop.f32.mrf.mxu2 }
 0x19f   : > { %v9709_v36 = vadd.f32 %v1836_v41, %v9676_v50  ;;  %v1737_v2 = vadd.f32 %v1736_v35, %v1701_v18  ;;  %v1933_v26 = vpop.f32.mrf.mxu1  ;;  %v2810_v18 = vsel %vm428_vm2, %v2807_v30, %v2809_v47 }
 0x1a0   : > { %v1839_v37 = vpop.f32.mrf.mxu3  ;;  %v2813_v56 = vsel %vm383_vm0, %v2810_v18, 0 }
 0x1a1   : > { %v1774_v39 = vadd.f32 %v1773_v1, %v1737_v2  ;;  %2683 = vmatmul.f32.vlgmr.msra.gmra.mxu0 %v9649_v40  ;;  %2724 = vmatmul.f32.gmra.mxu1 %v2607_v12  ;;  %v9724_v40 = vand.u32 4294901760, %v3042_v51  ;;  %v9747_v8 = vand.u32 4294901760, %v2813_v56  ;;  %v3047_v1 = vrot.slane %v9658_v23, 2 }
 0x1a2   : > { %2989 = vmatpush.msra.mxu0 %v2876_v28 }
 0x1a3   : > { %v1809_v50 = vadd.f32 %v1808_v60, %v1774_v39  ;;  %2761 = vmatmul.f32.gmra.mxu2 %v9655_v20  ;;  %v9733_v54 = vsub.f32 %v3042_v51, %v9724_v40  ;;  %v2844_v57 = vsub.f32 %v2813_v56, %v9747_v8 }
 0x1a4   : > { %2993 = vmatpush.msra.mxu0 %v2882_v46  ;;  %3072 = vmatpush.msra.mxu2 %v9724_v40 }
 0x1a5   : > { %v1840_v12 = vadd.f32 %v1839_v37, %v1809_v50  ;;  %2792 = vmatmul.f32.gmra.mxu3 %v9655_v20  ;;  %v3115_v20 = vsub.f32 %v9722_v13, %v3114_v24  ;;  %v3120_v33 = vand.u32 4294901760, %v9733_v54  ;;  %v2845_v48 = vand.u32 4294901760, %v2844_v57 }
 0x1a6   : > { %v1886_v52 = vpop.f32.mrf.mxu0  ;;  %v1967_v59 = vpop.f32.mrf.mxu2 }
 0x1a7   : > { %v9736_v38 = vadd.f32 %v1840_v12, %v9689_v10  ;;  %v1934_v62 = vadd.f32 %v1933_v26, %v1886_v52  ;;  %v1937_v3 = vpop.f32.mrf.mxu1  ;;  %v3116_v27 = vand.u32 4294901760, %v3115_v20  ;;  %v3121_v10 = vsub.f32 %v9733_v54, %v3120_v33 }
 0x1a8   : > { %v2002_v5 = vpop.f32.mrf.mxu3  ;;  %v2846_v60 = vsub.f32 %v2844_v57, %v2845_v48 }
 0x1a9   : > { %v1968_v22 = vadd.f32 %v1967_v59, %v1934_v62  ;;  %2688 = vmatmul.f32.gmra.mxu0 %v9667_v25  ;;  %2730 = vmatmul.f32.gmra.mxu1 %v2615_v49  ;;  %v3122_v28 = vand.u32 4294901760, %v3121_v10  ;;  %v3045_v25 = vrot.slane %v9645_v9, 2  ;;  %v2837_v49 = vand.u32 4294901760, %v2836_v7 }
 0x1aa   : > { %3117 = vmatpush.msra.mxu3 %v3116_v27  ;;  %v2815_v9 = vsel %vm383_vm0, %v2809_v47, 0  ;;  %v2847_v42 = vand.u32 4294901760, %v2846_v60  ;;  %v3053_v62 = vsel %vm383_vm0, %v3047_v1, 0 }
 0x1ab   : > { %v2003_v63 = vadd.f32 %v2002_v5, %v1968_v22  ;;  %2765 = vmatmul.f32.gmra.mxu2 %v9672_v55  ;;  %v2838_v21 = vsub.f32 %v2836_v7, %v2837_v49  ;;  %v3046_v53 = vsel %vm892_vm3, %v3044_v11, %v3045_v25  ;;  %v9761_v19 = vand.u32 4294901760, %v2815_v9 }
 0x1ac   : > { %3123 = vmatpush.msra.mxu3 %v3122_v28  ;;  %v3049_v44 = vsel %vm383_vm0, %v3046_v53, 0  ;;  %v3048_v26 = vsel %vm892_vm3, %v3045_v25, %v3047_v1  ;;  %v3089_v27 = vand.u32 4294901760, %v3053_v62 }
 0x1ad   : > { %2796 = vmatmul.f32.gmra.mxu3 %v9672_v55  ;;  %v9764_v41 = vand.u32 4294901760, %v3049_v44  ;;  %v2852_v23 = vsub.f32 %v2815_v9, %v9761_v19  ;;  %v3051_v39 = vsel %vm383_vm0, %v3048_v26, 0 }
 0x1ae   : > { %v1894_v4 = vpop.f32.mrf.mxu0  ;;  %v1972_v46 = vpop.f32.mrf.mxu2  ;;  %v3090_v11 = vsub.f32 %v3053_v62, %v3089_v27 }
 0x1af   : > { %v1938_v14 = vadd.f32 %v1937_v3, %v1894_v4  ;;  %v1941_v61 = vpop.f32.mrf.mxu1  ;;  %v9772_v37 = vsub.f32 %v3049_v44, %v9764_v41  ;;  %v2853_v6 = vand.u32 4294901760, %v2852_v23 }
 0x1b0   : > { %v2008_v16 = vpop.f32.mrf.mxu3 }
 0x1b1   : > { %v1973_v17 = vadd.f32 %v1972_v46, %v1938_v14  ;;  %2693 = vmatmul.f32.gmra.mxu0 %v9682_v43  ;;  %2887 = vmatmul.f32.vlgmr.msrb.gmra.mxu1 %v9727_v32  ;;  %v2839_v43 = vand.u32 4294901760, %v2838_v21  ;;  %v2854_v59 = vsub.f32 %v2852_v23, %v2853_v6 }
 0x1b2   : > { %3188 = vmatpush.msrb.mxu1 %v9717_v45 }
 0x1b3   : > { %v2009_v55 = vadd.f32 %v2008_v16, %v1973_v17  ;;  %2921 = vmatmul.f32.vlgmr.msrb.gmra.mxu2 %v2836_v7  ;;  %v2855_v3 = vand.u32 4294901760, %v2854_v59 }
 0x1b4   : > { %3227 = vmatpush.msrb.mxu2 %v3114_v24  ;;  %3190 = vmatpush.msrb.mxu1 %v9724_v40 }
 0x1b5   : > { %2956 = vmatmul.f32.vlgmr.msrb.gmra.mxu3 %v2837_v49 }
 0x1b6   : > { %v1902_v58 = vpop.f32.mrf.mxu0  ;;  %v1977_v30 = vpop.f32.mrf.mxu2  ;;  %3231 = vmatpush.msrb.mxu2 %v3120_v33  ;;  %3260 = vmatpush.msrb.mxu3 %v9717_v45 }
 0x1b7   : > { %v1942_v31 = vadd.f32 %v1941_v61, %v1902_v58  ;;  %v2072_v34 = vpop.f32.mrf.mxu1  ;;  %v3091_v61 = vand.u32 4294901760, %v3090_v11 }
 0x1b8   : > { %v2014_v35 = vpop.f32.mrf.mxu3  ;;  %3262 = vmatpush.msrb.mxu3 %v9724_v40  ;;  %v3075_v40 = vand.u32 4294901760, %v9772_v37 }
 0x1b9   : > { %v1978_v2 = vadd.f32 %v1977_v30, %v1942_v31  ;;  %2840 = vmatmul.f32.vlgmr.msrb.gmra.mxu0 %v2839_v43  ;;  %2891 = vmatmul.f32.gmra.mxu1 %v9747_v8  ;;  %v3092_v17 = vsub.f32 %v3090_v11, %v3091_v61 }
 0x1ba   : > { %3153 = vmatpush.msrb.mxu0 %v9722_v13  ;;  %v9779_v13 = vand.u32 4294901760, %v3051_v39  ;;  %v3076_v24 = vsub.f32 %v9772_v37, %v3075_v40 }
 0x1bb   : > { %v2015_v15 = vadd.f32 %v2014_v35, %v1978_v2  ;;  %2926 = vmatmul.f32.gmra.mxu2 %v2844_v57 }
 0x1bc   : > { %3156 = vmatpush.msrb.mxu0 %v9733_v54  ;;  %v3082_v54 = vsub.f32 %v3051_v39, %v9779_v13  ;;  %v3077_v7 = vand.u32 4294901760, %v3076_v24 }
 0x1bd   : > { %2962 = vmatmul.f32.gmra.mxu3 %v2845_v48 }
 0x1be   : > { %v2041_v47 = vpop.f32.mrf.mxu0  ;;  %v9776_v45 = vpop.f32.mrf.mxu2  ;;  %v3083_v56 = vand.u32 4294901760, %v3082_v54 }
 0x1bf   : > { %v2042_v50 = vadd.f32 %v2041_v47, %v2003_v63  ;;  %v2076_v51 = vpop.f32.mrf.mxu1 }
 0x1c0   : > { %v9781_v12 = vpop.f32.mrf.mxu3  ;;  %v3084_v28 = vsub.f32 %v3082_v54, %v3083_v56 }
 0x1c1   : > { %v2073_v52 = vadd.f32 %v2072_v34, %v2042_v50  ;;  %2848 = vmatmul.f32.gmra.mxu0 %v2847_v42  ;;  %2895 = vmatmul.f32.gmra.mxu1 %v9761_v19 }
 0x1c2   : > { %v3085_v14 = vand.u32 4294901760, %v3084_v28  ;;  %v3347_v28 = vld [vmem:[#allocation7 + $0xe8] sm:$0xff] }
 0x1c3   : > { %v9785_v18 = vadd.f32 %v2073_v52, %v9699_v29  ;;  %2931 = vmatmul.f32.gmra.mxu2 %v2852_v23 }
 0x1c5   : > { %14029 = vst [vmem:[#allocation17_spill] sm:$0xff] %v9785_v18  ;;  %2968 = vmatmul.f32.gmra.mxu3 %v2853_v6 }
 0x1c6   : > { %v2045_v5 = vpop.f32.mrf.mxu0  ;;  %v9790_v20 = vpop.f32.mrf.mxu2 }
 0x1c7   : > { %v2046_v33 = vadd.f32 %v2045_v5, %v2009_v55  ;;  %v2080_v22 = vpop.f32.mrf.mxu1  ;;  %v3093_v55 = vand.u32 4294901760, %v3092_v17 }
 0x1c8   : > { %v9792_v10 = vpop.f32.mrf.mxu3 }
 0x1c9   : > { %v2077_v29 = vadd.f32 %v2076_v51, %v2046_v33  ;;  %2856 = vmatmul.f32.gmra.mxu0 %v2855_v3  ;;  %3026 = vmatmul.f32.vlgmr.msra.gmra.mxu1 %v9727_v32  ;;  %v3349_v3 = vld [vmem:[#allocation7 + $0xf8] sm:$0xff]  ;;  %v3348_v33 = vld [vmem:[#allocation7 + $0xf0] sm:$0xff] }
 0x1ca   : > { %v9891_v5 = vand.u32 4294901760, %v3349_v3 }
 0x1cb   : > { %v9796_v63 = vadd.f32 %v2077_v29, %v9709_v36  ;;  %3078 = vmatmul.f32.vlgmr.msra.gmra.mxu2 %v3077_v7 }
 0x1cd   : > { %14030 = vst [vmem:[#allocation18_spill] sm:$0xff] %v9796_v63  ;;  %3125 = vmatmul.f32.vlgmr.msra.gmra.mxu3 %v9764_v41 }
 0x1ce   : > { %v2049_v25 = vpop.f32.mrf.mxu0  ;;  %v9799_v49 = vpop.f32.mrf.mxu2  ;;  %3592 = vmatpush.msra.mxu3 %v9891_v5 }
 0x1cf   : > { %14031 = vst [vmem:[#allocation19_spill] sm:$0xff] %v9799_v49  ;;  %v2050_v4 = vadd.f32 %v2049_v25, %v2015_v15  ;;  %v9801_v46 = vpop.f32.mrf.mxu1 }
 0x1d0   : > { %v9803_v16 = vpop.f32.mrf.mxu3 }
 0x1d1   : > { %14032 = vst [vmem:[#allocation20_spill] sm:$0xff] %v9803_v16  ;;  %v2081_v57 = vadd.f32 %v2080_v22, %v2050_v4  ;;  %2995 = vmatmul.f32.vlgmr.msra.gmra.mxu0 %v9727_v32  ;;  %3030 = vmatmul.f32.gmra.mxu1 %v9747_v8 }
 0x1d2   : > { %3362 = vmatpush.msra.mxu0 %v9891_v5 }
 0x1d3   : > { %v9808_v36 = vadd.f32 %v2081_v57, %v9736_v38  ;;  %3086 = vmatmul.f32.gmra.mxu2 %v3085_v14  ;;  %v9913_v14 = vand.u32 4294901760, %v3347_v28 }
 0x1d5   : > { %14033 = vst [vmem:[#allocation21_spill] sm:$0xff] %v9808_v36  ;;  %3129 = vmatmul.f32.gmra.mxu3 %v9779_v13 }
 0x1d6   : > { %v9811_v21 = vpop.f32.mrf.mxu0  ;;  %v9813_v53 = vpop.f32.mrf.mxu2 }
 0x1d7   : > { %v9815_v9 = vpop.f32.mrf.mxu1 }
 0x1d8   : > { %v9817_v48 = vpop.f32.mrf.mxu3 }
 0x1d9   : > { %2999 = vmatmul.f32.gmra.mxu0 %v9747_v8  ;;  %3034 = vmatmul.f32.gmra.mxu1 %v9761_v19 }
 0x1db   : > { %3094 = vmatmul.f32.gmra.mxu2 %v3093_v55  ;;  %v9922_v55 = vsub.f32 %v3347_v28, %v9913_v14 }
 0x1dd   : > { %3133 = vmatmul.f32.gmra.mxu3 %v3089_v27 }
 0x1de   : > { %v9821_v32 = vpop.f32.mrf.mxu0  ;;  %v9823_v38 = vpop.f32.mrf.mxu2 }
 0x1df   : > { %14034 = vst [vmem:[#allocation22_spill] sm:$0xff] %v9823_v38  ;;  %v9825_v44 = vpop.f32.mrf.mxu1  ;;  %v3336_v38 = vld [vmem:[#allocation7 + $0x90] sm:$0xff] }
 0x1e0   : > { %14035 = vst [vmem:[#allocation23_spill] sm:$0xff] %v9825_v44  ;;  %v9827_v1 = vpop.f32.mrf.mxu3  ;;  %v3342_v44 = vld [vmem:[#allocation7 + $0xc0] sm:$0xff] }
 0x1e1   : > { %14036 = vst [vmem:[#allocation24_spill] sm:$0xff] %v9827_v1  ;;  %3003 = vmatmul.f32.gmra.mxu0 %v9761_v19  ;;  %3194 = vmatmul.f32.vlgmr.msrb.gmra.mxu1 %v3075_v40  ;;  %v3340_v1 = vld [vmem:[#allocation7 + $0xb0] sm:$0xff] }
 0x1e3   : > { %3233 = vmatmul.f32.vlgmr.msrb.gmra.mxu2 %v9764_v41 }
 0x1e5   : > { %3264 = vmatmul.f32.vlgmr.msrb.gmra.mxu3 %v9764_v41 }
 0x1e6   : > { %v9832_v8 = vpop.f32.mrf.mxu0  ;;  %v9834_v43 = vpop.f32.mrf.mxu2 }
 0x1e7   : > { %14037 = vst [vmem:[#allocation25_spill] sm:$0xff] %v9832_v8  ;;  %v9836_v58 = vpop.f32.mrf.mxu1 }
 0x1e8   : > { %14038 = vst [vmem:[#allocation26_spill] sm:$0xff] %v9834_v43  ;;  %v9838_v30 = vpop.f32.mrf.mxu3 }
 0x1e9   : > { %14039 = vst [vmem:[#allocation27_spill] sm:$0xff] %v9838_v30  ;;  %3159 = vmatmul.f32.vlgmr.msrb.gmra.mxu0 %v9772_v37  ;;  %3200 = vmatmul.f32.gmra.mxu1 %v3083_v56  ;;  %v9898_v56 = vsub.f32 %v3349_v3, %v9891_v5  ;;  %v3344_v30 = vld [vmem:[#allocation7 + $0xd0] sm:$0xff] }
 0x1ea   : > { %v9950_v43 = vand.u32 4294901760, %v3344_v30 }
 0x1eb   : > { %3237 = vmatmul.f32.gmra.mxu2 %v9779_v13  ;;  %v13766_v25 = vand.u32 4294901760, %v9898_v56 }
 0x1ec   : > { %3529 = vmatpush.msra.mxu2 %v9898_v56 }
 0x1ed   : > { %3268 = vmatmul.f32.gmra.mxu3 %v9779_v13  ;;  %v3421_v57 = vsub.f32 %v9898_v56, %v13766_v25  ;;  %v13768_v25 = vand.u32 4294901760, %v9922_v55 }
 0x1ee   : > { %v9843_v19 = vpop.f32.mrf.mxu0  ;;  %v9845_v31 = vpop.f32.mrf.mxu2 }
 0x1ef   : > { %v9847_v34 = vpop.f32.mrf.mxu1  ;;  %v3422_v0 = vand.u32 4294901760, %v3421_v57 }
 0x1f0   : > { %v9849_v41 = vpop.f32.mrf.mxu3 }
 0x1f1   : > { %3164 = vmatmul.f32.gmra.mxu0 %v3082_v54  ;;  %3206 = vmatmul.f32.gmra.mxu1 %v3091_v61  ;;  %v3346_v61 = vld [vmem:[#allocation7 + $0xe0] sm:$0xff] }
 0x1f2   : > { %v9925_v3 = vand.u32 4294901760, %v3346_v61  ;;  %3423 = vmatpush.msra.mxu1 %v3422_v0 }
 0x1f3   : > { %3241 = vmatmul.f32.gmra.mxu2 %v3089_v27 }
 0x1f5   : > { %3272 = vmatmul.f32.gmra.mxu3 %v3089_v27  ;;  %v9900_v27 = vand.u32 4294901760, %v3348_v33 }
 0x1f6   : > { %v9851_v35 = vpop.f32.mrf.mxu0  ;;  %v9853_v60 = vpop.f32.mrf.mxu2 }
 0x1f7   : > { %14040 = vst [vmem:[#allocation28_spill] sm:$0xff] %v9853_v60  ;;  %v9855_v2 = vpop.f32.mrf.mxu1  ;;  %v9910_v4 = vsub.f32 %v3348_v33, %v9900_v27  ;;  %3594 = vmatpush.msra.mxu3 %v9900_v27  ;;  %3364 = vmatpush.msra.mxu0 %v9900_v27  ;;  %v3345_v33 = vld [vmem:[#allocation7 + $0xd8] sm:$0xff] }
 0x1f8   : > { %14041 = vst [vmem:[#allocation29_spill] sm:$0xff] %v9855_v2  ;;  %v9857_v23 = vpop.f32.mrf.mxu3  ;;  %v9938_v28 = vand.u32 4294901760, %v3345_v33 }
 0x1f9   : > { %14042 = vst [vmem:[#allocation30_spill] sm:$0xff] %v9857_v23  ;;  %3169 = vmatmul.f32.gmra.mxu0 %v3090_v11  ;;  %v13767_v17 = vand.u32 4294901760, %v9910_v4  ;;  %3532 = vmatpush.msra.mxu2 %v9910_v4 }
 0x1fa   : > { %3596 = vmatpush.msra.mxu3 %v9913_v14  ;;  %3366 = vmatpush.msra.mxu0 %v9913_v14 }
 0x1fb   : > { %v3427_v36 = vsub.f32 %v9910_v4, %v13767_v17  ;;  %3535 = vmatpush.msra.mxu2 %v9922_v55 }
 0x1fc   : > { %3598 = vmatpush.msra.mxu3 %v9925_v3  ;;  %3368 = vmatpush.msra.mxu0 %v9925_v3 }
 0x1fd   : > { %v3428_v17 = vand.u32 4294901760, %v3427_v36 }
 0x1fe   : > { %v9859_v26 = vpop.f32.mrf.mxu0  ;;  %v9861_v15 = vpop.f32.mrf.mxu2  ;;  %3600 = vmatpush.msra.mxu3 %v9938_v28  ;;  %3370 = vmatpush.msra.mxu0 %v9938_v28 }
 0x1ff   : > { %14043 = vst [vmem:[#allocation31_spill] sm:$0xff] %v9859_v26  ;;  %v9863_v37 = vpop.f32.mrf.mxu1  ;;  %3429 = vmatpush.msra.mxu1 %v3428_v17 }
 0x200   : > { %14044 = vst [vmem:[#allocation32_spill] sm:$0xff] %v9861_v15  ;;  %v9865_v39 = vpop.f32.mrf.mxu3  ;;  %v3343_v15 = vld [vmem:[#allocation7 + $0xc8] sm:$0xff]  ;;  %3602 = vmatpush.msra.mxu3 %v9950_v43  ;;  %3372 = vmatpush.msra.mxu0 %v9950_v43 }
 0x201   : > { %14045 = vst [vmem:[#allocation33_spill] sm:$0xff] %v9863_v37 }
 0x202   : > { %14046 = vst [vmem:[#allocation34_spill] sm:$0xff] %v9865_v39 }
 0x206   : > { %v9867_v42 = vpop.f32.mrf.mxu0  ;;  %v9869_v6 = vpop.f32.mrf.mxu2 }
 0x207   : > { %14047 = vst [vmem:[#allocation35_spill] sm:$0xff] %v9867_v42  ;;  %v9871_v47 = vpop.f32.mrf.mxu1 }
 0x208   : > { %14048 = vst [vmem:[#allocation36_spill] sm:$0xff] %v9871_v47  ;;  %v9873_v50 = vpop.f32.mrf.mxu3  ;;  %v9955_v47 = vsub.f32 %v3345_v33, %v9938_v28 }
 0x20a   : > { %v13770_v33 = vand.u32 4294901760, %v9955_v47 }
 0x20e   : > { %v9875_v51 = vpop.f32.mrf.mxu0  ;;  %v9877_v40 = vpop.f32.mrf.mxu2 }
 0x20f   : > { %14049 = vst [vmem:[#allocation37_spill] sm:$0xff] %v9875_v51  ;;  %v9879_v13 = vpop.f32.mrf.mxu1 }
 0x210   : > { %14050 = vst [vmem:[#allocation38_spill] sm:$0xff] %v9877_v40  ;;  %v9881_v52 = vpop.f32.mrf.mxu3 }
 0x211   : > { %14051 = vst [vmem:[#allocation39_spill] sm:$0xff] %v9879_v13  ;;  %v9934_v13 = vsub.f32 %v3346_v61, %v9925_v3  ;;  %v3433_v61 = vsub.f32 %v9922_v55, %v13768_v25 }
 0x212   : > { %14052 = vst [vmem:[#allocation40_spill] sm:$0xff] %v9881_v52 }
 0x213   : > { %v13769_v39 = vand.u32 4294901760, %v9934_v13  ;;  %3538 = vmatpush.msra.mxu2 %v9934_v13  ;;  %v3434_v36 = vand.u32 4294901760, %v3433_v61 }
 0x215   : > { %v3439_v25 = vsub.f32 %v9934_v13, %v13769_v39  ;;  %3541 = vmatpush.msra.mxu2 %v9955_v47  ;;  %3435 = vmatpush.msra.mxu1 %v3434_v36  ;;  %v9976_v39 = vand.u32 4294901760, %v3342_v44 }
 0x216   : > { %v9883_v59 = vpop.f32.mrf.mxu0  ;;  %v9885_v24 = vpop.f32.mrf.mxu2 }
 0x217   : > { %14053 = vst [vmem:[#allocation41_spill] sm:$0xff] %v9883_v59  ;;  %v9887_v54 = vpop.f32.mrf.mxu1  ;;  %v9989_v36 = vsub.f32 %v3342_v44, %v9976_v39 }
 0x218   : > { %14054 = vst [vmem:[#allocation42_spill] sm:$0xff] %v9885_v24  ;;  %v9889_v62 = vpop.f32.mrf.mxu3 }
 0x219   : > { %14055 = vst [vmem:[#allocation43_spill] sm:$0xff] %v9889_v62  ;;  %v3341_v62 = vld [vmem:[#allocation7 + $0xb8] sm:$0xff] }
 0x21a   : > { %v9991_v24 = vand.u32 4294901760, %v3341_v62 }
 0x21e   : > { %v9893_v22 = vpop.f32.mrf.mxu0  ;;  %v9895_v7 = vpop.f32.mrf.mxu2 }
 0x21f   : > { %14056 = vst [vmem:[#allocation44_spill] sm:$0xff] %v9895_v7  ;;  %v9904_v29 = vpop.f32.mrf.mxu1  ;;  %v3335_v7 = vld [vmem:[#allocation7 + $0x88] sm:$0xff] }
 0x220   : > { %14057 = vst [vmem:[#allocation45_spill] sm:$0xff] %v9904_v29  ;;  %v9906_v11 = vpop.f32.mrf.mxu3  ;;  %v13773_v29 = vand.u32 4294901760, %v9989_v36 }
 0x221   : > { %14058 = vst [vmem:[#allocation46_spill] sm:$0xff] %v9906_v11  ;;  %v10005_v11 = vsub.f32 %v3341_v62, %v9991_v24 }
 0x223   : > { %v13774_v62 = vand.u32 4294901760, %v10005_v11 }
 0x226   : > { %v9941_v59 = vpop.f32.mrf.mxu0  ;;  %v9943_v57 = vpop.f32.mrf.mxu2 }
 0x227   : > { %14059 = vst [vmem:[#allocation47_spill] sm:$0xff] %v9941_v59  ;;  %v9952_v63 = vpop.f32.mrf.mxu1 }
 0x228   : > { %14060 = vst [vmem:[#allocation48_spill] sm:$0xff] %v9943_v57  ;;  %v9959_v0 = vpop.f32.mrf.mxu3  ;;  %v9965_v57 = vsub.f32 %v3344_v30, %v9950_v43  ;;  %v3445_v30 = vsub.f32 %v9955_v47, %v13770_v33 }
 0x229   : > { %14061 = vst [vmem:[#allocation49_spill] sm:$0xff] %v9952_v63  ;;  %v9967_v63 = vand.u32 4294901760, %v3343_v15 }
 0x22a   : > { %14062 = vst [vmem:[#allocation50_spill] sm:$0xff] %v9959_v0  ;;  %v3440_v0 = vand.u32 4294901760, %v3439_v25  ;;  %v13771_v17 = vand.u32 4294901760, %v9965_v57  ;;  %3544 = vmatpush.msra.mxu2 %v9965_v57  ;;  %v3446_v33 = vand.u32 4294901760, %v3445_v30 }
 0x22b   : > { %v9974_v61 = vsub.f32 %v3343_v15, %v9967_v63  ;;  %3604 = vmatpush.msra.mxu3 %v9967_v63  ;;  %3374 = vmatpush.msra.mxu0 %v9967_v63 }
 0x22c   : > { %3441 = vmatpush.msra.mxu1 %v3440_v0  ;;  %v3451_v25 = vsub.f32 %v9965_v57, %v13771_v17 }
 0x22d   : > { %v13772_v15 = vand.u32 4294901760, %v9974_v61  ;;  %3547 = vmatpush.msra.mxu2 %v9974_v61  ;;  %3606 = vmatpush.msra.mxu3 %v9976_v39 }
 0x22e   : > { %v9996_v0 = vpop.f32.mrf.mxu0  ;;  %v9998_v51 = vpop.f32.mrf.mxu2  ;;  %v3452_v17 = vand.u32 4294901760, %v3451_v25  ;;  %3376 = vmatpush.msra.mxu0 %v9976_v39  ;;  %3447 = vmatpush.msra.mxu1 %v3446_v33 }
 0x22f   : > { %14063 = vst [vmem:[#allocation51_spill] sm:$0xff] %v9996_v0  ;;  %v3457_v44 = vsub.f32 %v9974_v61, %v13772_v15  ;;  %v10008_v30 = vpop.f32.mrf.mxu1  ;;  %3550 = vmatpush.msra.mxu2 %v9989_v36  ;;  %v10011_v0 = vand.u32 4294901760, %v3340_v1  ;;  %v3463_v15 = vsub.f32 %v9989_v36, %v13773_v29  ;;  %3608 = vmatpush.msra.mxu3 %v9991_v24 }
 0x230   : > { %14064 = vst [vmem:[#allocation52_spill] sm:$0xff] %v9998_v51  ;;  %v3339_v51 = vld [vmem:[#allocation7 + $0xa8] sm:$0xff]  ;;  %v10013_v25 = vpop.f32.mrf.mxu3  ;;  %3378 = vmatpush.msra.mxu0 %v9991_v24  ;;  %3453 = vmatpush.msra.mxu1 %v3452_v17  ;;  %v3469_v29 = vsub.f32 %v10005_v11, %v13774_v62  ;;  %v3337_v17 = vld [vmem:[#allocation7 + $0x98] sm:$0xff] }
 0x231   : > { %14065 = vst [vmem:[#allocation53_spill] sm:$0xff] %v10013_v25  ;;  %v3458_v2 = vand.u32 4294901760, %v3457_v44  ;;  %v10019_v26 = vand.u32 4294901760, %v3339_v51  ;;  %v10024_v33 = vsub.f32 %v3340_v1, %v10011_v0  ;;  %3553 = vmatpush.msra.mxu2 %v10005_v11  ;;  %v3338_v25 = vld [vmem:[#allocation7 + $0xa0] sm:$0xff]  ;;  %v3464_v44 = vand.u32 4294901760, %v3463_v15  ;;  %3610 = vmatpush.msra.mxu3 %v10011_v0 }
 0x232   : > { %v10033_v8 = vand.u32 4294901760, %v3338_v25  ;;  %3380 = vmatpush.msra.mxu0 %v10011_v0  ;;  %v3470_v15 = vand.u32 4294901760, %v3469_v29 }
 0x233   : > { %v10031_v23 = vsub.f32 %v3339_v51, %v10019_v26  ;;  %3459 = vmatpush.msra.mxu1 %v3458_v2  ;;  %v13775_v1 = vand.u32 4294901760, %v10024_v33  ;;  %3556 = vmatpush.msra.mxu2 %v10024_v33  ;;  %v10043_v51 = vand.u32 4294901760, %v3337_v17 }
 0x234   : > { %v10041_v62 = vsub.f32 %v3338_v25, %v10033_v8  ;;  %3612 = vmatpush.msra.mxu3 %v10019_v26  ;;  %3382 = vmatpush.msra.mxu0 %v10019_v26 }
 0x235   : > { %14066 = vst [vmem:[#allocation54_spill] sm:$0xff] %v10043_v51  ;;  %3465 = vmatpush.msra.mxu1 %v3464_v44  ;;  %v3475_v2 = vsub.f32 %v10024_v33, %v13775_v1  ;;  %3559 = vmatpush.msra.mxu2 %v10031_v23  ;;  %v14068_v25 = vand.u32 4294901760, %v10031_v23  ;;  %v10060_v49 = vsub.f32 %v3337_v17, %v10043_v51  ;;  %v10062_v44 = vand.u32 4294901760, %v3336_v38 }
 0x236   : > { %v10051_v29 = vpop.f32.mrf.mxu0  ;;  %v10053_v37 = vpop.f32.mrf.mxu2  ;;  %v13776_v16 = vand.u32 4294901760, %v10041_v62  ;;  %3614 = vmatpush.msra.mxu3 %v10033_v8  ;;  %3384 = vmatpush.msra.mxu0 %v10033_v8 }
 0x237   : > { %14067 = vst [vmem:[#allocation55_spill] sm:$0xff] %v10053_v37  ;;  %v3481_v18 = vsub.f32 %v10031_v23, %v14068_v25  ;;  %v10066_v1 = vpop.f32.mrf.mxu1  ;;  %3471 = vmatpush.msra.mxu1 %v3470_v15  ;;  %v3476_v59 = vand.u32 4294901760, %v3475_v2  ;;  %3562 = vmatpush.msra.mxu2 %v10041_v62  ;;  %v13777_v37 = vand.u32 4294901760, %v10060_v49  ;;  %v10076_v52 = vsub.f32 %v3336_v38, %v10062_v44  ;;  %v3334_v2 = vld [vmem:[#allocation7 + $0x80] sm:$0xff] }
 0x238   : > { %14069 = vst [vmem:[#allocation56_spill] sm:$0xff] %v10062_v44  ;;  %v10069_v60 = vpop.f32.mrf.mxu3  ;;  %v3487_v17 = vsub.f32 %v10041_v62, %v13776_v16  ;;  %3616 = vmatpush.msra.mxu3 %v10043_v51  ;;  %3386 = vmatpush.msra.mxu0 %v10043_v51  ;;  %v10081_v15 = vand.u32 4294901760, %v3335_v7  ;;  %v3330_v51 = vld [vmem:[#allocation7 + $0x68] sm:$0xff] }
 0x239   : > { %14070 = vst [vmem:[#allocation57_spill] sm:$0xff] %v10066_v1  ;;  %v3482_v25 = vand.u32 4294901760, %v3481_v18  ;;  %3477 = vmatpush.msra.mxu1 %v3476_v59  ;;  %3565 = vmatpush.msra.mxu2 %v10060_v49  ;;  %v3493_v16 = vsub.f32 %v10060_v49, %v13777_v37  ;;  %v13779_v1 = vand.u32 4294901760, %v10076_v52 }
 0x23a   : > { %14071 = vst [vmem:[#allocation58_spill] sm:$0xff] %v10069_v60  ;;  %v3488_v18 = vand.u32 4294901760, %v3487_v17  ;;  %v10087_v60 = vand.u32 4294901760, %v3334_v2  ;;  %3618 = vmatpush.msra.mxu3 %v10062_v44  ;;  %3388 = vmatpush.msra.mxu0 %v10062_v44  ;;  %v10092_v38 = vsub.f32 %v3335_v7, %v10081_v15 }
 0x23b   : > { %14072 = vst [vmem:[#allocation59_spill] sm:$0xff] %v10081_v15  ;;  %3483 = vmatpush.msra.mxu1 %v3482_v25  ;;  %3568 = vmatpush.msra.mxu2 %v10076_v52  ;;  %v3494_v59 = vand.u32 4294901760, %v3493_v16  ;;  %v3499_v17 = vsub.f32 %v10076_v52, %v13779_v1  ;;  %v3332_v1 = vld [vmem:[#allocation7 + $0x78] sm:$0xff] }
 0x23c   : > { %14073 = vst [vmem:[#allocation60_spill] sm:$0xff] %v10087_v60  ;;  %v10099_v37 = vsub.f32 %v3334_v2, %v10087_v60  ;;  %3620 = vmatpush.msra.mxu3 %v10081_v15  ;;  %3390 = vmatpush.msra.mxu0 %v10081_v15  ;;  %v13782_v25 = vand.u32 4294901760, %v10092_v38  ;;  %v3331_v15 = vld [vmem:[#allocation7 + $0x70] sm:$0xff] }
 0x23d   : > { %3489 = vmatpush.msra.mxu1 %v3488_v18  ;;  %3571 = vmatpush.msra.mxu2 %v10092_v38  ;;  %v3500_v16 = vand.u32 4294901760, %v3499_v17 }
 0x23e   : > { %v10105_v7 = vpop.f32.mrf.mxu0  ;;  %v10107_v44 = vpop.f32.mrf.mxu2  ;;  %v13784_v40 = vand.u32 4294901760, %v10099_v37  ;;  %3622 = vmatpush.msra.mxu3 %v10087_v60  ;;  %3392 = vmatpush.msra.mxu0 %v10087_v60  ;;  %v3505_v18 = vsub.f32 %v10092_v38, %v13782_v25  ;;  %v14078_v60 = vand.u32 4294901760, %v9898_v56 }
 0x23f   : > { %14074 = vst [vmem:[#allocation61_spill] sm:$0xff] %v10105_v7  ;;  %v10112_v2 = vpop.f32.mrf.mxu1  ;;  %3495 = vmatpush.msra.mxu1 %v3494_v59  ;;  %3574 = vmatpush.msra.mxu2 %v10099_v37  ;;  %v10118_v7 = vand.u32 4294901760, %v3332_v1 }
 0x240   : > { %14075 = vst [vmem:[#allocation62_spill] sm:$0xff] %v10107_v44  ;;  %v10120_v44 = vpop.f32.mrf.mxu3  ;;  %v3511_v17 = vsub.f32 %v10099_v37, %v13784_v40  ;;  %3645 = vmatpush.msrb.mxu0 %v14078_v60  ;;  %v3506_v59 = vand.u32 4294901760, %v3505_v18  ;;  %v10137_v60 = vand.u32 4294901760, %v3330_v51  ;;  %v3329_v18 = vld [vmem:[#allocation7 + $0x60] sm:$0xff] }
 0x241   : > { %14076 = vst [vmem:[#allocation63_spill] sm:$0xff] %v10112_v2  ;;  %3501 = vmatpush.msra.mxu1 %v3500_v16  ;;  %3765 = vmatpush.msrb.mxu2 %v10118_v7  ;;  %v10129_v25 = vsub.f32 %v3332_v1, %v10118_v7  ;;  %v10131_v2 = vand.u32 4294901760, %v3331_v15  ;;  %v14084_v1 = vand.u32 4294901760, %v9922_v55  ;;  %v14086_v55 = vand.u32 4294901760, %v9934_v13 }
 0x242   : > { %14077 = vst [vmem:[#allocation64_spill] sm:$0xff] %v10120_v44  ;;  %v3512_v42 = vand.u32 4294901760, %v3511_v17  ;;  %v14081_v44 = vand.u32 4294901760, %v9910_v4  ;;  %v10149_v17 = vand.u32 4294901760, %v3329_v18 }
 0x243   : > { %14079 = vst [vmem:[#allocation65_spill] sm:$0xff] %v10129_v25  ;;  %3507 = vmatpush.msra.mxu1 %v3506_v59  ;;  %3767 = vmatpush.msrb.mxu2 %v10131_v2  ;;  %v13785_v56 = vand.u32 4294901760, %v10129_v25  ;;  %v10140_v16 = vsub.f32 %v3331_v15, %v10131_v2  ;;  %v10152_v59 = vsub.f32 %v3330_v51, %v10137_v60 }
 0x244   : > { %14080 = vst [vmem:[#allocation66_spill] sm:$0xff] %v10131_v2  ;;  %3649 = vmatpush.msrb.mxu0 %v14081_v44  ;;  %v10174_v13 = vsub.f32 %v3329_v18, %v10149_v17 }
 0x245   : > { %14082 = vst [vmem:[#allocation67_spill] sm:$0xff] %v10137_v60  ;;  %3513 = vmatpush.msra.mxu1 %v3512_v42  ;;  %v3824_v4 = vsub.f32 %v10129_v25, %v13785_v56  ;;  %3769 = vmatpush.msrb.mxu2 %v10137_v60  ;;  %v13792_v44 = vand.u32 4294901760, %v10140_v16  ;;  %v3328_v42 = vld [vmem:[#allocation7 + $0x58] sm:$0xff]  ;;  %v13797_v51 = vand.u32 4294901760, %v10152_v59 }
 0x246   : > { %14083 = vst [vmem:[#allocation68_spill] sm:$0xff] %v10140_v16  ;;  %3653 = vmatpush.msrb.mxu0 %v14084_v1  ;;  %v10154_v15 = vpop.f32.mrf.mxu0  ;;  %v10156_v40 = vpop.f32.mrf.mxu2 }
 0x247   : > { %14085 = vst [vmem:[#allocation69_spill] sm:$0xff] %v10149_v17  ;;  %3720 = vmatpush.msrb.mxu1 %v9891_v5  ;;  %v10161_v1 = vpop.f32.mrf.mxu1  ;;  %v3825_v56 = vand.u32 4294901760, %v3824_v4  ;;  %v3830_v25 = vsub.f32 %v10140_v16, %v13792_v44  ;;  %3771 = vmatpush.msrb.mxu2 %v10149_v17  ;;  %v10171_v5 = vand.u32 4294901760, %v3328_v42  ;;  %v14087_v4 = vand.u32 4294901760, %v9955_v47  ;;  %v3326_v17 = vld [vmem:[#allocation7 + $0x48] sm:$0xff] }
 0x248   : > { %3657 = vmatpush.msrb.mxu0 %v14086_v55  ;;  %v10168_v60 = vpop.f32.mrf.mxu3  ;;  %v3327_v55 = vld [vmem:[#allocation7 + $0x50] sm:$0xff]  ;;  %v3836_v44 = vsub.f32 %v10152_v59, %v13797_v51 }
 0x249   : > { %3722 = vmatpush.msrb.mxu1 %v9900_v27  ;;  %3826 = vmatpush.msrb.mxu3 %v3825_v56  ;;  %v3831_v2 = vand.u32 4294901760, %v3830_v25  ;;  %v10181_v16 = vand.u32 4294901760, %v3327_v55  ;;  %v13798_v27 = vand.u32 4294901760, %v10174_v13  ;;  %v10187_v18 = vsub.f32 %v3328_v42, %v10171_v5 }
 0x24a   : > { %3661 = vmatpush.msrb.mxu0 %v14087_v4  ;;  %3773 = vmatpush.msrb.mxu2 %v10171_v5  ;;  %v3837_v47 = vand.u32 4294901760, %v3836_v44  ;;  %v10189_v56 = vand.u32 4294901760, %v3326_v17  ;;  %v14091_v4 = vand.u32 4294901760, %v9965_v57  ;;  %v2172_v44 = vadd.f32 %v9781_v12, %v9776_v45 }
 0x24b   : > { %14088 = vst [vmem:[#allocation70_spill] sm:$0xff] %v10181_v16  ;;  %3724 = vmatpush.msrb.mxu1 %v9913_v14  ;;  %3832 = vmatpush.msrb.mxu3 %v3831_v2  ;;  %v10192_v25 = vsub.f32 %v3327_v55, %v10181_v16  ;;  %v3842_v14 = vsub.f32 %v10174_v13, %v13798_v27  ;;  %v3325_v2 = vld [vmem:[#allocation7 + $0x40] sm:$0xff]  ;;  %v14093_v45 = vand.u32 4294901760, %v10187_v18 }
 0x24c   : > { %14089 = vst [vmem:[#allocation71_spill] sm:$0xff] %v10187_v18  ;;  %3665 = vmatpush.msrb.mxu0 %v14091_v4  ;;  %3775 = vmatpush.msrb.mxu2 %v10181_v16  ;;  %v10205_v51 = vand.u32 4294901760, %v3325_v2  ;;  %v10208_v57 = vsub.f32 %v3326_v17, %v10189_v56  ;;  %v2206_v17 = vadd.f32 %v9811_v21, %v2172_v44  ;;  %v3323_v44 = vld [vmem:[#allocation7 + $0x30] sm:$0xff] }
 0x24d   : > { %14090 = vst [vmem:[#allocation72_spill] sm:$0xff] %v10189_v56  ;;  %3726 = vmatpush.msrb.mxu1 %v9925_v3  ;;  %3838 = vmatpush.msrb.mxu3 %v3837_v47  ;;  %v14092_v3 = vand.u32 4294901760, %v9974_v61  ;;  %v3843_v42 = vand.u32 4294901760, %v3842_v14  ;;  %v3848_v12 = vsub.f32 %v10187_v18, %v14093_v45  ;;  %v3324_v47 = vld [vmem:[#allocation7 + $0x38] sm:$0xff]  ;;  %v14094_v61 = vand.u32 4294901760, %v10192_v25 }
 0x24e   : > { %v10212_v4 = vpop.f32.mrf.mxu0  ;;  %v10214_v27 = vpop.f32.mrf.mxu2  ;;  %3777 = vmatpush.msrb.mxu2 %v10189_v56  ;;  %v13807_v16 = vand.u32 4294901760, %v10208_v57  ;;  %v10233_v56 = vand.u32 4294901760, %v3324_v47  ;;  %v10236_v21 = vsub.f32 %v3325_v2, %v10205_v51 }
 0x24f   : > { %3669 = vmatpush.msrb.mxu0 %v14092_v3  ;;  %3728 = vmatpush.msrb.mxu1 %v9938_v28  ;;  %v10222_v55 = vpop.f32.mrf.mxu1  ;;  %v3854_v3 = vsub.f32 %v10192_v25, %v14094_v61  ;;  %v14095_v28 = vand.u32 4294901760, %v9989_v36  ;;  %v3849_v45 = vand.u32 4294901760, %v3848_v12  ;;  %v14096_v61 = vand.u32 4294901760, %v10005_v11  ;;  %v3322_v12 = vld [vmem:[#allocation7 + $0x28] sm:$0xff] }
 0x250   : > { %v10230_v14 = vpop.f32.mrf.mxu3  ;;  %3844 = vmatpush.msrb.mxu3 %v3843_v42  ;;  %3779 = vmatpush.msrb.mxu2 %v10205_v51  ;;  %v13805_v36 = vand.u32 4294901760, %v10236_v21  ;;  %v10246_v42 = vand.u32 4294901760, %v3323_v44  ;;  %v10249_v2 = vsub.f32 %v3324_v47, %v10233_v56  ;;  %v10253_v11 = vand.u32 4294901760, %v3322_v12 }
 0x251   : > { %3673 = vmatpush.msrb.mxu0 %v14095_v28  ;;  %3730 = vmatpush.msrb.mxu1 %v9950_v43  ;;  %v3855_v18 = vand.u32 4294901760, %v3854_v3  ;;  %v3860_v43 = vsub.f32 %v10208_v57, %v13807_v16  ;;  %v2241_v3 = vadd.f32 %v9801_v46, %v2206_v17  ;;  %v3321_v46 = vld [vmem:[#allocation7 + $0x20] sm:$0xff]  ;;  %v2410_v17 = vadd.f32 %v9836_v58, %v9843_v19 }
 0x252   : > { %3850 = vmatpush.msrb.mxu3 %v3849_v45  ;;  %3781 = vmatpush.msrb.mxu2 %v10233_v56  ;;  %v3866_v45 = vsub.f32 %v10236_v21, %v13805_v36  ;;  %v13806_v47 = vand.u32 4294901760, %v10249_v2  ;;  %v3320_v36 = vld [vmem:[#allocation7 + $0x18] sm:$0xff] }
 0x253   : > { %3677 = vmatpush.msrb.mxu0 %v14096_v61  ;;  %3732 = vmatpush.msrb.mxu1 %v9967_v63  ;;  %v14097_v63 = vand.u32 4294901760, %v10024_v33  ;;  %v3861_v28 = vand.u32 4294901760, %v3860_v43  ;;  %v10263_v61 = vsub.f32 %v3323_v44, %v10246_v42  ;;  %v10268_v33 = vand.u32 4294901760, %v3321_v46 }
 0x254   : > { %3856 = vmatpush.msrb.mxu3 %v3855_v18  ;;  %3783 = vmatpush.msrb.mxu2 %v10246_v42  ;;  %v14098_v18 = vand.u32 4294901760, %v10031_v23  ;;  %v2176_v43 = vadd.f32 %v9792_v10, %v9790_v20  ;;  %v3867_v58 = vand.u32 4294901760, %v3866_v45  ;;  %v3872_v19 = vsub.f32 %v10249_v2, %v13806_v47 }
 0x255   : > { %3681 = vmatpush.msrb.mxu0 %v14097_v63  ;;  %3734 = vmatpush.msrb.mxu1 %v9976_v39  ;;  %v10271_v39 = vsub.f32 %v3322_v12, %v10253_v11  ;;  %v13812_v12 = vand.u32 4294901760, %v10263_v61  ;;  %v2651_v23 = vadd.f32 %v9873_v50, %v9869_v6  ;;  %v10290_v10 = vand.u32 4294901760, %v3320_v36 }
 0x256   : > { %v10277_v63 = vpop.f32.mrf.mxu0  ;;  %v10279_v44 = vpop.f32.mrf.mxu2  ;;  %3862 = vmatpush.msrb.mxu3 %v3861_v28  ;;  %3785 = vmatpush.msrb.mxu2 %v10253_v11  ;;  %v14099_v28 = vand.u32 4294901760, %v10041_v62  ;;  %v2280_v45 = vadd.f32 %v9813_v53, %v2241_v3  ;;  %v3873_v6 = vand.u32 4294901760, %v3872_v19  ;;  %v2444_v62 = vadd.f32 %v9845_v31, %v2410_v17 }
 0x257   : > { %3685 = vmatpush.msrb.mxu0 %v14098_v18  ;;  %3736 = vmatpush.msrb.mxu1 %v9991_v24  ;;  %v13811_v20 = vand.u32 4294901760, %v10271_v39  ;;  %v10293_v24 = vsub.f32 %v3321_v46, %v10268_v33  ;;  %v2211_v18 = vadd.f32 %v9821_v32, %v2176_v43  ;;  %v10301_v16 = vpop.f32.mrf.mxu1  ;;  %v3878_v50 = vsub.f32 %v10263_v61, %v13812_v12  ;;  %v3319_v46 = vld [vmem:[#allocation7 + $0x10] sm:$0xff]  ;;  %v14124_v12 = vld [vmem:[#allocation61_spill] sm:$0xff] }
 0x258   : > { %v10299_v47 = vpop.f32.mrf.mxu3  ;;  %3868 = vmatpush.msrb.mxu3 %v3867_v58  ;;  %3787 = vmatpush.msrb.mxu2 %v10268_v33  ;;  %v10317_v43 = vand.u32 4294901760, %v3319_v46  ;;  %v10320_v31 = vsub.f32 %v3320_v36, %v10290_v10  ;;  %v2889_v17 = vadd.f32 %v10008_v30, %v10051_v29 }
 0x259   : > { %3689 = vmatpush.msrb.mxu0 %v14099_v28  ;;  %3738 = vmatpush.msrb.mxu1 %v10011_v0  ;;  %v2685_v28 = vadd.f32 %v9893_v22, %v2651_v23  ;;  %v3884_v53 = vsub.f32 %v10271_v39, %v13811_v20  ;;  %v13810_v32 = vand.u32 4294901760, %v10293_v24  ;;  %v14100_v0 = vand.u32 4294901760, %v10060_v49  ;;  %v3318_v22 = vld [vmem:[#allocation7 + $0x8] sm:$0xff] }
 0x25a   : > { %3874 = vmatpush.msrb.mxu3 %v3873_v6  ;;  %v3879_v3 = vand.u32 4294901760, %v3878_v50  ;;  %14101 = vst [vmem:[#allocation73_spill] sm:$0xff] %v10320_v31  ;;  %3789 = vmatpush.msrb.mxu2 %v10290_v10  ;;  %v10328_v19 = vand.u32 4294901760, %v3318_v22  ;;  %v2311_v23 = vadd.f32 %v9817_v48, %v2280_v45  ;;  %v2247_v36 = vadd.f32 %v9815_v9, %v2211_v18  ;;  %v3317_v48 = vld [vmem:[#allocation7] sm:$0xff]  ;;  %v14106_v18 = vld [vmem:[#allocation54_spill] sm:$0xff] }
 0x25b   : > { %3693 = vmatpush.msrb.mxu0 %v14100_v0  ;;  %3740 = vmatpush.msrb.mxu1 %v10019_v26  ;;  %v3885_v58 = vand.u32 4294901760, %v3884_v53  ;;  %v3890_v49 = vsub.f32 %v10293_v24, %v13810_v32  ;;  %v14103_v26 = vand.u32 4294901760, %v10076_v52  ;;  %v13809_v30 = vand.u32 4294901760, %v10320_v31  ;;  %v14121_v32 = vld [vmem:[#allocation20_spill] sm:$0xff] }
 0x25c   : > { %14102 = vst [vmem:[#allocation74_spill] sm:$0xff] %v10328_v19  ;;  %3880 = vmatpush.msrb.mxu3 %v3879_v3  ;;  %v10337_v29 = vsub.f32 %v3319_v46, %v10317_v43  ;;  %v2479_v6 = vadd.f32 %v9849_v41, %v2444_v62  ;;  %v2414_v50 = vadd.f32 %v9847_v34, %v9851_v35  ;;  %v14105_v9 = vand.u32 4294901760, %v10092_v38  ;;  %v14109_v38 = vld [vmem:[#allocation35_spill] sm:$0xff]  ;;  %v14110_v62 = vld [vmem:[#allocation38_spill] sm:$0xff] }
 0x25d   : > { %3697 = vmatpush.msrb.mxu0 %v14103_v26  ;;  %3742 = vmatpush.msrb.mxu1 %v10033_v8  ;;  %v2720_v52 = vadd.f32 %v9887_v54, %v2685_v28  ;;  %v3891_v53 = vand.u32 4294901760, %v3890_v49  ;;  %v3896_v34 = vsub.f32 %v10320_v31, %v13809_v30  ;;  %v10355_v35 = vand.u32 4294901760, %v3317_v48  ;;  %v14111_v28 = vld [vmem:[#allocation40_spill] sm:$0xff]  ;;  %v14112_v3 = vld [vmem:[#allocation55_spill] sm:$0xff] }
 0x25e   : > { %14104 = vst [vmem:[#allocation75_spill] sm:$0xff] %v10337_v29  ;;  %3791 = vmatpush.msrb.mxu2 %v10317_v43  ;;  %v10346_v8 = vpop.f32.mrf.mxu0  ;;  %v10348_v45 = vpop.f32.mrf.mxu2  ;;  %3886 = vmatpush.msrb.mxu3 %v3885_v58  ;;  %v13808_v41 = vand.u32 4294901760, %v10337_v29  ;;  %v10358_v54 = vsub.f32 %v3318_v22, %v10328_v19  ;;  %v2518_v46 = vadd.f32 %v14109_v38, %v2479_v6  ;;  %v14113_v58 = vand.u32 4294901760, %v10099_v37  ;;  %v14120_v30 = vld [vmem:[#allocation19_spill] sm:$0xff] }
 0x25f   : > { %3701 = vmatpush.msrb.mxu0 %v14105_v9  ;;  %3744 = vmatpush.msrb.mxu1 %v14106_v18  ;;  %14107 = vst [vmem:[#allocation54_spill] sm:$0xff] %v10355_v35  ;;  %v2655_v0 = vadd.f32 %v14111_v28, %v14110_v62  ;;  %v2923_v49 = vadd.f32 %v14112_v3, %v2889_v17  ;;  %v14114_v9 = vld [vmem:[#allocation56_spill] sm:$0xff]  ;;  %v3897_v18 = vand.u32 4294901760, %v3896_v34  ;;  %v14118_v3 = vld [vmem:[#allocation47_spill] sm:$0xff] }
 0x260   : > { %14108 = vst [vmem:[#allocation76_spill] sm:$0xff] %v10358_v54  ;;  %3793 = vmatpush.msrb.mxu2 %v10328_v19  ;;  %v10367_v26 = vpop.f32.mrf.mxu3  ;;  %3892 = vmatpush.msrb.mxu3 %v3891_v53  ;;  %v3902_v22 = vsub.f32 %v10337_v29, %v13808_v41  ;;  %v13817_v6 = vand.u32 4294901760, %v10358_v54  ;;  %v10375_v38 = vsub.f32 %v3317_v48, %v10355_v35  ;;  %v14116_v17 = vld [vmem:[#allocation28_spill] sm:$0xff]  ;;  %v14119_v53 = vld [vmem:[#allocation59_spill] sm:$0xff]  ;;  %v3291_v19 = vlaneseq }
 0x261   : > { %3705 = vmatpush.msrb.mxu0 %v14113_v58  ;;  %3746 = vmatpush.msrb.mxu1 %v14114_v9  ;;  %v2449_v62 = vadd.f32 %v14116_v17, %v2414_v50  ;;  %v14117_v28 = vld [vmem:[#allocation44_spill] sm:$0xff]  ;;  %v2690_v58 = vadd.f32 %v14118_v3, %v2655_v0  ;;  %v3195_v9 = vpop.f32.mrf.mxu1  ;;  %v2180_v50 = vadd.f32 %v14121_v32, %v14120_v30  ;;  %v14122_v17 = vld [vmem:[#allocation17_spill] sm:$0xff] }
 0x262   : > { %14115 = vst [vmem:[#allocation35_spill] sm:$0xff] %v10375_v38  ;;  %v2759_v37 = vadd.f32 %v14117_v28, %v2720_v52  ;;  %3795 = vmatpush.msrb.mxu2 %v10355_v35  ;;  %3898 = vmatpush.msrb.mxu3 %v3897_v18  ;;  %v3903_v34 = vand.u32 4294901760, %v3902_v22  ;;  %v3908_v41 = vsub.f32 %v10358_v54, %v13817_v6  ;;  %v13820_v48 = vand.u32 4294901760, %v10375_v38  ;;  %v14123_v28 = vld [vmem:[#allocation58_spill] sm:$0xff]  ;;  %v14125_v0 = vld [vmem:[#allocation57_spill] sm:$0xff]  ;;  %v14128_v29 = vld [vmem:[#allocation60_spill] sm:$0xff] }
 0x263   : > { %3748 = vmatpush.msrb.mxu1 %v14119_v53  ;;  %v2321_v52 = vadd.f32 %v2311_v23, %v14122_v17  ;;  %v2958_v20 = vadd.f32 %v14123_v28, %v2923_v49  ;;  %v2893_v3 = vadd.f32 %v14125_v0, %v14124_v12  ;;  %v14126_v35 = vld [vmem:[#allocation22_spill] sm:$0xff]  ;;  %v14127_v18 = vld [vmem:[#allocation33_spill] sm:$0xff]  ;;  %v3127_v12 = vadd.f32 %v10230_v14, %v10214_v27  ;;  %v14137_v27 = vld [vmem:[#allocation24_spill] sm:$0xff] }
 0x264   : > { %v2284_v53 = vadd.f32 %v14126_v35, %v2247_v36  ;;  %v2549_v22 = vadd.f32 %v14127_v18, %v2518_v46  ;;  %3904 = vmatpush.msrb.mxu3 %v3903_v34  ;;  %v3909_v6 = vand.u32 4294901760, %v3908_v41  ;;  %v3914_v54 = vsub.f32 %v10375_v38, %v13820_v48  ;;  %v14129_v32 = vld [vmem:[#allocation25_spill] sm:$0xff]  ;;  %v14130_v23 = vld [vmem:[#allocation30_spill] sm:$0xff]  ;;  %v14131_v36 = vld [vmem:[#allocation31_spill] sm:$0xff] }
 0x265   : > { %3750 = vmatpush.msrb.mxu1 %v14128_v29  ;;  %v2216_v30 = vadd.f32 %v14129_v32, %v2180_v50  ;;  %v2485_v17 = vadd.f32 %v14130_v23, %v2449_v62  ;;  %v2997_v49 = vadd.f32 %v10212_v4, %v2958_v20  ;;  %v14132_v35 = vld [vmem:[#allocation29_spill] sm:$0xff]  ;;  %v14133_v28 = vld [vmem:[#allocation46_spill] sm:$0xff] }
 0x266   : > { %v2418_v46 = vadd.f32 %v14132_v35, %v14131_v36  ;;  %v2790_v29 = vadd.f32 %v14133_v28, %v2759_v37  ;;  %v14134_v34 = vld [vmem:[#allocation45_spill] sm:$0xff]  ;;  %v3160_v0 = vpop.f32.mrf.mxu0  ;;  %v3234_v18 = vpop.f32.mrf.mxu2  ;;  %3910 = vmatpush.msrb.mxu3 %v3909_v6  ;;  %v3915_v48 = vand.u32 4294901760, %v3914_v54  ;;  %v14135_v38 = vld [vmem:[#allocation62_spill] sm:$0xff]  ;;  %v2559_v62 = vadd.f32 %v2549_v22, %v2321_v52  ;;  %v14139_v35 = vld [vmem:[#allocation43_spill] sm:$0xff] }
 0x267   : > { %v2726_v41 = vadd.f32 %v14134_v34, %v2690_v58  ;;  %v2928_v50 = vadd.f32 %v14135_v38, %v2893_v3  ;;  %v3161_v32 = vadd.f32 %v3160_v0, %v3127_v12  ;;  %v14136_v23 = vld [vmem:[#allocation37_spill] sm:$0xff]  ;;  %v2315_v14 = vadd.f32 %v14137_v27, %v2284_v53  ;;  %v14138_v36 = vld [vmem:[#allocation42_spill] sm:$0xff]  ;;  %v14140_v34 = vld [vmem:[#allocation23_spill] sm:$0xff] }
 0x268   : > { %v2522_v4 = vadd.f32 %v14136_v23, %v2485_v17  ;;  %v3265_v20 = vpop.f32.mrf.mxu3  ;;  %3916 = vmatpush.msrb.mxu3 %v3915_v48  ;;  %v2659_v37 = vadd.f32 %v14139_v35, %v14138_v36  ;;  %v3028_v58 = vadd.f32 %v10161_v1, %v2997_v49  ;;  %v2253_v6 = vadd.f32 %v14140_v34, %v2216_v30  ;;  %v14141_v54 = vld [vmem:[#allocation32_spill] sm:$0xff]  ;;  %v14143_v22 = vld [vmem:[#allocation51_spill] sm:$0xff]  ;;  %v14152_v34 = vld [vmem:[#allocation49_spill] sm:$0xff] }
 0x269   : > { %v3196_v28 = vadd.f32 %v3195_v9, %v3161_v32  ;;  %v2454_v31 = vadd.f32 %v14141_v54, %v2418_v46  ;;  %v2800_v38 = vadd.f32 %v2790_v29, %v2559_v62  ;;  %v14142_v3 = vld [vmem:[#allocation48_spill] sm:$0xff]  ;;  %v14145_v48 = vld [vmem:[#allocation63_spill] sm:$0xff]  ;;  %v10421_v35 = vshrl.u32 %v3291_v19, 7  ;;  %v3201_v1 = vpop.f32.mrf.mxu1 }
 0x26a   : > { %v2763_v52 = vadd.f32 %v14142_v3, %v2726_v41  ;;  %v2695_v17 = vadd.f32 %v14143_v22, %v2659_v37  ;;  %v14144_v12 = vld [vmem:[#allocation64_spill] sm:$0xff]  ;;  %v2897_v53 = vadd.f32 %v14145_v48, %v10154_v15  ;;  %v3131_v49 = vadd.f32 %v10299_v47, %v10279_v44  ;;  %v14148_v41 = vld [vmem:[#allocation18_spill] sm:$0xff]  ;;  %v14153_v44 = vld [vmem:[#allocation41_spill] sm:$0xff] }
 0x26b   : > { %v2964_v0 = vadd.f32 %v14144_v12, %v2928_v50  ;;  %v3235_v23 = vadd.f32 %v3234_v18, %v3196_v28  ;;  %v14146_v27 = vld [vmem:[#allocation36_spill] sm:$0xff]  ;;  %14147 = vst [vmem:[#allocation38_spill] sm:$0xff] %v10421_v35  ;;  %v3038_v9 = vadd.f32 %v3028_v58, %v2800_v38  ;;  %v2322_v32 = vadd.f32 %v2315_v14, %v14148_v41  ;;  %v14149_v50 = vld [vmem:[#allocation26_spill] sm:$0xff] }
 0x26c   : > { %v2553_v36 = vadd.f32 %v14146_v27, %v2522_v4  ;;  %v8748_v29 = vld [vmem:[#allocation11] ss:$0 sm:$0xff]  ;;  %v2288_v62 = vadd.f32 %v14149_v50, %v2253_v6  ;;  %v14150_v37 = vld [vmem:[#allocation34_spill] sm:$0xff]  ;;  %v2732_v54 = vadd.f32 %v14152_v34, %v2695_v17  ;;  %v2933_v58 = vadd.f32 %v10156_v40, %v2897_v53  ;;  %v8749_v38 = vld [vmem:[#allocation11 + $0x1] ss:$0 sm:$0xff] }
 0x26d   : > { %v3001_v30 = vadd.f32 %v10277_v63, %v2964_v0  ;;  %v3266_v46 = vadd.f32 %v3265_v20, %v3235_v23  ;;  %v2491_v15 = vadd.f32 %v14150_v37, %v2454_v31  ;;  %v14151_v18 = vld [vmem:[#allocation50_spill] sm:$0xff]  ;;  %v3296_v14 = vadd.s32 4294967293, %v10421_v35  ;;  %v14155_v23 = vld [vmem:[#allocation52_spill] sm:$0xff] }
 0x26e   : > { %v2794_v28 = vadd.f32 %v14151_v18, %v2763_v52  ;;  %v3165_v4 = vpop.f32.mrf.mxu0  ;;  %v3238_v19 = vpop.f32.mrf.mxu2  ;;  %v2560_v47 = vadd.f32 %v2553_v36, %v2322_v32  ;;  %v14154_v52 = vld [vmem:[#allocation27_spill] sm:$0xff]  ;;  %v2767_v17 = vadd.f32 %v14155_v23, %v2732_v54  ;;  %v2970_v40 = vadd.f32 %v10168_v60, %v2933_v58 }
 0x26f   : > { %v3276_v63 = vadd.f32 %v3266_v46, %v3038_v9  ;;  %v3166_v3 = vadd.f32 %v3165_v4, %v3131_v49  ;;  %v2526_v20 = vadd.f32 %v14153_v44, %v2491_v15  ;;  %v3032_v6 = vadd.f32 %v10222_v55, %v3001_v30  ;;  %v14156_v9 = vld [vmem:[#allocation39_spill] sm:$0xff] }
 0x270   : > { %v3269_v22 = vpop.f32.mrf.mxu3  ;;  %v2319_v0 = vadd.f32 %v14154_v52, %v2288_v62  ;;  %v2801_v48 = vadd.f32 %v2794_v28, %v2560_v47  ;;  %vm3299_vm4 = vcmp.ge.s32.totalorder %v3296_v14, 0  ;;  %v3005_v46 = vadd.f32 %v10346_v8, %v2970_v40  ;;  %v14158_v62 = vld [vmem:[#allocation53_spill] sm:$0xff] }
 0x271   : > { %v3280_v31 = vmul.f32 %v8748_v29, %v3276_v63  ;;  %v3202_v12 = vadd.f32 %v3201_v1, %v3166_v3  ;;  %v2557_v36 = vadd.f32 %v14156_v9, %v2526_v20  ;;  %v3135_v55 = vadd.f32 %v10367_v26, %v10348_v45  ;;  %v14157_v1 = vld [vmem:[#allocation21_spill] sm:$0xff]  ;;  %v3207_v50 = vpop.f32.mrf.mxu1  ;;  %v14167_v9 = vld [vmem:[#allocation66_spill] sm:$0xff] }
 0x272   : > { %v3039_v49 = vadd.f32 %v3032_v6, %v2801_v48  ;;  %v2323_v41 = vadd.f32 %v2319_v0, %v14157_v1  ;;  %v2798_v37 = vadd.f32 %v14158_v62, %v2767_v17  ;;  %v14159_v4 = vmov 0.0  }
 0x273   : > { %v3284_v53 = vadd.f32 %v8749_v38, %v3280_v31  ;;  %v3239_v27 = vadd.f32 %v3238_v19, %v3202_v12  ;;  %v8628_v19 = vsel %vm3299_vm4, 1.0, %v14159_v4  ;;  %v3036_v54 = vadd.f32 %v10301_v16, %v3005_v46 }
 0x274   : > { %v2561_v28 = vadd.f32 %v2557_v36, %v2323_v41  ;;  %v10447_v45 = vadd.s32 16, %v10421_v35 }
 0x275   : > { %v3270_v30 = vadd.f32 %v3269_v22, %v3239_v27  ;;  %v3287_v15 = vmax.f32 %v3284_v53, 0.0 }
 0x276   : > { %v3170_v32 = vpop.f32.mrf.mxu0  ;;  %v3242_v34 = vpop.f32.mrf.mxu2  ;;  %14160 = vst [vmem:[#allocation40_spill] sm:$0xff] %v10447_v45  ;;  %v2802_v63 = vadd.f32 %v2798_v37, %v2561_v28  ;;  %v3298_v6 = vadd.s32 4294967293, %v10447_v45 }
 0x277   : > { %v3277_v60 = vadd.f32 %v3270_v30, %v3039_v49  ;;  %v3171_v18 = vadd.f32 %v3170_v32, %v3135_v55  ;;  %v10449_v3 = vmul.f32 %v8628_v19, %v3287_v15  ;;  %v14170_v55 = vld [vmem:[#allocation67_spill] sm:$0xff]  ;;  %v14171_v30 = vld [vmem:[#allocation68_spill] sm:$0xff]  ;;  %v14173_v32 = vld [vmem:[#allocation69_spill] sm:$0xff] }
 0x278   : > { %v3273_v26 = vpop.f32.mrf.mxu3  ;;  %v3040_v20 = vadd.f32 %v3036_v54, %v2802_v63  ;;  %vm3304_vm5 = vcmp.lt.s32.totalorder %v3298_v6, 16  ;;  %v14172_v1 = vand.u32 4294901760, %v14171_v30  ;;  %v14183_v54 = vld [vmem:[#allocation72_spill] sm:$0xff]  ;;  %v4183_v63 = vld [vmem:[#allocation7 + $0x178] sm:$0xff] }
 0x279   : > { %v3281_v8 = vmul.f32 %v8748_v29, %v3277_v60  ;;  %v3208_v58 = vadd.f32 %v3207_v50, %v3171_v18  ;;  %14161 = vst [vmem:[#allocation55_spill] sm:$0xff] %v10449_v3  ;;  %v3353_v31 = vrot.slane %v10449_v3, 1  ;;  %v8629_v17 = vsel %vm3304_vm5, 1.0, %v14159_v4  ;;  %v14178_v60 = vld [vmem:[#allocation70_spill] sm:$0xff]  ;;  %v14179_v18 = vld [vmem:[#allocation71_spill] sm:$0xff] }
 0x27a   : > { %v14174_v50 = vand.u32 4294901760, %v10152_v59  ;;  %v14180_v28 = vand.u32 4294901760, %v14179_v18 }
 0x27b   : > { %v3285_v47 = vadd.f32 %v8749_v38, %v3281_v8  ;;  %v3243_v44 = vadd.f32 %v3242_v34, %v3208_v58  ;;  %v14184_v58 = vand.u32 4294901760, %v10192_v25 }
 0x27d   : > { %v10451_v14 = vmax.f32 %v3285_v47, 0.0  ;;  %v3274_v22 = vadd.f32 %v3273_v26, %v3243_v44  ;;  %v10520_v26 = vand.u32 4294901760, %v10449_v3  ;;  %v14187_v44 = vand.u32 4294901760, %v10208_v57 }
 0x27f   : > { %14162 = vst [vmem:[#allocation56_spill] sm:$0xff] %v10451_v14  ;;  %v3354_v16 = vrot.slane %v10451_v14, 1  ;;  %v3278_v12 = vadd.f32 %v3274_v22, %v3040_v20  ;;  %v4182_v20 = vld [vmem:[#allocation7 + $0x170] sm:$0xff]  ;;  %v10541_v22 = vsub.f32 %v10449_v3, %v10520_v26 }
 0x281   : > { %v3282_v52 = vmul.f32 %v8748_v29, %v3278_v12  ;;  %v3355_v0 = vsel %vm428_vm2, %v3353_v31, %v3354_v16  ;;  %v10548_v31 = vand.u32 4294901760, %v4182_v20  ;;  %v14190_v12 = vand.u32 4294901760, %v10249_v2 }
 0x282   : > { %v10457_v48 = vand.u32 4294901760, %v3355_v0 }
 0x283   : > { %v3286_v23 = vadd.f32 %v8749_v38, %v3282_v52  ;;  %v14168_v38 = vld [vmem:[#allocation65_spill] sm:$0xff] }
 0x284   : > { %14163 = vst [vmem:[#allocation28_spill] sm:$0xff] %v10457_v48  ;;  %3515 = vmatmul.f32.vlgmr.msra.gmra.mxu1 %v10457_v48  ;;  %v10462_v40 = vsub.f32 %v3355_v0, %v10457_v48  ;;  %v14169_v36 = vand.u32 4294901760, %v14168_v38  ;;  %v13838_v0 = vand.u32 4294901760, %v10541_v22 }
 0x285   : > { %v3289_v53 = vmax.f32 %v3286_v23, 0.0  ;;  %3995 = vmatpush.msra.mxu1 %v10118_v7 }
 0x286   : > { %14164 = vst [vmem:[#allocation44_spill] sm:$0xff] %v10462_v40  ;;  %3577 = vmatmul.f32.vlgmr.msra.gmra.mxu2 %v10462_v40  ;;  %v10467_v29 = vand.u32 4294901760, %v10462_v40 }
 0x287   : > { %v10469_v27 = vmul.f32 %v8629_v17, %v3289_v53  ;;  %3997 = vmatpush.msra.mxu1 %v14167_v9  ;;  %4048 = vmatpush.msra.mxu2 %v14169_v36  ;;  %v4180_v17 = vld [vmem:[#allocation7 + $0x160] sm:$0xff]  ;;  %v10568_v53 = vsub.f32 %v4182_v20, %v10548_v31  ;;  %v14192_v36 = vand.u32 4294901760, %v10271_v39 }
 0x288   : > { %14165 = vst [vmem:[#allocation47_spill] sm:$0xff] %v10467_v29  ;;  %3626 = vmatmul.f32.vlgmr.msra.gmra.mxu3 %v10467_v29  ;;  %v3396_v49 = vsub.f32 %v10462_v40, %v10467_v29 }
 0x289   : > { %14166 = vst [vmem:[#allocation59_spill] sm:$0xff] %v10469_v27  ;;  %v3356_v46 = vrot.slane %v10469_v27, 1  ;;  %3999 = vmatpush.msra.mxu1 %v14170_v55  ;;  %4052 = vmatpush.msra.mxu2 %v14172_v1  ;;  %v14194_v1 = vand.u32 4294901760, %v10293_v24 }
 0x28a   : > { %4123 = vmatpush.msra.mxu3 %v10118_v7  ;;  %v10482_v41 = vand.u32 4294901760, %v3396_v49  ;;  %v14176_v7 = vand.u32 4294901760, %v10174_v13  ;;  %v3799_v49 = vsub.f32 %v10541_v22, %v13838_v0  ;;  %v4168_v0 = vld [vmem:[#allocation7 + $0x100] sm:$0xff] }
 0x28b   : > { %4001 = vmatpush.msra.mxu1 %v14173_v32  ;;  %4056 = vmatpush.msra.mxu2 %v14174_v50  ;;  %v3357_v62 = vsel %vm428_vm2, %v3354_v16, %v3356_v46  ;;  %v10508_v34 = vand.u32 4294901760, %v3356_v46  ;;  %v4181_v16 = vld [vmem:[#allocation7 + $0x168] sm:$0xff] }
 0x28c   : > { %4125 = vmatpush.msra.mxu3 %v14167_v9  ;;  %3398 = vmatmul.f32.vlgmr.msra.gmra.mxu0 %v10482_v41  ;;  %v10490_v37 = vand.u32 4294901760, %v3357_v62  ;;  %v10561_v23 = vand.u32 4294901760, %v4181_v16  ;;  %v14191_v9 = vand.u32 4294901760, %v10263_v61  ;;  %v3800_v50 = vand.u32 4294901760, %v3799_v49 }
 0x28d   : > { %3932 = vmatpush.msra.mxu0 %v14168_v38  ;;  %4003 = vmatpush.msra.mxu1 %v10171_v5  ;;  %14182 = vst [vmem:[#allocation58_spill] sm:$0xff] %v10508_v34  ;;  %v4179_v38 = vld [vmem:[#allocation7 + $0x158] sm:$0xff] }
 0x28e   : > { %14175 = vst [vmem:[#allocation19_spill] sm:$0xff] %v10490_v37  ;;  %4060 = vmatpush.msra.mxu2 %v14176_v7  ;;  %4127 = vmatpush.msra.mxu3 %v14170_v55  ;;  %v10498_v15 = vsub.f32 %v3357_v62, %v10490_v37  ;;  %v13831_v55 = vand.u32 4294901760, %v10568_v53 }
 0x28f   : > { %3519 = vmatmul.f32.gmra.mxu1 %v10490_v37  ;;  %3935 = vmatpush.msra.mxu0 %v14171_v30  ;;  %v4178_v30 = vld [vmem:[#allocation7 + $0x150] sm:$0xff] }
 0x290   : > { %14177 = vst [vmem:[#allocation20_spill] sm:$0xff] %v10498_v15  ;;  %4005 = vmatpush.msra.mxu1 %v14178_v60  ;;  %4064 = vmatpush.msra.mxu2 %v14180_v28  ;;  %v10506_v19 = vand.u32 4294901760, %v10498_v15 }
 0x291   : > { %4129 = vmatpush.msra.mxu3 %v14173_v32  ;;  %3582 = vmatmul.f32.gmra.mxu2 %v10498_v15  ;;  %v10598_v32 = vand.u32 4294901760, %v4179_v38 }
 0x292   : > { %14181 = vst [vmem:[#allocation17_spill] sm:$0xff] %v10506_v19  ;;  %3938 = vmatpush.msra.mxu0 %v10152_v59  ;;  %4007 = vmatpush.msra.mxu1 %v14183_v54  ;;  %v3404_v8 = vsub.f32 %v10498_v15, %v10506_v19  ;;  %v10527_v59 = vsub.f32 %v3356_v46, %v10508_v34  ;;  %v10588_v46 = vand.u32 4294901760, %v10451_v14 }
 0x293   : > { %4068 = vmatpush.msra.mxu2 %v14184_v58  ;;  %4131 = vmatpush.msra.mxu3 %v10171_v5  ;;  %v10534_v5 = vand.u32 4294901760, %v4183_v63  ;;  %v14197_v58 = vld [vmem:[#allocation74_spill] sm:$0xff] }
 0x294   : > { %3632 = vmatmul.f32.gmra.mxu3 %v10506_v19  ;;  %3941 = vmatpush.msra.mxu0 %v10174_v13  ;;  %v10524_v47 = vand.u32 4294901760, %v3404_v8  ;;  %14186 = vst [vmem:[#allocation57_spill] sm:$0xff] %v10527_v59  ;;  %v14188_v13 = vand.u32 4294901760, %v10236_v21  ;;  %v10546_v6 = vand.u32 4294901760, %v10527_v59  ;;  %v10613_v7 = vsub.f32 %v10451_v14, %v10588_v46  ;;  %v4176_v8 = vld [vmem:[#allocation7 + $0x140] sm:$0xff]  ;;  %v4649_v19 = vld [vmem:[#allocation8 + $0x1d8] sm:$0xff] }
 0x295   : > { %4009 = vmatpush.msra.mxu1 %v10205_v51  ;;  %4072 = vmatpush.msra.mxu2 %v14187_v44  ;;  %v10556_v52 = vsub.f32 %v4183_v63, %v10534_v5 }
 0x296   : > { %14185 = vst [vmem:[#allocation61_spill] sm:$0xff] %v10524_v47  ;;  %4133 = vmatpush.msra.mxu3 %v14178_v60  ;;  %3944 = vmatpush.msra.mxu0 %v14179_v18  ;;  %v4177_v60 = vld [vmem:[#allocation7 + $0x148] sm:$0xff] }
 0x297   : > { %4011 = vmatpush.msra.mxu1 %v10233_v56  ;;  %4076 = vmatpush.msra.mxu2 %v14188_v13  ;;  %14189 = vst [vmem:[#allocation22_spill] sm:$0xff] %v10546_v6  ;;  %v14195_v18 = vld [vmem:[#allocation73_spill] sm:$0xff]  ;;  %v10630_v20 = vand.u32 4294901760, %v4177_v60  ;;  %v14198_v13 = vld [vmem:[#allocation75_spill] sm:$0xff] }
 0x298   : > { %4135 = vmatpush.msra.mxu3 %v14183_v54  ;;  %3406 = vmatmul.f32.gmra.mxu0 %v10524_v47  ;;  %v14196_v28 = vand.u32 4294901760, %v14195_v18  ;;  %v4258_v54 = vsub.f32 %v10568_v53, %v13831_v55  ;;  %v4171_v55 = vld [vmem:[#allocation7 + $0x118] sm:$0xff] }
 0x299   : > { %3523 = vmatmul.f32.gmra.mxu1 %v10508_v34  ;;  %3947 = vmatpush.msra.mxu0 %v10192_v25  ;;  %v3412_v25 = vsub.f32 %v10527_v59, %v10546_v6 }
 0x29a   : > { %4013 = vmatpush.msra.mxu1 %v10246_v42  ;;  %4080 = vmatpush.msra.mxu2 %v14190_v12  ;;  %v13836_v12 = vand.u32 4294901760, %v10613_v7 }
 0x29b   : > { %4137 = vmatpush.msra.mxu3 %v10205_v51  ;;  %3587 = vmatmul.f32.gmra.mxu2 %v10527_v59  ;;  %v13834_v51 = vand.u32 4294901760, %v10556_v52  ;;  %v4652_v59 = vld [vmem:[#allocation8 + $0x1f0] sm:$0xff] }
 0x29c   : > { %3950 = vmatpush.msra.mxu0 %v10208_v57  ;;  %4015 = vmatpush.msra.mxu1 %v10253_v11  ;;  %v10576_v57 = vand.u32 4294901760, %v4180_v17 }
 0x29d   : > { %4084 = vmatpush.msra.mxu2 %v14191_v9  ;;  %4139 = vmatpush.msra.mxu3 %v10233_v56  ;;  %v10585_v56 = vsub.f32 %v4181_v16, %v10561_v23  ;;  %v14199_v16 = vand.u32 4294901760, %v14198_v13  ;;  %v4175_v9 = vld [vmem:[#allocation7 + $0x138] sm:$0xff] }
 0x29e   : > { %3638 = vmatmul.f32.gmra.mxu3 %v10546_v6  ;;  %3953 = vmatpush.msra.mxu0 %v10236_v21  ;;  %v10592_v21 = vand.u32 4294901760, %v3412_v25  ;;  %v10644_v25 = vand.u32 4294901760, %v4176_v8 }
 0x29f   : > { %4017 = vmatpush.msra.mxu1 %v10268_v33  ;;  %4088 = vmatpush.msra.mxu2 %v14192_v36  ;;  %v13829_v62 = vand.u32 4294901760, %v10585_v56 }
 0x2a0   : > { %4141 = vmatpush.msra.mxu3 %v10246_v42  ;;  %3956 = vmatpush.msra.mxu0 %v10249_v2  ;;  %14193 = vst [vmem:[#allocation33_spill] sm:$0xff] %v10592_v21  ;;  %v4252_v42 = vsub.f32 %v10556_v52, %v13834_v51  ;;  %v10606_v2 = vsub.f32 %v4180_v17, %v10576_v57  ;;  %v4259_v17 = vand.u32 4294901760, %v4258_v54 }
 0x2a1   : > { %4019 = vmatpush.msra.mxu1 %v10290_v10  ;;  %4092 = vmatpush.msra.mxu2 %v14194_v1  ;;  %v10651_v1 = vand.u32 4294901760, %v10469_v27 }
 0x2a2   : > { %4143 = vmatpush.msra.mxu3 %v10253_v11  ;;  %3414 = vmatmul.f32.gmra.mxu0 %v10592_v21  ;;  %v10615_v11 = vand.u32 4294901760, %v4178_v30  ;;  %v4253_v63 = vand.u32 4294901760, %v4252_v42  ;;  %v13828_v44 = vand.u32 4294901760, %v10606_v2  ;;  %v4174_v42 = vld [vmem:[#allocation7 + $0x130] sm:$0xff]  ;;  %v4645_v21 = vld [vmem:[#allocation8 + $0x1b8] sm:$0xff] }
 0x2a3   : > { %3752 = vmatmul.f32.vlgmr.msrb.gmra.mxu1 %v10457_v48  ;;  %3959 = vmatpush.msra.mxu0 %v10263_v61  ;;  %v10625_v61 = vsub.f32 %v4179_v38, %v10598_v32  ;;  %v14200_v38 = vld [vmem:[#allocation54_spill] sm:$0xff] }
 0x2a4   : > { %4021 = vmatpush.msra.mxu1 %v10317_v43  ;;  %4096 = vmatpush.msra.mxu2 %v14196_v28 }
 0x2a5   : > { %4145 = vmatpush.msra.mxu3 %v10268_v33  ;;  %3801 = vmatmul.f32.vlgmr.msrb.gmra.mxu2 %v3800_v50  ;;  %v4264_v33 = vsub.f32 %v10585_v56, %v13829_v62  ;;  %v13827_v49 = vand.u32 4294901760, %v10625_v61  ;;  %v14203_v50 = vld [vmem:[#allocation35_spill] sm:$0xff]  ;;  %v4172_v62 = vld [vmem:[#allocation7 + $0x120] sm:$0xff] }
 0x2a6   : > { %3962 = vmatpush.msra.mxu0 %v10271_v39  ;;  %4023 = vmatpush.msra.mxu1 %v14197_v58  ;;  %v10640_v39 = vsub.f32 %v4178_v30, %v10615_v11  ;;  %v10658_v30 = vsub.f32 %v4177_v60, %v10630_v20  ;;  %v14204_v28 = vand.u32 4294901760, %v14203_v50  ;;  %v10671_v60 = vsub.f32 %v4176_v8, %v10644_v25 }
 0x2a7   : > { %4100 = vmatpush.msra.mxu2 %v14199_v16  ;;  %4147 = vmatpush.msra.mxu3 %v10290_v10  ;;  %v14201_v10 = vld [vmem:[#allocation76_spill] sm:$0xff]  ;;  %v4265_v54 = vand.u32 4294901760, %v4264_v33  ;;  %v3807_v16 = vsub.f32 %v10613_v7, %v13836_v12  ;;  %v10680_v33 = vsub.f32 %v10469_v27, %v10651_v1 }
 0x2a8   : > { %3918 = vmatmul.f32.vlgmr.msrb.gmra.mxu3 %v10520_v26  ;;  %3965 = vmatpush.msra.mxu0 %v10293_v24  ;;  %v14202_v36 = vand.u32 4294901760, %v14201_v10  ;;  %v4270_v24 = vsub.f32 %v10606_v2, %v13828_v44 }
 0x2a9   : > { %4025 = vmatpush.msra.mxu1 %v14200_v38  ;;  %4149 = vmatpush.msra.mxu3 %v10317_v43  ;;  %v13830_v43 = vand.u32 4294901760, %v10640_v39 }
 0x2aa   : > { %4104 = vmatpush.msra.mxu2 %v14202_v36  ;;  %3968 = vmatpush.msra.mxu0 %v14195_v18  ;;  %v4276_v18 = vsub.f32 %v10625_v61, %v13827_v49  ;;  %v10682_v36 = vand.u32 4294901760, %v4174_v42  ;;  %v4271_v8 = vand.u32 4294901760, %v4270_v24 }
 0x2ab   : > { %4254 = vmatpush.msrb.mxu1 %v4253_v63  ;;  %v10667_v63 = vand.u32 4294901760, %v4175_v9  ;;  %4151 = vmatpush.msra.mxu3 %v14197_v58  ;;  %v13832_v58 = vand.u32 4294901760, %v10658_v30  ;;  %v4282_v49 = vsub.f32 %v10640_v39, %v13830_v43  ;;  %v10708_v43 = vand.u32 4294901760, %v4172_v62 }
 0x2ac   : > { %4108 = vmatpush.msra.mxu2 %v14204_v28  ;;  %3707 = vmatmul.f32.vlgmr.msrb.gmra.mxu0 %v10457_v48  ;;  %v4173_v28 = vld [vmem:[#allocation7 + $0x128] sm:$0xff]  ;;  %v4644_v48 = vld [vmem:[#allocation8 + $0x1b0] sm:$0xff] }
 0x2ad   : > { %4260 = vmatpush.msrb.mxu1 %v4259_v17  ;;  %3971 = vmatpush.msra.mxu0 %v14198_v13  ;;  %v3808_v17 = vand.u32 4294901760, %v3807_v16  ;;  %v10692_v44 = vsub.f32 %v4175_v9, %v10667_v63  ;;  %v13833_v13 = vand.u32 4294901760, %v10671_v60  ;;  %v10697_v24 = vand.u32 4294901760, %v4173_v28 }
 0x2ae   : > { %4360 = vmatpush.msrb.mxu2 %v10556_v52  ;;  %3756 = vmatmul.f32.gmra.mxu1 %v10490_v37  ;;  %v10702_v16 = vsub.f32 %v4174_v42, %v10682_v36  ;;  %v4288_v9 = vsub.f32 %v10658_v30, %v13832_v58  ;;  %v10726_v58 = vand.u32 4294901760, %v4171_v55 }
 0x2af   : > { %4153 = vmatpush.msra.mxu3 %v14200_v38  ;;  %4266 = vmatpush.msrb.mxu1 %v4265_v54  ;;  %v4277_v38 = vand.u32 4294901760, %v4276_v18  ;;  %v13835_v54 = vand.u32 4294901760, %v10680_v33  ;;  %v13837_v18 = vand.u32 4294901760, %v10692_v44  ;;  %v4294_v42 = vsub.f32 %v10671_v60, %v13833_v13 }
 0x2b0   : > { %4363 = vmatpush.msrb.mxu2 %v10568_v53  ;;  %3974 = vmatpush.msra.mxu0 %v14201_v10  ;;  %v4283_v10 = vand.u32 4294901760, %v4282_v49  ;;  %v4289_v13 = vand.u32 4294901760, %v4288_v9 }
 0x2b1   : > { %4423 = vmatpush.msrb.mxu3 %v10534_v5  ;;  %3809 = vmatmul.f32.gmra.mxu2 %v3808_v17  ;;  %v4170_v17 = vld [vmem:[#allocation7 + $0x110] sm:$0xff]  ;;  %v3815_v49 = vsub.f32 %v10680_v33, %v13835_v54  ;;  %v4169_v54 = vld [vmem:[#allocation7 + $0x108] sm:$0xff]  ;;  %v4295_v12 = vand.u32 4294901760, %v4294_v42 }
 0x2b2   : > { %4272 = vmatpush.msrb.mxu1 %v4271_v8  ;;  %4366 = vmatpush.msrb.mxu2 %v10585_v56  ;;  %v10719_v8 = vsub.f32 %v4173_v28, %v10697_v24  ;;  %v10731_v28 = vsub.f32 %v4172_v62, %v10708_v43  ;;  %v10737_v51 = vand.u32 4294901760, %v4170_v17  ;;  %v10752_v45 = vand.u32 4294901760, %v4169_v54 }
 0x2b3   : > { %4425 = vmatpush.msrb.mxu3 %v10548_v31  ;;  %3977 = vmatpush.msra.mxu0 %v14203_v50  ;;  %v13841_v50 = vand.u32 4294901760, %v10702_v16  ;;  %v3816_v62 = vand.u32 4294901760, %v3815_v49 }
 0x2b4   : > { %3922 = vmatmul.f32.gmra.mxu3 %v10588_v46  ;;  %4278 = vmatpush.msrb.mxu1 %v4277_v38  ;;  %v4300_v38 = vsub.f32 %v10692_v44, %v13837_v18  ;;  %v10748_v18 = vsub.f32 %v4171_v55, %v10726_v58  ;;  %v10756_v49 = vsub.f32 %v4170_v17, %v10737_v51  ;;  %v14205_v55 = vand.u32 4294901760, %v10719_v8 }
 0x2b5   : > { %4193 = vmatpush.msrb.mxu0 %v10534_v5  ;;  %4369 = vmatpush.msrb.mxu2 %v10606_v2  ;;  %v14206_v17 = vand.u32 4294901760, %v10731_v28 }
 0x2b6   : > { %4427 = vmatpush.msrb.mxu3 %v10561_v23  ;;  %4284 = vmatpush.msrb.mxu1 %v4283_v10  ;;  %v4306_v10 = vsub.f32 %v10702_v16, %v13841_v50  ;;  %v4301_v9 = vand.u32 4294901760, %v4300_v38  ;;  %v10762_v50 = vand.u32 4294901760, %v4168_v0  ;;  %v10773_v38 = vsub.f32 %v4169_v54, %v10752_v45 }
 0x2b7   : > { %4195 = vmatpush.msrb.mxu0 %v10548_v31  ;;  %4372 = vmatpush.msrb.mxu2 %v10625_v61 }
 0x2b8   : > { %4429 = vmatpush.msrb.mxu3 %v10576_v57  ;;  %3711 = vmatmul.f32.gmra.mxu0 %v10490_v37  ;;  %v4307_v42 = vand.u32 4294901760, %v4306_v10  ;;  %v13847_v4 = vand.u32 4294901760, %v10773_v38  ;;  %v14217_v37 = vand.u32 4294901760, %v10680_v33 }
 0x2b9   : > { %3760 = vmatmul.f32.gmra.mxu1 %v10508_v34  ;;  %4197 = vmatpush.msrb.mxu0 %v10561_v23 }
 0x2ba   : > { %4290 = vmatpush.msrb.mxu1 %v4289_v13  ;;  %4375 = vmatpush.msrb.mxu2 %v10640_v39  ;;  %v4312_v13 = vsub.f32 %v10719_v8, %v14205_v55 }
 0x2bb   : > { %4431 = vmatpush.msrb.mxu3 %v10598_v32  ;;  %3817 = vmatmul.f32.gmra.mxu2 %v3816_v62  ;;  %v10780_v62 = vsub.f32 %v4168_v0, %v10762_v50  ;;  %v14209_v0 = vand.u32 4294901760, %v10756_v49 }
 0x2bc   : > { %4199 = vmatpush.msrb.mxu0 %v10576_v57  ;;  %4296 = vmatpush.msrb.mxu1 %v4295_v12  ;;  %v4318_v12 = vsub.f32 %v10731_v28, %v14206_v17  ;;  %v4313_v10 = vand.u32 4294901760, %v4312_v13  ;;  %v14207_v17 = vand.u32 4294901760, %v10748_v18  ;;  %v14208_v13 = vand.u32 4294901760, %v10541_v22 }
 0x2bd   : > { %4378 = vmatpush.msrb.mxu2 %v10658_v30  ;;  %4433 = vmatpush.msrb.mxu3 %v10615_v11 }
 0x2be   : > { %3926 = vmatmul.f32.gmra.mxu3 %v10651_v1  ;;  %4201 = vmatpush.msrb.mxu0 %v10598_v32  ;;  %v4324_v54 = vsub.f32 %v10748_v18, %v14207_v17  ;;  %v4319_v55 = vand.u32 4294901760, %v4318_v12  ;;  %v4651_v17 = vld [vmem:[#allocation8 + $0x1e8] sm:$0xff] }
 0x2bf   : > { %4302 = vmatpush.msrb.mxu1 %v4301_v9  ;;  %4381 = vmatpush.msrb.mxu2 %v10671_v60  ;;  %v4653_v9 = vld [vmem:[#allocation8 + $0x1f8] sm:$0xff]  ;;  %v10820_v15 = vand.u32 4294901760, %v4651_v17 }
 0x2c0   : > { %4435 = vmatpush.msrb.mxu3 %v10630_v20  ;;  %4203 = vmatpush.msrb.mxu0 %v10615_v11  ;;  %v10797_v35 = vand.u32 4294901760, %v4653_v9  ;;  %v4325_v12 = vand.u32 4294901760, %v4324_v54  ;;  %v14210_v54 = vand.u32 4294901760, %v10780_v62 }
 0x2c1   : > { %4308 = vmatpush.msrb.mxu1 %v4307_v42  ;;  %4384 = vmatpush.msrb.mxu2 %v10692_v44  ;;  %v4330_v42 = vsub.f32 %v10756_v49, %v14209_v0  ;;  %v10807_v0 = vand.u32 4294901760, %v4652_v59 }
 0x2c2   : > { %4437 = vmatpush.msrb.mxu3 %v10644_v25  ;;  %3715 = vmatmul.f32.gmra.mxu0 %v10508_v34  ;;  %v10815_v6 = vsub.f32 %v4653_v9, %v10797_v35  ;;  %v4646_v34 = vld [vmem:[#allocation8 + $0x1c0] sm:$0xff] }
 0x2c3   : > { %4029 = vmatmul.f32.vlgmr.msra.gmra.mxu1 %v14208_v13  ;;  %4205 = vmatpush.msrb.mxu0 %v10630_v20  ;;  %v4336_v13 = vsub.f32 %v10773_v38, %v13847_v4  ;;  %v4650_v4 = vld [vmem:[#allocation8 + $0x1e0] sm:$0xff] }
 0x2c4   : > { %4314 = vmatpush.msrb.mxu1 %v4313_v10  ;;  %4387 = vmatpush.msrb.mxu2 %v10702_v16  ;;  %v4331_v10 = vand.u32 4294901760, %v4330_v42 }
 0x2c5   : > { %4439 = vmatpush.msrb.mxu3 %v10667_v63  ;;  %4110 = vmatmul.f32.vlgmr.msra.gmra.mxu2 %v10520_v26  ;;  %v4337_v42 = vand.u32 4294901760, %v4336_v13  ;;  %v14211_v13 = vand.u32 4294901760, %v10613_v7 }
 0x2c6   : > { %4207 = vmatpush.msrb.mxu0 %v10644_v25  ;;  %4320 = vmatpush.msrb.mxu1 %v4319_v55  ;;  %v4342_v55 = vsub.f32 %v10780_v62, %v14210_v54  ;;  %v10829_v54 = vand.u32 4294901760, %v4650_v4 }
 0x2c7   : > { %4390 = vmatpush.msrb.mxu2 %v10719_v8  ;;  %4441 = vmatpush.msrb.mxu3 %v10682_v36 }
 0x2c8   : > { %4155 = vmatmul.f32.vlgmr.msra.gmra.mxu3 %v10520_v26  ;;  %4209 = vmatpush.msrb.mxu0 %v10667_v63  ;;  %v10824_v26 = vsub.f32 %v4652_v59, %v10807_v0  ;;  %v4343_v9 = vand.u32 4294901760, %v4342_v55  ;;  %v10836_v59 = vsub.f32 %v4651_v17, %v10820_v15  ;;  %v10841_v55 = vand.u32 4294901760, %v4649_v19 }
 0x2c9   : > { %4326 = vmatpush.msrb.mxu1 %v4325_v12  ;;  %4393 = vmatpush.msrb.mxu2 %v10731_v28  ;;  %v13851_v12 = vand.u32 4294901760, %v10815_v6 }
 0x2ca   : > { %4443 = vmatpush.msrb.mxu3 %v10697_v24  ;;  %4211 = vmatpush.msrb.mxu0 %v10682_v36  ;;  %v10865_v29 = vsub.f32 %v4649_v19, %v10841_v55 }
 0x2cb   : > { %4332 = vmatpush.msrb.mxu1 %v4331_v10  ;;  %4396 = vmatpush.msrb.mxu2 %v10748_v18  ;;  %v4648_v10 = vld [vmem:[#allocation8 + $0x1d0] sm:$0xff] }
 0x2cc   : > { %4445 = vmatpush.msrb.mxu3 %v10708_v43  ;;  %3980 = vmatmul.f32.vlgmr.msra.gmra.mxu0 %v10541_v22  ;;  %v10853_v40 = vand.u32 4294901760, %v4648_v10  ;;  %v4647_v22 = vld [vmem:[#allocation8 + $0x1c8] sm:$0xff]  ;;  %14214 = vst [vmem:[#allocation25_spill] sm:$0xff] %v10865_v29 }
 0x2cd   : > { %4035 = vmatmul.f32.gmra.mxu1 %v14211_v13  ;;  %4213 = vmatpush.msrb.mxu0 %v10697_v24  ;;  %v10848_v13 = vsub.f32 %v4650_v4, %v10829_v54  ;;  %v14213_v4 = vand.u32 4294901760, %v10824_v26 }
 0x2ce   : > { %4338 = vmatpush.msrb.mxu1 %v4337_v42  ;;  %4399 = vmatpush.msrb.mxu2 %v10756_v49  ;;  %v4714_v42 = vsub.f32 %v10815_v6, %v13851_v12  ;;  %v4184_v12 = vrot.slane %v10449_v3, 2  ;;  %v14215_v3 = vrot.slane %v10451_v14, 2  ;;  %v10878_v19 = vsub.f32 %v4648_v10, %v10853_v40 }
 0x2cf   : > { %4447 = vmatpush.msrb.mxu3 %v10726_v58  ;;  %4114 = vmatmul.f32.gmra.mxu2 %v10588_v46  ;;  %14212 = vst [vmem:[#allocation60_spill] sm:$0xff] %v10848_v13  ;;  %v4720_v17 = vsub.f32 %v10824_v26, %v14213_v4 }
 0x2d0   : > { %4215 = vmatpush.msrb.mxu0 %v10708_v43  ;;  %4344 = vmatpush.msrb.mxu1 %v4343_v9  ;;  %v10870_v9 = vand.u32 4294901760, %v4647_v22  ;;  %v4186_v4 = vsel %vm892_vm3, %v4184_v12, %v14215_v3  ;;  %v13865_v12 = vand.u32 4294901760, %v10865_v29 }
 0x2d1   : > { %4402 = vmatpush.msrb.mxu2 %v10773_v38  ;;  %4449 = vmatpush.msrb.mxu3 %v10737_v51  ;;  %v4721_v3 = vand.u32 4294901760, %v4720_v17  ;;  %v10895_v47 = vand.u32 4294901760, %v4186_v4  ;;  %v10903_v17 = vand.u32 4294901760, %v4645_v21 }
 0x2d2   : > { %4159 = vmatmul.f32.gmra.mxu3 %v10588_v46  ;;  %4551 = vmatpush.msra.mxu1 %v10534_v5  ;;  %v4715_v5 = vand.u32 4294901760, %v4714_v42  ;;  %v10885_v46 = vand.u32 4294901760, %v4646_v34 }
 0x2d3   : > { %4217 = vmatpush.msrb.mxu0 %v10726_v58  ;;  %4405 = vmatpush.msrb.mxu2 %v10780_v62  ;;  %14219 = vst [vmem:[#allocation30_spill] sm:$0xff] %v10895_v47 }
 0x2d4   : > { %4451 = vmatpush.msrb.mxu3 %v10752_v45  ;;  %4553 = vmatpush.msra.mxu1 %v10548_v31  ;;  %v14216_v31 = vand.u32 4294901760, %v10836_v59 }
 0x2d5   : > { %4655 = vmatpush.msra.mxu2 %v10797_v35  ;;  %4219 = vmatpush.msrb.mxu0 %v10737_v51 }
 0x2d6   : > { %4453 = vmatpush.msrb.mxu3 %v10762_v50  ;;  %3985 = vmatmul.f32.gmra.mxu0 %v10613_v7  ;;  %v4726_v42 = vsub.f32 %v10836_v59, %v14216_v31  ;;  %v14218_v7 = vand.u32 4294901760, %v10848_v13  ;;  %v10898_v31 = vsub.f32 %v4647_v22, %v10870_v9  ;;  %v10911_v22 = vrot.slane %v10469_v27, 2 }
 0x2d7   : > { %4041 = vmatmul.f32.gmra.mxu1 %v14217_v37  ;;  %4657 = vmatpush.msra.mxu2 %v10807_v0  ;;  %v10917_v37 = vand.u32 4294901760, %v4644_v48 }
 0x2d8   : > { %4555 = vmatpush.msra.mxu1 %v10561_v23  ;;  %4716 = vmatpush.msra.mxu3 %v4715_v5  ;;  %v4732_v10 = vsub.f32 %v10848_v13, %v14218_v7  ;;  %v4727_v23 = vand.u32 4294901760, %v4726_v42  ;;  %v10908_v5 = vsub.f32 %v4646_v34, %v10885_v46  ;;  %v4738_v7 = vsub.f32 %v10865_v29, %v13865_v12  ;;  %v4643_v13 = vld [vmem:[#allocation8 + $0x1a8] sm:$0xff] }
 0x2d9   : > { %4221 = vmatpush.msrb.mxu0 %v10752_v45  ;;  %4118 = vmatmul.f32.gmra.mxu2 %v10651_v1  ;;  %v10923_v42 = vsub.f32 %v4186_v4, %v10895_v47  ;;  %v14222_v12 = vand.u32 4294901760, %v10878_v19  ;;  %v10932_v29 = vsub.f32 %v4645_v21, %v10903_v17 }
 0x2da   : > { %4557 = vmatpush.msra.mxu1 %v10576_v57  ;;  %4659 = vmatpush.msra.mxu2 %v10820_v15  ;;  %v14220_v57 = vand.u32 4294901760, %v10556_v52  ;;  %v4733_v34 = vand.u32 4294901760, %v4732_v10  ;;  %v14223_v52 = vand.u32 4294901760, %v10568_v53  ;;  %v13873_v4 = vand.u32 4294901760, %v10908_v5 }
 0x2db   : > { %4722 = vmatpush.msra.mxu3 %v4721_v3  ;;  %4223 = vmatpush.msrb.mxu0 %v10762_v50  ;;  %14221 = vst [vmem:[#allocation31_spill] sm:$0xff] %v10923_v42  ;;  %v13870_v3 = vand.u32 4294901760, %v10898_v31  ;;  %v4744_v27 = vsub.f32 %v10878_v19, %v14222_v12  ;;  %v10937_v10 = vand.u32 4294901760, %v4643_v13  ;;  %v14224_v12 = vrot.slane %v10451_v14, 2  ;;  %v4640_v14 = vld [vmem:[#allocation8 + $0x190] sm:$0xff] }
 0x2dc   : > { %4163 = vmatmul.f32.gmra.mxu3 %v10651_v1  ;;  %4559 = vmatpush.msra.mxu1 %v10598_v32  ;;  %v4642_v1 = vld [vmem:[#allocation8 + $0x1a0] sm:$0xff]  ;;  %v4739_v32 = vand.u32 4294901760, %v4738_v7  ;;  %v10950_v53 = vand.u32 4294901760, %v10923_v42  ;;  %v4641_v7 = vld [vmem:[#allocation8 + $0x198] sm:$0xff] }
 0x2dd   : > { %4476 = vmatpush.msra.mxu0 %v14220_v57  ;;  %4661 = vmatpush.msra.mxu2 %v10829_v54  ;;  %v4188_v21 = vsel %vm892_vm3, %v14224_v12, %v10911_v22  ;;  %v10946_v57 = vsub.f32 %v4644_v48, %v10917_v37  ;;  %v4745_v48 = vand.u32 4294901760, %v4744_v27  ;;  %v10987_v27 = vand.u32 4294901760, %v4640_v14 }
 0x2de   : > { %4728 = vmatpush.msra.mxu3 %v4727_v23  ;;  %4561 = vmatpush.msra.mxu1 %v10615_v11  ;;  %14225 = vst [vmem:[#allocation29_spill] sm:$0xff] %v10950_v53  ;;  %v4750_v11 = vsub.f32 %v10898_v31, %v13870_v3  ;;  %v10955_v23 = vand.u32 4294901760, %v4642_v1  ;;  %v10966_v12 = vand.u32 4294901760, %v4188_v21  ;;  %v10969_v3 = vsub.f32 %v4643_v13, %v10937_v10 }
 0x2df   : > { %4480 = vmatpush.msra.mxu0 %v14223_v52  ;;  %4663 = vmatpush.msra.mxu2 %v10841_v55  ;;  %v14226_v52 = vand.u32 4294901760, %v10585_v56  ;;  %v10973_v56 = vand.u32 4294901760, %v4641_v7 }
 0x2e0   : > { %4734 = vmatpush.msra.mxu3 %v4733_v34  ;;  %3990 = vmatmul.f32.gmra.mxu0 %v10680_v33  ;;  %v13874_v34 = vand.u32 4294901760, %v10932_v29  ;;  %v4756_v33 = vsub.f32 %v10908_v5, %v13873_v4  ;;  %14227 = vst [vmem:[#allocation46_spill] sm:$0xff] %v10966_v12  ;;  %v4227_v4 = vsub.f32 %v10923_v42, %v10950_v53 }
 0x2e1   : > { %4346 = vmatmul.f32.vlgmr.msrb.gmra.mxu1 %v10895_v47  ;;  %4484 = vmatpush.msra.mxu0 %v14226_v52  ;;  %v4751_v52 = vand.u32 4294901760, %v4750_v11  ;;  %v10981_v13 = vsub.f32 %v4642_v1, %v10955_v23  ;;  %v4773_v1 = vand.u32 4294901760, %v10969_v3 }
 0x2e2   : > { %4563 = vmatpush.msra.mxu1 %v10630_v20  ;;  %4665 = vmatpush.msra.mxu2 %v10853_v40  ;;  %v14228_v20 = vand.u32 4294901760, %v10606_v2  ;;  %v4639_v2 = vld [vmem:[#allocation8 + $0x188] sm:$0xff]  ;;  %v4757_v11 = vand.u32 4294901760, %v4756_v33 }
 0x2e3   : > { %4740 = vmatpush.msra.mxu3 %v4739_v32  ;;  %4408 = vmatmul.f32.vlgmr.msrb.gmra.mxu2 %v10923_v42  ;;  %v4762_v32 = vsub.f32 %v10932_v29, %v13874_v34  ;;  %v11002_v42 = vsub.f32 %v4641_v7, %v10973_v56  ;;  %v4779_v33 = vand.u32 4294901760, %v10981_v13 }
 0x2e4   : > { %4488 = vmatpush.msra.mxu0 %v14228_v20  ;;  %4565 = vmatpush.msra.mxu1 %v10644_v25  ;;  %v14229_v25 = vand.u32 4294901760, %v10625_v61  ;;  %v10993_v20 = vsub.f32 %v4188_v21, %v10966_v12  ;;  %v14232_v61 = vand.u32 4294901760, %v10640_v39  ;;  %v11006_v21 = vand.u32 4294901760, %v4227_v4 }
 0x2e5   : > { %4667 = vmatpush.msra.mxu2 %v10870_v9  ;;  %4746 = vmatpush.msra.mxu3 %v4745_v48  ;;  %v14231_v48 = vand.u32 4294901760, %v10946_v57  ;;  %v4774_v4 = vsub.f32 %v10969_v3, %v4773_v1 }
 0x2e6   : > { %4457 = vmatmul.f32.vlgmr.msrb.gmra.mxu3 %v10950_v53  ;;  %4492 = vmatpush.msra.mxu0 %v14229_v25  ;;  %14230 = vst [vmem:[#allocation45_spill] sm:$0xff] %v10993_v20  ;;  %v4638_v53 = vld [vmem:[#allocation8 + $0x180] sm:$0xff]  ;;  %v11009_v25 = vand.u32 4294901760, %v4639_v2  ;;  %v11018_v39 = vand.u32 4294901760, %v10993_v20 }
 0x2e7   : > { %4567 = vmatpush.msra.mxu1 %v10667_v63  ;;  %4669 = vmatpush.msra.mxu2 %v10885_v46  ;;  %v4768_v34 = vsub.f32 %v10946_v57, %v14231_v48  ;;  %14233 = vst [vmem:[#allocation62_spill] sm:$0xff] %v11006_v21  ;;  %v4763_v63 = vand.u32 4294901760, %v4762_v32  ;;  %v11014_v48 = vsub.f32 %v4640_v14, %v10987_v27  ;;  %v11023_v7 = vand.u32 4294901760, %v4638_v53 }
 0x2e8   : > { %4752 = vmatpush.msra.mxu3 %v4751_v52  ;;  %4496 = vmatpush.msra.mxu0 %v14232_v61  ;;  %14234 = vst [vmem:[#allocation37_spill] sm:$0xff] %v11018_v39  ;;  %v4785_v14 = vand.u32 4294901760, %v11002_v42  ;;  %v4780_v32 = vsub.f32 %v10981_v13, %v4779_v33  ;;  %v4235_v61 = vsub.f32 %v10993_v20, %v11018_v39 }
 0x2e9   : > { %4569 = vmatpush.msra.mxu1 %v10682_v36  ;;  %4671 = vmatpush.msra.mxu2 %v10903_v17  ;;  %v14235_v36 = vand.u32 4294901760, %v10658_v30  ;;  %v4769_v52 = vand.u32 4294901760, %v4768_v34  ;;  %v4791_v30 = vand.u32 4294901760, %v11014_v48  ;;  %v14236_v34 = vand.u32 4294901760, %v10671_v60 }
 0x2ea   : > { %4758 = vmatpush.msra.mxu3 %v4757_v11  ;;  %4229 = vmatmul.f32.vlgmr.msrb.gmra.mxu0 %v11006_v21  ;;  %v11035_v11 = vsub.f32 %v4639_v2, %v11009_v25  ;;  %v11048_v2 = vsub.f32 %v4638_v53, %v11023_v7  ;;  %v4786_v60 = vsub.f32 %v11002_v42, %v4785_v14 }
 0x2eb   : > { %4350 = vmatmul.f32.gmra.mxu1 %v10966_v12  ;;  %4500 = vmatpush.msra.mxu0 %v14235_v36  ;;  %v11045_v36 = vand.u32 4294901760, %v10911_v22  ;;  %v4792_v53 = vsub.f32 %v11014_v48, %v4791_v30 }
 0x2ec   : > { %4571 = vmatpush.msra.mxu1 %v10697_v24  ;;  %4673 = vmatpush.msra.mxu2 %v10917_v37  ;;  %v4775_v24 = vand.u32 4294901760, %v4774_v4  ;;  %v4797_v4 = vand.u32 4294901760, %v11035_v11 }
 0x2ed   : > { %4764 = vmatpush.msra.mxu3 %v4763_v63  ;;  %4413 = vmatmul.f32.gmra.mxu2 %v10993_v20  ;;  %14237 = vst [vmem:[#allocation24_spill] sm:$0xff] %v11045_v36  ;;  %v4781_v63 = vand.u32 4294901760, %v4780_v32  ;;  %v4803_v32 = vand.u32 4294901760, %v11048_v2 }
 0x2ee   : > { %4504 = vmatpush.msra.mxu0 %v14236_v34  ;;  %4573 = vmatpush.msra.mxu1 %v10708_v43  ;;  %v14238_v43 = vand.u32 4294901760, %v10692_v44  ;;  %v11065_v34 = vand.u32 4294901760, %v4235_v61  ;;  %v11069_v44 = vsub.f32 %v10911_v22, %v11045_v36  ;;  %v4793_v22 = vand.u32 4294901760, %v4792_v53 }
 0x2ef   : > { %4675 = vmatpush.msra.mxu2 %v10937_v10  ;;  %4770 = vmatpush.msra.mxu3 %v4769_v52  ;;  %v14239_v52 = vand.u32 4294901760, %v10702_v16  ;;  %v4798_v16 = vsub.f32 %v11035_v11, %v4797_v4  ;;  %v4804_v61 = vsub.f32 %v11048_v2, %v4803_v32 }
 0x2f0   : > { %4463 = vmatmul.f32.gmra.mxu3 %v11018_v39  ;;  %4508 = vmatpush.msra.mxu0 %v14238_v43  ;;  %14240 = vst [vmem:[#allocation42_spill] sm:$0xff] %v11065_v34  ;;  %v4621_v39 = vld [vmem:[#allocation8] sm:$0xff] }
 0x2f1   : > { %4575 = vmatpush.msra.mxu1 %v10726_v58  ;;  %4677 = vmatpush.msra.mxu2 %v10955_v23  ;;  %14241 = vst [vmem:[#allocation43_spill] sm:$0xff] %v11069_v44  ;;  %v4787_v58 = vand.u32 4294901760, %v4786_v60  ;;  %v14244_v60 = vand.u32 4294901760, %v10731_v28  ;;  %v14247_v28 = vand.u32 4294901760, %v10756_v49  ;;  %v14251_v49 = vand.u32 4294901760, %v10836_v59 }
 0x2f2   : > { %4776 = vmatpush.msra.mxu3 %v4775_v24  ;;  %4512 = vmatpush.msra.mxu0 %v14239_v52  ;;  %v14242_v24 = vand.u32 4294901760, %v10719_v8  ;;  %v4799_v8 = vand.u32 4294901760, %v4798_v16  ;;  %v14249_v52 = vand.u32 4294901760, %v10824_v26 }
 0x2f3   : > { %4577 = vmatpush.msra.mxu1 %v10737_v51  ;;  %4679 = vmatpush.msra.mxu2 %v10973_v56  ;;  %v11084_v51 = vand.u32 4294901760, %v11069_v44 }
 0x2f4   : > { %4782 = vmatpush.msra.mxu3 %v4781_v63  ;;  %4237 = vmatmul.f32.gmra.mxu0 %v11065_v34  ;;  %v14245_v63 = vand.u32 4294901760, %v10748_v18  ;;  %v14250_v18 = vand.u32 4294901760, %v10773_v38  ;;  %v14255_v38 = vld [vmem:[#allocation28_spill] sm:$0xff] }
 0x2f5   : > { %4354 = vmatmul.f32.gmra.mxu1 %v11045_v36  ;;  %4516 = vmatpush.msra.mxu0 %v14242_v24  ;;  %14243 = vst [vmem:[#allocation23_spill] sm:$0xff] %v11084_v51  ;;  %v4243_v43 = vsub.f32 %v11069_v44, %v11084_v51  ;;  %v14270_v24 = vld [vmem:[#allocation20_spill] sm:$0xff] }
 0x2f6   : > { %4579 = vmatpush.msra.mxu1 %v10752_v45  ;;  %4681 = vmatpush.msra.mxu2 %v10987_v27  ;;  %v4805_v45 = vand.u32 4294901760, %v4804_v61  ;;  %v4633_v61 = vld [vmem:[#allocation8 + $0x60] sm:$0xff] }
 0x2f7   : > { %4788 = vmatpush.msra.mxu3 %v4787_v58  ;;  %4418 = vmatmul.f32.gmra.mxu2 %v11069_v44  ;;  %v11107_v53 = vand.u32 4294901760, %v4243_v43  ;;  %v14252_v58 = vand.u32 4294901760, %v10780_v62 }
 0x2f8   : > { %4520 = vmatpush.msra.mxu0 %v14244_v60  ;;  %4581 = vmatpush.msra.mxu1 %v10762_v50  ;;  %v14246_v50 = vand.u32 4294901760, %v10815_v6  ;;  %v4632_v60 = vld [vmem:[#allocation8 + $0x58] sm:$0xff] }
 0x2f9   : > { %4683 = vmatpush.msra.mxu2 %v11009_v25  ;;  %4794 = vmatpush.msra.mxu3 %v4793_v22  ;;  %14248 = vst [vmem:[#allocation32_spill] sm:$0xff] %v11107_v53 }
 0x2fa   : > { %4885 = vmatpush.msrb.mxu1 %v10797_v35  ;;  %4469 = vmatmul.f32.gmra.mxu3 %v11084_v51 }
 0x2fb   : > { %4524 = vmatpush.msra.mxu0 %v14245_v63  ;;  %4685 = vmatpush.msra.mxu2 %v11023_v7 }
 0x2fc   : > { %4800 = vmatpush.msra.mxu3 %v4799_v8  ;;  %4887 = vmatpush.msrb.mxu1 %v10807_v0  ;;  %v4631_v8 = vld [vmem:[#allocation8 + $0x50] sm:$0xff] }
 0x2fd   : > { %4938 = vmatpush.msrb.mxu2 %v14246_v50  ;;  %4528 = vmatpush.msra.mxu0 %v14247_v28  ;;  %v11261_v50 = vand.u32 4294901760, %v4633_v61  ;;  %v11263_v28 = vand.u32 4294901760, %v4632_v60 }
 0x2fe   : > { %4806 = vmatpush.msra.mxu3 %v4805_v45  ;;  %4889 = vmatpush.msrb.mxu1 %v10820_v15  ;;  %v14271_v45 = vld [vmem:[#allocation22_spill] sm:$0xff] }
 0x2ff   : > { %4942 = vmatpush.msrb.mxu2 %v14249_v52  ;;  %4245 = vmatmul.f32.gmra.mxu0 %v11107_v53  ;;  %v11266_v52 = vand.u32 4294901760, %v4631_v8 }
 0x300   : > { %5013 = vmatpush.msrb.mxu3 %v10797_v35  ;;  %4583 = vmatmul.f32.vlgmr.msra.gmra.mxu1 %v10895_v47  ;;  %v14253_v35 = vld [vmem:[#allocation60_spill] sm:$0xff] }
 0x301   : > { %4532 = vmatpush.msra.mxu0 %v14250_v18  ;;  %4891 = vmatpush.msrb.mxu1 %v10829_v54  ;;  %v14254_v16 = vand.u32 4294901760, %v14253_v35 }
 0x302   : > { %4946 = vmatpush.msrb.mxu2 %v14251_v49  ;;  %5015 = vmatpush.msrb.mxu3 %v10807_v0  ;;  %v14256_v0 = vld [vmem:[#allocation25_spill] sm:$0xff]  ;;  %v11272_v49 = vsub.f32 %v4633_v61, %v11261_v50 }
 0x303   : > { %4536 = vmatpush.msra.mxu0 %v14252_v58  ;;  %4691 = vmatmul.f32.vlgmr.msra.gmra.mxu2 %v10482_v41  ;;  %v14257_v62 = vand.u32 4294901760, %v14256_v0  ;;  %v14258_v41 = vand.u32 4294901760, %v10878_v19  ;;  %v11275_v58 = vsub.f32 %v4632_v60, %v11263_v28 }
 0x304   : > { %4893 = vmatpush.msrb.mxu1 %v10841_v55  ;;  %4950 = vmatpush.msrb.mxu2 %v14254_v16 }
 0x305   : > { %4822 = vmatpush.msrb.mxu0 %v10815_v6  ;;  %5017 = vmatpush.msrb.mxu3 %v10820_v15  ;;  %v14259_v15 = vand.u32 4294901760, %v10898_v31  ;;  %v14260_v6 = vld [vmem:[#allocation61_spill] sm:$0xff] }
 0x306   : > { %4808 = vmatmul.f32.vlgmr.msra.gmra.mxu3 %v14255_v38  ;;  %4895 = vmatpush.msrb.mxu1 %v10853_v40 }
 0x307   : > { %4825 = vmatpush.msrb.mxu0 %v10824_v26  ;;  %4954 = vmatpush.msrb.mxu2 %v14257_v62  ;;  %v14261_v26 = vand.u32 4294901760, %v10908_v5  ;;  %v13881_v62 = vand.u32 4294901760, %v11275_v58 }
 0x308   : > { %5019 = vmatpush.msrb.mxu3 %v10829_v54  ;;  %4897 = vmatpush.msrb.mxu1 %v10870_v9  ;;  %v14262_v54 = vld [vmem:[#allocation19_spill] sm:$0xff] }
 0x309   : > { %4828 = vmatpush.msrb.mxu0 %v10836_v59  ;;  %4958 = vmatpush.msrb.mxu2 %v14258_v41  ;;  %v14263_v59 = vand.u32 4294901760, %v10932_v29 }
 0x30a   : > { %5021 = vmatpush.msrb.mxu3 %v10841_v55  ;;  %4538 = vmatmul.f32.vlgmr.msra.gmra.mxu0 %v10895_v47  ;;  %v14264_v55 = vand.u32 4294901760, %v10946_v57 }
 0x30b   : > { %4587 = vmatmul.f32.gmra.mxu1 %v10966_v12  ;;  %4831 = vmatpush.msrb.mxu0 %v14253_v35  ;;  %v11280_v35 = vsub.f32 %v4631_v8, %v11266_v52 }
 0x30c   : > { %4899 = vmatpush.msrb.mxu1 %v10885_v46  ;;  %4962 = vmatpush.msrb.mxu2 %v14259_v15 }
 0x30d   : > { %5023 = vmatpush.msrb.mxu3 %v10853_v40  ;;  %4699 = vmatmul.f32.gmra.mxu2 %v14260_v6  ;;  %v11157_v40 = vpop.f32.mrf.mxu0  ;;  %v13880_v41 = vand.u32 4294901760, %v11280_v35 }
 0x30e   : > { %4834 = vmatpush.msrb.mxu0 %v14256_v0  ;;  %4901 = vmatpush.msrb.mxu1 %v10903_v17  ;;  %v13883_v0 = vand.u32 4294901760, %v11272_v49 }
 0x30f   : > { %4966 = vmatpush.msrb.mxu2 %v14261_v26  ;;  %5025 = vmatpush.msrb.mxu3 %v10870_v9  ;;  %v11164_v9 = vpop.f32.mrf.mxu1 }
 0x310   : > { %4812 = vmatmul.f32.gmra.mxu3 %v14262_v54  ;;  %4837 = vmatpush.msrb.mxu0 %v10878_v19  ;;  %v5135_v26 = vsub.f32 %v11272_v49, %v13883_v0 }
 0x311   : > { %4903 = vmatpush.msrb.mxu1 %v10917_v37  ;;  %4970 = vmatpush.msrb.mxu2 %v14263_v59  ;;  %v14272_v59 = vld [vmem:[#allocation57_spill] sm:$0xff] }
 0x312   : > { %5027 = vmatpush.msrb.mxu3 %v10885_v46  ;;  %4840 = vmatpush.msrb.mxu0 %v10898_v31  ;;  %v14265_v46 = vld [vmem:[#allocation33_spill] sm:$0xff]  ;;  %v14266_v31 = vld [vmem:[#allocation58_spill] sm:$0xff] }
 0x313   : > { %4905 = vmatpush.msrb.mxu1 %v10937_v10  ;;  %4974 = vmatpush.msrb.mxu2 %v14264_v55  ;;  %v5147_v55 = vsub.f32 %v11280_v35, %v13880_v41  ;;  %v4625_v41 = vld [vmem:[#allocation8 + $0x20] sm:$0xff] }
 0x314   : > { %5029 = vmatpush.msrb.mxu3 %v10903_v17  ;;  %4542 = vmatmul.f32.gmra.mxu0 %v10966_v12 }
 0x315   : > { %4591 = vmatmul.f32.gmra.mxu1 %v11045_v36  ;;  %4843 = vmatpush.msrb.mxu0 %v10908_v5  ;;  %v11180_v19 = vpop.f32.mrf.mxu0 }
 0x316   : > { %4907 = vmatpush.msrb.mxu1 %v10955_v23  ;;  %4978 = vmatpush.msrb.mxu2 %v4773_v1 }
 0x317   : > { %5031 = vmatpush.msrb.mxu3 %v10917_v37  ;;  %4707 = vmatmul.f32.gmra.mxu2 %v14265_v46  ;;  %v11187_v37 = vpop.f32.mrf.mxu1  ;;  %v4630_v46 = vld [vmem:[#allocation8 + $0x48] sm:$0xff] }
 0x318   : > { %4846 = vmatpush.msrb.mxu0 %v10932_v29  ;;  %4909 = vmatpush.msrb.mxu1 %v10973_v56  ;;  %v14267_v29 = vld [vmem:[#allocation47_spill] sm:$0xff] }
 0x319   : > { %4982 = vmatpush.msrb.mxu2 %v4779_v33  ;;  %5033 = vmatpush.msrb.mxu3 %v10937_v10 }
 0x31a   : > { %4816 = vmatmul.f32.gmra.mxu3 %v14266_v31  ;;  %4849 = vmatpush.msrb.mxu0 %v10946_v57 }
 0x31b   : > { %4911 = vmatpush.msrb.mxu1 %v10987_v27  ;;  %4986 = vmatpush.msrb.mxu2 %v4785_v14 }
 0x31c   : > { %5035 = vmatpush.msrb.mxu3 %v10955_v23  ;;  %4852 = vmatpush.msrb.mxu0 %v10969_v3  ;;  %v4635_v3 = vld [vmem:[#allocation8 + $0x70] sm:$0xff]  ;;  %v14268_v23 = vld [vmem:[#allocation44_spill] sm:$0xff] }
 0x31d   : > { %4913 = vmatpush.msrb.mxu1 %v11009_v25  ;;  %4990 = vmatpush.msrb.mxu2 %v4791_v30  ;;  %v11218_v57 = vand.u32 4294901760, %v4635_v3  ;;  %v4634_v30 = vld [vmem:[#allocation8 + $0x68] sm:$0xff] }
 0x31e   : > { %5037 = vmatpush.msrb.mxu3 %v10973_v56  ;;  %4546 = vmatmul.f32.gmra.mxu0 %v11045_v36  ;;  %v11222_v56 = vpop.f32.mrf.mxu2 }
 0x31f   : > { %4855 = vmatpush.msrb.mxu0 %v10981_v13  ;;  %4915 = vmatpush.msrb.mxu1 %v11023_v7  ;;  %v11208_v17 = vpop.f32.mrf.mxu0  ;;  %v11213_v5 = vpop.f32.mrf.mxu1  ;;  %v11228_v1 = vsub.f32 %v4635_v3, %v11218_v57  ;;  %v11310_v3 = vand.u32 4294901760, %v4630_v46 }
 0x320   : > { %4994 = vmatpush.msrb.mxu2 %v4797_v4  ;;  %5039 = vmatpush.msrb.mxu3 %v10987_v27  ;;  %v14269_v27 = vld [vmem:[#allocation17_spill] sm:$0xff] }
 0x321   : > { %4919 = vmatmul.f32.vlgmr.msrb.gmra.mxu1 %v14267_v29  ;;  %4858 = vmatpush.msrb.mxu0 %v11002_v42  ;;  %v4636_v42 = vld [vmem:[#allocation8 + $0x78] sm:$0xff]  ;;  %v5136_v29 = vand.u32 4294901760, %v5135_v26 }
 0x322   : > { %4998 = vmatpush.msrb.mxu2 %v4803_v32  ;;  %5041 = vmatpush.msrb.mxu3 %v11009_v25  ;;  %v11216_v10 = vand.u32 4294901760, %v4636_v42  ;;  %v13885_v25 = vand.u32 4294901760, %v11228_v1  ;;  %v11252_v32 = vand.u32 4294901760, %v4634_v30 }
 0x323   : > { %5000 = vmatmul.f32.vlgmr.msrb.gmra.mxu2 %v14255_v38  ;;  %4861 = vmatpush.msrb.mxu0 %v11014_v48  ;;  %v11238_v48 = vpop.f32.mrf.mxu3 }
 0x324   : > { %5043 = vmatpush.msrb.mxu3 %v11023_v7  ;;  %v11225_v13 = vsub.f32 %v4636_v42, %v11216_v10  ;;  %v11259_v63 = vsub.f32 %v4634_v30, %v11252_v32 }
 0x325   : > { %5045 = vmatmul.f32.vlgmr.msrb.gmra.mxu3 %v14255_v38  ;;  %4864 = vmatpush.msrb.mxu0 %v11035_v11  ;;  %v5123_v11 = vsub.f32 %v11228_v1, %v13885_v25  ;;  %v11376_v25 = vand.u32 4294901760, %v4625_v41 }
 0x326   : > { %5288 = vmatpush.msra.mxu3 %v11216_v10  ;;  %v13886_v33 = vand.u32 4294901760, %v11225_v13  ;;  %5225 = vmatpush.msra.mxu2 %v11225_v13  ;;  %v11256_v43 = vpop.f32.mrf.mxu2  ;;  %v13884_v18 = vand.u32 4294901760, %v11259_v63 }
 0x327   : > { %4867 = vmatpush.msrb.mxu0 %v11048_v2  ;;  %v11250_v2 = vpop.f32.mrf.mxu1  ;;  %v5124_v22 = vand.u32 4294901760, %v5123_v11  ;;  %v4627_v11 = vld [vmem:[#allocation8 + $0x30] sm:$0xff] }
 0x328   : > { %4870 = vmatmul.f32.vlgmr.msrb.gmra.mxu0 %v14268_v23  ;;  %5290 = vmatpush.msra.mxu3 %v11218_v57  ;;  %v5117_v14 = vsub.f32 %v11225_v13, %v13886_v33  ;;  %v5129_v38 = vsub.f32 %v11259_v63, %v13884_v18  ;;  %v5148_v23 = vand.u32 4294901760, %v5147_v55  ;;  %v11325_v61 = vand.u32 4294901760, %v4627_v11 }
 0x329   : > { %4925 = vmatmul.f32.gmra.mxu1 %v14269_v27  ;;  %5058 = vmatpush.msra.mxu0 %v11216_v10  ;;  %v11241_v7 = vpop.f32.mrf.mxu0  ;;  %v4629_v27 = vld [vmem:[#allocation8 + $0x40] sm:$0xff] }
 0x32a   : > { %5228 = vmatpush.msra.mxu2 %v11228_v1  ;;  %v5118_v4 = vand.u32 4294901760, %v5117_v14  ;;  %5292 = vmatpush.msra.mxu3 %v11252_v32  ;;  %v5130_v6 = vand.u32 4294901760, %v5129_v38  ;;  %v4628_v14 = vld [vmem:[#allocation8 + $0x38] sm:$0xff]  ;;  %v11337_v38 = vsub.f32 %v4627_v11, %v11325_v61 }
 0x32b   : > { %5004 = vmatmul.f32.gmra.mxu2 %v14262_v54  ;;  %5060 = vmatpush.msra.mxu0 %v11218_v57  ;;  %v11283_v16 = vpop.f32.mrf.mxu3 }
 0x32c   : > { %5119 = vmatpush.msra.mxu1 %v5118_v4  ;;  %5294 = vmatpush.msra.mxu3 %v11261_v50  ;;  %v11318_v4 = vsub.f32 %v4630_v46, %v11310_v3  ;;  %v13882_v55 = vand.u32 4294901760, %v11337_v38 }
 0x32d   : > { %5049 = vmatmul.f32.gmra.mxu3 %v14262_v54  ;;  %5062 = vmatpush.msra.mxu0 %v11252_v32  ;;  %v5141_v54 = vsub.f32 %v11275_v58, %v13881_v62  ;;  %v4624_v62 = vld [vmem:[#allocation8 + $0x18] sm:$0xff] }
 0x32e   : > { %5125 = vmatpush.msra.mxu1 %v5124_v22  ;;  %5231 = vmatpush.msra.mxu2 %v11259_v63  ;;  %v11315_v30 = vpop.f32.mrf.mxu2  ;;  %v11322_v22 = vand.u32 4294901760, %v4628_v14  ;;  %v13878_v60 = vand.u32 4294901760, %v11318_v4  ;;  %v11378_v33 = vand.u32 4294901760, %v4624_v62 }
 0x32f   : > { %5064 = vmatpush.msra.mxu0 %v11261_v50  ;;  %5296 = vmatpush.msra.mxu3 %v11263_v28  ;;  %v5142_v42 = vand.u32 4294901760, %v5141_v54 }
 0x330   : > { %4875 = vmatmul.f32.gmra.mxu0 %v14270_v24  ;;  %5234 = vmatpush.msra.mxu2 %v11272_v49  ;;  %v11320_v24 = vand.u32 4294901760, %v4629_v27  ;;  %v5153_v26 = vsub.f32 %v11318_v4, %v13878_v60 }
 0x331   : > { %4931 = vmatmul.f32.gmra.mxu1 %v14271_v45  ;;  %5066 = vmatpush.msra.mxu0 %v11263_v28  ;;  %v11334_v45 = vsub.f32 %v4628_v14, %v11322_v22  ;;  %v4626_v14 = vld [vmem:[#allocation8 + $0x28] sm:$0xff] }
 0x332   : > { %5237 = vmatpush.msra.mxu2 %v11275_v58  ;;  %5131 = vmatpush.msra.mxu1 %v5130_v6  ;;  %v11330_v8 = vsub.f32 %v4629_v27, %v11320_v24  ;;  %v5171_v27 = vsub.f32 %v11337_v38, %v13882_v55  ;;  %v11368_v60 = vand.u32 4294901760, %v4626_v14  ;;  %v4623_v55 = vld [vmem:[#allocation8 + $0x10] sm:$0xff] }
 0x333   : > { %5008 = vmatmul.f32.gmra.mxu2 %v14266_v31  ;;  %5298 = vmatpush.msra.mxu3 %v11266_v52  ;;  %v11341_v6 = vpop.f32.mrf.mxu3 }
 0x334   : > { %5240 = vmatpush.msra.mxu2 %v11280_v35  ;;  %5068 = vmatpush.msra.mxu0 %v11266_v52  ;;  %14273 = vst [vmem:[#allocation48_spill] sm:$0xff] %v11341_v6  ;;  %v13877_v54 = vand.u32 4294901760, %v11330_v8  ;;  %v11374_v18 = vsub.f32 %v4626_v14, %v11368_v60  ;;  %v5472_v6 = vld [vmem:[#allocation8 + $0xd8] sm:$0xff] }
 0x335   : > { %5053 = vmatmul.f32.gmra.mxu3 %v14266_v31  ;;  %v11294_v15 = vpop.f32.mrf.mxu0  ;;  %v11308_v31 = vpop.f32.mrf.mxu1  ;;  %5137 = vmatpush.msra.mxu1 %v5136_v29  ;;  %v5154_v29 = vand.u32 4294901760, %v5153_v26 }
 0x336   : > { %5300 = vmatpush.msra.mxu3 %v11310_v3  ;;  %5070 = vmatpush.msra.mxu0 %v11310_v3  ;;  %v11371_v0 = vpop.f32.mrf.mxu2 }
 0x337   : > { %5143 = vmatpush.msra.mxu1 %v5142_v42  ;;  %5243 = vmatpush.msra.mxu2 %v11318_v4  ;;  %v5159_v42 = vsub.f32 %v11330_v8, %v13877_v54 }
 0x338   : > { %4880 = vmatmul.f32.gmra.mxu0 %v14272_v59  ;;  %5302 = vmatpush.msra.mxu3 %v11320_v24  ;;  %v13879_v59 = vand.u32 4294901760, %v11334_v45 }
 0x339   : > { %5072 = vmatpush.msra.mxu0 %v11320_v24  ;;  %5149 = vmatpush.msra.mxu1 %v5148_v23  ;;  %v5160_v26 = vand.u32 4294901760, %v5159_v42  ;;  %v13889_v42 = vand.u32 4294901760, %v11374_v18 }
 0x33a   : > { %5246 = vmatpush.msra.mxu2 %v11330_v8  ;;  %5304 = vmatpush.msra.mxu3 %v11322_v22  ;;  %v5165_v23 = vsub.f32 %v11334_v45, %v13879_v59  ;;  %v5172_v59 = vand.u32 4294901760, %v5171_v27  ;;  %v11390_v27 = vsub.f32 %v4624_v62, %v11378_v33 }
 0x33b   : > { %5074 = vmatpush.msra.mxu0 %v11322_v22  ;;  %5155 = vmatpush.msra.mxu1 %v5154_v29  ;;  %v11381_v29 = vand.u32 4294901760, %v4623_v55 }
 0x33c   : > { %5249 = vmatpush.msra.mxu2 %v11334_v45  ;;  %5306 = vmatpush.msra.mxu3 %v11325_v61  ;;  %v5166_v54 = vand.u32 4294901760, %v5165_v23  ;;  %v11386_v23 = vsub.f32 %v4625_v41, %v11376_v25  ;;  %v5177_v41 = vsub.f32 %v11374_v18, %v13889_v42  ;;  %v13899_v53 = vand.u32 4294901760, %v11390_v27 }
 0x33d   : > { %5076 = vmatpush.msra.mxu0 %v11325_v61  ;;  %v11366_v11 = vpop.f32.mrf.mxu1  ;;  %5161 = vmatpush.msra.mxu1 %v5160_v26  ;;  %v11393_v14 = vsub.f32 %v4623_v55, %v11381_v29  ;;  %v11397_v26 = vpop.f32.mrf.mxu3  ;;  %v4622_v55 = vld [vmem:[#allocation8 + $0x8] sm:$0xff] }
 0x33e   : > { %14275 = vst [vmem:[#allocation64_spill] sm:$0xff] %v11366_v11  ;;  %5252 = vmatpush.msra.mxu2 %v11337_v38  ;;  %5308 = vmatpush.msra.mxu3 %v11368_v60  ;;  %v5189_v44 = vsub.f32 %v11390_v27, %v13899_v53  ;;  %v11420_v34 = vand.u32 4294901760, %v4622_v55  ;;  %v11427_v53 = vand.u32 4294901760, %v4621_v39  ;;  %v11436_v47 = vpop.f32.mrf.mxu2 }
 0x33f   : > { %v11352_v46 = vpop.f32.mrf.mxu0  ;;  %5078 = vmatpush.msra.mxu0 %v11368_v60  ;;  %5167 = vmatpush.msra.mxu1 %v5166_v54  ;;  %v13896_v54 = vand.u32 4294901760, %v11386_v23  ;;  %v13900_v62 = vand.u32 4294901760, %v11393_v14  ;;  %14278 = vst [vmem:[#allocation18_spill] sm:$0xff] %v11436_v47  ;;  %v14283_v47 = vand.u32 4294901760, %v11228_v1 }
 0x340   : > { %14274 = vst [vmem:[#allocation51_spill] sm:$0xff] %v11352_v46  ;;  %5255 = vmatpush.msra.mxu2 %v11374_v18  ;;  %5310 = vmatpush.msra.mxu3 %v11376_v25  ;;  %v5190_v12 = vand.u32 4294901760, %v5189_v44 }
 0x341   : > { %5080 = vmatpush.msra.mxu0 %v11376_v25  ;;  %5173 = vmatpush.msra.mxu1 %v5172_v59  ;;  %v5178_v59 = vand.u32 4294901760, %v5177_v41  ;;  %v5183_v42 = vsub.f32 %v11386_v23, %v13896_v54  ;;  %v5195_v36 = vsub.f32 %v11393_v14, %v13900_v62  ;;  %v5476_v41 = vld [vmem:[#allocation8 + $0xf8] sm:$0xff]  ;;  %v11430_v62 = vsub.f32 %v4622_v55, %v11420_v34 }
 0x342   : > { %5258 = vmatpush.msra.mxu2 %v11386_v23  ;;  %5312 = vmatpush.msra.mxu3 %v11378_v33  ;;  %v11433_v21 = vand.u32 4294901760, %v5476_v41 }
 0x343   : > { %5082 = vmatpush.msra.mxu0 %v11378_v33  ;;  %5179 = vmatpush.msra.mxu1 %v5178_v59  ;;  %v5184_v54 = vand.u32 4294901760, %v5183_v42  ;;  %v5196_v11 = vand.u32 4294901760, %v5195_v36  ;;  %v11439_v42 = vsub.f32 %v4621_v39, %v11427_v53  ;;  %v13904_v44 = vand.u32 4294901760, %v11430_v62 }
 0x344   : > { %5261 = vmatpush.msra.mxu2 %v11390_v27  ;;  %5314 = vmatpush.msra.mxu3 %v11381_v29  ;;  %14277 = vst [vmem:[#allocation36_spill] sm:$0xff] %v11433_v21  ;;  %v11444_v55 = vsub.f32 %v5476_v41, %v11433_v21  ;;  %v14280_v39 = vand.u32 4294901760, %v11225_v13  ;;  %v5475_v41 = vld [vmem:[#allocation8 + $0xf0] sm:$0xff] }
 0x345   : > { %5084 = vmatpush.msra.mxu0 %v11381_v29  ;;  %v11424_v20 = vpop.f32.mrf.mxu1  ;;  %5185 = vmatpush.msra.mxu1 %v5184_v54  ;;  %v13905_v59 = vand.u32 4294901760, %v11439_v42  ;;  %v5201_v36 = vsub.f32 %v11430_v62, %v13904_v44  ;;  %v11455_v54 = vpop.f32.mrf.mxu3 }
 0x346   : > { %14276 = vst [vmem:[#allocation63_spill] sm:$0xff] %v11424_v20  ;;  %5264 = vmatpush.msra.mxu2 %v11393_v14  ;;  %5316 = vmatpush.msra.mxu3 %v11420_v34  ;;  %v11461_v20 = vand.u32 4294901760, %v5475_v41  ;;  %v13908_v44 = vand.u32 4294901760, %v11444_v55 }
 0x347   : > { %5086 = vmatpush.msra.mxu0 %v11420_v34  ;;  %14279 = vst [vmem:[#allocation26_spill] sm:$0xff] %v11444_v55  ;;  %5191 = vmatpush.msra.mxu1 %v5190_v12  ;;  %v5207_v12 = vsub.f32 %v11439_v42, %v13905_v59  ;;  %v5202_v46 = vand.u32 4294901760, %v5201_v36 }
 0x348   : > { %5267 = vmatpush.msra.mxu2 %v11430_v62  ;;  %5318 = vmatpush.msra.mxu3 %v11427_v53  ;;  %14281 = vst [vmem:[#allocation34_spill] sm:$0xff] %v11455_v54  ;;  %v5474_v54 = vld [vmem:[#allocation8 + $0xe8] sm:$0xff]  ;;  %v11475_v36 = vsub.f32 %v5475_v41, %v11461_v20  ;;  %v11488_v41 = vand.u32 4294901760, %v5472_v6 }
 0x349   : > { %v11408_v51 = vpop.f32.mrf.mxu0  ;;  %5088 = vmatpush.msra.mxu0 %v11427_v53  ;;  %5197 = vmatpush.msra.mxu1 %v5196_v11  ;;  %14282 = vst [vmem:[#allocation50_spill] sm:$0xff] %v11461_v20  ;;  %v5548_v11 = vsub.f32 %v11444_v55, %v13908_v44  ;;  %v11472_v59 = vand.u32 4294901760, %v5474_v54 }
 0x34a   : > { %5270 = vmatpush.msra.mxu2 %v11439_v42  ;;  %v13913_v44 = vand.u32 4294901760, %v11475_v36  ;;  %14287 = vst [vmem:[#allocation27_spill] sm:$0xff] %v11488_v41 }
 0x34b   : > { %5341 = vmatpush.msrb.mxu0 %v14280_v39  ;;  %v5208_v39 = vand.u32 4294901760, %v5207_v12  ;;  %5203 = vmatpush.msra.mxu1 %v5202_v46  ;;  %v14285_v12 = vand.u32 4294901760, %v11259_v63  ;;  %v5549_v46 = vand.u32 4294901760, %v5548_v11  ;;  %v11486_v55 = vsub.f32 %v5474_v54, %v11472_v59 }
 0x34c   : > { %5489 = vmatpush.msrb.mxu2 %v11433_v21  ;;  %v5473_v21 = vld [vmem:[#allocation8 + $0xe0] sm:$0xff]  ;;  %v14288_v63 = vand.u32 4294901760, %v11272_v49 }
 0x34d   : > { %5345 = vmatpush.msrb.mxu0 %v14283_v47  ;;  %v11477_v1 = vpop.f32.mrf.mxu1  ;;  %v11479_v47 = vand.u32 4294901760, %v5473_v21  ;;  %5209 = vmatpush.msra.mxu1 %v5208_v39  ;;  %14286 = vst [vmem:[#allocation41_spill] sm:$0xff] %v11486_v55  ;;  %v5554_v39 = vsub.f32 %v11475_v36, %v13913_v44  ;;  %v13914_v54 = vand.u32 4294901760, %v11486_v55  ;;  %v11516_v44 = vpop.f32.mrf.mxu3 }
 0x34e   : > { %5491 = vmatpush.msrb.mxu2 %v11461_v20  ;;  %14284 = vst [vmem:[#allocation49_spill] sm:$0xff] %v11477_v1  ;;  %v11490_v20 = vpop.f32.mrf.mxu2  ;;  %5550 = vmatpush.msrb.mxu3 %v5549_v46 }
 0x34f   : > { %5349 = vmatpush.msrb.mxu0 %v14285_v12  ;;  %5416 = vmatpush.msrb.mxu1 %v11216_v10  ;;  %v11494_v1 = vsub.f32 %v5473_v21, %v11479_v47  ;;  %v5471_v10 = vld [vmem:[#allocation8 + $0xd0] sm:$0xff]  ;;  %v14289_v21 = vand.u32 4294901760, %v11275_v58  ;;  %v5555_v12 = vand.u32 4294901760, %v5554_v39  ;;  %v5560_v49 = vsub.f32 %v11486_v55, %v13914_v54  ;;  %v5470_v58 = vld [vmem:[#allocation8 + $0xc8] sm:$0xff] }
 0x350   : > { %5493 = vmatpush.msrb.mxu2 %v11472_v59  ;;  %v11511_v46 = vand.u32 4294901760, %v5471_v10  ;;  %v14290_v39 = vand.u32 4294901760, %v11280_v35  ;;  %v14292_v35 = vand.u32 4294901760, %v11318_v4  ;;  %v5468_v4 = vld [vmem:[#allocation8 + $0xb8] sm:$0xff] }
 0x351   : > { %5353 = vmatpush.msrb.mxu0 %v14288_v63  ;;  %5418 = vmatpush.msrb.mxu1 %v11218_v57  ;;  %v13919_v11 = vand.u32 4294901760, %v11494_v1  ;;  %v11514_v63 = vsub.f32 %v5472_v6, %v11488_v41  ;;  %v11526_v6 = vand.u32 4294901760, %v5470_v58 }
 0x352   : > { %5495 = vmatpush.msrb.mxu2 %v11479_v47  ;;  %5556 = vmatpush.msrb.mxu3 %v5555_v12  ;;  %v11532_v55 = vsub.f32 %v5471_v10, %v11511_v46 }
 0x353   : > { %v11466_v13 = vpop.f32.mrf.mxu0  ;;  %5357 = vmatpush.msrb.mxu0 %v14289_v21  ;;  %5420 = vmatpush.msrb.mxu1 %v11252_v32  ;;  %v5566_v57 = vsub.f32 %v11494_v1, %v13919_v11  ;;  %v5561_v21 = vand.u32 4294901760, %v5560_v49  ;;  %v13920_v54 = vand.u32 4294901760, %v11514_v63  ;;  %14291 = vst [vmem:[#allocation52_spill] sm:$0xff] %v11526_v6  ;;  %v5469_v11 = vld [vmem:[#allocation8 + $0xc0] sm:$0xff] }
 0x354   : > { %5497 = vmatpush.msrb.mxu2 %v11488_v41  ;;  %v11540_v49 = vand.u32 4294901760, %v5469_v11  ;;  %v13923_v10 = vand.u32 4294901760, %v11532_v55 }
 0x355   : > { %5361 = vmatpush.msrb.mxu0 %v14290_v39  ;;  %5422 = vmatpush.msrb.mxu1 %v11261_v50  ;;  %v5567_v32 = vand.u32 4294901760, %v5566_v57  ;;  %v5572_v12 = vsub.f32 %v11514_v63, %v13920_v54  ;;  %v11543_v39 = vsub.f32 %v5470_v58, %v11526_v6  ;;  %v11545_v50 = vpop.f32.mrf.mxu1  ;;  %v14295_v57 = vand.u32 4294901760, %v11330_v8  ;;  %v5467_v8 = vld [vmem:[#allocation8 + $0xb0] sm:$0xff] }
 0x356   : > { %5499 = vmatpush.msrb.mxu2 %v11511_v46  ;;  %5562 = vmatpush.msrb.mxu3 %v5561_v21  ;;  %14293 = vst [vmem:[#allocation39_spill] sm:$0xff] %v11540_v49  ;;  %v11553_v54 = vand.u32 4294901760, %v5468_v4  ;;  %v11555_v58 = vpop.f32.mrf.mxu2 }
 0x357   : > { %5365 = vmatpush.msrb.mxu0 %v14292_v35  ;;  %14294 = vst [vmem:[#allocation21_spill] sm:$0xff] %v11543_v39  ;;  %5424 = vmatpush.msrb.mxu1 %v11263_v28  ;;  %v5573_v21 = vand.u32 4294901760, %v5572_v12  ;;  %v13924_v35 = vand.u32 4294901760, %v11543_v39  ;;  %v5578_v28 = vsub.f32 %v11532_v55, %v13923_v10 }
 0x358   : > { %5501 = vmatpush.msrb.mxu2 %v11526_v6  ;;  %5568 = vmatpush.msrb.mxu3 %v5567_v32  ;;  %v11562_v6 = vsub.f32 %v5469_v11, %v11540_v49  ;;  %v14296_v32 = vand.u32 4294901760, %v11334_v45  ;;  %v3517_v11 = vadd.f32 %v11164_v9, %v11157_v40  ;;  %v11588_v40 = vpop.f32.mrf.mxu3 }
 0x359   : > { %5369 = vmatpush.msrb.mxu0 %v14295_v57  ;;  %5426 = vmatpush.msrb.mxu1 %v11266_v52  ;;  %v5584_v12 = vsub.f32 %v11543_v39, %v13924_v35  ;;  %v11570_v57 = vand.u32 4294901760, %v5467_v8  ;;  %v11573_v52 = vsub.f32 %v5468_v4, %v11553_v54  ;;  %v5579_v10 = vand.u32 4294901760, %v5578_v28 }
 0x35a   : > { %5503 = vmatpush.msrb.mxu2 %v11540_v49  ;;  %5574 = vmatpush.msrb.mxu3 %v5573_v21  ;;  %v13929_v45 = vand.u32 4294901760, %v11562_v6  ;;  %v5466_v21 = vld [vmem:[#allocation8 + $0xa8] sm:$0xff] }
 0x35b   : > { %5373 = vmatpush.msrb.mxu0 %v14296_v32  ;;  %14297 = vst [vmem:[#allocation53_spill] sm:$0xff] %v11570_v57  ;;  %5428 = vmatpush.msrb.mxu1 %v11310_v3  ;;  %v14299_v32 = vand.u32 4294901760, %v11337_v38  ;;  %v5585_v35 = vand.u32 4294901760, %v5584_v12  ;;  %v13930_v39 = vand.u32 4294901760, %v11573_v52  ;;  %v11583_v49 = vand.u32 4294901760, %v5466_v21  ;;  %v5465_v3 = vld [vmem:[#allocation8 + $0xa0] sm:$0xff] }
 0x35c   : > { %5505 = vmatpush.msrb.mxu2 %v11553_v54  ;;  %14298 = vst [vmem:[#allocation66_spill] sm:$0xff] %v11573_v52  ;;  %v11586_v4 = vsub.f32 %v5467_v8, %v11570_v57  ;;  %5580 = vmatpush.msrb.mxu3 %v5579_v10  ;;  %v5590_v9 = vsub.f32 %v11562_v6, %v13929_v45  ;;  %v11599_v8 = vand.u32 4294901760, %v5465_v3  ;;  %v14300_v12 = vand.u32 4294901760, %v11374_v18  ;;  %v5464_v45 = vld [vmem:[#allocation8 + $0x98] sm:$0xff] }
 0x35d   : > { %v11528_v41 = vpop.f32.mrf.mxu0  ;;  %5377 = vmatpush.msrb.mxu0 %v14299_v32  ;;  %5430 = vmatpush.msrb.mxu1 %v11320_v24  ;;  %v5596_v38 = vsub.f32 %v11573_v52, %v13930_v39  ;;  %v11607_v32 = vsub.f32 %v5466_v21, %v11583_v49  ;;  %v3579_v39 = vadd.f32 %v11222_v56, %v3517_v11  ;;  %v11614_v18 = vand.u32 4294901760, %v5464_v45  ;;  %v5463_v11 = vld [vmem:[#allocation8 + $0x90] sm:$0xff] }
 0x35e   : > { %5507 = vmatpush.msrb.mxu2 %v11570_v57  ;;  %v5601_v28 = vand.u32 4294901760, %v11586_v4  ;;  %5586 = vmatpush.msrb.mxu3 %v5585_v35  ;;  %v5591_v10 = vand.u32 4294901760, %v5590_v9  ;;  %v11623_v56 = vsub.f32 %v5465_v3, %v11599_v8  ;;  %v11626_v9 = vand.u32 4294901760, %v5463_v11 }
 0x35f   : > { %5381 = vmatpush.msrb.mxu0 %v14300_v12  ;;  %5432 = vmatpush.msrb.mxu1 %v11322_v22  ;;  %v5597_v52 = vand.u32 4294901760, %v5596_v38  ;;  %v14301_v12 = vand.u32 4294901760, %v11386_v23  ;;  %v11618_v22 = vpop.f32.mrf.mxu1  ;;  %v13935_v35 = vand.u32 4294901760, %v11607_v32  ;;  %v14302_v38 = vand.u32 4294901760, %v11390_v27  ;;  %v11630_v23 = vpop.f32.mrf.mxu2 }
 0x360   : > { %5509 = vmatpush.msrb.mxu2 %v11583_v49  ;;  %v5602_v57 = vsub.f32 %v11586_v4, %v5601_v28  ;;  %5592 = vmatpush.msrb.mxu3 %v5591_v10  ;;  %v13938_v3 = vand.u32 4294901760, %v11623_v56  ;;  %v5462_v10 = vld [vmem:[#allocation8 + $0x88] sm:$0xff] }
 0x361   : > { %5385 = vmatpush.msrb.mxu0 %v14301_v12  ;;  %5434 = vmatpush.msrb.mxu1 %v11325_v61  ;;  %v5608_v61 = vsub.f32 %v11607_v32, %v13935_v35  ;;  %v3628_v12 = vadd.f32 %v11238_v48, %v3579_v39  ;;  %v11642_v27 = vand.u32 4294901760, %v5462_v10  ;;  %v5461_v35 = vld [vmem:[#allocation8 + $0x80] sm:$0xff] }
 0x362   : > { %5511 = vmatpush.msrb.mxu2 %v11599_v8  ;;  %v5603_v21 = vand.u32 4294901760, %v5602_v57  ;;  %5598 = vmatpush.msrb.mxu3 %v5597_v52  ;;  %v11638_v57 = vsub.f32 %v5464_v45, %v11614_v18  ;;  %v3521_v52 = vadd.f32 %v11187_v37, %v11180_v19  ;;  %v5614_v48 = vsub.f32 %v11623_v56, %v13938_v3 }
 0x363   : > { %5389 = vmatpush.msrb.mxu0 %v14302_v38  ;;  %5436 = vmatpush.msrb.mxu1 %v11368_v60  ;;  %v11645_v38 = vsub.f32 %v5463_v11, %v11626_v9  ;;  %v14303_v60 = vand.u32 4294901760, %v11393_v14  ;;  %v5609_v45 = vand.u32 4294901760, %v5608_v61  ;;  %v3709_v11 = vadd.f32 %v11241_v7, %v3628_v12 }
 0x364   : > { %5513 = vmatpush.msrb.mxu2 %v11614_v18  ;;  %5604 = vmatpush.msrb.mxu3 %v5603_v21  ;;  %v13937_v39 = vand.u32 4294901760, %v11638_v57  ;;  %v11662_v19 = vsub.f32 %v5462_v10, %v11642_v27  ;;  %v14304_v37 = vand.u32 4294901760, %v11430_v62  ;;  %v5615_v21 = vand.u32 4294901760, %v5614_v48 }
 0x365   : > { %5393 = vmatpush.msrb.mxu0 %v14303_v60  ;;  %5438 = vmatpush.msrb.mxu1 %v11376_v25  ;;  %v13936_v14 = vand.u32 4294901760, %v11645_v38  ;;  %v11659_v60 = vand.u32 4294901760, %v5461_v35  ;;  %v11666_v25 = vpop.f32.mrf.mxu3  ;;  %v14305_v12 = vand.u32 4294901760, %v11439_v42 }
 0x366   : > { %5515 = vmatpush.msrb.mxu2 %v11626_v9  ;;  %5610 = vmatpush.msrb.mxu3 %v5609_v45  ;;  %v5620_v7 = vsub.f32 %v11638_v57, %v13937_v39  ;;  %v5631_v10 = vand.u32 4294901760, %v11662_v19 }
 0x367   : > { %v11603_v24 = vpop.f32.mrf.mxu0  ;;  %5397 = vmatpush.msrb.mxu0 %v14304_v37  ;;  %5440 = vmatpush.msrb.mxu1 %v11378_v33  ;;  %v5626_v61 = vsub.f32 %v11645_v38, %v13936_v14  ;;  %v11678_v62 = vsub.f32 %v5461_v35, %v11659_v60  ;;  %v3584_v33 = vadd.f32 %v11256_v43, %v3521_v52 }
 0x368   : > { %5517 = vmatpush.msrb.mxu2 %v11642_v27  ;;  %5616 = vmatpush.msrb.mxu3 %v5615_v21  ;;  %v5621_v48 = vand.u32 4294901760, %v5620_v7  ;;  %v3754_v37 = vadd.f32 %v11250_v2, %v3709_v11  ;;  %v5632_v39 = vsub.f32 %v11662_v19, %v5631_v10  ;;  %v4351_v3 = vpop.f32.mrf.mxu1  ;;  %v3525_v21 = vadd.f32 %v11213_v5, %v11208_v17  ;;  %v14306_v17 = vld [vmem:[#allocation48_spill] sm:$0xff] }
 0x369   : > { %5401 = vmatpush.msrb.mxu0 %v14305_v12  ;;  %5442 = vmatpush.msrb.mxu1 %v11381_v29  ;;  %v5627_v14 = vand.u32 4294901760, %v5626_v61  ;;  %v5637_v35 = vand.u32 4294901760, %v11678_v62  ;;  %v11693_v29 = vpop.f32.mrf.mxu2  ;;  %v3634_v2 = vadd.f32 %v11283_v16, %v3584_v33 }
 0x36a   : > { %5519 = vmatpush.msrb.mxu2 %v11659_v60  ;;  %5622 = vmatpush.msrb.mxu3 %v5621_v48  ;;  %v5633_v42 = vand.u32 4294901760, %v5632_v39  ;;  %v3803_v52 = vadd.f32 %v11371_v0, %v3754_v37  ;;  %v3589_v61 = vadd.f32 %v11315_v30, %v3525_v21  ;;  %v4348_v0 = vadd.f32 %v11618_v22, %v11603_v24  ;;  %v14308_v37 = vld [vmem:[#allocation63_spill] sm:$0xff]  ;;  %v14310_v30 = vld [vmem:[#allocation38_spill] sm:$0xff]  ;;  %v14312_v24 = vld [vmem:[#allocation64_spill] sm:$0xff] }
 0x36b   : > { %5444 = vmatpush.msrb.mxu1 %v11420_v34  ;;  %v5638_v43 = vsub.f32 %v11678_v62, %v5637_v35  ;;  %v3713_v34 = vadd.f32 %v11294_v15, %v3634_v2  ;;  %v14307_v15 = vld [vmem:[#allocation18_spill] sm:$0xff] }
 0x36c   : > { %5628 = vmatpush.msrb.mxu3 %v5627_v14  ;;  %v3920_v7 = vadd.f32 %v11397_v26, %v3803_v52  ;;  %v3640_v5 = vadd.f32 %v14306_v17, %v3589_v61  ;;  %v14309_v26 = vld [vmem:[#allocation51_spill] sm:$0xff]  ;;  %v4600_v52 = vadd.s32 4294967294, %v14310_v30 }
 0x36d   : > { %5446 = vmatpush.msrb.mxu1 %v11427_v53  ;;  %v5639_v11 = vand.u32 4294901760, %v5638_v43  ;;  %v11701_v39 = vpop.f32.mrf.mxu3  ;;  %v3758_v14 = vadd.f32 %v11308_v31, %v3713_v34  ;;  %v14311_v31 = vld [vmem:[#allocation34_spill] sm:$0xff] }
 0x36e   : > { %5634 = vmatpush.msrb.mxu3 %v5633_v42  ;;  %v3982_v16 = vadd.f32 %v11408_v51, %v3920_v7  ;;  %v3717_v2 = vadd.f32 %v14309_v26, %v3640_v5  ;;  %vm4603_vm6 = vcmp.ge.s32.totalorder %v4600_v52, 0  ;;  %v14314_v26 = vld [vmem:[#allocation49_spill] sm:$0xff] }
 0x36f   : > { %v3811_v48 = vadd.f32 %v14307_v15, %v3758_v14 }
 0x370   : > { %5640 = vmatpush.msrb.mxu3 %v5639_v11  ;;  %v4031_v42 = vadd.f32 %v14308_v37, %v3982_v16  ;;  %v3762_v22 = vadd.f32 %v14312_v24, %v3717_v2  ;;  %v14313_v37 = vmov 0.0   ;;  %v14315_v24 = vld [vmem:[#allocation36_spill] sm:$0xff] }
 0x371   : > { %v4238_v45 = vpop.f32.mrf.mxu0  ;;  %v4409_v33 = vpop.f32.mrf.mxu2  ;;  %v3924_v21 = vadd.f32 %v14311_v31, %v3811_v48  ;;  %v8630_v48 = vsel %vm4603_vm6, 1.0, %v14313_v37 }
 0x372   : > { %v4355_v12 = vpop.f32.mrf.mxu1  ;;  %v4410_v43 = vadd.f32 %v4409_v33, %v4348_v0  ;;  %v4112_v51 = vadd.f32 %v11555_v58, %v4031_v42  ;;  %v4352_v17 = vadd.f32 %v4351_v3, %v4238_v45  ;;  %v3819_v33 = vadd.f32 %v11490_v20, %v3762_v22 }
 0x373   : > { %v3987_v61 = vadd.f32 %v11466_v13, %v3924_v21 }
 0x374   : > { %v4157_v0 = vadd.f32 %v11588_v40, %v4112_v51 }
 0x375   : > { %v4458_v11 = vpop.f32.mrf.mxu3  ;;  %v4037_v58 = vadd.f32 %v14314_v26, %v3987_v61 }
 0x376   : > { %v4459_v34 = vadd.f32 %v4458_v11, %v4410_v43  ;;  %v3928_v11 = vadd.f32 %v11516_v44, %v3819_v33 }
 0x377   : > { %v4116_v3 = vadd.f32 %v11630_v23, %v4037_v58 }
 0x378   : > { %v3992_v40 = vadd.f32 %v11528_v41, %v3928_v11  ;;  %v14317_v41 = vld [vmem:[#allocation26_spill] sm:$0xff] }
 0x379   : > { %v4414_v15 = vpop.f32.mrf.mxu2  ;;  %v4161_v44 = vadd.f32 %v11666_v25, %v4116_v3  ;;  %v14319_v25 = vand.u32 4294901760, %v11475_v36 }
 0x37a   : > { %v4415_v42 = vadd.f32 %v4414_v15, %v4352_v17  ;;  %v14316_v17 = vld [vmem:[#allocation50_spill] sm:$0xff] }
 0x37c   : > { %v4246_v53 = vpop.f32.mrf.mxu0 }
 0x37d   : > { %v4584_v16 = vpop.f32.mrf.mxu1  ;;  %v4464_v13 = vpop.f32.mrf.mxu3  ;;  %v4356_v20 = vadd.f32 %v4355_v12, %v4246_v53  ;;  %v14318_v53 = vand.u32 4294901760, %v14317_v41 }
 0x37e   : > { %v4465_v45 = vadd.f32 %v4464_v13, %v4415_v42 }
 0x381   : > { %v4419_v61 = vpop.f32.mrf.mxu2 }
 0x382   : > { %v4420_v12 = vadd.f32 %v4419_v61, %v4356_v20  ;;  %v14323_v20 = vld [vmem:[#allocation27_spill] sm:$0xff] }
 0x385   : > { %v4470_v42 = vpop.f32.mrf.mxu3 }
 0x386   : > { %v4471_v13 = vadd.f32 %v4470_v42, %v4420_v12  ;;  %v14328_v12 = vld [vmem:[#allocation39_spill] sm:$0xff] }
 0x387   : > { %v4539_v7 = vpop.f32.mrf.mxu0 }
 0x388   : > { %v4540_v14 = vadd.f32 %v4539_v7, %v4459_v34  ;;  %v4588_v34 = vpop.f32.mrf.mxu1  ;;  %v4043_v7 = vadd.f32 %v11545_v50, %v3992_v40 }
 0x38a   : > { %v4585_v5 = vadd.f32 %v4584_v16, %v4540_v14  ;;  %v4120_v58 = vadd.f32 %v11693_v29, %v4043_v7  ;;  %v14325_v7 = vand.u32 4294901760, %v11514_v63 }
 0x38c   : > { %v4595_v43 = vadd.f32 %v4585_v5, %v4157_v0  ;;  %v14320_v5 = vld [vmem:[#allocation40_spill] sm:$0xff] }
 0x38d   : > { %v4602_v33 = vadd.s32 4294967294, %v14320_v5 }
 0x38e   : > { %v4618_v2 = vmul.f32 %v8630_v48, %v4595_v43  ;;  %v14321_v43 = vld [vmem:[#allocation41_spill] sm:$0xff] }
 0x38f   : > { %v14322_v11 = vand.u32 4294901760, %v14321_v43  ;;  %vm4608_vm7 = vcmp.lt.s32.totalorder %v4602_v33, 16 }
 0x390   : > { %v11724_v52 = vand.u32 4294901760, %v4618_v2  ;;  %v6334_v0 = vrot.slane %v4618_v2, 2  ;;  %v5480_v3 = vrot.slane %v4618_v2, 1 }
 0x391   : > { %v4543_v31 = vpop.f32.mrf.mxu0 }
 0x392   : > { %v4544_v21 = vadd.f32 %v4543_v31, %v4465_v45  ;;  %5211 = vmatmul.f32.vlgmr.msra.gmra.mxu1 %v11724_v52  ;;  %v5090_v51 = vsub.f32 %v4618_v2, %v11724_v52  ;;  %v14324_v2 = vand.u32 4294901760, %v11494_v1 }
 0x393   : > { %5719 = vmatpush.msra.mxu1 %v14315_v24 }
 0x394   : > { %v4589_v22 = vadd.f32 %v4588_v34, %v4544_v21  ;;  %5273 = vmatmul.f32.vlgmr.msra.gmra.mxu2 %v5090_v51  ;;  %v5091_v23 = vand.u32 4294901760, %v5090_v51  ;;  %v4592_v34 = vpop.f32.mrf.mxu1 }
 0x395   : > { %5721 = vmatpush.msra.mxu1 %v14316_v17  ;;  %5772 = vmatpush.msra.mxu2 %v14318_v53 }
 0x396   : > { %v11735_v14 = vadd.f32 %v4589_v22, %v4161_v44  ;;  %5322 = vmatmul.f32.vlgmr.msra.gmra.mxu3 %v5091_v23  ;;  %v5092_v16 = vsub.f32 %v5090_v51, %v5091_v23  ;;  %v8631_v23 = vsel %vm4608_vm7, 1.0, %v14313_v37 }
 0x397   : > { %5723 = vmatpush.msra.mxu1 %v11472_v59  ;;  %5776 = vmatpush.msra.mxu2 %v14319_v25 }
 0x398   : > { %v5481_v50 = vrot.slane %v11735_v14, 1  ;;  %v6335_v15 = vrot.slane %v11735_v14, 2  ;;  %5847 = vmatpush.msra.mxu3 %v14315_v24  ;;  %v5093_v48 = vand.u32 4294901760, %v5092_v16  ;;  %v11745_v26 = vand.u32 4294901760, %v11735_v14 }
 0x399   : > { %5725 = vmatpush.msra.mxu1 %v11479_v47  ;;  %5780 = vmatpush.msra.mxu2 %v14322_v11  ;;  %v4165_v24 = vadd.f32 %v11701_v39, %v4120_v58  ;;  %v5910_v39 = vld [vmem:[#allocation8 + $0x278] sm:$0xff]  ;;  %v5908_v11 = vld [vmem:[#allocation8 + $0x268] sm:$0xff] }
 0x39a   : > { %5849 = vmatpush.msra.mxu3 %v14316_v17  ;;  %5094 = vmatmul.f32.vlgmr.msra.gmra.mxu0 %v5093_v48  ;;  %v5098_v45 = vsub.f32 %v11735_v14, %v11745_v26  ;;  %v11757_v40 = vsel %vm892_vm3, %v6334_v0, %v6335_v15  ;;  %v5482_v51 = vsel %vm428_vm2, %v5480_v3, %v5481_v50  ;;  %v11792_v33 = vand.u32 4294901760, %v5910_v39  ;;  %v5909_v48 = vld [vmem:[#allocation8 + $0x270] sm:$0xff] }
 0x39b   : > { %v4547_v29 = vpop.f32.mrf.mxu0  ;;  %5215 = vmatmul.f32.gmra.mxu1 %v11745_v26  ;;  %5656 = vmatpush.msra.mxu0 %v14317_v41  ;;  %v11775_v61 = vand.u32 4294901760, %v5482_v51 }
 0x39c   : > { %v4548_v31 = vadd.f32 %v4547_v29, %v4471_v13  ;;  %5727 = vmatpush.msra.mxu1 %v14323_v20  ;;  %5784 = vmatpush.msra.mxu2 %v14324_v2  ;;  %v5099_v21 = vand.u32 4294901760, %v5098_v45  ;;  %v11809_v3 = vsub.f32 %v5910_v39, %v11792_v33  ;;  %v14333_v29 = vld [vmem:[#allocation66_spill] sm:$0xff]  ;;  %v11819_v2 = vand.u32 4294901760, %v5908_v11 }
 0x39d   : > { %5851 = vmatpush.msra.mxu3 %v11472_v59  ;;  %5278 = vmatmul.f32.gmra.mxu2 %v5098_v45  ;;  %v14326_v59 = vld [vmem:[#allocation52_spill] sm:$0xff]  ;;  %v11787_v0 = vsub.f32 %v5482_v51, %v11775_v61  ;;  %v14336_v39 = vand.u32 4294901760, %v11623_v56 }
 0x39e   : > { %v4593_v44 = vadd.f32 %v4592_v34, %v4548_v31  ;;  %5659 = vmatpush.msra.mxu0 %v11475_v36  ;;  %5729 = vmatpush.msra.mxu1 %v11511_v46  ;;  %v5100_v22 = vsub.f32 %v5098_v45, %v5099_v21  ;;  %v14327_v36 = vand.u32 4294901760, %v11532_v55  ;;  %v14334_v31 = vand.u32 4294901760, %v14333_v29  ;;  %v5906_v34 = vld [vmem:[#allocation8 + $0x258] sm:$0xff] }
 0x39f   : > { %5788 = vmatpush.msra.mxu2 %v14325_v7  ;;  %5853 = vmatpush.msra.mxu3 %v11479_v47  ;;  %v14329_v47 = vld [vmem:[#allocation21_spill] sm:$0xff]  ;;  %v11844_v7 = vsub.f32 %v5908_v11, %v11819_v2 }
 0x3a0   : > { %v4597_v17 = vadd.f32 %v4593_v44, %v4165_v24  ;;  %5328 = vmatmul.f32.gmra.mxu3 %v5099_v21  ;;  %5662 = vmatpush.msra.mxu0 %v14321_v43  ;;  %v5101_v53 = vand.u32 4294901760, %v5100_v22  ;;  %v14330_v16 = vand.u32 4294901760, %v14329_v47  ;;  %v11805_v43 = vand.u32 4294901760, %v5909_v48 }
 0x3a1   : > { %5731 = vmatpush.msra.mxu1 %v14326_v59  ;;  %5792 = vmatpush.msra.mxu2 %v14327_v36  ;;  %v13955_v44 = vand.u32 4294901760, %v11809_v3  ;;  %v5905_v36 = vld [vmem:[#allocation8 + $0x250] sm:$0xff] }
 0x3a2   : > { %v4620_v41 = vmul.f32 %v8631_v23, %v4597_v17  ;;  %5855 = vmatpush.msra.mxu3 %v14323_v20  ;;  %5665 = vmatpush.msra.mxu0 %v11494_v1  ;;  %v14331_v1 = vand.u32 4294901760, %v11562_v6  ;;  %v11828_v21 = vsub.f32 %v5909_v48, %v11805_v43 }
 0x3a3   : > { %5733 = vmatpush.msra.mxu1 %v14328_v12  ;;  %5796 = vmatpush.msra.mxu2 %v14330_v16  ;;  %v13953_v16 = vand.u32 4294901760, %v11844_v7 }
 0x3a4   : > { %5857 = vmatpush.msra.mxu3 %v11511_v46  ;;  %5102 = vmatmul.f32.gmra.mxu0 %v5101_v53  ;;  %v11790_v25 = vand.u32 4294901760, %v4620_v41  ;;  %v11794_v58 = vrot.slane %v4620_v41, 1  ;;  %v5522_v46 = vand.u32 4294901760, %v11787_v0  ;;  %v11840_v23 = vrot.slane %v4620_v41, 2 }
 0x3a5   : > { %5668 = vmatpush.msra.mxu0 %v11514_v63  ;;  %5735 = vmatpush.msra.mxu1 %v11553_v54  ;;  %v14332_v63 = vld [vmem:[#allocation53_spill] sm:$0xff]  ;;  %v13954_v17 = vand.u32 4294901760, %v11828_v21 }
 0x3a6   : > { %5219 = vmatmul.f32.gmra.mxu1 %v11790_v25  ;;  %5800 = vmatpush.msra.mxu2 %v14331_v1  ;;  %v5106_v42 = vsub.f32 %v4620_v41, %v11790_v25  ;;  %v5484_v45 = vsel %vm428_vm2, %v5481_v50, %v11794_v58  ;;  %v5523_v50 = vsub.f32 %v11787_v0, %v5522_v46  ;;  %v11876_v1 = vand.u32 4294901760, %v5905_v36 }
 0x3a7   : > { %5859 = vmatpush.msra.mxu3 %v14326_v59  ;;  %5671 = vmatpush.msra.mxu0 %v11532_v55  ;;  %v5907_v55 = vld [vmem:[#allocation8 + $0x260] sm:$0xff]  ;;  %v11830_v51 = vand.u32 4294901760, %v5484_v45  ;;  %v5971_v41 = vsub.f32 %v11809_v3, %v13955_v44  ;;  %v5977_v14 = vsub.f32 %v11828_v21, %v13954_v17  ;;  %v12130_v44 = vpop.f32.mrf.mxu2 }
 0x3a8   : > { %5283 = vmatmul.f32.gmra.mxu2 %v5106_v42  ;;  %5737 = vmatpush.msra.mxu1 %v14332_v63  ;;  %v5107_v13 = vand.u32 4294901760, %v5106_v42  ;;  %v11835_v22 = vand.u32 4294901760, %v5907_v55  ;;  %14339 = vst [vmem:[#allocation65_spill] sm:$0xff] %v12130_v44  ;;  %v6321_v44 = vld [vmem:[#allocation8 + $0x118] sm:$0xff] }
 0x3a9   : > { %5804 = vmatpush.msra.mxu2 %v14334_v31  ;;  %5861 = vmatpush.msra.mxu3 %v14328_v12  ;;  %v11852_v59 = vsub.f32 %v5484_v45, %v11830_v51  ;;  %v5904_v12 = vld [vmem:[#allocation8 + $0x248] sm:$0xff]  ;;  %v5902_v31 = vld [vmem:[#allocation8 + $0x238] sm:$0xff] }
 0x3aa   : > { %5334 = vmatmul.f32.gmra.mxu3 %v5107_v13  ;;  %5674 = vmatpush.msra.mxu0 %v14329_v47  ;;  %v5108_v20 = vsub.f32 %v5106_v42, %v5107_v13  ;;  %v11861_v53 = vsub.f32 %v5907_v55, %v11835_v22  ;;  %v11868_v47 = vsel %vm892_vm3, %v6335_v15, %v11840_v23  ;;  %v5972_v15 = vand.u32 4294901760, %v5971_v41 }
 0x3ab   : > { %5739 = vmatpush.msra.mxu1 %v11583_v49  ;;  %5808 = vmatpush.msra.mxu2 %v5601_v28  ;;  %v14335_v28 = vand.u32 4294901760, %v11607_v32  ;;  %v11888_v11 = vand.u32 4294901760, %v5904_v12  ;;  %v11894_v13 = vand.u32 4294901760, %v11794_v58  ;;  %v5978_v55 = vand.u32 4294901760, %v5977_v14  ;;  %v5899_v14 = vld [vmem:[#allocation8 + $0x220] sm:$0xff] }
 0x3ac   : > { %5863 = vmatpush.msra.mxu3 %v11553_v54  ;;  %5677 = vmatpush.msra.mxu0 %v11562_v6  ;;  %v5109_v24 = vand.u32 4294901760, %v5108_v20  ;;  %v11846_v54 = vand.u32 4294901760, %v5906_v34  ;;  %v5524_v6 = vand.u32 4294901760, %v5523_v50  ;;  %v13951_v42 = vand.u32 4294901760, %v11861_v53 }
 0x3ad   : > { %5741 = vmatpush.msra.mxu1 %v11599_v8  ;;  %5812 = vmatpush.msra.mxu2 %v14335_v28  ;;  %v11918_v50 = vsub.f32 %v5904_v12, %v11888_v11 }
 0x3ae   : > { %5865 = vmatpush.msra.mxu3 %v14332_v63  ;;  %5110 = vmatmul.f32.gmra.mxu0 %v5109_v24  ;;  %v11874_v48 = vsub.f32 %v5906_v34, %v11846_v54  ;;  %v5903_v63 = vld [vmem:[#allocation8 + $0x240] sm:$0xff]  ;;  %v5989_v20 = vsub.f32 %v11861_v53, %v13951_v42  ;;  %v11926_v34 = vand.u32 4294901760, %v5902_v31  ;;  %v5901_v24 = vld [vmem:[#allocation8 + $0x230] sm:$0xff] }
 0x3af   : > { %5448 = vmatmul.f32.vlgmr.msrb.gmra.mxu1 %v11724_v52  ;;  %5680 = vmatpush.msra.mxu0 %v14333_v29  ;;  %v11903_v29 = vsub.f32 %v5905_v36, %v11876_v1  ;;  %v5900_v36 = vld [vmem:[#allocation8 + $0x228] sm:$0xff] }
 0x3b0   : > { %5743 = vmatpush.msra.mxu1 %v11614_v18  ;;  %5816 = vmatpush.msra.mxu2 %v14336_v39  ;;  %v13949_v45 = vand.u32 4294901760, %v11874_v48  ;;  %v11942_v39 = vand.u32 4294901760, %v5901_v24  ;;  %v11947_v41 = vsub.f32 %v5902_v31, %v11926_v34  ;;  %v11971_v31 = vand.u32 4294901760, %v5899_v14 }
 0x3b1   : > { %5867 = vmatpush.msra.mxu3 %v11583_v49  ;;  %5525 = vmatmul.f32.vlgmr.msrb.gmra.mxu2 %v5524_v6  ;;  %v14337_v49 = vand.u32 4294901760, %v11638_v57 }
 0x3b2   : > { %5683 = vmatpush.msra.mxu0 %v11586_v4  ;;  %5745 = vmatpush.msra.mxu1 %v11626_v9  ;;  %v5530_v4 = vand.u32 4294901760, %v11852_v59  ;;  %v5995_v28 = vsub.f32 %v11874_v48, %v13949_v45  ;;  %v6330_v45 = vld [vmem:[#allocation8 + $0x160] sm:$0xff] }
 0x3b3   : > { %5820 = vmatpush.msra.mxu2 %v14337_v49  ;;  %5869 = vmatpush.msra.mxu3 %v11599_v8  ;;  %v14338_v8 = vand.u32 4294901760, %v11645_v38  ;;  %v11953_v49 = vand.u32 4294901760, %v5900_v36 }
 0x3b4   : > { %5642 = vmatmul.f32.vlgmr.msrb.gmra.mxu3 %v11775_v61  ;;  %5686 = vmatpush.msra.mxu0 %v11607_v32  ;;  %v5983_v32 = vsub.f32 %v11844_v7, %v13953_v16  ;;  %v5996_v12 = vand.u32 4294901760, %v5995_v28 }
 0x3b5   : > { %5747 = vmatpush.msra.mxu1 %v11642_v27  ;;  %5824 = vmatpush.msra.mxu2 %v14338_v8  ;;  %v5898_v8 = vld [vmem:[#allocation8 + $0x218] sm:$0xff] }
 0x3b6   : > { %5871 = vmatpush.msra.mxu3 %v11614_v18  ;;  %5689 = vmatpush.msra.mxu0 %v11623_v56  ;;  %v5531_v18 = vsub.f32 %v11852_v59, %v5530_v4  ;;  %v11911_v56 = vand.u32 4294901760, %v5903_v63 }
 0x3b7   : > { %5749 = vmatpush.msra.mxu1 %v11659_v60  ;;  %5828 = vmatpush.msra.mxu2 %v5631_v10  ;;  %v11924_v10 = vsub.f32 %v11794_v58, %v11894_v13 }
 0x3b8   : > { %5873 = vmatpush.msra.mxu3 %v11626_v9  ;;  %5403 = vmatmul.f32.vlgmr.msrb.gmra.mxu0 %v11724_v52  ;;  %v5984_v9 = vand.u32 4294901760, %v5983_v32  ;;  %v13948_v52 = vand.u32 4294901760, %v11903_v29  ;;  %v5532_v58 = vand.u32 4294901760, %v5531_v18  ;;  %v11937_v6 = vsub.f32 %v5903_v63, %v11911_v56 }
 0x3b9   : > { %5973 = vmatpush.msrb.mxu1 %v5972_v15  ;;  %5692 = vmatpush.msra.mxu0 %v11638_v57  ;;  %v5990_v57 = vand.u32 4294901760, %v5989_v20  ;;  %v11963_v63 = vsub.f32 %v5901_v24, %v11942_v39  ;;  %v13939_v32 = vand.u32 4294901760, %v11947_v41  ;;  %v11975_v18 = vsub.f32 %v5900_v36, %v11953_v49 }
 0x3ba   : > { %5452 = vmatmul.f32.gmra.mxu1 %v11745_v26  ;;  %5832 = vmatpush.msra.mxu2 %v5637_v35  ;;  %v13942_v35 = vand.u32 4294901760, %v11918_v50  ;;  %v11982_v24 = vand.u32 4294901760, %v5898_v8 }
 0x3bb   : > { %5875 = vmatpush.msra.mxu3 %v11642_v27  ;;  %5979 = vmatpush.msrb.mxu1 %v5978_v55  ;;  %v5538_v27 = vand.u32 4294901760, %v11924_v10  ;;  %v13941_v28 = vand.u32 4294901760, %v11963_v63  ;;  %v6019_v36 = vsub.f32 %v11947_v41, %v13939_v32  ;;  %v5895_v32 = vld [vmem:[#allocation8 + $0x200] sm:$0xff] }
 0x3bc   : > { %6079 = vmatpush.msrb.mxu2 %v11809_v3  ;;  %5695 = vmatpush.msra.mxu0 %v11645_v38  ;;  %v6001_v38 = vsub.f32 %v11903_v29, %v13948_v52  ;;  %v6007_v15 = vsub.f32 %v11918_v50, %v13942_v35 }
 0x3bd   : > { %5533 = vmatmul.f32.gmra.mxu2 %v5532_v58  ;;  %5877 = vmatpush.msra.mxu3 %v11659_v60  ;;  %v13940_v60 = vand.u32 4294901760, %v11937_v6 }
 0x3be   : > { %5985 = vmatpush.msrb.mxu1 %v5984_v9  ;;  %6082 = vmatpush.msrb.mxu2 %v11828_v21  ;;  %v6002_v55 = vand.u32 4294901760, %v6001_v38  ;;  %v5897_v9 = vld [vmem:[#allocation8 + $0x210] sm:$0xff] }
 0x3bf   : > { %6142 = vmatpush.msrb.mxu3 %v11792_v33  ;;  %5698 = vmatpush.msra.mxu0 %v11662_v19  ;;  %v5539_v19 = vsub.f32 %v11924_v10, %v5538_v27  ;;  %v6013_v20 = vsub.f32 %v11937_v6, %v13940_v60  ;;  %v11997_v38 = vand.u32 4294901760, %v5897_v9  ;;  %v6020_v60 = vand.u32 4294901760, %v6019_v36 }
 0x3c0   : > { %5646 = vmatmul.f32.gmra.mxu3 %v11830_v51  ;;  %5991 = vmatpush.msrb.mxu1 %v5990_v57  ;;  %v11993_v57 = vsub.f32 %v5899_v14, %v11971_v31  ;;  %v6025_v14 = vsub.f32 %v11963_v63, %v13941_v28  ;;  %v12022_v28 = vand.u32 4294901760, %v5895_v32 }
 0x3c1   : > { %6085 = vmatpush.msrb.mxu2 %v11844_v7  ;;  %6144 = vmatpush.msrb.mxu3 %v11805_v43  ;;  %v5540_v58 = vand.u32 4294901760, %v5539_v19  ;;  %v12001_v19 = vsub.f32 %v5898_v8, %v11982_v24 }
 0x3c2   : > { %5701 = vmatpush.msra.mxu0 %v11678_v62  ;;  %5997 = vmatpush.msrb.mxu1 %v5996_v12  ;;  %v6008_v62 = vand.u32 4294901760, %v6007_v15  ;;  %v5896_v12 = vld [vmem:[#allocation8 + $0x208] sm:$0xff]  ;;  %v6014_v15 = vand.u32 4294901760, %v6013_v20  ;;  %v13945_v20 = vand.u32 4294901760, %v11993_v57  ;;  %v6026_v36 = vand.u32 4294901760, %v6025_v14  ;;  %v6333_v14 = vld [vmem:[#allocation8 + $0x178] sm:$0xff] }
 0x3c3   : > { %6088 = vmatpush.msrb.mxu2 %v11861_v53  ;;  %6146 = vmatpush.msrb.mxu3 %v11819_v2 }
 0x3c4   : > { %5912 = vmatpush.msrb.mxu0 %v11792_v33  ;;  %5456 = vmatmul.f32.gmra.mxu1 %v11790_v25 }
 0x3c5   : > { %5407 = vmatmul.f32.gmra.mxu0 %v11745_v26  ;;  %6003 = vmatpush.msrb.mxu1 %v6002_v55  ;;  %v13943_v26 = vand.u32 4294901760, %v11975_v18  ;;  %v12007_v55 = vand.u32 4294901760, %v5896_v12 }
 0x3c6   : > { %5914 = vmatpush.msrb.mxu0 %v11805_v43  ;;  %6091 = vmatpush.msrb.mxu2 %v11874_v48 }
 0x3c7   : > { %6148 = vmatpush.msrb.mxu3 %v11835_v22  ;;  %5541 = vmatmul.f32.gmra.mxu2 %v5540_v58  ;;  %v6031_v8 = vsub.f32 %v11975_v18, %v13943_v26  ;;  %v13944_v58 = vand.u32 4294901760, %v12001_v19  ;;  %v12027_v35 = vsub.f32 %v5896_v12, %v12007_v55  ;;  %v12043_v12 = vsub.f32 %v5895_v32, %v12022_v28  ;;  %v6332_v32 = vld [vmem:[#allocation8 + $0x170] sm:$0xff] }
 0x3c8   : > { %5916 = vmatpush.msrb.mxu0 %v11819_v2  ;;  %6009 = vmatpush.msrb.mxu1 %v6008_v62  ;;  %v12018_v62 = vsub.f32 %v5897_v9, %v11997_v38  ;;  %v6037_v9 = vsub.f32 %v11993_v57, %v13945_v20  ;;  %v12056_v20 = vand.u32 4294901760, %v6333_v14 }
 0x3c9   : > { %6094 = vmatpush.msrb.mxu2 %v11903_v29  ;;  %6150 = vmatpush.msrb.mxu3 %v11846_v54 }
 0x3ca   : > { %5650 = vmatmul.f32.gmra.mxu3 %v11894_v13  ;;  %5918 = vmatpush.msrb.mxu0 %v11835_v22  ;;  %v13946_v26 = vand.u32 4294901760, %v12018_v62 }
 0x3cb   : > { %6015 = vmatpush.msrb.mxu1 %v6014_v15  ;;  %6097 = vmatpush.msrb.mxu2 %v11918_v50  ;;  %v6032_v15 = vand.u32 4294901760, %v6031_v8 }
 0x3cc   : > { %6152 = vmatpush.msrb.mxu3 %v11876_v1  ;;  %5920 = vmatpush.msrb.mxu0 %v11846_v54  ;;  %v6049_v8 = vsub.f32 %v12018_v62, %v13946_v26  ;;  %v6331_v26 = vld [vmem:[#allocation8 + $0x168] sm:$0xff] }
 0x3cd   : > { %6021 = vmatpush.msrb.mxu1 %v6020_v60  ;;  %6100 = vmatpush.msrb.mxu2 %v11937_v6  ;;  %v6043_v60 = vsub.f32 %v12001_v19, %v13944_v58  ;;  %v13950_v58 = vand.u32 4294901760, %v12043_v12  ;;  %v12077_v52 = vand.u32 4294901760, %v6331_v26 }
 0x3ce   : > { %6154 = vmatpush.msrb.mxu3 %v11888_v11  ;;  %5411 = vmatmul.f32.gmra.mxu0 %v11790_v25  ;;  %v13947_v25 = vand.u32 4294901760, %v12027_v35 }
 0x3cf   : > { %5753 = vmatmul.f32.vlgmr.msra.gmra.mxu1 %v5522_v46  ;;  %5922 = vmatpush.msrb.mxu0 %v11876_v1  ;;  %v6038_v46 = vand.u32 4294901760, %v6037_v9 }
 0x3d0   : > { %6027 = vmatpush.msrb.mxu1 %v6026_v36  ;;  %6103 = vmatpush.msrb.mxu2 %v11947_v41  ;;  %v6044_v36 = vand.u32 4294901760, %v6043_v60  ;;  %v6055_v9 = vsub.f32 %v12027_v35, %v13947_v25  ;;  %v6050_v60 = vand.u32 4294901760, %v6049_v8  ;;  %v12073_v25 = vsub.f32 %v6333_v14, %v12056_v20  ;;  %v6329_v14 = vld [vmem:[#allocation8 + $0x158] sm:$0xff] }
 0x3d1   : > { %6156 = vmatpush.msrb.mxu3 %v11911_v56  ;;  %5834 = vmatmul.f32.vlgmr.msra.gmra.mxu2 %v11775_v61 }
 0x3d2   : > { %5924 = vmatpush.msrb.mxu0 %v11888_v11  ;;  %6033 = vmatpush.msrb.mxu1 %v6032_v15  ;;  %v12064_v15 = vand.u32 4294901760, %v6332_v32 }
 0x3d3   : > { %6106 = vmatpush.msrb.mxu2 %v11963_v63  ;;  %6158 = vmatpush.msrb.mxu3 %v11926_v34 }
 0x3d4   : > { %5879 = vmatmul.f32.vlgmr.msra.gmra.mxu3 %v11775_v61  ;;  %5926 = vmatpush.msrb.mxu0 %v11911_v56  ;;  %v6061_v61 = vsub.f32 %v12043_v12, %v13950_v58  ;;  %v12083_v8 = vsub.f32 %v6332_v32, %v12064_v15  ;;  %v6328_v58 = vld [vmem:[#allocation8 + $0x150] sm:$0xff] }
 0x3d5   : > { %6039 = vmatpush.msrb.mxu1 %v6038_v46  ;;  %6109 = vmatpush.msrb.mxu2 %v11975_v18  ;;  %v6056_v46 = vand.u32 4294901760, %v6055_v9  ;;  %v12089_v9 = vand.u32 4294901760, %v6330_v45 }
 0x3d6   : > { %6160 = vmatpush.msrb.mxu3 %v11942_v39  ;;  %5928 = vmatpush.msrb.mxu0 %v11926_v34  ;;  %v13956_v32 = vand.u32 4294901760, %v12083_v8 }
 0x3d7   : > { %6045 = vmatpush.msrb.mxu1 %v6044_v36  ;;  %6112 = vmatpush.msrb.mxu2 %v11993_v57  ;;  %v13952_v36 = vand.u32 4294901760, %v12073_v25 }
 0x3d8   : > { %6162 = vmatpush.msrb.mxu3 %v11953_v49  ;;  %5704 = vmatmul.f32.vlgmr.msra.gmra.mxu0 %v11787_v0  ;;  %v6062_v0 = vand.u32 4294901760, %v6061_v61  ;;  %v12107_v61 = vsub.f32 %v6330_v45, %v12089_v9 }
 0x3d9   : > { %5759 = vmatmul.f32.gmra.mxu1 %v5530_v4  ;;  %5930 = vmatpush.msrb.mxu0 %v11942_v39  ;;  %v12093_v4 = vsub.f32 %v6331_v26, %v12077_v52  ;;  %v6402_v26 = vsub.f32 %v12073_v25, %v13952_v36  ;;  %v6326_v36 = vld [vmem:[#allocation8 + $0x140] sm:$0xff] }
 0x3da   : > { %6051 = vmatpush.msrb.mxu1 %v6050_v60  ;;  %6115 = vmatpush.msrb.mxu2 %v12001_v19  ;;  %v12098_v60 = vand.u32 4294901760, %v6329_v14 }
 0x3db   : > { %6164 = vmatpush.msrb.mxu3 %v11971_v31  ;;  %5838 = vmatmul.f32.gmra.mxu2 %v11830_v51  ;;  %v13957_v42 = vand.u32 4294901760, %v12093_v4  ;;  %v6403_v16 = vand.u32 4294901760, %v6402_v26 }
 0x3dc   : > { %5932 = vmatpush.msrb.mxu0 %v11953_v49  ;;  %6057 = vmatpush.msrb.mxu1 %v6056_v46  ;;  %v6327_v46 = vld [vmem:[#allocation8 + $0x148] sm:$0xff]  ;;  %v12120_v45 = vsub.f32 %v6329_v14, %v12098_v60 }
 0x3dd   : > { %6118 = vmatpush.msrb.mxu2 %v12018_v62  ;;  %6166 = vmatpush.msrb.mxu3 %v11982_v24 }
 0x3de   : > { %5883 = vmatmul.f32.gmra.mxu3 %v11830_v51  ;;  %5934 = vmatpush.msrb.mxu0 %v11971_v31  ;;  %v12112_v51 = vand.u32 4294901760, %v6328_v58 }
 0x3df   : > { %6063 = vmatpush.msrb.mxu1 %v6062_v0  ;;  %6121 = vmatpush.msrb.mxu2 %v12027_v35  ;;  %v6408_v0 = vsub.f32 %v12083_v8, %v13956_v32  ;;  %v6325_v32 = vld [vmem:[#allocation8 + $0x138] sm:$0xff] }
 0x3e0   : > { %6168 = vmatpush.msrb.mxu3 %v11997_v38  ;;  %5936 = vmatpush.msrb.mxu0 %v11982_v24  ;;  %v12138_v14 = vsub.f32 %v6328_v58, %v12112_v51  ;;  %v14342_v58 = vand.u32 4294901760, %v12107_v61  ;;  %v12156_v5 = vand.u32 4294901760, %v6325_v32 }
 0x3e1   : > { %6270 = vmatpush.msra.mxu1 %v11792_v33  ;;  %6124 = vmatpush.msrb.mxu2 %v12043_v12  ;;  %v12124_v33 = vand.u32 4294901760, %v6327_v46  ;;  %v6409_v26 = vand.u32 4294901760, %v6408_v0  ;;  %v6324_v0 = vld [vmem:[#allocation8 + $0x130] sm:$0xff] }
 0x3e2   : > { %6170 = vmatpush.msrb.mxu3 %v12007_v55  ;;  %5709 = vmatmul.f32.gmra.mxu0 %v11852_v59  ;;  %v6414_v59 = vsub.f32 %v12093_v4, %v13957_v42  ;;  %14340 = vst [vmem:[#allocation67_spill] sm:$0xff] %v12138_v14  ;;  %v6420_v37 = vsub.f32 %v12107_v61, %v14342_v58  ;;  %v13959_v17 = vand.u32 4294901760, %v12138_v14  ;;  %v6323_v58 = vld [vmem:[#allocation8 + $0x128] sm:$0xff] }
 0x3e3   : > { %5765 = vmatmul.f32.gmra.mxu1 %v5538_v27  ;;  %6343 = vmatpush.msra.mxu2 %v12056_v20  ;;  %v12140_v27 = vpop.f32.mrf.mxu3  ;;  %v12150_v42 = vsub.f32 %v6327_v46, %v12124_v33 }
 0x3e4   : > { %6272 = vmatpush.msra.mxu1 %v11805_v43  ;;  %5938 = vmatpush.msrb.mxu0 %v11997_v38  ;;  %14341 = vst [vmem:[#allocation68_spill] sm:$0xff] %v12140_v27  ;;  %v12145_v43 = vand.u32 4294901760, %v6326_v36  ;;  %v14345_v27 = vld [vmem:[#allocation30_spill] sm:$0xff] }
 0x3e5   : > { %6172 = vmatpush.msrb.mxu3 %v12022_v28  ;;  %5842 = vmatmul.f32.gmra.mxu2 %v11894_v13 }
 0x3e6   : > { %6274 = vmatpush.msra.mxu1 %v11819_v2  ;;  %6345 = vmatpush.msra.mxu2 %v12064_v15  ;;  %v6415_v2 = vand.u32 4294901760, %v6414_v59  ;;  %v12166_v30 = vsub.f32 %v6326_v36, %v12145_v43  ;;  %v14344_v59 = vand.u32 4294901760, %v11809_v3  ;;  %v12183_v36 = vand.u32 4294901760, %v6323_v58 }
 0x3e7   : > { %6404 = vmatpush.msra.mxu3 %v6403_v16  ;;  %5940 = vmatpush.msrb.mxu0 %v12007_v55  ;;  %v14343_v16 = vand.u32 4294901760, %v12120_v45  ;;  %v14346_v3 = vand.u32 4294901760, %v11828_v21  ;;  %v14350_v21 = vld [vmem:[#allocation31_spill] sm:$0xff] }
 0x3e8   : > { %5887 = vmatmul.f32.gmra.mxu3 %v11894_v13  ;;  %6276 = vmatpush.msra.mxu1 %v11835_v22  ;;  %v12171_v13 = vand.u32 4294901760, %v6324_v0  ;;  %v6322_v22 = vld [vmem:[#allocation8 + $0x120] sm:$0xff] }
 0x3e9   : > { %6347 = vmatpush.msra.mxu2 %v12077_v52  ;;  %6410 = vmatpush.msra.mxu3 %v6409_v26  ;;  %v6426_v46 = vsub.f32 %v12120_v45, %v14343_v16  ;;  %v6421_v26 = vand.u32 4294901760, %v6420_v37  ;;  %v12177_v16 = vsub.f32 %v6325_v32, %v12156_v5  ;;  %v12189_v32 = vpop.f32.mrf.mxu2 }
 0x3ea   : > { %5942 = vmatpush.msrb.mxu0 %v12022_v28  ;;  %6278 = vmatpush.msra.mxu1 %v11846_v54  ;;  %v6432_v54 = vsub.f32 %v12138_v14, %v13959_v17  ;;  %14347 = vst [vmem:[#allocation69_spill] sm:$0xff] %v12189_v32  ;;  %v12197_v17 = vsub.f32 %v6324_v0, %v12171_v13  ;;  %v14352_v0 = vand.u32 4294901760, %v12166_v30 }
 0x3eb   : > { %6349 = vmatpush.msra.mxu2 %v12089_v9  ;;  %6416 = vmatpush.msra.mxu3 %v6415_v2  ;;  %v12199_v14 = vpop.f32.mrf.mxu3 }
 0x3ec   : > { %6195 = vmatpush.msra.mxu0 %v14344_v59  ;;  %6065 = vmatmul.f32.vlgmr.msrb.gmra.mxu1 %v14345_v27  ;;  %v6427_v59 = vand.u32 4294901760, %v6426_v46  ;;  %14349 = vst [vmem:[#allocation70_spill] sm:$0xff] %v12199_v14  ;;  %v6433_v37 = vand.u32 4294901760, %v6432_v54  ;;  %v6320_v46 = vld [vmem:[#allocation8 + $0x110] sm:$0xff]  ;;  %v14353_v14 = vld [vmem:[#allocation29_spill] sm:$0xff]  ;;  %v13962_v54 = vand.u32 4294901760, %v12197_v17 }
 0x3ed   : > { %5714 = vmatmul.f32.gmra.mxu0 %v11924_v10  ;;  %6280 = vmatpush.msra.mxu1 %v11876_v1  ;;  %v14348_v10 = vand.u32 4294901760, %v12150_v42  ;;  %v14351_v1 = vand.u32 4294901760, %v11844_v7  ;;  %v14354_v7 = vand.u32 4294901760, %v11861_v53 }
 0x3ee   : > { %6199 = vmatpush.msra.mxu0 %v14346_v3  ;;  %6351 = vmatpush.msra.mxu2 %v12098_v60  ;;  %v12203_v3 = vand.u32 4294901760, %v6322_v22 }
 0x3ef   : > { %v6438_v2 = vsub.f32 %v12150_v42, %v14348_v10  ;;  %6422 = vmatpush.msra.mxu3 %v6421_v26  ;;  %6127 = vmatmul.f32.vlgmr.msrb.gmra.mxu2 %v14350_v21  ;;  %v12209_v10 = vsub.f32 %v6323_v58, %v12183_v36  ;;  %v6444_v26 = vsub.f32 %v12166_v30, %v14352_v0  ;;  %v12215_v21 = vand.u32 4294901760, %v6321_v44  ;;  %v6319_v0 = vld [vmem:[#allocation8 + $0x108] sm:$0xff] }
 0x3f0   : > { %6203 = vmatpush.msra.mxu0 %v14351_v1  ;;  %6282 = vmatpush.msra.mxu1 %v11888_v11  ;;  %v14355_v58 = vand.u32 4294901760, %v12177_v16  ;;  %v12227_v1 = vsub.f32 %v6322_v22, %v12203_v3  ;;  %v14357_v22 = vld [vmem:[#allocation62_spill] sm:$0xff] }
 0x3f1   : > { %6353 = vmatpush.msra.mxu2 %v12112_v51  ;;  %6428 = vmatpush.msra.mxu3 %v6427_v59  ;;  %v6439_v11 = vand.u32 4294901760, %v6438_v2  ;;  %v12232_v2 = vand.u32 4294901760, %v6320_v46 }
 0x3f2   : > { %6176 = vmatmul.f32.vlgmr.msrb.gmra.mxu3 %v14353_v14  ;;  %6207 = vmatpush.msra.mxu0 %v14354_v7  ;;  %v6450_v59 = vsub.f32 %v12177_v16, %v14355_v58  ;;  %v14356_v14 = vand.u32 4294901760, %v11874_v48  ;;  %v12237_v7 = vsub.f32 %v6321_v44, %v12215_v21  ;;  %v6456_v48 = vsub.f32 %v12197_v17, %v13962_v54  ;;  %v6318_v58 = vld [vmem:[#allocation8 + $0x100] sm:$0xff]  ;;  %v12249_v44 = vpop.f32.mrf.mxu2 }
 0x3f3   : > { %6284 = vmatpush.msra.mxu1 %v11911_v56  ;;  %6355 = vmatpush.msra.mxu2 %v12124_v33  ;;  %v6445_v56 = vand.u32 4294901760, %v6444_v26  ;;  %v12257_v54 = vsub.f32 %v6320_v46, %v12232_v2  ;;  %v12259_v32 = vpop.f32.mrf.mxu3  ;;  %v14363_v46 = vand.u32 4294901760, %v12227_v1 }
 0x3f4   : > { %6434 = vmatpush.msra.mxu3 %v6433_v37  ;;  %6211 = vmatpush.msra.mxu0 %v14356_v14  ;;  %v12243_v37 = vand.u32 4294901760, %v6319_v0  ;;  %v14358_v14 = vld [vmem:[#allocation46_spill] sm:$0xff]  ;;  %v6451_v53 = vand.u32 4294901760, %v6450_v59  ;;  %v6457_v26 = vand.u32 4294901760, %v6456_v48  ;;  %v14365_v59 = vand.u32 4294901760, %v11937_v6 }
 0x3f5   : > { %6286 = vmatpush.msra.mxu1 %v11926_v34  ;;  %6357 = vmatpush.msra.mxu2 %v12145_v43  ;;  %v14359_v34 = vand.u32 4294901760, %v11903_v29  ;;  %v14361_v29 = vld [vmem:[#allocation45_spill] sm:$0xff]  ;;  %v14368_v6 = vand.u32 4294901760, %v11947_v41 }
 0x3f6   : > { %6440 = vmatpush.msra.mxu3 %v6439_v11  ;;  %5948 = vmatmul.f32.vlgmr.msrb.gmra.mxu0 %v14357_v22  ;;  %v14360_v11 = vand.u32 4294901760, %v12209_v10 }
 0x3f7   : > { %6069 = vmatmul.f32.gmra.mxu1 %v14358_v14  ;;  %6215 = vmatpush.msra.mxu0 %v14359_v34  ;;  %v12263_v34 = vand.u32 4294901760, %v6318_v58 }
 0x3f8   : > { %6288 = vmatpush.msra.mxu1 %v11942_v39  ;;  %6359 = vmatpush.msra.mxu2 %v12156_v5  ;;  %v6462_v22 = vsub.f32 %v12209_v10, %v14360_v11  ;;  %v14362_v39 = vand.u32 4294901760, %v11918_v50  ;;  %v12269_v11 = vsub.f32 %v6319_v0, %v12243_v37  ;;  %v14367_v0 = vand.u32 4294901760, %v12237_v7 }
 0x3f9   : > { %6446 = vmatpush.msra.mxu3 %v6445_v56  ;;  %6132 = vmatmul.f32.gmra.mxu2 %v14361_v29  ;;  %v6468_v56 = vsub.f32 %v12227_v1, %v14363_v46  ;;  %v14364_v29 = vld [vmem:[#allocation37_spill] sm:$0xff]  ;;  %v12287_v48 = vsub.f32 %v6318_v58, %v12263_v34  ;;  %v12290_v46 = vand.u32 4294901760, %v11757_v40  ;;  %v14371_v58 = vld [vmem:[#allocation42_spill] sm:$0xff] }
 0x3fa   : > { %6219 = vmatpush.msra.mxu0 %v14362_v39  ;;  %6290 = vmatpush.msra.mxu1 %v11953_v49  ;;  %v6463_v50 = vand.u32 4294901760, %v6462_v22  ;;  %v13963_v39 = vand.u32 4294901760, %v12257_v54  ;;  %v12279_v49 = vpop.f32.mrf.mxu1 }
 0x3fb   : > { %6361 = vmatpush.msra.mxu2 %v12171_v13  ;;  %6452 = vmatpush.msra.mxu3 %v6451_v53  ;;  %14366 = vst [vmem:[#allocation71_spill] sm:$0xff] %v12279_v49  ;;  %v6474_v53 = vsub.f32 %v12237_v7, %v14367_v0  ;;  %v12305_v41 = vpop.f32.mrf.mxu3  ;;  %v14373_v0 = vld [vmem:[#allocation24_spill] sm:$0xff]  ;;  %v13968_v22 = vand.u32 4294901760, %v12287_v48 }
 0x3fc   : > { %6182 = vmatmul.f32.gmra.mxu3 %v14364_v29  ;;  %6223 = vmatpush.msra.mxu0 %v14365_v59  ;;  %v12295_v59 = vpop.f32.mrf.mxu0  ;;  %v12299_v29 = vpop.f32.mrf.mxu2  ;;  %14372 = vst [vmem:[#allocation74_spill] sm:$0xff] %v12305_v41 }
 0x3fd   : > { %6292 = vmatpush.msra.mxu1 %v11971_v31  ;;  %6363 = vmatpush.msra.mxu2 %v12183_v36  ;;  %14369 = vst [vmem:[#allocation72_spill] sm:$0xff] %v12295_v59  ;;  %v6469_v31 = vand.u32 4294901760, %v6468_v56  ;;  %v12313_v56 = vsub.f32 %v11757_v40, %v12290_v46  ;;  %v6492_v40 = vsub.f32 %v12287_v48, %v13968_v22  ;;  %v6756_v22 = vld [vmem:[#allocation8 + $0x2b8] sm:$0xff] }
 0x3fe   : > { %6458 = vmatpush.msra.mxu3 %v6457_v26  ;;  %6227 = vmatpush.msra.mxu0 %v14368_v6  ;;  %14370 = vst [vmem:[#allocation73_spill] sm:$0xff] %v12299_v29  ;;  %v6480_v26 = vsub.f32 %v12257_v54, %v13963_v39  ;;  %v14374_v6 = vand.u32 4294901760, %v11963_v63  ;;  %v14376_v39 = vld [vmem:[#allocation43_spill] sm:$0xff]  ;;  %v14377_v63 = vand.u32 4294901760, %v11975_v18 }
 0x3ff   : > { %6294 = vmatpush.msra.mxu1 %v11982_v24  ;;  %6365 = vmatpush.msra.mxu2 %v12203_v3  ;;  %v6475_v24 = vand.u32 4294901760, %v6474_v53 }
 0x400   : > { %6464 = vmatpush.msra.mxu3 %v6463_v50  ;;  %5956 = vmatmul.f32.gmra.mxu0 %v14371_v58  ;;  %v14375_v50 = vand.u32 4294901760, %v12269_v11  ;;  %v6481_v53 = vand.u32 4294901760, %v6480_v26 }
 0x401   : > { %6073 = vmatmul.f32.gmra.mxu1 %v14373_v0  ;;  %6231 = vmatpush.msra.mxu0 %v14374_v6  ;;  %v14378_v6 = vld [vmem:[#allocation23_spill] sm:$0xff] }
 0x402   : > { %6296 = vmatpush.msra.mxu1 %v11997_v38  ;;  %6367 = vmatpush.msra.mxu2 %v12215_v21  ;;  %v6486_v58 = vsub.f32 %v12269_v11, %v14375_v50  ;;  %v6376_v38 = vand.u32 4294901760, %v12313_v56  ;;  %v12332_v18 = vpop.f32.mrf.mxu1 }
 0x403   : > { %6470 = vmatpush.msra.mxu3 %v6469_v31  ;;  %6137 = vmatmul.f32.gmra.mxu2 %v14376_v39  ;;  %v14379_v31 = vand.u32 4294901760, %v11993_v57  ;;  %v6493_v57 = vand.u32 4294901760, %v6492_v40  ;;  %v14383_v40 = vand.u32 4294901760, %v12018_v62  ;;  %v14386_v62 = vand.u32 4294901760, %v12093_v4 }
 0x404   : > { %6235 = vmatpush.msra.mxu0 %v14377_v63  ;;  %6298 = vmatpush.msra.mxu1 %v12007_v55  ;;  %v6487_v39 = vand.u32 4294901760, %v6486_v58  ;;  %v12337_v55 = vand.u32 4294901760, %v11868_v47  ;;  %v12340_v26 = vpop.f32.mrf.mxu0  ;;  %v12348_v50 = vpop.f32.mrf.mxu2  ;;  %v14381_v63 = vand.u32 4294901760, %v12073_v25 }
 0x405   : > { %6369 = vmatpush.msra.mxu2 %v12232_v2  ;;  %6476 = vmatpush.msra.mxu3 %v6475_v24  ;;  %v14380_v24 = vand.u32 4294901760, %v12001_v19  ;;  %v12351_v58 = vpop.f32.mrf.mxu3 }
 0x406   : > { %6188 = vmatmul.f32.gmra.mxu3 %v14378_v6  ;;  %6239 = vmatpush.msra.mxu0 %v14379_v31  ;;  %v12358_v19 = vsub.f32 %v11868_v47, %v12337_v55  ;;  %v14384_v31 = vand.u32 4294901760, %v12083_v8 }
 0x407   : > { %6300 = vmatpush.msra.mxu1 %v12022_v28  ;;  %6371 = vmatpush.msra.mxu2 %v12243_v37  ;;  %v6377_v28 = vsub.f32 %v12313_v56, %v6376_v38 }
 0x408   : > { %6482 = vmatpush.msra.mxu3 %v6481_v53  ;;  %6243 = vmatpush.msra.mxu0 %v14380_v24  ;;  %v14382_v53 = vld [vmem:[#allocation32_spill] sm:$0xff]  ;;  %v13966_v47 = vand.u32 4294901760, %v12358_v19 }
 0x409   : > { %6573 = vmatpush.msrb.mxu1 %v12056_v20  ;;  %6373 = vmatpush.msra.mxu2 %v12263_v34  ;;  %v6378_v6 = vand.u32 4294901760, %v6377_v28  ;;  %v14388_v28 = vand.u32 4294901760, %v12107_v61 }
 0x40a   : > { %6488 = vmatpush.msra.mxu3 %v6487_v39  ;;  %5964 = vmatmul.f32.gmra.mxu0 %v14382_v53  ;;  %v14385_v39 = vand.u32 4294901760, %v12027_v35  ;;  %v12373_v24 = vpop.f32.mrf.mxu1 }
 0x40b   : > { %6575 = vmatpush.msrb.mxu1 %v12064_v15  ;;  %6626 = vmatpush.msrb.mxu2 %v14381_v63 }
 0x40c   : > { %6247 = vmatpush.msra.mxu0 %v14383_v40  ;;  %6302 = vmatmul.f32.vlgmr.msra.gmra.mxu1 %v14345_v27  ;;  %v12383_v35 = vpop.f32.mrf.mxu0 }
 0x40d   : > { %6494 = vmatpush.msra.mxu3 %v6493_v57  ;;  %6577 = vmatpush.msrb.mxu1 %v12077_v52  ;;  %v14387_v57 = vand.u32 4294901760, %v12043_v12  ;;  %v12391_v12 = vpop.f32.mrf.mxu2  ;;  %v12395_v63 = vpop.f32.mrf.mxu3 }
 0x40e   : > { %6630 = vmatpush.msrb.mxu2 %v14384_v31  ;;  %6251 = vmatpush.msra.mxu0 %v14385_v39 }
 0x40f   : > { %6701 = vmatpush.msrb.mxu3 %v12056_v20  ;;  %6379 = vmatmul.f32.vlgmr.msra.gmra.mxu2 %v6378_v6  ;;  %v12379_v20 = vand.u32 4294901760, %v11840_v23  ;;  %v6764_v6 = vld [vmem:[#allocation8 + $0x2f8] sm:$0xff] }
 0x410   : > { %6579 = vmatpush.msrb.mxu1 %v12089_v9  ;;  %6634 = vmatpush.msrb.mxu2 %v14386_v62  ;;  %v6762_v62 = vld [vmem:[#allocation8 + $0x2e8] sm:$0xff] }
 0x411   : > { %6703 = vmatpush.msrb.mxu3 %v12064_v15  ;;  %6255 = vmatpush.msra.mxu0 %v14387_v57  ;;  %v6385_v15 = vsub.f32 %v12358_v19, %v13966_v47  ;;  %v12402_v53 = vsub.f32 %v11840_v23, %v12379_v20 }
 0x412   : > { %6496 = vmatmul.f32.vlgmr.msra.gmra.mxu3 %v12290_v46  ;;  %6581 = vmatpush.msrb.mxu1 %v12098_v60  ;;  %v12413_v31 = vpop.f32.mrf.mxu1 }
 0x413   : > { %6510 = vmatpush.msrb.mxu0 %v12073_v25  ;;  %6638 = vmatpush.msrb.mxu2 %v14388_v28  ;;  %v14389_v25 = vand.u32 4294901760, %v12120_v45  ;;  %v13964_v23 = vand.u32 4294901760, %v12402_v53  ;;  %14392 = vst [vmem:[#allocation75_spill] sm:$0xff] %v12413_v31  ;;  %v14398_v28 = vand.u32 4294901760, %v12177_v16  ;;  %v6751_v31 = vld [vmem:[#allocation8 + $0x290] sm:$0xff] }
 0x414   : > { %6705 = vmatpush.msrb.mxu3 %v12077_v52  ;;  %6583 = vmatpush.msrb.mxu1 %v12112_v51  ;;  %v6386_v52 = vand.u32 4294901760, %v6385_v15  ;;  %v6761_v15 = vld [vmem:[#allocation8 + $0x2e0] sm:$0xff] }
 0x415   : > { %6513 = vmatpush.msrb.mxu0 %v12083_v8  ;;  %6642 = vmatpush.msrb.mxu2 %v14389_v25  ;;  %v14390_v8 = vld [vmem:[#allocation67_spill] sm:$0xff] }
 0x416   : > { %6707 = vmatpush.msrb.mxu3 %v12089_v9  ;;  %6257 = vmatmul.f32.vlgmr.msra.gmra.mxu0 %v14345_v27  ;;  %v14391_v40 = vand.u32 4294901760, %v14390_v8  ;;  %v14393_v9 = vand.u32 4294901760, %v12150_v42 }
 0x417   : > { %6306 = vmatmul.f32.gmra.mxu1 %v14358_v14  ;;  %6516 = vmatpush.msrb.mxu0 %v12093_v4  ;;  %v6763_v4 = vld [vmem:[#allocation8 + $0x2f0] sm:$0xff]  ;;  %v12420_v27 = vpop.f32.mrf.mxu0  ;;  %v12426_v39 = vpop.f32.mrf.mxu2 }
 0x418   : > { %6585 = vmatpush.msrb.mxu1 %v12124_v33  ;;  %6646 = vmatpush.msrb.mxu2 %v14391_v40  ;;  %14394 = vst [vmem:[#allocation54_spill] sm:$0xff] %v12420_v27 }
 0x419   : > { %6709 = vmatpush.msrb.mxu3 %v12098_v60  ;;  %6387 = vmatmul.f32.gmra.mxu2 %v6386_v52  ;;  %v12424_v60 = vand.u32 4294901760, %v6764_v6  ;;  %14395 = vst [vmem:[#allocation76_spill] sm:$0xff] %v12426_v39  ;;  %v12434_v57 = vpop.f32.mrf.mxu3  ;;  %v12448_v52 = vand.u32 4294901760, %v6762_v62 }
 0x41a   : > { %6519 = vmatpush.msrb.mxu0 %v12107_v61  ;;  %6587 = vmatpush.msrb.mxu1 %v12145_v43  ;;  %v14396_v61 = vand.u32 4294901760, %v12166_v30  ;;  %14397 = vst [vmem:[#allocation35_spill] sm:$0xff] %v12434_v57 }
 0x41b   : > { %6650 = vmatpush.msrb.mxu2 %v14393_v9  ;;  %6711 = vmatpush.msrb.mxu3 %v12112_v51  ;;  %v6393_v51 = vsub.f32 %v12402_v53, %v13964_v23  ;;  %v12446_v25 = vsub.f32 %v6764_v6, %v12424_v60  ;;  %v12461_v6 = vpop.f32.mrf.mxu1  ;;  %v12467_v9 = vsub.f32 %v6762_v62, %v12448_v52  ;;  %v14402_v23 = vand.u32 4294901760, %v12237_v7 }
 0x41c   : > { %6500 = vmatmul.f32.gmra.mxu3 %v12337_v55  ;;  %6522 = vmatpush.msrb.mxu0 %v12120_v45  ;;  %v12438_v45 = vand.u32 4294901760, %v6763_v4 }
 0x41d   : > { %6589 = vmatpush.msrb.mxu1 %v12156_v5  ;;  %6654 = vmatpush.msrb.mxu2 %v14396_v61 }
 0x41e   : > { %6713 = vmatpush.msrb.mxu3 %v12124_v33  ;;  %6525 = vmatpush.msrb.mxu0 %v14390_v8  ;;  %v6394_v33 = vand.u32 4294901760, %v6393_v51  ;;  %v14399_v8 = vand.u32 4294901760, %v12197_v17  ;;  %v12456_v40 = vsub.f32 %v6763_v4, %v12438_v45  ;;  %v14400_v4 = vand.u32 4294901760, %v12209_v10 }
 0x41f   : > { %6591 = vmatpush.msrb.mxu1 %v12171_v13  ;;  %6658 = vmatpush.msrb.mxu2 %v14398_v28 }
 0x420   : > { %6715 = vmatpush.msrb.mxu3 %v12145_v43  ;;  %6261 = vmatmul.f32.gmra.mxu0 %v14358_v14  ;;  %v12458_v43 = vand.u32 4294901760, %v6761_v15  ;;  %v6760_v14 = vld [vmem:[#allocation8 + $0x2d8] sm:$0xff]  ;;  %v12482_v62 = vpop.f32.mrf.mxu2 }
 0x421   : > { %6310 = vmatmul.f32.gmra.mxu1 %v14373_v0  ;;  %6528 = vmatpush.msrb.mxu0 %v12150_v42  ;;  %v13965_v42 = vand.u32 4294901760, %v12446_v25  ;;  %v12472_v61 = vand.u32 4294901760, %v6760_v14  ;;  %v12474_v51 = vpop.f32.mrf.mxu0 }
 0x422   : > { %6593 = vmatpush.msrb.mxu1 %v12183_v36  ;;  %6662 = vmatpush.msrb.mxu2 %v14399_v8  ;;  %v12480_v28 = vsub.f32 %v6761_v15, %v12458_v43  ;;  %v13969_v15 = vand.u32 4294901760, %v12467_v9 }
 0x423   : > { %6717 = vmatpush.msrb.mxu3 %v12156_v5  ;;  %6395 = vmatmul.f32.gmra.mxu2 %v6394_v33  ;;  %v6759_v5 = vld [vmem:[#allocation8 + $0x2d0] sm:$0xff]  ;;  %v12487_v33 = vpop.f32.mrf.mxu3 }
 0x424   : > { %6531 = vmatpush.msrb.mxu0 %v12166_v30  ;;  %6595 = vmatpush.msrb.mxu1 %v12203_v3  ;;  %v13967_v30 = vand.u32 4294901760, %v12456_v40  ;;  %v12495_v8 = vand.u32 4294901760, %v6759_v5 }
 0x425   : > { %6666 = vmatpush.msrb.mxu2 %v14400_v4  ;;  %6719 = vmatpush.msrb.mxu3 %v12171_v13  ;;  %v14401_v13 = vand.u32 4294901760, %v12227_v1  ;;  %v6758_v4 = vld [vmem:[#allocation8 + $0x2c8] sm:$0xff] }
 0x426   : > { %6504 = vmatmul.f32.gmra.mxu3 %v12379_v20  ;;  %6534 = vmatpush.msrb.mxu0 %v12177_v16  ;;  %v6834_v16 = vsub.f32 %v12446_v25, %v13965_v42  ;;  %v6757_v42 = vld [vmem:[#allocation8 + $0x2c0] sm:$0xff]  ;;  %v12511_v47 = vand.u32 4294901760, %v6758_v4 }
 0x427   : > { %6597 = vmatpush.msrb.mxu1 %v12215_v21  ;;  %6670 = vmatpush.msrb.mxu2 %v14401_v13  ;;  %v12501_v13 = vsub.f32 %v6760_v14, %v12472_v61  ;;  %v12520_v14 = vsub.f32 %v6759_v5, %v12495_v8 }
 0x428   : > { %6721 = vmatpush.msrb.mxu3 %v12183_v36  ;;  %6537 = vmatpush.msrb.mxu0 %v12197_v17  ;;  %v6840_v17 = vsub.f32 %v12456_v40, %v13967_v30  ;;  %v13970_v36 = vand.u32 4294901760, %v12480_v28  ;;  %v12525_v30 = vand.u32 4294901760, %v6757_v42 }
 0x429   : > { %6599 = vmatpush.msrb.mxu1 %v12232_v2  ;;  %6674 = vmatpush.msrb.mxu2 %v14402_v23  ;;  %v14403_v23 = vand.u32 4294901760, %v12257_v54 }
 0x42a   : > { %6723 = vmatpush.msrb.mxu3 %v12203_v3  ;;  %6265 = vmatmul.f32.gmra.mxu0 %v14373_v0  ;;  %v6835_v3 = vand.u32 4294901760, %v6834_v16  ;;  %v6846_v0 = vsub.f32 %v12467_v9, %v13969_v15  ;;  %v6841_v16 = vand.u32 4294901760, %v6840_v17  ;;  %v6852_v5 = vsub.f32 %v12480_v28, %v13970_v36 }
 0x42b   : > { %6540 = vmatpush.msrb.mxu0 %v12209_v10  ;;  %6601 = vmatpush.msrb.mxu1 %v12243_v37  ;;  %v12541_v15 = vsub.f32 %v6758_v4, %v12511_v47  ;;  %v6755_v10 = vld [vmem:[#allocation8 + $0x2b0] sm:$0xff]  ;;  %v12543_v57 = vpop.f32.mrf.mxu2  ;;  %v12548_v36 = vand.u32 4294901760, %v6756_v22  ;;  %v12556_v4 = vsub.f32 %v6757_v42, %v12525_v30  ;;  %v14410_v42 = vand.u32 4294901760, %v12520_v14 }
 0x42c   : > { %6678 = vmatpush.msrb.mxu2 %v14403_v23  ;;  %6725 = vmatpush.msrb.mxu3 %v12215_v21  ;;  %v12527_v23 = vpop.f32.mrf.mxu1  ;;  %v14405_v21 = vand.u32 4294901760, %v12269_v11  ;;  %14406 = vst [vmem:[#allocation28_spill] sm:$0xff] %v12543_v57  ;;  %v6847_v17 = vand.u32 4294901760, %v6846_v0  ;;  %v6853_v0 = vand.u32 4294901760, %v6852_v5  ;;  %v6753_v5 = vld [vmem:[#allocation8 + $0x2a0] sm:$0xff] }
 0x42d   : > { %6543 = vmatpush.msrb.mxu0 %v12227_v1  ;;  %6603 = vmatpush.msrb.mxu1 %v12263_v34  ;;  %14404 = vst [vmem:[#allocation60_spill] sm:$0xff] %v12527_v23  ;;  %v12535_v1 = vpop.f32.mrf.mxu0 }
 0x42e   : > { %6682 = vmatpush.msrb.mxu2 %v14405_v21  ;;  %6727 = vmatpush.msrb.mxu3 %v12232_v2  ;;  %v14407_v2 = vand.u32 4294901760, %v12287_v48  ;;  %v6754_v21 = vld [vmem:[#allocation8 + $0x2a8] sm:$0xff] }
 0x42f   : > { %6607 = vmatmul.f32.vlgmr.msrb.gmra.mxu1 %v6376_v38  ;;  %6546 = vmatpush.msrb.mxu0 %v12237_v7  ;;  %v14408_v7 = vand.u32 4294901760, %v12501_v13  ;;  %v12576_v39 = vand.u32 4294901760, %v6754_v21 }
 0x430   : > { %6836 = vmatpush.msra.mxu1 %v6835_v3  ;;  %6686 = vmatpush.msrb.mxu2 %v14407_v2  ;;  %v12558_v3 = vpop.f32.mrf.mxu3  ;;  %v12561_v2 = vand.u32 4294901760, %v6755_v10 }
 0x431   : > { %6729 = vmatpush.msrb.mxu3 %v12243_v37  ;;  %6688 = vmatmul.f32.vlgmr.msrb.gmra.mxu2 %v12290_v46  ;;  %v6858_v38 = vsub.f32 %v12501_v13, %v14408_v7  ;;  %14409 = vst [vmem:[#allocation25_spill] sm:$0xff] %v12558_v3  ;;  %v13971_v37 = vand.u32 4294901760, %v12541_v15  ;;  %v6864_v7 = vsub.f32 %v12520_v14, %v14410_v42 }
 0x432   : > { %6842 = vmatpush.msra.mxu1 %v6841_v16  ;;  %6942 = vmatpush.msra.mxu2 %v12446_v25  ;;  %v12571_v16 = vsub.f32 %v6756_v22, %v12548_v36 }
 0x433   : > { %6549 = vmatpush.msrb.mxu0 %v12257_v54  ;;  %6731 = vmatpush.msrb.mxu3 %v12263_v34  ;;  %v6859_v54 = vand.u32 4294901760, %v6858_v38  ;;  %v6870_v22 = vsub.f32 %v12541_v15, %v13971_v37  ;;  %v12587_v38 = vand.u32 4294901760, %v6753_v5  ;;  %v14414_v37 = vand.u32 4294901760, %v12556_v4 }
 0x434   : > { %6733 = vmatmul.f32.vlgmr.msrb.gmra.mxu3 %v12290_v46  ;;  %6848 = vmatpush.msra.mxu1 %v6847_v17  ;;  %v12580_v46 = vsub.f32 %v6755_v10, %v12561_v2  ;;  %v6752_v17 = vld [vmem:[#allocation8 + $0x298] sm:$0xff]  ;;  %v12589_v42 = vpop.f32.mrf.mxu1  ;;  %v6865_v10 = vand.u32 4294901760, %v6864_v7 }
 0x435   : > { %6945 = vmatpush.msra.mxu2 %v12456_v40  ;;  %7005 = vmatpush.msra.mxu3 %v12424_v60  ;;  %14411 = vst [vmem:[#allocation61_spill] sm:$0xff] %v12589_v42  ;;  %v12591_v34 = vpop.f32.mrf.mxu0  ;;  %v6876_v27 = vsub.f32 %v12556_v4, %v14414_v37  ;;  %v12602_v42 = vsub.f32 %v6754_v21, %v12576_v39  ;;  %v12616_v21 = vand.u32 4294901760, %v6751_v31 }
 0x436   : > { %6552 = vmatpush.msrb.mxu0 %v12269_v11  ;;  %6854 = vmatpush.msra.mxu1 %v6853_v0  ;;  %14412 = vst [vmem:[#allocation19_spill] sm:$0xff] %v12591_v34  ;;  %v14413_v11 = vand.u32 4294901760, %v12358_v19  ;;  %v13972_v0 = vand.u32 4294901760, %v12571_v16  ;;  %v12604_v34 = vand.u32 4294901760, %v6752_v17  ;;  %v12614_v37 = vsub.f32 %v6753_v5, %v12587_v38 }
 0x437   : > { %6948 = vmatpush.msra.mxu2 %v12467_v9  ;;  %7007 = vmatpush.msra.mxu3 %v12438_v45  ;;  %v12640_v5 = vsub.f32 %v6751_v31, %v12616_v21 }
 0x438   : > { %6555 = vmatpush.msrb.mxu0 %v12287_v48  ;;  %6613 = vmatmul.f32.gmra.mxu1 %v14413_v11  ;;  %v12606_v48 = vpop.f32.mrf.mxu2  ;;  %v6750_v11 = vld [vmem:[#allocation8 + $0x288] sm:$0xff]  ;;  %v6882_v7 = vsub.f32 %v12571_v16, %v13972_v0  ;;  %v12628_v41 = vsub.f32 %v6752_v17, %v12604_v34 }
 0x439   : > { %6558 = vmatmul.f32.vlgmr.msrb.gmra.mxu0 %v12313_v56  ;;  %6860 = vmatpush.msra.mxu1 %v6859_v54  ;;  %14415 = vst [vmem:[#allocation33_spill] sm:$0xff] %v12606_v48  ;;  %v6871_v56 = vand.u32 4294901760, %v6870_v22  ;;  %v12618_v54 = vpop.f32.mrf.mxu3  ;;  %v6749_v48 = vld [vmem:[#allocation8 + $0x280] sm:$0xff]  ;;  %v6877_v22 = vand.u32 4294901760, %v6876_v27  ;;  %v12630_v29 = vand.u32 4294901760, %v6750_v11 }
 0x43a   : > { %6775 = vmatpush.msra.mxu0 %v12424_v60  ;;  %6951 = vmatpush.msra.mxu2 %v12480_v28  ;;  %14416 = vst [vmem:[#allocation58_spill] sm:$0xff] %v12618_v54  ;;  %v12642_v17 = vand.u32 4294901760, %v6749_v48 }
 0x43b   : > { %7009 = vmatpush.msra.mxu3 %v12448_v52  ;;  %6692 = vmatmul.f32.gmra.mxu2 %v12337_v55  ;;  %v12652_v27 = vsub.f32 %v6750_v11, %v12630_v29  ;;  %v14424_v11 = vld [vmem:[#allocation56_spill] sm:$0xff] }
 0x43c   : > { %6777 = vmatpush.msra.mxu0 %v12438_v45  ;;  %6866 = vmatpush.msra.mxu1 %v6865_v10  ;;  %v14417_v10 = vand.u32 4294901760, %v12580_v46  ;;  %v12654_v31 = vpop.f32.mrf.mxu1  ;;  %v12668_v59 = vsub.f32 %v6749_v48, %v12642_v17 }
 0x43d   : > { %6954 = vmatpush.msra.mxu2 %v12501_v13  ;;  %7011 = vmatpush.msra.mxu3 %v12458_v43  ;;  %14419 = vst [vmem:[#allocation47_spill] sm:$0xff] %v12654_v31  ;;  %v6767_v31 = vrot.slane %v14424_v11, 3  ;;  %v14427_v11 = vand.u32 4294901760, %v12652_v27 }
 0x43e   : > { %6737 = vmatmul.f32.gmra.mxu3 %v12337_v55  ;;  %6779 = vmatpush.msra.mxu0 %v12448_v52  ;;  %v6888_v0 = vsub.f32 %v12580_v46, %v14417_v10  ;;  %v6883_v55 = vand.u32 4294901760, %v6882_v7  ;;  %v14418_v10 = vand.u32 4294901760, %v12602_v42 }
 0x43f   : > { %6872 = vmatpush.msra.mxu1 %v6871_v56  ;;  %6957 = vmatpush.msra.mxu2 %v12520_v14 }
 0x440   : > { %7013 = vmatpush.msra.mxu3 %v12472_v61  ;;  %6781 = vmatpush.msra.mxu0 %v12458_v43  ;;  %v6894_v56 = vsub.f32 %v12602_v42, %v14418_v10  ;;  %v6889_v7 = vand.u32 4294901760, %v6888_v0  ;;  %v14422_v10 = vand.u32 4294901760, %v12614_v37  ;;  %v12670_v3 = vpop.f32.mrf.mxu2  ;;  %v14423_v0 = vand.u32 4294901760, %v12628_v41 }
 0x441   : > { %6878 = vmatpush.msra.mxu1 %v6877_v22  ;;  %6960 = vmatpush.msra.mxu2 %v12541_v15  ;;  %v14421_v22 = vand.u32 4294901760, %v12402_v53 }
 0x442   : > { %v12656_v49 = vpop.f32.mrf.mxu0  ;;  %7015 = vmatpush.msra.mxu3 %v12495_v8  ;;  %6563 = vmatmul.f32.gmra.mxu0 %v12358_v19  ;;  %v6900_v54 = vsub.f32 %v12614_v37, %v14422_v10  ;;  %v6895_v19 = vand.u32 4294901760, %v6894_v56  ;;  %v14425_v56 = vand.u32 4294901760, %v12640_v5  ;;  %v14426_v10 = vld [vmem:[#allocation55_spill] sm:$0xff] }
 0x443   : > { %14420 = vst [vmem:[#allocation44_spill] sm:$0xff] %v12656_v49  ;;  %6619 = vmatmul.f32.gmra.mxu1 %v14421_v22  ;;  %6783 = vmatpush.msra.mxu0 %v12472_v61  ;;  %v6906_v22 = vsub.f32 %v12628_v41, %v14423_v0  ;;  %v12680_v48 = vpop.f32.mrf.mxu3  ;;  %v13973_v0 = vand.u32 4294901760, %v12668_v59  ;;  %v6766_v49 = vrot.slane %v14426_v10, 3 }
 0x444   : > { %6884 = vmatpush.msra.mxu1 %v6883_v55  ;;  %6963 = vmatpush.msra.mxu2 %v12556_v4  ;;  %v6901_v55 = vand.u32 4294901760, %v6900_v54  ;;  %v6912_v57 = vsub.f32 %v12640_v5, %v14425_v56  ;;  %v6918_v54 = vsub.f32 %v12652_v27, %v14427_v11  ;;  %v12703_v56 = vpop.f32.mrf.mxu1 }
 0x445   : > { %7017 = vmatpush.msra.mxu3 %v12511_v47  ;;  %6696 = vmatmul.f32.gmra.mxu2 %v12379_v20  ;;  %v6768_v23 = vsel %vm6765_vm8, %v6766_v49, %v6767_v31  ;;  %14428 = vst [vmem:[#allocation17_spill] sm:$0xff] %v12703_v56 }
 0x446   : > { %6785 = vmatpush.msra.mxu0 %v12495_v8  ;;  %6890 = vmatpush.msra.mxu1 %v6889_v7  ;;  %v6907_v7 = vand.u32 4294901760, %v6906_v22  ;;  %v12709_v49 = vand.u32 4294901760, %v6768_v23  ;;  %v6919_v11 = vand.u32 4294901760, %v6918_v54 }
 0x447   : > { %6966 = vmatpush.msra.mxu2 %v12571_v16  ;;  %7019 = vmatpush.msra.mxu3 %v12525_v30 }
 0x448   : > { %6741 = vmatmul.f32.gmra.mxu3 %v12379_v20  ;;  %6787 = vmatpush.msra.mxu0 %v12511_v47  ;;  %v6913_v20 = vand.u32 4294901760, %v6912_v57 }
 0x449   : > { %6896 = vmatpush.msra.mxu1 %v6895_v19  ;;  %6969 = vmatpush.msra.mxu2 %v12580_v46  ;;  %v6924_v19 = vsub.f32 %v12668_v59, %v13973_v0 }
 0x44a   : > { %7021 = vmatpush.msra.mxu3 %v12548_v36  ;;  %6789 = vmatpush.msra.mxu0 %v12525_v30  ;;  %v12713_v10 = vpop.f32.mrf.mxu2 }
 0x44b   : > { %6902 = vmatpush.msra.mxu1 %v6901_v55  ;;  %6972 = vmatpush.msra.mxu2 %v12602_v42  ;;  %v12705_v22 = vpop.f32.mrf.mxu0  ;;  %v14429_v55 = vld [vmem:[#allocation59_spill] sm:$0xff]  ;;  %v6925_v0 = vand.u32 4294901760, %v6924_v19 }
 0x44c   : > { %7023 = vmatpush.msra.mxu3 %v12561_v2  ;;  %6568 = vmatmul.f32.gmra.mxu0 %v12402_v53  ;;  %v6769_v57 = vrot.slane %v14429_v55, 3  ;;  %v6807_v53 = vsub.f32 %v6768_v23, %v12709_v49  ;;  %v12734_v23 = vpop.f32.mrf.mxu1 }
 0x44d   : > { %6791 = vmatpush.msra.mxu0 %v12548_v36  ;;  %6908 = vmatpush.msra.mxu1 %v6907_v7  ;;  %v12718_v56 = vpop.f32.mrf.mxu3  ;;  %14430 = vst [vmem:[#allocation20_spill] sm:$0xff] %v12734_v23 }
 0x44e   : > { %6975 = vmatpush.msra.mxu2 %v12614_v37  ;;  %7025 = vmatpush.msra.mxu3 %v12576_v39  ;;  %v6770_v7 = vsel %vm6765_vm8, %v6767_v31, %v6769_v57  ;;  %v6808_v54 = vand.u32 4294901760, %v6807_v53  ;;  %v12752_v23 = vand.u32 4294901760, %v6769_v57 }
 0x44f   : > { %6793 = vmatpush.msra.mxu0 %v12561_v2  ;;  %6914 = vmatpush.msra.mxu1 %v6913_v20  ;;  %v12730_v20 = vand.u32 4294901760, %v6770_v7 }
 0x450   : > { %6978 = vmatpush.msra.mxu2 %v12628_v41  ;;  %7027 = vmatpush.msra.mxu3 %v12587_v38  ;;  %v6809_v19 = vsub.f32 %v6807_v53, %v6808_v54 }
 0x451   : > { %6795 = vmatpush.msra.mxu0 %v12576_v39  ;;  %6920 = vmatpush.msra.mxu1 %v6919_v11  ;;  %v6815_v11 = vsub.f32 %v6770_v7, %v12730_v20 }
 0x452   : > { %6981 = vmatpush.msra.mxu2 %v12640_v5  ;;  %7029 = vmatpush.msra.mxu3 %v12604_v34 }
 0x453   : > { %6797 = vmatpush.msra.mxu0 %v12587_v38  ;;  %6926 = vmatpush.msra.mxu1 %v6925_v0 }
 0x454   : > { %6984 = vmatpush.msra.mxu2 %v12652_v27  ;;  %7031 = vmatpush.msra.mxu3 %v12616_v21  ;;  %v12741_v0 = vpop.f32.mrf.mxu2 }
 0x455   : > { %6928 = vmatmul.f32.vlgmr.msra.gmra.mxu1 %v12709_v49  ;;  %6799 = vmatpush.msra.mxu0 %v12604_v34  ;;  %v12736_v31 = vpop.f32.mrf.mxu0  ;;  %14431 = vst [vmem:[#allocation22_spill] sm:$0xff] %v12741_v0  ;;  %v6816_v0 = vand.u32 4294901760, %v6815_v11 }
 0x456   : > { %7133 = vmatpush.msrb.mxu1 %v12424_v60  ;;  %6987 = vmatpush.msra.mxu2 %v12668_v59  ;;  %v6810_v60 = vand.u32 4294901760, %v6809_v19 }
 0x457   : > { %7033 = vmatpush.msra.mxu3 %v12630_v29  ;;  %6990 = vmatmul.f32.vlgmr.msra.gmra.mxu2 %v6807_v53  ;;  %v12747_v55 = vpop.f32.mrf.mxu3  ;;  %v5760_v53 = vpop.f32.mrf.mxu1  ;;  %v6817_v7 = vsub.f32 %v6815_v11, %v6816_v0 }
 0x458   : > { %7135 = vmatpush.msrb.mxu1 %v12438_v45  ;;  %6801 = vmatpush.msra.mxu0 %v12616_v21  ;;  %14432 = vst [vmem:[#allocation57_spill] sm:$0xff] %v12747_v55  ;;  %v5648_v45 = vadd.f32 %v12680_v48, %v12670_v3  ;;  %v14434_v55 = vand.u32 4294901760, %v12456_v40 }
 0x459   : > { %7035 = vmatpush.msra.mxu3 %v12642_v17  ;;  %v6818_v48 = vand.u32 4294901760, %v6817_v7 }
 0x45a   : > { %7039 = vmatmul.f32.vlgmr.msra.gmra.mxu3 %v6808_v54  ;;  %7137 = vmatpush.msrb.mxu1 %v12448_v52  ;;  %v14433_v52 = vand.u32 4294901760, %v12446_v25  ;;  %v6823_v54 = vsub.f32 %v6769_v57, %v12752_v23  ;;  %v14435_v25 = vand.u32 4294901760, %v12467_v9  ;;  %v14436_v57 = vand.u32 4294901760, %v12480_v28 }
 0x45b   : > { %6803 = vmatpush.msra.mxu0 %v12630_v29  ;;  %v5652_v9 = vadd.f32 %v12718_v56, %v12713_v10  ;;  %v14438_v28 = vand.u32 4294901760, %v12520_v14  ;;  %v14440_v10 = vand.u32 4294901760, %v12556_v4  ;;  %v14443_v4 = vand.u32 4294901760, %v12602_v42 }
 0x45c   : > { %7139 = vmatpush.msrb.mxu1 %v12458_v43  ;;  %v14446_v42 = vand.u32 4294901760, %v12640_v5 }
 0x45d   : > { %6805 = vmatpush.msra.mxu0 %v12642_v17  ;;  %6932 = vmatmul.f32.gmra.mxu1 %v12730_v20 }
 0x45e   : > { %6811 = vmatmul.f32.vlgmr.msra.gmra.mxu0 %v6810_v60  ;;  %7141 = vmatpush.msrb.mxu1 %v12472_v61  ;;  %v5839_v60 = vpop.f32.mrf.mxu2 }
 0x45f   : > { %7058 = vmatpush.msrb.mxu0 %v14433_v52  ;;  %6995 = vmatmul.f32.gmra.mxu2 %v6815_v11  ;;  %v5710_v43 = vpop.f32.mrf.mxu0 }
 0x460   : > { %7143 = vmatpush.msrb.mxu1 %v12495_v8  ;;  %v5711_v19 = vadd.f32 %v5710_v43, %v5648_v45  ;;  %v6824_v8 = vand.u32 4294901760, %v6823_v54  ;;  %v14439_v45 = vand.u32 4294901760, %v12541_v15  ;;  %v14442_v15 = vand.u32 4294901760, %v12580_v46 }
 0x461   : > { %7062 = vmatpush.msrb.mxu0 %v14434_v55  ;;  %v5884_v3 = vpop.f32.mrf.mxu3  ;;  %v5766_v55 = vpop.f32.mrf.mxu1  ;;  %v14445_v46 = vand.u32 4294901760, %v12628_v41 }
 0x462   : > { %7045 = vmatmul.f32.gmra.mxu3 %v6816_v0  ;;  %7145 = vmatpush.msrb.mxu1 %v12511_v47  ;;  %v5761_v61 = vadd.f32 %v5760_v53, %v5711_v19  ;;  %v14437_v47 = vand.u32 4294901760, %v12501_v13  ;;  %v14441_v53 = vand.u32 4294901760, %v12571_v16  ;;  %v14444_v16 = vand.u32 4294901760, %v12614_v37 }
 0x463   : > { %7066 = vmatpush.msrb.mxu0 %v14435_v25  ;;  %v14447_v19 = vand.u32 4294901760, %v12652_v27  ;;  %v14450_v37 = vand.u32 4294901760, %v12668_v59  ;;  %v4818_v59 = vadd.f32 %v12259_v32, %v12249_v44 }
 0x464   : > { %7147 = vmatpush.msrb.mxu1 %v12525_v30  ;;  %v5840_v11 = vadd.f32 %v5839_v60, %v5761_v61  ;;  %v6825_v30 = vsub.f32 %v6823_v54, %v6824_v8  ;;  %v14449_v60 = vld [vmem:[#allocation70_spill] sm:$0xff] }
 0x465   : > { %7070 = vmatpush.msrb.mxu0 %v14436_v57  ;;  %6936 = vmatmul.f32.gmra.mxu1 %v12752_v23 }
 0x466   : > { %6819 = vmatmul.f32.gmra.mxu0 %v6818_v48  ;;  %7149 = vmatpush.msrb.mxu1 %v12548_v36  ;;  %v12773_v40 = vadd.f32 %v5884_v3, %v5840_v11 }
 0x467   : > { %7074 = vmatpush.msrb.mxu0 %v14437_v47  ;;  %7000 = vmatmul.f32.gmra.mxu2 %v6823_v54 }
 0x468   : > { %7151 = vmatpush.msrb.mxu1 %v12561_v2  ;;  %v5843_v13 = vpop.f32.mrf.mxu2  ;;  %v6826_v2 = vand.u32 4294901760, %v6825_v30 }
 0x469   : > { %7078 = vmatpush.msrb.mxu0 %v14438_v28 }
 0x46a   : > { %v5715_v0 = vpop.f32.mrf.mxu0  ;;  %7051 = vmatmul.f32.gmra.mxu3 %v6824_v8  ;;  %7153 = vmatpush.msrb.mxu1 %v12576_v39 }
 0x46b   : > { %v5716_v36 = vadd.f32 %v5715_v0, %v5652_v9  ;;  %7082 = vmatpush.msrb.mxu0 %v14439_v45  ;;  %v5888_v56 = vpop.f32.mrf.mxu3 }
 0x46c   : > { %7155 = vmatpush.msrb.mxu1 %v12587_v38  ;;  %v6066_v38 = vpop.f32.mrf.mxu1 }
 0x46d   : > { %v5767_v52 = vadd.f32 %v5766_v55, %v5716_v36  ;;  %7086 = vmatpush.msrb.mxu0 %v14440_v10  ;;  %v14451_v10 = vld [vmem:[#allocation60_spill] sm:$0xff] }
 0x46e   : > { %6827 = vmatmul.f32.gmra.mxu0 %v6826_v2  ;;  %7157 = vmatpush.msrb.mxu1 %v12604_v34 }
 0x46f   : > { %v5844_v14 = vadd.f32 %v5843_v13, %v5767_v52  ;;  %7090 = vmatpush.msrb.mxu0 %v14441_v53  ;;  %v14453_v53 = vld [vmem:[#allocation28_spill] sm:$0xff] }
 0x470   : > { %7159 = vmatpush.msrb.mxu1 %v12616_v21 }
 0x471   : > { %v12792_v39 = vadd.f32 %v5888_v56, %v5844_v14  ;;  %7094 = vmatpush.msrb.mxu0 %v14442_v15  ;;  %v14454_v15 = vld [vmem:[#allocation47_spill] sm:$0xff] }
 0x472   : > { %7161 = vmatpush.msrb.mxu1 %v12630_v29  ;;  %v6128_v21 = vpop.f32.mrf.mxu2 }
 0x473   : > { %7098 = vmatpush.msrb.mxu0 %v14443_v4  ;;  %v5949_v43 = vpop.f32.mrf.mxu0 }
 0x474   : > { %7163 = vmatpush.msrb.mxu1 %v12642_v17  ;;  %v6067_v34 = vadd.f32 %v6066_v38, %v5949_v43  ;;  %v14448_v17 = vld [vmem:[#allocation69_spill] sm:$0xff]  ;;  %v6070_v25 = vpop.f32.mrf.mxu1 }
 0x475   : > { %7102 = vmatpush.msrb.mxu0 %v14444_v16  ;;  %7165 = vmatmul.f32.vlgmr.msrb.gmra.mxu1 %v12709_v49  ;;  %v6177_v54 = vpop.f32.mrf.mxu3  ;;  %v4814_v61 = vadd.f32 %v14449_v60, %v14448_v17  ;;  %v7272_v60 = vld [vmem:[#allocation10 + $0xf8] sm:$0xff] }
 0x476   : > { %v6129_v7 = vadd.f32 %v6128_v21, %v6067_v34  ;;  %v14455_v34 = vld [vmem:[#allocation25_spill] sm:$0xff] }
 0x477   : > { %7106 = vmatpush.msrb.mxu0 %v14445_v46  ;;  %v4877_v41 = vadd.f32 %v12340_v26, %v4814_v61  ;;  %v4882_v26 = vadd.f32 %v12383_v35, %v4818_v59  ;;  %v12848_v61 = vand.u32 4294901760, %v7272_v60  ;;  %v7268_v59 = vld [vmem:[#allocation10 + $0xd8] sm:$0xff] }
 0x478   : > { %v6178_v29 = vadd.f32 %v6177_v54, %v6129_v7  ;;  %v14456_v7 = vld [vmem:[#allocation17_spill] sm:$0xff] }
 0x479   : > { %7110 = vmatpush.msrb.mxu0 %v14446_v42  ;;  %v4927_v27 = vadd.f32 %v12332_v18, %v4877_v41  ;;  %v4933_v18 = vadd.f32 %v12373_v24, %v4882_v26  ;;  %7497 = vmatpush.msra.mxu1 %v12848_v61 }
 0x47a   : > { %7284 = vmatpush.msrb.mxu2 %v12848_v61 }
 0x47b   : > { %7114 = vmatpush.msrb.mxu0 %v14447_v19  ;;  %v5006_v47 = vadd.f32 %v12348_v50, %v4927_v27  ;;  %v5010_v32 = vadd.f32 %v12391_v12, %v4933_v18 }
 0x47c   : > { %v6133_v5 = vpop.f32.mrf.mxu2 }
 0x47d   : > { %7118 = vmatpush.msrb.mxu0 %v14450_v37  ;;  %7169 = vmatmul.f32.gmra.mxu1 %v12730_v20  ;;  %v5957_v3 = vpop.f32.mrf.mxu0  ;;  %v5051_v28 = vadd.f32 %v12351_v58, %v5006_v47  ;;  %v5055_v35 = vadd.f32 %v12395_v63, %v5010_v32  ;;  %v12851_v37 = vsub.f32 %v7272_v60, %v12848_v61  ;;  %v7266_v32 = vld [vmem:[#allocation10 + $0xc8] sm:$0xff] }
 0x47e   : > { %7120 = vmatmul.f32.vlgmr.msrb.gmra.mxu0 %v12709_v49  ;;  %v6071_v48 = vadd.f32 %v6070_v25, %v5957_v3  ;;  %v6074_v9 = vpop.f32.mrf.mxu1 }
 0x47f   : > { %v6183_v11 = vpop.f32.mrf.mxu3  ;;  %v5104_v36 = vadd.f32 %v12474_v51, %v5051_v28  ;;  %v5112_v52 = vadd.f32 %v12535_v1, %v5055_v35  ;;  %v7334_v3 = vand.u32 4294901760, %v12851_v37  ;;  %7439 = vmatpush.msra.mxu0 %v12851_v37  ;;  %v12891_v28 = vand.u32 4294901760, %v7268_v59 }
 0x480   : > { %v6134_v8 = vadd.f32 %v6133_v5, %v6071_v48  ;;  %v7269_v5 = vld [vmem:[#allocation10 + $0xe0] sm:$0xff] }
 0x481   : > { %v5217_v44 = vadd.f32 %v12461_v6, %v5104_v36  ;;  %v5221_v56 = vadd.f32 %v14451_v10, %v5112_v52  ;;  %v7265_v52 = vld [vmem:[#allocation10 + $0xc0] sm:$0xff] }
 0x482   : > { %v6184_v57 = vadd.f32 %v6183_v11, %v6134_v8  ;;  %v7335_v8 = vsub.f32 %v12851_v37, %v7334_v3 }
 0x483   : > { %v5285_v6 = vadd.f32 %v14453_v53, %v5221_v56  ;;  %v12920_v56 = vand.u32 4294901760, %v7265_v52 }
 0x484   : > { %v7336_v47 = vand.u32 4294901760, %v7335_v8 }
 0x485   : > { %7173 = vmatmul.f32.gmra.mxu1 %v12752_v23  ;;  %v5336_v1 = vadd.f32 %v14455_v34, %v5285_v6  ;;  %v7264_v6 = vld [vmem:[#allocation10 + $0xb8] sm:$0xff] }
 0x486   : > { %7124 = vmatmul.f32.gmra.mxu0 %v12730_v20  ;;  %v6138_v55 = vpop.f32.mrf.mxu2  ;;  %v5280_v20 = vadd.f32 %v12482_v62, %v5217_v44  ;;  %7337 = vmatpush.msrb.mxu3 %v7336_v47 }
 0x487   : > { %v5965_v49 = vpop.f32.mrf.mxu0 }
 0x488   : > { %v6075_v30 = vadd.f32 %v6074_v9, %v5965_v49  ;;  %v5330_v51 = vadd.f32 %v12487_v33, %v5280_v20  ;;  %v5413_v33 = vadd.f32 %v12705_v22, %v5336_v1  ;;  %v7270_v22 = vld [vmem:[#allocation10 + $0xe8] sm:$0xff] }
 0x489   : > { %v6189_v45 = vpop.f32.mrf.mxu3  ;;  %v6303_v2 = vpop.f32.mrf.mxu1  ;;  %v12862_v41 = vand.u32 4294901760, %v7270_v22 }
 0x48a   : > { %v6139_v0 = vadd.f32 %v6138_v55, %v6075_v30  ;;  %v5458_v46 = vadd.f32 %v14456_v7, %v5413_v33  ;;  %v7267_v55 = vld [vmem:[#allocation10 + $0xd0] sm:$0xff] }
 0x48b   : > { %v12873_v27 = vsub.f32 %v7270_v22, %v12862_v41  ;;  %v7261_v22 = vld [vmem:[#allocation10 + $0xa0] sm:$0xff] }
 0x48c   : > { %v6190_v13 = vadd.f32 %v6189_v45, %v6139_v0  ;;  %v5893_v42 = vadd.f32 %v12792_v39, %v5458_v46  ;;  %v12899_v45 = vand.u32 4294901760, %v7267_v55 }
 0x48d   : > { %v13985_v9 = vand.u32 4294901760, %v12873_v27 }
 0x48e   : > { %7128 = vmatmul.f32.gmra.mxu0 %v12752_v23  ;;  %v14452_v23 = vld [vmem:[#allocation44_spill] sm:$0xff]  ;;  %v12910_v35 = vsub.f32 %v7267_v55, %v12899_v45  ;;  %v12984_v55 = vand.u32 4294901760, %v7261_v22 }
 0x48f   : > { %v5409_v14 = vadd.f32 %v14452_v23, %v5330_v51  ;;  %v7347_v18 = vsub.f32 %v12873_v27, %v13985_v9 }
 0x490   : > { %v13982_v10 = vand.u32 4294901760, %v12910_v35 }
 0x491   : > { %v5454_v4 = vadd.f32 %v14454_v15, %v5409_v14  ;;  %v7348_v44 = vand.u32 4294901760, %v7347_v18 }
 0x492   : > { %v12865_v48 = vpop.f32.mrf.mxu2  ;;  %v7365_v15 = vsub.f32 %v12910_v35, %v13982_v10  ;;  %v14462_v10 = vld [vmem:[#allocation71_spill] sm:$0xff] }
 0x493   : > { %v6258_v50 = vpop.f32.mrf.mxu0  ;;  %v5892_v62 = vadd.f32 %v12773_v40, %v5454_v4  ;;  %v7271_v40 = vld [vmem:[#allocation10 + $0xf0] sm:$0xff]  ;;  %v12939_v4 = vsub.f32 %v7265_v52, %v12920_v56 }
 0x494   : > { %v6259_v58 = vadd.f32 %v6258_v50, %v6178_v29  ;;  %v6307_v38 = vpop.f32.mrf.mxu1  ;;  %v12853_v25 = vand.u32 4294901760, %v7271_v40  ;;  %v7366_v34 = vand.u32 4294901760, %v7365_v15 }
 0x495   : > { %v12889_v30 = vpop.f32.mrf.mxu3  ;;  %v13978_v1 = vand.u32 4294901760, %v12939_v4 }
 0x496   : > { %v12832_v24 = vadd.f32 %v6303_v2, %v6259_v58  ;;  %v12859_v39 = vsub.f32 %v7271_v40, %v12853_v25  ;;  %7499 = vmatpush.msra.mxu1 %v12853_v25  ;;  %7286 = vmatpush.msrb.mxu2 %v12853_v25  ;;  %v12916_v2 = vand.u32 4294901760, %v7266_v32 }
 0x498   : > { %v13987_v11 = vand.u32 4294901760, %v12859_v39  ;;  %7442 = vmatpush.msra.mxu0 %v12859_v39  ;;  %7501 = vmatpush.msra.mxu1 %v12862_v41  ;;  %v12931_v53 = vsub.f32 %v7266_v32, %v12916_v2 }
 0x499   : > { %7288 = vmatpush.msrb.mxu2 %v12862_v41 }
 0x49a   : > { %v7341_v26 = vsub.f32 %v12859_v39, %v13987_v11  ;;  %7445 = vmatpush.msra.mxu0 %v12873_v27 }
 0x49c   : > { %v7342_v0 = vand.u32 4294901760, %v7341_v26  ;;  %v12923_v23 = vpop.f32.mrf.mxu2 }
 0x49d   : > { %v6262_v12 = vpop.f32.mrf.mxu0 }
 0x49e   : > { %v6263_v63 = vadd.f32 %v6262_v12, %v6184_v57  ;;  %v6311_v29 = vpop.f32.mrf.mxu1  ;;  %v12876_v57 = vand.u32 4294901760, %v7269_v5  ;;  %7343 = vmatpush.msrb.mxu3 %v7342_v0  ;;  %v7260_v0 = vld [vmem:[#allocation10 + $0x98] sm:$0xff] }
 0x4a0   : > { %v6308_v43 = vadd.f32 %v6307_v38, %v6263_v63  ;;  %v12885_v49 = vsub.f32 %v7269_v5, %v12876_v57  ;;  %7503 = vmatpush.msra.mxu1 %v12876_v57  ;;  %7290 = vmatpush.msrb.mxu2 %v12876_v57  ;;  %v12941_v63 = vand.u32 4294901760, %v7264_v6 }
 0x4a1   : > { %7349 = vmatpush.msrb.mxu3 %v7348_v44  ;;  %v12987_v44 = vand.u32 4294901760, %v7260_v0 }
 0x4a2   : > { %v12841_v16 = vadd.f32 %v6308_v43, %v5892_v62  ;;  %v13984_v36 = vand.u32 4294901760, %v12885_v49  ;;  %7448 = vmatpush.msra.mxu0 %v12885_v49  ;;  %7505 = vmatpush.msra.mxu1 %v12891_v28  ;;  %v13980_v62 = vand.u32 4294901760, %v12931_v53  ;;  %v7263_v43 = vld [vmem:[#allocation10 + $0xb0] sm:$0xff]  ;;  %v12949_v33 = vsub.f32 %v7264_v6, %v12941_v63 }
 0x4a3   : > { %7292 = vmatpush.msrb.mxu2 %v12891_v28  ;;  %v12958_v46 = vand.u32 4294901760, %v7263_v43  ;;  %v7259_v6 = vld [vmem:[#allocation10 + $0x90] sm:$0xff] }
 0x4a4   : > { %v7353_v50 = vsub.f32 %v12885_v49, %v13984_v36  ;;  %7507 = vmatpush.msra.mxu1 %v12899_v45  ;;  %v7371_v7 = vsub.f32 %v12931_v53, %v13980_v62  ;;  %v7254_v36 = vld [vmem:[#allocation10 + $0x70] sm:$0xff] }
 0x4a5   : > { %7294 = vmatpush.msrb.mxu2 %v12899_v45  ;;  %v12969_v40 = vsub.f32 %v7263_v43, %v12958_v46  ;;  %v13008_v43 = vand.u32 4294901760, %v7259_v6  ;;  %v13080_v11 = vand.u32 4294901760, %v7254_v36 }
 0x4a6   : > { %v7354_v51 = vand.u32 4294901760, %v7353_v50  ;;  %7509 = vmatpush.msra.mxu1 %v12916_v2  ;;  %v7372_v60 = vand.u32 4294901760, %v7371_v7  ;;  %v12991_v50 = vpop.f32.mrf.mxu2 }
 0x4a7   : > { %v6266_v21 = vpop.f32.mrf.mxu0  ;;  %7296 = vmatpush.msrb.mxu2 %v12916_v2  ;;  %v13975_v26 = vand.u32 4294901760, %v12969_v40  ;;  %14464 = vst [vmem:[#allocation51_spill] sm:$0xff] %v13080_v11 }
 0x4a8   : > { %v6267_v54 = vadd.f32 %v6266_v21, %v6190_v13  ;;  %v12902_v13 = vsub.f32 %v7268_v59, %v12891_v28  ;;  %7355 = vmatpush.msrb.mxu3 %v7354_v51  ;;  %7511 = vmatpush.msra.mxu1 %v12920_v56  ;;  %v12952_v21 = vpop.f32.mrf.mxu3 }
 0x4a9   : > { %7298 = vmatpush.msrb.mxu2 %v12920_v56  ;;  %v7389_v51 = vsub.f32 %v12969_v40, %v13975_v26 }
 0x4aa   : > { %v6312_v19 = vadd.f32 %v6311_v29, %v6267_v54  ;;  %v13983_v58 = vand.u32 4294901760, %v12902_v13  ;;  %7451 = vmatpush.msra.mxu0 %v12902_v13  ;;  %v7262_v54 = vld [vmem:[#allocation10 + $0xa8] sm:$0xff]  ;;  %v7377_v29 = vsub.f32 %v12939_v4, %v13978_v1  ;;  %7513 = vmatpush.msra.mxu1 %v12941_v63 }
 0x4ab   : > { %7300 = vmatpush.msrb.mxu2 %v12941_v63 }
 0x4ac   : > { %v12846_v17 = vadd.f32 %v6312_v19, %v5893_v42  ;;  %v12912_v20 = vpop.f32.mrf.mxu1  ;;  %v7359_v12 = vsub.f32 %v12902_v13, %v13983_v58  ;;  %7454 = vmatpush.msra.mxu0 %v12910_v35  ;;  %v13976_v42 = vand.u32 4294901760, %v12949_v33  ;;  %v12964_v19 = vand.u32 4294901760, %v7262_v54  ;;  %7515 = vmatpush.msra.mxu1 %v12958_v46 }
 0x4ad   : > { %v7378_v5 = vand.u32 4294901760, %v7377_v29  ;;  %7302 = vmatpush.msrb.mxu2 %v12958_v46 }
 0x4ae   : > { %14457 = vst [vmem:[#allocation48_spill] sm:$0xff] %v12846_v17  ;;  %v7360_v38 = vand.u32 4294901760, %v7359_v12  ;;  %7457 = vmatpush.msra.mxu0 %v12931_v53  ;;  %v7383_v8 = vsub.f32 %v12949_v33, %v13976_v42  ;;  %v12976_v59 = vsub.f32 %v7262_v54, %v12964_v19  ;;  %7517 = vmatpush.msra.mxu1 %v12964_v19  ;;  %v7258_v54 = vld [vmem:[#allocation10 + $0x88] sm:$0xff]  ;;  %v14465_v17 = vand.u32 4294901760, %v12859_v39 }
 0x4af   : > { %7304 = vmatpush.msrb.mxu2 %v12964_v19  ;;  %v12999_v12 = vsub.f32 %v7261_v22, %v12984_v55  ;;  %v13016_v22 = vsub.f32 %v7259_v6, %v13008_v43 }
 0x4b0   : > { %7361 = vmatpush.msrb.mxu3 %v7360_v38  ;;  %7460 = vmatpush.msra.mxu0 %v12939_v4  ;;  %v7384_v18 = vand.u32 4294901760, %v7383_v8  ;;  %v13974_v32 = vand.u32 4294901760, %v12976_v59  ;;  %v13006_v38 = vsub.f32 %v7260_v0, %v12987_v44  ;;  %v13026_v0 = vand.u32 4294901760, %v7258_v54 }
 0x4b1   : > { %7519 = vmatpush.msra.mxu1 %v12984_v55  ;;  %7306 = vmatpush.msrb.mxu2 %v12984_v55  ;;  %v13977_v7 = vand.u32 4294901760, %v12999_v12  ;;  %v13981_v26 = vand.u32 4294901760, %v13016_v22 }
 0x4b2   : > { %7367 = vmatpush.msrb.mxu3 %v7366_v34  ;;  %7463 = vmatpush.msra.mxu0 %v12949_v33  ;;  %v7395_v15 = vsub.f32 %v12976_v59, %v13974_v32  ;;  %v7390_v34 = vand.u32 4294901760, %v7389_v51  ;;  %v14458_v51 = vld [vmem:[#allocation65_spill] sm:$0xff] }
 0x4b3   : > { %7521 = vmatpush.msra.mxu1 %v12987_v44  ;;  %7308 = vmatpush.msrb.mxu2 %v12987_v44  ;;  %v7401_v8 = vsub.f32 %v12999_v12, %v13977_v7  ;;  %v13039_v7 = vsub.f32 %v7258_v54, %v13026_v0 }
 0x4b4   : > { %7373 = vmatpush.msrb.mxu3 %v7372_v60  ;;  %7466 = vmatpush.msra.mxu0 %v12969_v40  ;;  %v7396_v29 = vand.u32 4294901760, %v7395_v15  ;;  %v13979_v60 = vand.u32 4294901760, %v13006_v38  ;;  %v14459_v15 = vld [vmem:[#allocation68_spill] sm:$0xff] }
 0x4b5   : > { %v12980_v47 = vpop.f32.mrf.mxu1  ;;  %v4810_v6 = vadd.f32 %v14459_v15, %v14458_v51  ;;  %7523 = vmatpush.msra.mxu1 %v13008_v43  ;;  %7310 = vmatpush.msrb.mxu2 %v13008_v43  ;;  %v14460_v51 = vld [vmem:[#allocation72_spill] sm:$0xff] }
 0x4b6   : > { %v12925_v14 = vpop.f32.mrf.mxu0  ;;  %7379 = vmatpush.msrb.mxu3 %v7378_v5  ;;  %7469 = vmatpush.msra.mxu0 %v12976_v59  ;;  %v13020_v5 = vpop.f32.mrf.mxu3  ;;  %v7407_v32 = vsub.f32 %v13006_v38, %v13979_v60  ;;  %v7413_v60 = vsub.f32 %v13016_v22, %v13981_v26 }
 0x4b7   : > { %v4872_v15 = vadd.f32 %v14460_v51, %v4810_v6  ;;  %7525 = vmatpush.msra.mxu1 %v13026_v0  ;;  %7312 = vmatpush.msrb.mxu2 %v13026_v0  ;;  %v7255_v51 = vld [vmem:[#allocation10 + $0x78] sm:$0xff] }
 0x4b8   : > { %7385 = vmatpush.msrb.mxu3 %v7384_v18  ;;  %7472 = vmatpush.msra.mxu0 %v12999_v12  ;;  %v7257_v18 = vld [vmem:[#allocation10 + $0x80] sm:$0xff]  ;;  %v7408_v1 = vand.u32 4294901760, %v7407_v32  ;;  %v7414_v32 = vand.u32 4294901760, %v7413_v60 }
 0x4b9   : > { %v13034_v42 = vand.u32 4294901760, %v7257_v18  ;;  %v4921_v60 = vadd.f32 %v14462_v10, %v4872_v15  ;;  %v7253_v15 = vld [vmem:[#allocation10 + $0x68] sm:$0xff] }
 0x4ba   : > { %7391 = vmatpush.msrb.mxu3 %v7390_v34  ;;  %7475 = vmatpush.msra.mxu0 %v13006_v38  ;;  %v7402_v34 = vand.u32 4294901760, %v7401_v8  ;;  %v13986_v8 = vand.u32 4294901760, %v13039_v7 }
 0x4bb   : > { %v13047_v62 = vsub.f32 %v7257_v18, %v13034_v42  ;;  %7527 = vmatpush.msra.mxu1 %v13034_v42  ;;  %7314 = vmatpush.msrb.mxu2 %v13034_v42 }
 0x4bc   : > { %7397 = vmatpush.msrb.mxu3 %v7396_v29  ;;  %7478 = vmatpush.msra.mxu0 %v13016_v22  ;;  %v13051_v29 = vpop.f32.mrf.mxu2  ;;  %v7419_v26 = vsub.f32 %v13039_v7, %v13986_v8 }
 0x4bd   : > { %v13988_v6 = vand.u32 4294901760, %v13047_v62  ;;  %7544 = vmatpush.msra.mxu2 %v7334_v3  ;;  %v13086_v3 = vand.u32 4294901760, %v7253_v15 }
 0x4be   : > { %7403 = vmatpush.msrb.mxu3 %v7402_v34  ;;  %7481 = vmatpush.msra.mxu0 %v13039_v7  ;;  %v13066_v34 = vand.u32 4294901760, %v7255_v51  ;;  %v13074_v9 = vpop.f32.mrf.mxu3 }
 0x4bf   : > { %v12993_v52 = vpop.f32.mrf.mxu0  ;;  %v7425_v58 = vsub.f32 %v13047_v62, %v13988_v6  ;;  %7548 = vmatpush.msra.mxu2 %v14465_v17  ;;  %14466 = vst [vmem:[#allocation34_spill] sm:$0xff] %v13086_v3  ;;  %v7252_v6 = vld [vmem:[#allocation10 + $0x60] sm:$0xff] }
 0x4c0   : > { %v13053_v54 = vpop.f32.mrf.mxu1  ;;  %7409 = vmatpush.msrb.mxu3 %v7408_v1  ;;  %7484 = vmatpush.msra.mxu0 %v13047_v62  ;;  %14461 = vst [vmem:[#allocation18_spill] sm:$0xff] %v13066_v34  ;;  %v7420_v1 = vand.u32 4294901760, %v7419_v26  ;;  %v13078_v8 = vsub.f32 %v7255_v51, %v13066_v34  ;;  %v13089_v26 = vsub.f32 %v7254_v36, %v13080_v11 }
 0x4c1   : > { %v7426_v10 = vand.u32 4294901760, %v7425_v58  ;;  %v13104_v36 = vsub.f32 %v7253_v15, %v13086_v3 }
 0x4c2   : > { %7415 = vmatpush.msrb.mxu3 %v7414_v32  ;;  %7663 = vmatpush.msrb.mxu0 %v13066_v34  ;;  %14463 = vst [vmem:[#allocation63_spill] sm:$0xff] %v13078_v8  ;;  %v13991_v37 = vand.u32 4294901760, %v13078_v8  ;;  %v14468_v32 = vld [vmem:[#allocation73_spill] sm:$0xff]  ;;  %v14469_v34 = vand.u32 4294901760, %v12873_v27  ;;  %v13998_v39 = vand.u32 4294901760, %v13089_v26  ;;  %v7251_v27 = vld [vmem:[#allocation10 + $0x58] sm:$0xff] }
 0x4c3   : > { %14467 = vst [vmem:[#allocation64_spill] sm:$0xff] %v13089_v26  ;;  %v5002_v51 = vadd.f32 %v14468_v32, %v4921_v60  ;;  %v14001_v15 = vand.u32 4294901760, %v13104_v36 }
 0x4c4   : > { %7421 = vmatpush.msrb.mxu3 %v7420_v1  ;;  %7665 = vmatpush.msrb.mxu0 %v13080_v11  ;;  %v7714_v17 = vsub.f32 %v13078_v8, %v13991_v37  ;;  %v13101_v1 = vand.u32 4294901760, %v7252_v6  ;;  %v13109_v60 = vpop.f32.mrf.mxu2  ;;  %v7720_v37 = vsub.f32 %v13089_v26, %v13998_v39 }
 0x4c5   : > { %7552 = vmatpush.msra.mxu2 %v14469_v34  ;;  %v14470_v34 = vand.u32 4294901760, %v12885_v49  ;;  %v7726_v39 = vsub.f32 %v13104_v36, %v14001_v15 }
 0x4c6   : > { %7427 = vmatpush.msrb.mxu3 %v7426_v10  ;;  %7667 = vmatpush.msrb.mxu0 %v13086_v3  ;;  %v7715_v32 = vand.u32 4294901760, %v7714_v17  ;;  %v13118_v3 = vand.u32 4294901760, %v7251_v27  ;;  %v13123_v49 = vsub.f32 %v7252_v6, %v13101_v1  ;;  %v14474_v17 = vand.u32 4294901760, %v12902_v13 }
 0x4c7   : > { %7556 = vmatpush.msra.mxu2 %v14470_v34  ;;  %v7250_v34 = vld [vmem:[#allocation10 + $0x50] sm:$0xff]  ;;  %v7721_v11 = vand.u32 4294901760, %v7720_v37  ;;  %v14478_v37 = vand.u32 4294901760, %v12910_v35  ;;  %v7248_v35 = vld [vmem:[#allocation10 + $0x40] sm:$0xff] }
 0x4c8   : > { %7615 = vmatpush.msra.mxu3 %v12848_v61  ;;  %7669 = vmatpush.msrb.mxu0 %v13101_v1  ;;  %14471 = vst [vmem:[#allocation49_spill] sm:$0xff] %v13118_v3  ;;  %v14472_v61 = vld [vmem:[#allocation74_spill] sm:$0xff]  ;;  %v13131_v26 = vand.u32 4294901760, %v7250_v34  ;;  %v14002_v13 = vand.u32 4294901760, %v13123_v49 }
 0x4c9   : > { %v13060_v18 = vpop.f32.mrf.mxu0  ;;  %v5047_v8 = vadd.f32 %v14472_v61, %v5002_v51  ;;  %14473 = vst [vmem:[#allocation36_spill] sm:$0xff] %v13123_v49  ;;  %7560 = vmatpush.msra.mxu2 %v14474_v17  ;;  %7716 = vmatpush.msrb.mxu1 %v7715_v32  ;;  %v13134_v51 = vsub.f32 %v7251_v27, %v13118_v3  ;;  %v7249_v61 = vld [vmem:[#allocation10 + $0x48] sm:$0xff]  ;;  %v13141_v32 = vpop.f32.mrf.mxu3  ;;  %v7727_v17 = vand.u32 4294901760, %v7726_v39 }
 0x4ca   : > { %7617 = vmatpush.msra.mxu3 %v12853_v25  ;;  %7671 = vmatpush.msrb.mxu0 %v13118_v3  ;;  %14475 = vst [vmem:[#allocation50_spill] sm:$0xff] %v13131_v26  ;;  %v14477_v25 = vld [vmem:[#allocation54_spill] sm:$0xff]  ;;  %v13145_v27 = vand.u32 4294901760, %v7249_v61 }
 0x4cb   : > { %14476 = vst [vmem:[#allocation26_spill] sm:$0xff] %v13134_v51  ;;  %v5096_v6 = vadd.f32 %v14477_v25, %v5047_v8  ;;  %7564 = vmatpush.msra.mxu2 %v14478_v37  ;;  %7722 = vmatpush.msrb.mxu1 %v7721_v11  ;;  %v14007_v15 = vand.u32 4294901760, %v13134_v51  ;;  %v13148_v8 = vsub.f32 %v7250_v34, %v13131_v26  ;;  %v14479_v25 = vand.u32 4294901760, %v12931_v53  ;;  %v14482_v37 = vld [vmem:[#allocation75_spill] sm:$0xff] }
 0x4cc   : > { %7619 = vmatpush.msra.mxu3 %v12862_v41  ;;  %7673 = vmatpush.msrb.mxu0 %v13131_v26  ;;  %v7732_v41 = vsub.f32 %v13123_v49, %v14002_v13  ;;  %v13161_v34 = vand.u32 4294901760, %v7248_v35  ;;  %v14483_v26 = vld [vmem:[#allocation33_spill] sm:$0xff]  ;;  %v14484_v49 = vld [vmem:[#allocation58_spill] sm:$0xff] }
 0x4cd   : > { %7568 = vmatpush.msra.mxu2 %v14479_v25  ;;  %7728 = vmatpush.msrb.mxu1 %v7727_v17  ;;  %v7738_v11 = vsub.f32 %v13134_v51, %v14007_v15  ;;  %v5213_v13 = vadd.f32 %v14482_v37, %v5096_v6  ;;  %v5644_v53 = vadd.f32 %v14484_v49, %v14483_v26  ;;  %v7247_v25 = vld [vmem:[#allocation10 + $0x38] sm:$0xff]  ;;  %v14485_v15 = vand.u32 4294901760, %v12939_v4  ;;  %v7246_v26 = vld [vmem:[#allocation10 + $0x30] sm:$0xff] }
 0x4ce   : > { %7621 = vmatpush.msra.mxu3 %v12876_v57  ;;  %7675 = vmatpush.msrb.mxu0 %v13145_v27  ;;  %14480 = vst [vmem:[#allocation41_spill] sm:$0xff] %v13161_v34  ;;  %v13164_v57 = vsub.f32 %v7249_v61, %v13145_v27  ;;  %v7733_v17 = vand.u32 4294901760, %v7732_v41  ;;  %v14486_v3 = vand.u32 4294901760, %v13148_v8  ;;  %v13179_v37 = vand.u32 4294901760, %v7247_v25 }
 0x4cf   : > { %7572 = vmatpush.msra.mxu2 %v14485_v15  ;;  %v7739_v39 = vand.u32 4294901760, %v7738_v11  ;;  %v13184_v4 = vsub.f32 %v7248_v35, %v13161_v34  ;;  %v13186_v15 = vpop.f32.mrf.mxu2  ;;  %v13194_v11 = vand.u32 4294901760, %v7246_v26 }
 0x4d0   : > { %14481 = vst [vmem:[#allocation27_spill] sm:$0xff] %v13164_v57  ;;  %7623 = vmatpush.msra.mxu3 %v12891_v28  ;;  %v7744_v61 = vsub.f32 %v13148_v8, %v14486_v3  ;;  %7677 = vmatpush.msrb.mxu0 %v13161_v34  ;;  %v14012_v6 = vand.u32 4294901760, %v13164_v57  ;;  %v5706_v28 = vadd.f32 %v12736_v31, %v5644_v53  ;;  %v14487_v31 = vand.u32 4294901760, %v12949_v33 }
 0x4d1   : > { %7734 = vmatpush.msrb.mxu1 %v7733_v17  ;;  %v14019_v35 = vand.u32 4294901760, %v13184_v4  ;;  %v13203_v53 = vsub.f32 %v7247_v25, %v13179_v37  ;;  %v7245_v17 = vld [vmem:[#allocation10 + $0x28] sm:$0xff]  ;;  %v13210_v33 = vsub.f32 %v7246_v26, %v13194_v11 }
 0x4d2   : > { %v13094_v58 = vpop.f32.mrf.mxu1  ;;  %7625 = vmatpush.msra.mxu3 %v12899_v45  ;;  %v7745_v3 = vand.u32 4294901760, %v7744_v61  ;;  %v7750_v41 = vsub.f32 %v13164_v57, %v14012_v6  ;;  %7679 = vmatpush.msrb.mxu0 %v13179_v37  ;;  %v6498_v45 = vadd.f32 %v12889_v30, %v12865_v48  ;;  %v14488_v61 = vld [vmem:[#allocation76_spill] sm:$0xff]  ;;  %v13207_v34 = vand.u32 4294901760, %v7245_v17 }
 0x4d3   : > { %7576 = vmatpush.msra.mxu2 %v14487_v31  ;;  %7740 = vmatpush.msrb.mxu1 %v7739_v39  ;;  %v5275_v6 = vadd.f32 %v14488_v61, %v5213_v13  ;;  %14489 = vst [vmem:[#allocation52_spill] sm:$0xff] %v13210_v33  ;;  %v14490_v48 = vand.u32 4294901760, %v12969_v40  ;;  %v14491_v30 = vld [vmem:[#allocation20_spill] sm:$0xff]  ;;  %v7756_v13 = vsub.f32 %v13184_v4, %v14019_v35  ;;  %v14017_v25 = vand.u32 4294901760, %v13203_v53  ;;  %v13221_v31 = vpop.f32.mrf.mxu3  ;;  %v7242_v35 = vld [vmem:[#allocation10 + $0x10] sm:$0xff] }
 0x4d4   : > { %7627 = vmatpush.msra.mxu3 %v12916_v2  ;;  %v7751_v57 = vand.u32 4294901760, %v7750_v41  ;;  %7681 = vmatpush.msrb.mxu0 %v13194_v11  ;;  %v5755_v2 = vadd.f32 %v14491_v30, %v5706_v28  ;;  %v6560_v39 = vadd.f32 %v12925_v14, %v6498_v45  ;;  %v7244_v41 = vld [vmem:[#allocation10 + $0x20] sm:$0xff]  ;;  %v14018_v40 = vand.u32 4294901760, %v13210_v33  ;;  %v7243_v45 = vld [vmem:[#allocation10 + $0x18] sm:$0xff] }
 0x4d5   : > { %7580 = vmatpush.msra.mxu2 %v14490_v48  ;;  %7746 = vmatpush.msrb.mxu1 %v7745_v3  ;;  %v13225_v26 = vand.u32 4294901760, %v7244_v41  ;;  %v13228_v14 = vsub.f32 %v7245_v17, %v13207_v34  ;;  %v7757_v28 = vand.u32 4294901760, %v7756_v13  ;;  %v7762_v3 = vsub.f32 %v13203_v53, %v14017_v25  ;;  %v14496_v13 = vld [vmem:[#allocation22_spill] sm:$0xff] }
 0x4d6   : > { %7629 = vmatpush.msra.mxu3 %v12920_v56  ;;  %7683 = vmatpush.msrb.mxu0 %v13207_v34  ;;  %v14493_v56 = vand.u32 4294901760, %v12976_v59  ;;  %v7768_v61 = vsub.f32 %v13210_v33, %v14018_v40  ;;  %v13241_v48 = vand.u32 4294901760, %v7243_v45  ;;  %v6609_v25 = vadd.f32 %v12912_v20, %v6560_v39 }
 0x4d7   : > { %14492 = vst [vmem:[#allocation39_spill] sm:$0xff] %v13225_v26  ;;  %7752 = vmatpush.msrb.mxu1 %v7751_v57  ;;  %v13244_v59 = vsub.f32 %v7244_v41, %v13225_v26  ;;  %v14495_v57 = vld [vmem:[#allocation35_spill] sm:$0xff]  ;;  %v7763_v40 = vand.u32 4294901760, %v7762_v3  ;;  %v6502_v3 = vadd.f32 %v12952_v21, %v12923_v23 }
 0x4d8   : > { %7584 = vmatpush.msra.mxu2 %v14493_v56  ;;  %7631 = vmatpush.msra.mxu3 %v12941_v63  ;;  %v14494_v63 = vand.u32 4294901760, %v12999_v12  ;;  %v5324_v30 = vadd.f32 %v14495_v57, %v5275_v6  ;;  %v5836_v56 = vadd.f32 %v14496_v13, %v5755_v2  ;;  %v14497_v12 = vand.u32 4294901760, %v13228_v14  ;;  %v14499_v2 = vld [vmem:[#allocation19_spill] sm:$0xff] }
 0x4d9   : > { %7685 = vmatpush.msrb.mxu0 %v13225_v26  ;;  %7758 = vmatpush.msrb.mxu1 %v7757_v28  ;;  %v7769_v26 = vand.u32 4294901760, %v7768_v61  ;;  %v7779_v20 = vand.u32 4294901760, %v13244_v59  ;;  %v7241_v28 = vld [vmem:[#allocation10 + $0x8] sm:$0xff]  ;;  %v6690_v21 = vadd.f32 %v13051_v29, %v6609_v25  ;;  %v6565_v13 = vadd.f32 %v12993_v52, %v6502_v3 }
 0x4da   : > { %v13172_v51 = vpop.f32.mrf.mxu1  ;;  %7588 = vmatpush.msra.mxu2 %v14494_v63  ;;  %7633 = vmatpush.msra.mxu3 %v12958_v46  ;;  %v6991_v33 = vpop.f32.mrf.mxu2  ;;  %v7774_v6 = vsub.f32 %v13228_v14, %v14497_v12  ;;  %v14498_v46 = vand.u32 4294901760, %v13006_v38  ;;  %v5405_v39 = vadd.f32 %v14499_v2, %v5324_v30  ;;  %v13277_v57 = vand.u32 4294901760, %v7241_v28 }
 0x4db   : > { %v13111_v10 = vpop.f32.mrf.mxu0  ;;  %7687 = vmatpush.msrb.mxu0 %v13241_v48  ;;  %7764 = vmatpush.msrb.mxu1 %v7763_v40  ;;  %v7780_v38 = vsub.f32 %v13244_v59, %v7779_v20  ;;  %v14501_v40 = vld [vmem:[#allocation57_spill] sm:$0xff]  ;;  %v6615_v3 = vadd.f32 %v12980_v47, %v6565_v13 }
 0x4dc   : > { %v6930_v17 = vadd.f32 %v13094_v58, %v13111_v10  ;;  %7592 = vmatpush.msra.mxu2 %v14498_v46  ;;  %7635 = vmatpush.msra.mxu3 %v12964_v19  ;;  %v13265_v58 = vand.u32 4294901760, %v7242_v35  ;;  %v13268_v10 = vsub.f32 %v7243_v45, %v13241_v48  ;;  %v7775_v63 = vand.u32 4294901760, %v7774_v6 }
 0x4dd   : > { %v14500_v19 = vand.u32 4294901760, %v13016_v22  ;;  %v5881_v30 = vadd.f32 %v14501_v40, %v5836_v56  ;;  %7770 = vmatpush.msrb.mxu1 %v7769_v26  ;;  %v7040_v6 = vpop.f32.mrf.mxu3  ;;  %v7781_v46 = vand.u32 4294901760, %v7780_v38  ;;  %v7240_v22 = vld [vmem:[#allocation10] sm:$0xff]  ;;  %v14502_v56 = vand.u32 4294901760, %v13039_v7 }
 0x4de   : > { %7637 = vmatpush.msra.mxu3 %v12984_v55  ;;  %v7785_v45 = vand.u32 4294901760, %v13268_v10  ;;  %v13285_v23 = vsub.f32 %v7242_v35, %v13265_v58  ;;  %v6992_v12 = vadd.f32 %v6991_v33, %v6930_v17  ;;  %7689 = vmatpush.msrb.mxu0 %v13265_v58  ;;  %v13297_v35 = vand.u32 4294901760, %v7240_v22  ;;  %v14503_v33 = vld [vmem:[#allocation61_spill] sm:$0xff] }
 0x4df   : > { %7596 = vmatpush.msra.mxu2 %v14500_v19  ;;  %7776 = vmatpush.msrb.mxu1 %v7775_v63  ;;  %v13300_v52 = vsub.f32 %v7241_v28, %v13277_v57  ;;  %v5450_v25 = vadd.f32 %v14503_v33, %v5405_v39  ;;  %v14504_v7 = vand.u32 4294901760, %v13047_v62  ;;  %v6735_v39 = vadd.f32 %v13074_v9, %v6690_v21 }
 0x4e0   : > { %7639 = vmatpush.msra.mxu3 %v12987_v44  ;;  %v7786_v55 = vsub.f32 %v13268_v10, %v7785_v45  ;;  %v7791_v29 = vand.u32 4294901760, %v13285_v23  ;;  %7691 = vmatpush.msrb.mxu0 %v13277_v57  ;;  %v13312_v2 = vsub.f32 %v7240_v22, %v13297_v35  ;;  %v7041_v62 = vadd.f32 %v7040_v6, %v6992_v12 }
 0x4e1   : > { %7600 = vmatpush.msra.mxu2 %v14502_v56  ;;  %7782 = vmatpush.msrb.mxu1 %v7781_v46  ;;  %v7797_v17 = vand.u32 4294901760, %v13300_v52  ;;  %v5891_v28 = vadd.f32 %v5881_v30, %v5450_v25  ;;  %v6506_v9 = vadd.f32 %v13020_v5, %v12991_v50  ;;  %v6694_v6 = vadd.f32 %v13109_v60, %v6615_v3  ;;  %v8750_v5 = vld [vmem:[#allocation11 + $0x2] ss:$0 sm:$0xff] }
 0x4e2   : > { %v13254_v41 = vpop.f32.mrf.mxu1  ;;  %7641 = vmatpush.msra.mxu3 %v13008_v43  ;;  %v7787_v44 = vand.u32 4294901760, %v7786_v55  ;;  %v7792_v26 = vsub.f32 %v13285_v23, %v7791_v29  ;;  %7693 = vmatpush.msrb.mxu0 %v13297_v35  ;;  %v7803_v40 = vand.u32 4294901760, %v13312_v2  ;;  %v6996_v30 = vpop.f32.mrf.mxu2  ;;  %v8751_v55 = vld [vmem:[#allocation11 + $0x3] ss:$0 sm:$0xff] }
 0x4e3   : > { %v13188_v49 = vpop.f32.mrf.mxu0  ;;  %7604 = vmatpush.msra.mxu2 %v14504_v7  ;;  %v7798_v19 = vsub.f32 %v13300_v52, %v7797_v17  ;;  %v6314_v47 = vadd.f32 %v12832_v24, %v5891_v28  ;;  %v6570_v12 = vadd.f32 %v13060_v18, %v6506_v9  ;;  %v6739_v33 = vadd.f32 %v13141_v32, %v6694_v6  ;;  %v14505_v28 = vld [vmem:[#allocation38_spill] sm:$0xff]  ;;  %v14508_v6 = vld [vmem:[#allocation48_spill] sm:$0xff] }
 0x4e4   : > { %v6934_v43 = vadd.f32 %v13172_v51, %v13188_v49  ;;  %7643 = vmatpush.msra.mxu3 %v13026_v0  ;;  %7788 = vmatpush.msrb.mxu1 %v7787_v44  ;;  %v7793_v38 = vand.u32 4294901760, %v7792_v26  ;;  %v7804_v51 = vsub.f32 %v13312_v2, %v7803_v40 }
 0x4e5   : > { %v7799_v0 = vand.u32 4294901760, %v7798_v19  ;;  %v6745_v49 = vadd.f32 %v6735_v39, %v6314_v47  ;;  %v7046_v22 = vpop.f32.mrf.mxu3  ;;  %v7208_v39 = vadd.s32 4294967295, %v14505_v28 }
 0x4e6   : > { %7645 = vmatpush.msra.mxu3 %v13034_v42  ;;  %7794 = vmatpush.msrb.mxu1 %v7793_v38  ;;  %v6997_v46 = vadd.f32 %v6996_v30, %v6934_v43  ;;  %v7805_v24 = vand.u32 4294901760, %v7804_v51  ;;  %v6621_v42 = vadd.f32 %v13053_v54, %v6570_v12  ;;  %v6746_v43 = vadd.f32 %v6739_v33, %v12841_v16 }
 0x4e7   : > { %vm7211_vm9 = vcmp.ge.s32.totalorder %v7208_v39, 0  ;;  %v14510_v39 = vld [vmem:[#allocation56_spill] sm:$0xff] }
 0x4e8   : > { %7800 = vmatpush.msrb.mxu1 %v7799_v0  ;;  %v7047_v25 = vadd.f32 %v7046_v22, %v6997_v46  ;;  %v14507_v0 = vmov 0.0   ;;  %v9006_v46 = vmov 1.0   ;;  %v14509_v22 = vld [vmem:[#allocation55_spill] sm:$0xff] }
 0x4e9   : > { %v8632_v51 = vsel %vm7211_vm9, 1.0, %v14507_v0 }
 0x4ea   : > { %7806 = vmatpush.msrb.mxu1 %v7805_v24 }
 0x4eb   : > { %v13272_v61 = vpop.f32.mrf.mxu0 }
 0x4ec   : > { %v6938_v7 = vadd.f32 %v13254_v41, %v13272_v61 }
 0x4ed   : > { %v7052_v41 = vpop.f32.mrf.mxu3 }
 0x4f2   : > { %v7166_v63 = vpop.f32.mrf.mxu1 }
 0x4fa   : > { %v7170_v44 = vpop.f32.mrf.mxu1 }
 0x4fb   : > { %v7121_v21 = vpop.f32.mrf.mxu0 }
 0x4fc   : > { %v7122_v13 = vadd.f32 %v7121_v21, %v7041_v62  ;;  %v6698_v62 = vadd.f32 %v13186_v15, %v6621_v42  ;;  %v14506_v21 = vld [vmem:[#allocation40_spill] sm:$0xff]  ;;  %v7229_v42 = vrot.slane %v8632_v51, 6  ;;  %v14511_v51 = vld [vmem:[#allocation59_spill] sm:$0xff] }
 0x4fe   : > { %v7167_v50 = vadd.f32 %v7166_v63, %v7122_v13  ;;  %v7001_v63 = vpop.f32.mrf.mxu2  ;;  %v6743_v9 = vadd.f32 %v13221_v31, %v6698_v62  ;;  %v7210_v13 = vadd.s32 4294967295, %v14506_v21 }
 0x4ff   : > { %v7002_v38 = vadd.f32 %v7001_v63, %v6938_v7 }
 0x500   : > { %v7177_v56 = vadd.f32 %v7167_v50, %v6745_v49  ;;  %v6747_v16 = vadd.f32 %v6743_v9, %v14508_v6  ;;  %v7230_v50 = vrot.slane %v9006_v46, 6  ;;  %vm7216_vm10 = vcmp.lt.s32.totalorder %v7210_v13, 16  ;;  %v14512_v6 = vld [vmem:[#allocation18_spill] sm:$0xff]  ;;  %v14513_v46 = vld [vmem:[#allocation51_spill] sm:$0xff] }
 0x501   : > { %v7053_v61 = vadd.f32 %v7052_v41, %v7002_v38  ;;  %v8633_v28 = vsel %vm7216_vm10, 1.0, %v14507_v0 }
 0x502   : > { %v7181_v18 = vmul.f32 %v8750_v5, %v7177_v56  ;;  %v7174_v24 = vpop.f32.mrf.mxu1 }
 0x503   : > { %v7125_v60 = vpop.f32.mrf.mxu0 }
 0x504   : > { %v7185_v26 = vadd.f32 %v8751_v55, %v7181_v18  ;;  %v7126_v3 = vadd.f32 %v7125_v60, %v7047_v25  ;;  %v7231_v18 = vsel %vm7194_vm11, %v7229_v42, %v7230_v50 }
 0x506   : > { %v7188_v54 = vmax.f32 %v7185_v26, 0.0  ;;  %v7171_v19 = vadd.f32 %v7170_v44, %v7126_v3 }
 0x508   : > { %v7178_v32 = vadd.f32 %v7171_v19, %v6746_v43  ;;  %v7195_v47 = vrot.slane %v7188_v54, 6  ;;  %v7232_v43 = vrot.slane %v8633_v28, 6  ;;  %v14519_v28 = vand.u32 4294901760, %v13104_v36 }
 0x50a   : > { %v7182_v30 = vmul.f32 %v8750_v5, %v7178_v32  ;;  %v7203_v56 = vadd.f32 %v7195_v47, %v14509_v22  ;;  %v7233_v13 = vsel %vm7194_vm11, %v7230_v50, %v7232_v43  ;;  %v14521_v43 = vld [vmem:[#allocation36_spill] sm:$0xff] }
 0x50b   : > { %v7129_v49 = vpop.f32.mrf.mxu0 }
 0x50c   : > { %v7186_v15 = vadd.f32 %v8751_v55, %v7182_v30  ;;  %v7130_v12 = vadd.f32 %v7129_v49, %v7053_v61  ;;  %v7237_v44 = vmul.f32 %v7229_v42, %v7203_v56 }
 0x50e   : > { %v7189_v31 = vmax.f32 %v7186_v15, 0.0  ;;  %v7175_v33 = vadd.f32 %v7174_v24, %v7130_v12  ;;  %v7655_v38 = vrot.slane %v7237_v44, 2  ;;  %v7276_v19 = vrot.slane %v7237_v44, 3  ;;  %v14514_v24 = vld [vmem:[#allocation63_spill] sm:$0xff] }
 0x50f   : > { %v8052_v41 = vrot.slane %v7237_v44, 4  ;;  %v14515_v22 = vand.u32 4294901760, %v14514_v24 }
 0x510   : > { %v7196_v25 = vrot.slane %v7189_v31, 6  ;;  %v7179_v7 = vadd.f32 %v7175_v33, %v6747_v16  ;;  %v14516_v33 = vld [vmem:[#allocation34_spill] sm:$0xff] }
 0x512   : > { %v7197_v60 = vsel %vm7194_vm11, %v7195_v47, %v7196_v25  ;;  %v7183_v26 = vmul.f32 %v8750_v5, %v7179_v7 }
 0x513   : > { %v7204_v3 = vadd.f32 %v7197_v60, %v14510_v39 }
 0x514   : > { %v7187_v62 = vadd.f32 %v8751_v55, %v7183_v26 }
 0x515   : > { %v7238_v63 = vmul.f32 %v7231_v18, %v7204_v3 }
 0x516   : > { %v7190_v54 = vmax.f32 %v7187_v62, 0.0 }
 0x517   : > { %v7656_v32 = vrot.slane %v7238_v63, 2  ;;  %v7277_v9 = vrot.slane %v7238_v63, 3  ;;  %v8053_v61 = vrot.slane %v7238_v63, 4  ;;  %v14520_v63 = vld [vmem:[#allocation49_spill] sm:$0xff] }
 0x518   : > { %v7198_v30 = vrot.slane %v7190_v54, 6 }
 0x519   : > { %v7278_v21 = vsel %vm6765_vm8, %v7276_v19, %v7277_v9  ;;  %v7657_v5 = vsel %vm892_vm3, %v7655_v38, %v7656_v32  ;;  %v13352_v47 = vsel %vm8051_vm12, %v8052_v41, %v8053_v61  ;;  %v14522_v38 = vand.u32 4294901760, %v14521_v43 }
 0x51a   : > { %v7199_v55 = vsel %vm7194_vm11, %v7196_v25, %v7198_v30  ;;  %v13356_v0 = vand.u32 4294901760, %v7278_v21  ;;  %v13365_v50 = vand.u32 4294901760, %v7657_v5  ;;  %v14517_v25 = vld [vmem:[#allocation64_spill] sm:$0xff]  ;;  %v14524_v30 = vld [vmem:[#allocation26_spill] sm:$0xff] }
 0x51b   : > { %v7205_v49 = vadd.f32 %v7199_v55, %v14511_v51  ;;  %v14518_v7 = vand.u32 4294901760, %v14517_v25  ;;  %v8050_v51 = vld [vmem:[#allocation10 + $0x178] sm:$0xff] }
 0x51c   : > { %7429 = vmatmul.f32.vlgmr.msrb.gmra.mxu3 %v13356_v0  ;;  %v7316_v15 = vsub.f32 %v7278_v21, %v13356_v0  ;;  %v13379_v39 = vsub.f32 %v7657_v5, %v13365_v50  ;;  %v14525_v21 = vand.u32 4294901760, %v14524_v30 }
 0x51d   : > { %v7239_v12 = vmul.f32 %v7233_v13, %v7205_v49  ;;  %7876 = vmatpush.msrb.mxu3 %v14512_v6  ;;  %v14528_v49 = vld [vmem:[#allocation27_spill] sm:$0xff] }
 0x51e   : > { %7487 = vmatmul.f32.vlgmr.msra.gmra.mxu0 %v7316_v15  ;;  %v7317_v16 = vand.u32 4294901760, %v7316_v15  ;;  %v7696_v19 = vand.u32 4294901760, %v13379_v39 }
 0x51f   : > { %7878 = vmatpush.msrb.mxu3 %v14513_v46  ;;  %7923 = vmatpush.msra.mxu0 %v14515_v22  ;;  %v7279_v56 = vrot.slane %v7239_v12, 3  ;;  %v7658_v42 = vrot.slane %v7239_v12, 2  ;;  %v8055_v62 = vrot.slane %v7239_v12, 4  ;;  %v13416_v12 = vand.u32 4294901760, %v8050_v51 }
 0x520   : > { %7531 = vmatmul.f32.vlgmr.msra.gmra.mxu1 %v7317_v16  ;;  %v7318_v31 = vsub.f32 %v7316_v15, %v7317_v16  ;;  %v7697_v13 = vsub.f32 %v13379_v39, %v7696_v19  ;;  %v14529_v15 = vand.u32 4294901760, %v14528_v49 }
 0x521   : > { %7880 = vmatpush.msrb.mxu3 %v14516_v33  ;;  %7927 = vmatpush.msra.mxu0 %v14518_v7  ;;  %v7280_v18 = vsel %vm6765_vm8, %v7277_v9, %v7279_v56  ;;  %v7659_v44 = vsel %vm892_vm3, %v7656_v32, %v7658_v42  ;;  %v13391_v32 = vsel %vm8051_vm12, %v8053_v61, %v8055_v62  ;;  %v14523_v9 = vld [vmem:[#allocation50_spill] sm:$0xff]  ;;  %v14526_v61 = vand.u32 4294901760, %v13148_v8  ;;  %v8048_v56 = vld [vmem:[#allocation10 + $0x168] sm:$0xff] }
 0x522   : > { %7994 = vmatpush.msra.mxu1 %v14512_v6  ;;  %v7319_v60 = vand.u32 4294901760, %v7318_v31  ;;  %v13373_v26 = vand.u32 4294901760, %v7280_v18  ;;  %v13398_v5 = vand.u32 4294901760, %v7659_v44  ;;  %v8049_v6 = vld [vmem:[#allocation10 + $0x170] sm:$0xff]  ;;  %v7698_v16 = vand.u32 4294901760, %v7697_v13 }
 0x523   : > { %7882 = vmatpush.msrb.mxu3 %v13101_v1  ;;  %7931 = vmatpush.msra.mxu0 %v14519_v28  ;;  %v13425_v22 = vand.u32 4294901760, %v8049_v6  ;;  %v13430_v42 = vsub.f32 %v8050_v51, %v13416_v12  ;;  %v14531_v31 = vand.u32 4294901760, %v13203_v53  ;;  %v14535_v62 = vand.u32 4294901760, %v13228_v14  ;;  %v8042_v51 = vld [vmem:[#allocation10 + $0x138] sm:$0xff] }
 0x524   : > { %7996 = vmatpush.msra.mxu1 %v14513_v46  ;;  %7320 = vmatmul.f32.vlgmr.msrb.gmra.mxu2 %v7319_v60  ;;  %v7324_v3 = vsub.f32 %v7280_v18, %v13373_v26  ;;  %v14530_v46 = vand.u32 4294901760, %v13184_v4 }
 0x525   : > { %7433 = vmatmul.f32.gmra.mxu3 %v13373_v26  ;;  %7818 = vmatpush.msrb.mxu2 %v14514_v24  ;;  %v13446_v18 = vsub.f32 %v8049_v6, %v13425_v22  ;;  %v8110_v60 = vand.u32 4294901760, %v13430_v42 }
 0x526   : > { %7884 = vmatpush.msrb.mxu3 %v14520_v63  ;;  %7935 = vmatpush.msra.mxu0 %v14522_v38  ;;  %v7325_v54 = vand.u32 4294901760, %v7324_v3  ;;  %v8045_v38 = vld [vmem:[#allocation10 + $0x150] sm:$0xff] }
 0x527   : > { %7998 = vmatpush.msra.mxu1 %v14516_v33  ;;  %7492 = vmatmul.f32.gmra.mxu0 %v7324_v3  ;;  %v8047_v33 = vld [vmem:[#allocation10 + $0x160] sm:$0xff] }
 0x528   : > { %7821 = vmatpush.msrb.mxu2 %v14517_v25  ;;  %7886 = vmatpush.msrb.mxu3 %v14523_v9  ;;  %v7326_v41 = vsub.f32 %v7324_v3, %v7325_v54  ;;  %v13451_v28 = vand.u32 4294901760, %v8047_v33  ;;  %v14534_v3 = vld [vmem:[#allocation39_spill] sm:$0xff] }
 0x529   : > { %7939 = vmatpush.msra.mxu0 %v14525_v21  ;;  %8000 = vmatpush.msra.mxu1 %v13101_v1  ;;  %v14527_v1 = vld [vmem:[#allocation41_spill] sm:$0xff] }
 0x52a   : > { %7537 = vmatmul.f32.gmra.mxu1 %v7325_v54  ;;  %7824 = vmatpush.msrb.mxu2 %v13104_v36  ;;  %v7327_v55 = vand.u32 4294901760, %v7326_v41  ;;  %v13413_v36 = vsub.f32 %v7659_v44, %v13398_v5  ;;  %v8046_v44 = vld [vmem:[#allocation10 + $0x158] sm:$0xff]  ;;  %v8043_v41 = vld [vmem:[#allocation10 + $0x140] sm:$0xff] }
 0x52b   : > { %7888 = vmatpush.msrb.mxu3 %v13145_v27  ;;  %7943 = vmatpush.msra.mxu0 %v14526_v61  ;;  %v13507_v13 = vand.u32 4294901760, %v8043_v41 }
 0x52c   : > { %8002 = vmatpush.msra.mxu1 %v14520_v63  ;;  %7827 = vmatpush.msrb.mxu2 %v14521_v43  ;;  %v7704_v24 = vand.u32 4294901760, %v13413_v36  ;;  %v13461_v43 = vand.u32 4294901760, %v8046_v44 }
 0x52d   : > { %7890 = vmatpush.msrb.mxu3 %v14527_v1  ;;  %7947 = vmatpush.msra.mxu0 %v14529_v15  ;;  %v13532_v6 = vsub.f32 %v8043_v41, %v13507_v13 }
 0x52e   : > { %8004 = vmatpush.msra.mxu1 %v14523_v9  ;;  %7328 = vmatmul.f32.gmra.mxu2 %v7327_v55  ;;  %v7705_v7 = vsub.f32 %v13413_v36, %v7704_v24  ;;  %v13480_v9 = vsub.f32 %v8046_v44, %v13461_v43 }
 0x52f   : > { %7647 = vmatmul.f32.vlgmr.msra.gmra.mxu3 %v13356_v0  ;;  %7830 = vmatpush.msrb.mxu2 %v14524_v30 }
 0x530   : > { %7892 = vmatpush.msrb.mxu3 %v13179_v37  ;;  %7951 = vmatpush.msra.mxu0 %v14530_v46 }
 0x531   : > { %8006 = vmatpush.msra.mxu1 %v13145_v27  ;;  %7699 = vmatmul.f32.vlgmr.msrb.gmra.mxu0 %v7698_v16  ;;  %v13437_v27 = vand.u32 4294901760, %v8048_v56  ;;  %v8039_v16 = vld [vmem:[#allocation10 + $0x120] sm:$0xff] }
 0x532   : > { %7833 = vmatpush.msrb.mxu2 %v13148_v8  ;;  %7894 = vmatpush.msrb.mxu3 %v13194_v11  ;;  %v14532_v8 = vld [vmem:[#allocation52_spill] sm:$0xff] }
 0x533   : > { %7955 = vmatpush.msra.mxu0 %v14531_v31  ;;  %8008 = vmatpush.msra.mxu1 %v14527_v1  ;;  %v14533_v25 = vand.u32 4294901760, %v14532_v8  ;;  %v13459_v63 = vsub.f32 %v8048_v56, %v13437_v27  ;;  %v8041_v1 = vld [vmem:[#allocation10 + $0x130] sm:$0xff]  ;;  %v8152_v31 = vand.u32 4294901760, %v13532_v6 }
 0x534   : > { %7808 = vmatmul.f32.vlgmr.msrb.gmra.mxu1 %v13365_v50  ;;  %7836 = vmatpush.msrb.mxu2 %v14528_v49  ;;  %v13522_v49 = vand.u32 4294901760, %v8042_v51 }
 0x535   : > { %7896 = vmatpush.msrb.mxu3 %v13207_v34  ;;  %7959 = vmatpush.msra.mxu0 %v14533_v25  ;;  %v8122_v54 = vand.u32 4294901760, %v13459_v63 }
 0x536   : > { %8010 = vmatpush.msra.mxu1 %v13179_v37  ;;  %7839 = vmatpush.msrb.mxu2 %v13184_v4  ;;  %v7706_v37 = vand.u32 4294901760, %v7705_v7  ;;  %v8116_v4 = vand.u32 4294901760, %v13446_v18  ;;  %v13543_v46 = vsub.f32 %v8042_v51, %v13522_v49  ;;  %v8037_v7 = vld [vmem:[#allocation10 + $0x110] sm:$0xff] }
 0x537   : > { %7898 = vmatpush.msrb.mxu3 %v14534_v3  ;;  %7963 = vmatpush.msra.mxu0 %v14535_v62  ;;  %v8153_v62 = vsub.f32 %v13532_v6, %v8152_v31 }
 0x538   : > { %8012 = vmatpush.msra.mxu1 %v13194_v11  ;;  %7606 = vmatmul.f32.vlgmr.msra.gmra.mxu2 %v13356_v0  ;;  %v8111_v11 = vsub.f32 %v13430_v42, %v8110_v60  ;;  %v13473_v0 = vsub.f32 %v8047_v33, %v13451_v28  ;;  %v8038_v33 = vld [vmem:[#allocation10 + $0x118] sm:$0xff]  ;;  %v8158_v44 = vand.u32 4294901760, %v13543_v46 }
 0x539   : > { %7651 = vmatmul.f32.gmra.mxu3 %v13373_v26  ;;  %7842 = vmatpush.msrb.mxu2 %v13203_v53  ;;  %v8044_v53 = vld [vmem:[#allocation10 + $0x148] sm:$0xff] }
 0x53a   : > { %7900 = vmatpush.msrb.mxu3 %v13241_v48  ;;  %7967 = vmatpush.msra.mxu0 %v7779_v20  ;;  %v13482_v20 = vand.u32 4294901760, %v8045_v38  ;;  %v8112_v30 = vand.u32 4294901760, %v8111_v11  ;;  %v8128_v21 = vand.u32 4294901760, %v13473_v0  ;;  %v13493_v55 = vand.u32 4294901760, %v8044_v53 }
 0x53b   : > { %8014 = vmatpush.msra.mxu1 %v13207_v34  ;;  %7707 = vmatmul.f32.gmra.mxu0 %v7706_v37  ;;  %v8117_v34 = vsub.f32 %v13446_v18, %v8116_v4  ;;  %v8036_v37 = vld [vmem:[#allocation10 + $0x108] sm:$0xff]  ;;  %v8159_v41 = vsub.f32 %v13543_v46, %v8158_v44 }
 0x53c   : > { %7845 = vmatpush.msrb.mxu2 %v14532_v8  ;;  %7902 = vmatpush.msrb.mxu3 %v13265_v58  ;;  %v13505_v61 = vsub.f32 %v8045_v38, %v13482_v20  ;;  %v13557_v8 = vand.u32 4294901760, %v8039_v16  ;;  %v13595_v51 = vand.u32 4294901760, %v8036_v37 }
 0x53d   : > { %7971 = vmatpush.msra.mxu0 %v7785_v45  ;;  %8016 = vmatpush.msra.mxu1 %v14534_v3  ;;  %v8123_v45 = vsub.f32 %v13459_v63, %v8122_v54  ;;  %v13569_v3 = vand.u32 4294901760, %v8038_v33 }
 0x53e   : > { %7812 = vmatmul.f32.gmra.mxu1 %v13398_v5  ;;  %7848 = vmatpush.msrb.mxu2 %v13228_v14  ;;  %v8134_v14 = vand.u32 4294901760, %v13480_v9  ;;  %v8140_v15 = vand.u32 4294901760, %v13505_v61  ;;  %v13579_v11 = vsub.f32 %v8039_v16, %v13557_v8 }
 0x53f   : > { %7904 = vmatpush.msrb.mxu3 %v13277_v57  ;;  %7975 = vmatpush.msra.mxu0 %v7791_v29  ;;  %v13517_v29 = vsub.f32 %v8044_v53, %v13493_v55  ;;  %v13581_v53 = vand.u32 4294901760, %v8037_v7 }
 0x540   : > { %8018 = vmatpush.msra.mxu1 %v13241_v48  ;;  %7851 = vmatpush.msrb.mxu2 %v13244_v59  ;;  %v8118_v48 = vand.u32 4294901760, %v8117_v34  ;;  %v8129_v59 = vsub.f32 %v13473_v0, %v8128_v21  ;;  %v8035_v34 = vld [vmem:[#allocation10 + $0x100] sm:$0xff] }
 0x541   : > { %7906 = vmatpush.msrb.mxu3 %v13297_v35  ;;  %7979 = vmatpush.msra.mxu0 %v7797_v17  ;;  %v8135_v17 = vsub.f32 %v13480_v9, %v8134_v14 }
 0x542   : > { %8020 = vmatpush.msra.mxu1 %v13265_v58  ;;  %7610 = vmatmul.f32.gmra.mxu2 %v13373_v26  ;;  %v8124_v58 = vand.u32 4294901760, %v8123_v45  ;;  %v8040_v26 = vld [vmem:[#allocation10 + $0x128] sm:$0xff]  ;;  %v13593_v45 = vsub.f32 %v8038_v33, %v13569_v3 }
 0x543   : > { %8113 = vmatpush.msra.mxu3 %v8112_v30  ;;  %7854 = vmatpush.msrb.mxu2 %v13268_v10  ;;  %v8130_v10 = vand.u32 4294901760, %v8129_v59  ;;  %v13545_v56 = vand.u32 4294901760, %v8040_v26  ;;  %v13605_v59 = vsub.f32 %v8037_v7, %v13581_v53 }
 0x544   : > { %7910 = vmatmul.f32.vlgmr.msrb.gmra.mxu3 %v7696_v19  ;;  %7983 = vmatpush.msra.mxu0 %v7803_v40  ;;  %v13535_v19 = vand.u32 4294901760, %v8041_v1  ;;  %v8146_v40 = vand.u32 4294901760, %v13517_v29 }
 0x545   : > { %8022 = vmatpush.msra.mxu1 %v13277_v57  ;;  %8119 = vmatpush.msra.mxu3 %v8118_v48  ;;  %v8136_v57 = vand.u32 4294901760, %v8135_v17  ;;  %v8176_v48 = vand.u32 4294901760, %v13579_v11 }
 0x546   : > { %8215 = vmatpush.msrb.mxu0 %v13430_v42  ;;  %7857 = vmatpush.msrb.mxu2 %v13285_v23  ;;  %v8141_v23 = vsub.f32 %v13505_v61, %v8140_v15  ;;  %v8147_v25 = vsub.f32 %v13517_v29, %v8146_v40 }
 0x547   : > { %7985 = vmatmul.f32.vlgmr.msra.gmra.mxu0 %v13365_v50  ;;  %8024 = vmatpush.msra.mxu1 %v13297_v35  ;;  %v13555_v35 = vsub.f32 %v8041_v1, %v13535_v19  ;;  %v13607_v1 = vand.u32 4294901760, %v8035_v34 }
 0x548   : > { %8125 = vmatpush.msra.mxu3 %v8124_v58  ;;  %8218 = vmatpush.msrb.mxu0 %v13446_v18  ;;  %v8160_v58 = vand.u32 4294901760, %v8159_v41 }
 0x549   : > { %8273 = vmatpush.msrb.mxu1 %v13416_v12  ;;  %7860 = vmatpush.msrb.mxu2 %v13300_v52  ;;  %v13567_v52 = vsub.f32 %v8040_v26, %v13545_v56  ;;  %v8164_v38 = vand.u32 4294901760, %v13555_v35  ;;  %v8182_v26 = vand.u32 4294901760, %v13593_v45  ;;  %v13627_v33 = vsub.f32 %v8035_v34, %v13607_v1 }
 0x54a   : > { %8026 = vmatmul.f32.vlgmr.msra.gmra.mxu1 %v13365_v50  ;;  %8131 = vmatpush.msra.mxu3 %v8130_v10  ;;  %v8142_v50 = vand.u32 4294901760, %v8141_v23  ;;  %v13617_v10 = vsub.f32 %v8036_v37, %v13595_v51  ;;  %v8188_v23 = vand.u32 4294901760, %v13605_v59 }
 0x54b   : > { %8221 = vmatpush.msrb.mxu0 %v13459_v63  ;;  %8275 = vmatpush.msrb.mxu1 %v13425_v22  ;;  %v8170_v30 = vand.u32 4294901760, %v13567_v52  ;;  %v8200_v37 = vand.u32 4294901760, %v13627_v33 }
 0x54c   : > { %7863 = vmatpush.msrb.mxu2 %v13312_v2  ;;  %8137 = vmatpush.msra.mxu3 %v8136_v57  ;;  %v8148_v2 = vand.u32 4294901760, %v8147_v25  ;;  %v8177_v57 = vsub.f32 %v13579_v11, %v8176_v48  ;;  %v8183_v25 = vsub.f32 %v13593_v45, %v8182_v26  ;;  %v8194_v7 = vand.u32 4294901760, %v13617_v10 }
 0x54d   : > { %8224 = vmatpush.msrb.mxu0 %v13473_v0  ;;  %8277 = vmatpush.msrb.mxu1 %v13437_v27  ;;  %v8171_v17 = vsub.f32 %v13567_v52, %v8170_v30  ;;  %v8201_v41 = vsub.f32 %v13627_v33, %v8200_v37 }
 0x54e   : > { %8060 = vmatpush.msra.mxu2 %v13416_v12  ;;  %7916 = vmatmul.f32.gmra.mxu3 %v7704_v24  ;;  %v8165_v24 = vsub.f32 %v13555_v35, %v8164_v38 }
 0x54f   : > { %7866 = vmatmul.f32.vlgmr.msrb.gmra.mxu2 %v13379_v39  ;;  %8143 = vmatpush.msra.mxu3 %v8142_v50  ;;  %v8154_v39 = vand.u32 4294901760, %v8153_v62  ;;  %v8178_v50 = vand.u32 4294901760, %v8177_v57  ;;  %v8189_v62 = vsub.f32 %v13605_v59, %v8188_v23  ;;  %v8099_v57 = vand.u32 4294901760, %v13391_v32 }
 0x550   : > { %8062 = vmatpush.msra.mxu2 %v13425_v22  ;;  %8227 = vmatpush.msrb.mxu0 %v13480_v9  ;;  %v8166_v16 = vand.u32 4294901760, %v8165_v24 }
 0x551   : > { %8279 = vmatpush.msrb.mxu1 %v13451_v28  ;;  %7989 = vmatmul.f32.gmra.mxu0 %v13398_v5  ;;  %v8190_v34 = vand.u32 4294901760, %v8189_v62 }
 0x552   : > { %8064 = vmatpush.msra.mxu2 %v13437_v27  ;;  %8149 = vmatpush.msra.mxu3 %v8148_v2  ;;  %v8184_v2 = vand.u32 4294901760, %v8183_v25 }
 0x553   : > { %8230 = vmatpush.msrb.mxu0 %v13505_v61  ;;  %8281 = vmatpush.msrb.mxu1 %v13461_v43 }
 0x554   : > { %8030 = vmatmul.f32.gmra.mxu1 %v13398_v5  ;;  %8066 = vmatpush.msra.mxu2 %v13451_v28  ;;  %v8172_v5 = vand.u32 4294901760, %v8171_v17 }
 0x555   : > { %8155 = vmatpush.msra.mxu3 %v8154_v39  ;;  %8233 = vmatpush.msrb.mxu0 %v13517_v29  ;;  %v13658_v39 = vand.u32 4294901760, %v13352_v47 }
 0x556   : > { %8283 = vmatpush.msrb.mxu1 %v13482_v20  ;;  %8068 = vmatpush.msra.mxu2 %v13461_v43 }
 0x557   : > { %8161 = vmatpush.msra.mxu3 %v8160_v58  ;;  %8236 = vmatpush.msrb.mxu0 %v13532_v6  ;;  %v8202_v58 = vand.u32 4294901760, %v8201_v41  ;;  %v8092_v17 = vsub.f32 %v13352_v47, %v13658_v39 }
 0x558   : > { %8285 = vmatpush.msrb.mxu1 %v13493_v55  ;;  %7871 = vmatmul.f32.gmra.mxu2 %v13413_v36  ;;  %v8195_v36 = vsub.f32 %v13617_v10, %v8194_v7 }
 0x559   : > { %8070 = vmatpush.msra.mxu2 %v13482_v20  ;;  %8167 = vmatpush.msra.mxu3 %v8166_v16  ;;  %v8093_v16 = vand.u32 4294901760, %v8092_v17 }
 0x55a   : > { %8239 = vmatpush.msrb.mxu0 %v13543_v46  ;;  %8287 = vmatpush.msrb.mxu1 %v13507_v13  ;;  %v8196_v24 = vand.u32 4294901760, %v8195_v36 }
 0x55b   : > { %8072 = vmatpush.msra.mxu2 %v13493_v55  ;;  %8173 = vmatpush.msra.mxu3 %v8172_v5  ;;  %v8094_v47 = vsub.f32 %v8092_v17, %v8093_v16  ;;  %v8100_v5 = vsub.f32 %v13391_v32, %v8099_v57 }
 0x55c   : > { %8242 = vmatpush.msrb.mxu0 %v13555_v35  ;;  %8289 = vmatpush.msrb.mxu1 %v13522_v49 }
 0x55d   : > { %8074 = vmatpush.msra.mxu2 %v13507_v13  ;;  %8179 = vmatpush.msra.mxu3 %v8178_v50  ;;  %v8101_v25 = vand.u32 4294901760, %v8100_v5 }
 0x55e   : > { %8245 = vmatpush.msrb.mxu0 %v13567_v52  ;;  %8291 = vmatpush.msrb.mxu1 %v13535_v19 }
 0x55f   : > { %8076 = vmatpush.msra.mxu2 %v13522_v49  ;;  %8185 = vmatpush.msra.mxu3 %v8184_v2  ;;  %v8102_v32 = vsub.f32 %v8100_v5, %v8101_v25 }
 0x560   : > { %8248 = vmatpush.msrb.mxu0 %v13579_v11  ;;  %8293 = vmatpush.msrb.mxu1 %v13545_v56 }
 0x561   : > { %8078 = vmatpush.msra.mxu2 %v13535_v19  ;;  %8191 = vmatpush.msra.mxu3 %v8190_v34 }
 0x562   : > { %8251 = vmatpush.msrb.mxu0 %v13593_v45  ;;  %8295 = vmatpush.msrb.mxu1 %v13557_v8 }
 0x563   : > { %8080 = vmatpush.msra.mxu2 %v13545_v56  ;;  %8197 = vmatpush.msra.mxu3 %v8196_v24 }
 0x564   : > { %8254 = vmatpush.msrb.mxu0 %v13605_v59  ;;  %8297 = vmatpush.msrb.mxu1 %v13569_v3 }
 0x565   : > { %8082 = vmatpush.msra.mxu2 %v13557_v8  ;;  %8203 = vmatpush.msra.mxu3 %v8202_v58 }
 0x566   : > { %8257 = vmatpush.msrb.mxu0 %v13617_v10  ;;  %8299 = vmatpush.msrb.mxu1 %v13581_v53 }
 0x567   : > { %8205 = vmatmul.f32.vlgmr.msra.gmra.mxu3 %v13658_v39  ;;  %8084 = vmatpush.msra.mxu2 %v13569_v3 }
 0x568   : > { %8391 = vmatpush.msrb.mxu3 %v13416_v12  ;;  %8260 = vmatpush.msrb.mxu0 %v13627_v33  ;;  %v8095_v12 = vand.u32 4294901760, %v8094_v47 }
 0x569   : > { %8301 = vmatpush.msrb.mxu1 %v13595_v51  ;;  %8263 = vmatmul.f32.vlgmr.msrb.gmra.mxu0 %v8092_v17 }
 0x56a   : > { %8393 = vmatpush.msrb.mxu3 %v13425_v22  ;;  %8086 = vmatpush.msra.mxu2 %v13581_v53  ;;  %v8103_v22 = vand.u32 4294901760, %v8102_v32  ;;  %v8753_v32 = vld [vmem:[#allocation11 + $0x5] ss:$0 sm:$0xff] }
 0x56b   : > { %8303 = vmatpush.msrb.mxu1 %v13607_v1 }
 0x56c   : > { %8307 = vmatmul.f32.vlgmr.msrb.gmra.mxu1 %v8093_v16  ;;  %8395 = vmatpush.msrb.mxu3 %v13437_v27 }
 0x56d   : > { %8088 = vmatpush.msra.mxu2 %v13595_v51 }
 0x56e   : > { %8397 = vmatpush.msrb.mxu3 %v13451_v28 }
 0x56f   : > { %8090 = vmatpush.msra.mxu2 %v13607_v1  ;;  %8209 = vmatmul.f32.gmra.mxu3 %v8099_v57 }
 0x570   : > { %8096 = vmatmul.f32.vlgmr.msra.gmra.mxu2 %v8095_v12  ;;  %8399 = vmatpush.msrb.mxu3 %v13461_v43  ;;  %v8752_v12 = vld [vmem:[#allocation11 + $0x4] ss:$0 sm:$0xff] }
 0x571   : > { %8320 = vmatpush.msrb.mxu2 %v8110_v60  ;;  %8268 = vmatmul.f32.gmra.mxu0 %v8100_v5 }
 0x572   : > { %8401 = vmatpush.msrb.mxu3 %v13482_v20 }
 0x573   : > { %8324 = vmatpush.msrb.mxu2 %v8116_v4 }
 0x574   : > { %8313 = vmatmul.f32.gmra.mxu1 %v8101_v25  ;;  %8403 = vmatpush.msrb.mxu3 %v13493_v55 }
 0x575   : > { %8328 = vmatpush.msrb.mxu2 %v8122_v54 }
 0x576   : > { %8405 = vmatpush.msrb.mxu3 %v13507_v13 }
 0x577   : > { %8332 = vmatpush.msrb.mxu2 %v8128_v21 }
 0x578   : > { %8104 = vmatmul.f32.gmra.mxu2 %v8103_v22  ;;  %8407 = vmatpush.msrb.mxu3 %v13522_v49 }
 0x579   : > { %8336 = vmatpush.msrb.mxu2 %v8134_v14 }
 0x57a   : > { %8409 = vmatpush.msrb.mxu3 %v13535_v19 }
 0x57b   : > { %8340 = vmatpush.msrb.mxu2 %v8140_v15 }
 0x57c   : > { %8411 = vmatpush.msrb.mxu3 %v13545_v56 }
 0x57d   : > { %8344 = vmatpush.msrb.mxu2 %v8146_v40 }
 0x57e   : > { %8413 = vmatpush.msrb.mxu3 %v13557_v8 }
 0x57f   : > { %8348 = vmatpush.msrb.mxu2 %v8152_v31 }
 0x580   : > { %8415 = vmatpush.msrb.mxu3 %v13569_v3 }
 0x581   : > { %8352 = vmatpush.msrb.mxu2 %v8158_v44 }
 0x582   : > { %8417 = vmatpush.msrb.mxu3 %v13581_v53 }
 0x583   : > { %8356 = vmatpush.msrb.mxu2 %v8164_v38 }
 0x584   : > { %8419 = vmatpush.msrb.mxu3 %v13595_v51 }
 0x585   : > { %8360 = vmatpush.msrb.mxu2 %v8170_v30 }
 0x586   : > { %8421 = vmatpush.msrb.mxu3 %v13607_v1 }
 0x587   : > { %8364 = vmatpush.msrb.mxu2 %v8176_v48  ;;  %8423 = vmatmul.f32.vlgmr.msrb.gmra.mxu3 %v13658_v39 }
 0x589   : > { %8368 = vmatpush.msrb.mxu2 %v8182_v26 }
 0x58b   : > { %8372 = vmatpush.msrb.mxu2 %v8188_v23 }
 0x58d   : > { %8376 = vmatpush.msrb.mxu2 %v8194_v7 }
 0x58f   : > { %8380 = vmatpush.msrb.mxu2 %v8200_v37  ;;  %8427 = vmatmul.f32.gmra.mxu3 %v8099_v57 }
 0x590   : > { %8382 = vmatmul.f32.vlgmr.msrb.gmra.mxu2 %v13658_v39 }
 0x598   : > { %8386 = vmatmul.f32.gmra.mxu2 %v8099_v57 }
 0x59b   : > { %v7488_v18 = vpop.f32.mrf.mxu0 }
 0x59d   : > { %v7532_v63 = vpop.f32.mrf.mxu1 }
 0x59f   : > { %v7430_v42 = vpop.f32.mrf.mxu3 }
 0x5a4   : > { %v7493_v43 = vpop.f32.mrf.mxu0 }
 0x5a7   : > { %v7321_v27 = vpop.f32.mrf.mxu2  ;;  %v7538_v54 = vpop.f32.mrf.mxu1 }
 0x5a8   : > { %v7434_v60 = vpop.f32.mrf.mxu3  ;;  %v7431_v29 = vadd.f32 %v7430_v42, %v7321_v27 }
 0x5aa   : > { %v7489_v15 = vadd.f32 %v7488_v18, %v7431_v29 }
 0x5ac   : > { %v7533_v56 = vadd.f32 %v7532_v63, %v7489_v15 }
 0x5ae   : > { %v7700_v9 = vpop.f32.mrf.mxu0 }
 0x5b1   : > { %v7329_v28 = vpop.f32.mrf.mxu2  ;;  %v7809_v55 = vpop.f32.mrf.mxu1 }
 0x5b2   : > { %v7648_v4 = vpop.f32.mrf.mxu3  ;;  %v7435_v46 = vadd.f32 %v7434_v60, %v7329_v28 }
 0x5b4   : > { %v7494_v8 = vadd.f32 %v7493_v43, %v7435_v46 }
 0x5b6   : > { %v7539_v38 = vadd.f32 %v7538_v54, %v7494_v8 }
 0x5b8   : > { %v7708_v14 = vpop.f32.mrf.mxu0 }
 0x5bb   : > { %v7607_v0 = vpop.f32.mrf.mxu2  ;;  %v7813_v49 = vpop.f32.mrf.mxu1 }
 0x5bc   : > { %v7652_v20 = vpop.f32.mrf.mxu3  ;;  %v7608_v31 = vadd.f32 %v7607_v0, %v7533_v56 }
 0x5be   : > { %v7649_v44 = vadd.f32 %v7648_v4, %v7608_v31 }
 0x5c0   : > { %v7701_v30 = vadd.f32 %v7700_v9, %v7649_v44 }
 0x5c2   : > { %v7810_v48 = vadd.f32 %v7809_v55, %v7701_v30 }
 0x5c4   : > { %v7986_v6 = vpop.f32.mrf.mxu0 }
 0x5c5   : > { %v7611_v21 = vpop.f32.mrf.mxu2 }
 0x5c6   : > { %v7612_v53 = vadd.f32 %v7611_v21, %v7539_v38 }
 0x5c7   : > { %v7911_v61 = vpop.f32.mrf.mxu3  ;;  %v8027_v35 = vpop.f32.mrf.mxu1 }
 0x5c8   : > { %v7653_v51 = vadd.f32 %v7652_v20, %v7612_v53 }
 0x5ca   : > { %v7709_v33 = vadd.f32 %v7708_v14, %v7653_v51 }
 0x5cc   : > { %v7814_v37 = vadd.f32 %v7813_v49, %v7709_v33 }
 0x5ce   : > { %v7990_v11 = vpop.f32.mrf.mxu0 }
 0x5d1   : > { %v7917_v19 = vpop.f32.mrf.mxu3  ;;  %v8031_v45 = vpop.f32.mrf.mxu1 }
 0x5d2   : > { %v7867_v13 = vpop.f32.mrf.mxu2 }
 0x5d3   : > { %v7868_v59 = vadd.f32 %v7867_v13, %v7810_v48 }
 0x5d5   : > { %v7912_v7 = vadd.f32 %v7911_v61, %v7868_v59 }
 0x5d7   : > { %v7987_v2 = vadd.f32 %v7986_v6, %v7912_v7 }
 0x5d9   : > { %v8028_v47 = vadd.f32 %v8027_v35, %v7987_v2 }
 0x5db   : > { %v7872_v40 = vpop.f32.mrf.mxu2 }
 0x5dc   : > { %v7873_v36 = vadd.f32 %v7872_v40, %v7814_v37 }
 0x5de   : > { %v7918_v16 = vadd.f32 %v7917_v19, %v7873_v36 }
 0x5e0   : > { %v7991_v42 = vadd.f32 %v7990_v11, %v7918_v16 }
 0x5e2   : > { %v8032_v0 = vadd.f32 %v8031_v45, %v7991_v42 }
 0x5e6   : > { %v8264_v1 = vpop.f32.mrf.mxu0 }
 0x5e9   : > { %v8308_v62 = vpop.f32.mrf.mxu1 }
 0x5ea   : > { %v8206_v52 = vpop.f32.mrf.mxu3 }
 0x5ee   : > { %v8269_v17 = vpop.f32.mrf.mxu0 }
 0x5f1   : > { %v8314_v22 = vpop.f32.mrf.mxu1 }
 0x5f2   : > { %v8210_v10 = vpop.f32.mrf.mxu3 }
 0x5f3   : > { %v8097_v3 = vpop.f32.mrf.mxu2 }
 0x5f4   : > { %v8207_v26 = vadd.f32 %v8206_v52, %v8097_v3 }
 0x5f6   : > { %v8265_v50 = vadd.f32 %v8264_v1, %v8207_v26 }
 0x5f8   : > { %v8309_v41 = vadd.f32 %v8308_v62, %v8265_v50 }
 0x5fb   : > { %v8105_v23 = vpop.f32.mrf.mxu2 }
 0x5fc   : > { %v8211_v34 = vadd.f32 %v8210_v10, %v8105_v23 }
 0x5fe   : > { %v8270_v57 = vadd.f32 %v8269_v17, %v8211_v34 }
 0x600   : > { %v8315_v18 = vadd.f32 %v8314_v22, %v8270_v57 }
 0x60a   : > { %v8424_v39 = vpop.f32.mrf.mxu3 }
 0x612   : > { %v8428_v43 = vpop.f32.mrf.mxu3 }
 0x613   : > { %v8383_v24 = vpop.f32.mrf.mxu2 }
 0x614   : > { %v8384_v58 = vadd.f32 %v8383_v24, %v8309_v41 }
 0x616   : > { %v8425_v5 = vadd.f32 %v8424_v39, %v8384_v58 }
 0x618   : > { %v8431_v25 = vadd.f32 %v8425_v5, %v8028_v47 }
 0x61a   : > { %v8434_v27 = vmul.f32 %v8752_v12, %v8431_v25 }
 0x61b   : > { %v8387_v60 = vpop.f32.mrf.mxu2 }
 0x61c   : > { %v8437_v28 = vadd.f32 %v8753_v32, %v8434_v27  ;;  %v8388_v63 = vadd.f32 %v8387_v60, %v8315_v18 }
 0x61e   : > { %v8439_v4 = vmax.f32 %v8437_v28, 0.0  ;;  %v8429_v54 = vadd.f32 %v8428_v43, %v8388_v63 }
 0x620   : > { %8441 = vst [vmem:[%s376_s16] sm:$0xff] %v8439_v4  ;;  %v8432_v9 = vadd.f32 %v8429_v54, %v8032_v0 }
 0x622   : > { %v8435_v20 = vmul.f32 %v8752_v12, %v8432_v9 }
 0x624   : > { %v8438_v21 = vadd.f32 %v8753_v32, %v8435_v20 }
 0x626   : > { %v8440_v55 = vmax.f32 %v8438_v21, 0.0 }
 0x628   : > { %8442 = vst [vmem:[%s376_s16 + $0x8] sm:$0xff] %v8440_v55 }
 0x629 PF: > { %s22_s26 = sadd.s32 1, %s8996_s26   ;;  %s14536_s21 = smov %s8980_s22 }
 0x62a   : > { %p19_p2 = scmp.ge.s32.totalorder %s22_s26, 4   ;;  %s14537_s22 = smov %s8984_s23 }
 0x62b   : > { %s14538_s23 = smov %s9152_s12  ;;  %s14539_s24 = smov %s8992_s25 }
 0x62c   : > { %s14540_s25 = smov %s14542_s27  ;;  %21 = sbr.rel (!%p19_p2) target bundleno = 7 (0x7), region = 132 }
 0x631   :  { %8473 = vsyncpa [#allocation4], 1 }
 0x632   :  { %8475 = vsyncpa [#allocation4 + $0x1], 1 }
 0x633   :  { %8476 = vsyncpa [#allocation6], 1 }
 0x634   :  { %8477 = vsyncpa [#allocation9], 1 }
 0x635   :  { %8478 = vsyncpa [#allocation12], 1 }

</bundles_post_ra>
